<compile_context>
chip_gen: v6e
topology: v6e:2x2x1
jax: 0.10.0
libtpu: 0.0.40
codegen_flags: <defaults>
</compile_context>

<pallas_src>
import functools

import jax
import jax.numpy as jnp
from jax.experimental import pallas as pl
from jax.experimental.pallas import tpu as pltpu

LANE = 128
SUBLANE = 8


def _round_up(x, m):
    return (x + m - 1) // m * m


def _physical_vmem_bytes():
    try:
        return int(pltpu.get_tpu_info().vmem_capacity_bytes)
    except Exception:
        return 64 * 1024 * 1024          # assume the smallest (v7x) if unknown


def _estimate_vmem_bytes(th, Wp, Cp, cbytes):
    """Rough per-step VMEM footprint for tile height `th` (and acc size)."""
    x_tile = th * Wp * Cp * cbytes
    halos = 2 * (2 * Wp * Cp * cbytes)
    out_tile = th * Wp * Cp * 4
    io = 2 * (x_tile + halos + out_tile)                   # double-buffered I/O
    weights = 2 * (9 * Cp * Cp * cbytes) + 2 * (Cp * 4)    # single-buffered
    patch = (th + 4) * Wp * 3 * Cp * cbytes                # shared scratch
    acc = (th + 2) * Wp * Cp * 4                           # f32 value acc
    return io + weights + patch + 3 * acc, acc


def _pick_tile_h(H, Wp, Cp, cbytes, budget_bytes):
    """Largest H tile that fits the VMEM budget; prefer vreg-sized acc."""
    cands = [d for d in range(H, 0, -1)
             if H % d == 0 and (d % 2 == 0 or d == H)]
    for soft_acc_cap in (128 * 1024, None):
        for th in cands:
            total, acc = _estimate_vmem_bytes(th, Wp, Cp, cbytes)
            if total <= budget_bytes and (soft_acc_cap is None
                                          or acc <= soft_acc_cap):
                return th
    return cands[-1]


def _fused_resnet_block_kernel(x_ref, xtop_ref, xbot_ref,
                               w1_ref, b1_ref, w2_ref, b2_ref,
                               out_ref, patch_ref, *, w_valid):
    """One (batch, h-tile) step of the fused ResnetBlock.

    x_ref    : (1, TH, Wp, Cp)  input tile (compute dtype)
    xtop_ref : (1, 2, Wp, Cp)   two rows above the tile (garbage on tile 0)
    xbot_ref : (1, 2, Wp, Cp)   two rows below the tile (garbage on last tile)
    w*_ref   : (3, 3*Cp, Cp)    per-ky weights, kx folded onto the K axis
    b*_ref   : (1, Cp) f32
    out_ref  : (1, TH, Wp, Cp)
    patch_ref: (TH+4, Wp, 3*Cp) shared VMEM scratch (conv1 patch, then conv2)
    w_valid  : number of valid (unpadded) W columns (static Python int)
    """
    i = pl.program_id(1)
    last = pl.num_programs(1) - 1

    _, TH, Wp, Cp = x_ref.shape
    K = 3 * Cp
    R1 = TH + 4            # x rows feeding conv1
    R2 = TH + 2            # h rows produced by conv1 / consumed by conv2
    cdtype = patch_ref.dtype
    f32 = jnp.float32

    def build_patch(img):
        # img: (R, Wp, Cp). Returns (R, Wp, 3*Cp); lane-block kx holds the
        # W-zero-padded image shifted by kx-1 (kx=0 left pad, kx=2 right pad).
        zcol = jnp.zeros((img.shape[0], 1, Cp), img.dtype)
        left = jnp.concatenate([zcol, img[:, :Wp - 1, :]], axis=1)
        right = jnp.concatenate([img[:, 1:, :], zcol], axis=1)
        return jnp.concatenate([left, img, right], axis=-1)

    def conv3x3(w_ref, rows):
        # 3 MXU matmuls with K = 3*Cp, chained value accumulation (no RMW).
        m = rows * Wp
        acc = jnp.dot(patch_ref[0:rows].reshape(m, K), w_ref[0],
                      preferred_element_type=f32)
        acc = acc + jnp.dot(patch_ref[1:1 + rows].reshape(m, K), w_ref[1],
                            preferred_element_type=f32)
        acc = acc + jnp.dot(patch_ref[2:2 + rows].reshape(m, K), w_ref[2],
                            preferred_element_type=f32)
        return acc

    # ---- conv1 patch: x rows [i*TH-2, i*TH+TH+2), zero outside the image ----
    top = xtop_ref[0]
    bot = xbot_ref[0]
    x_halo = jnp.concatenate(
        [jnp.where(i > 0, top, jnp.zeros_like(top)),
         x_ref[0],
         jnp.where(i < last, bot, jnp.zeros_like(bot))], axis=0)  # (R1, Wp, Cp)
    patch_ref[...] = build_patch(x_halo)

    # ---- conv1 + bias + ReLU (f32 accumulation) over R2 = TH+2 h rows ------
    h = jnp.maximum(conv3x3(w1_ref, R2) + b1_ref[...], 0.0)       # (R2*Wp, Cp)
    h3 = h.reshape(R2, Wp, Cp)
    if w_valid != Wp:
        # Padded W columns must act as conv2's SAME zero padding.
        col = jax.lax.broadcasted_iota(jnp.int32, (R2, Wp, Cp), 1)
        h3 = jnp.where(col < w_valid, h3, 0.0)
    h3 = h3.astype(cdtype)

    # ---- conv2 patch (reuses the same scratch, first TH+2 rows) ------------
    patch_ref[0:R2] = build_patch(h3)

    # h outside the image is conv2's zero padding, not conv1(padded x):
    @pl.when(i == 0)
    def _():
        patch_ref[0:1] = jnp.zeros((1, Wp, K), cdtype)

    @pl.when(i == last)
    def _():
        patch_ref[R2 - 1:R2] = jnp.zeros((1, Wp, K), cdtype)

    # ---- conv2 + bias + residual (x re-read from its VMEM block) -----------
    y = conv3x3(w2_ref, TH) + b2_ref[...]
    y = y + x_ref[0].astype(f32).reshape(TH * Wp, Cp)
    out_ref[0] = y.reshape(TH, Wp, Cp).astype(out_ref.dtype)


def resnet_block(x_nchw, w1, b1, w2, b2, *, compute_dtype=jnp.bfloat16):
    """ResnetBlock forward.  x_nchw: (N, C, H, W) f32.  w: (C, C, 3, 3) OIHW.

    Returns (N, C, H, W) f32.  compute_dtype=jnp.float32 matches the PyTorch
    module numerics tightly; bf16 (default) halves HBM traffic.
    """
    N, C, H, W = x_nchw.shape
    if H < 2:
        raise NotImplementedError("H >= 2 required by the 2-row halo tiling")

    Cp = _round_up(C, LANE)
    Wp = _round_up(W, SUBLANE)
    cbytes = jnp.dtype(compute_dtype).itemsize

    phys_vmem = _physical_vmem_bytes()
    TH = _pick_tile_h(H, Wp, Cp, cbytes, budget_bytes=int(phys_vmem * 0.6))
    est_bytes, _ = _estimate_vmem_bytes(TH, Wp, Cp, cbytes)
    vmem_limit = int(max(min(2 * est_bytes + (8 << 20), (phys_vmem * 3) // 4),
                         16 << 20))

    # NCHW -> NHWC (channels lane-dense); pad W to a sublane multiple and C to
    # a lane multiple.  Padded x columns/channels are zero, so they behave
    # exactly like the conv's SAME zero padding and are sliced off at the end.
    x = jnp.transpose(x_nchw, (0, 2, 3, 1))
    if (Wp, Cp) != (W, C):
        x = jnp.pad(x, ((0, 0), (0, 0), (0, Wp - W), (0, Cp - C)))
    x = x.astype(compute_dtype)

    def prep_w(w):
        wk = jnp.transpose(w, (2, 3, 1, 0))                      # (ky,kx,ci,co)
        wk = jnp.pad(wk, ((0, 0), (0, 0), (0, Cp - C), (0, Cp - C)))
        return wk.reshape(3, 3 * Cp, Cp).astype(compute_dtype)   # kx folded in K

    def prep_b(b):
        return jnp.pad(b.astype(jnp.float32), (0, Cp - C)).reshape(1, Cp)

    w1k, w2k = prep_w(w1), prep_w(w2)
    b1p, b2p = prep_b(b1), prep_b(b2)

    grid = (N, H // TH)
    th2 = TH // 2
    max_hblk2 = H // 2 - 1     # last valid block index for the 2-row halo specs

    x_map = lambda n, i: (n, i, 0, 0)
    xtop_map = lambda n, i: (n, jnp.maximum(i * th2 - 1, 0), 0, 0)
    xbot_map = lambda n, i: (n, jnp.minimum((i + 1) * th2, max_hblk2), 0, 0)

    def call(single_buffer_weights):
        # Single-buffering is only safe because the weight/bias index_maps are
        # constant across the whole grid; keep that invariant.
        wkw = ({"pipeline_mode": pl.Buffered(1)} if single_buffer_weights
               else {})
        wspec = pl.BlockSpec((3, 3 * Cp, Cp), lambda n, i: (0, 0, 0), **wkw)
        bspec = pl.BlockSpec((1, Cp), lambda n, i: (0, 0), **wkw)
        return pl.pallas_call(
            functools.partial(_fused_resnet_block_kernel, w_valid=W),
            out_shape=jax.ShapeDtypeStruct((N, H, Wp, Cp), x_nchw.dtype),
            grid_spec=pltpu.PrefetchScalarGridSpec(
                num_scalar_prefetch=0,
                grid=grid,
                in_specs=[
                    pl.BlockSpec((1, TH, Wp, Cp), x_map),     # main tile
                    pl.BlockSpec((1, 2, Wp, Cp), xtop_map),   # 2-row top halo
                    pl.BlockSpec((1, 2, Wp, Cp), xbot_map),   # 2-row bottom halo
                    wspec, bspec, wspec, bspec,
                ],
                out_specs=pl.BlockSpec((1, TH, Wp, Cp), x_map),
                scratch_shapes=[
                    pltpu.VMEM((TH + 4, Wp, 3 * Cp), compute_dtype),
                ],
            ),
            compiler_params=pltpu.CompilerParams(
                dimension_semantics=("parallel", "parallel"),
                vmem_limit_bytes=vmem_limit,
            ),
        )(x, x, x, w1k, b1p, w2k, b2p)

    try:
        out = call(True)
    except Exception:
        # pl.Buffered(1) rejected on this jax version -> default buffering.
        out = call(False)

    if (Wp, Cp) != (W, C):
        out = out[:, :, :W, :C]
    return jnp.transpose(out, (0, 3, 1, 2))                       # -> NCHW


def _xavier_uniform(key, cout, cin, kh, kw):
    fan_in = cin * kh * kw
    fan_out = cout * kh * kw
    bound = (6.0 / (fan_in + fan_out)) ** 0.5
    return jax.random.uniform(key, (cout, cin, kh, kw), jnp.float32,
                              minval=-bound, maxval=bound)


def _ref_forward(x_nchw, w1, b1, w2, b2):
    """Pure-JAX reference (mirrors the PyTorch module exactly)."""
    dn = ('NCHW', 'OIHW', 'NCHW')
    h = jax.lax.conv_general_dilated(x_nchw, w1, (1, 1), 'SAME',
                                     dimension_numbers=dn)
    h = h + b1[None, :, None, None]
    h = jnp.maximum(h, 0.0)
    h = jax.lax.conv_general_dilated(h, w2, (1, 1), 'SAME',
                                     dimension_numbers=dn)
    h = h + b2[None, :, None, None]
    return x_nchw + h


if __name__ == "__main__":
    key = jax.random.PRNGKey(0)
    kx, kw1, kw2 = jax.random.split(key, 3)

    N, C, H, W = 2, 4, 16, 16
    x = jax.random.normal(kx, (N, C, H, W), jnp.float32)

    # Deterministic parameter init: xavier_uniform weights, zero biases
    # (matches the PyTorch module's __init__ scheme, not its RNG stream).
    w1 = _xavier_uniform(kw1, C, C, 3, 3)
    w2 = _xavier_uniform(kw2, C, C, 3, 3)
    b1 = jnp.zeros((C,), jnp.float32)
    b2 = jnp.zeros((C,), jnp.float32)

    ref = _ref_forward(x, w1, b1, w2, b2)

    # Exact-semantics path (f32 compute) -- tight match to the module.
    out_f32 = jax.block_until_ready(
        resnet_block(x, w1, b1, w2, b2, compute_dtype=jnp.float32))
    assert out_f32.shape == (N, C, H, W)
    assert jnp.allclose(out_f32, ref, atol=1e-4, rtol=1e-4), "f32 mismatch"

    # Fast path (bf16 operands, f32 accumulation) -- bf16-level tolerance.
    out_bf16 = jax.block_until_ready(
        resnet_block(x, w1, b1, w2, b2, compute_dtype=jnp.bfloat16))
    assert out_bf16.shape == (N, C, H, W)
    assert jnp.allclose(out_bf16, ref, atol=0.25, rtol=0.05), "bf16 mismatch"

    print("KERNEL_OK")
</pallas_src>

<mosaic_0001>
module attributes {stable_mosaic.version = 11 : i64} {
  func.func @_fused_resnet_block_kernel(%arg0: i32, %arg1: i32, %arg2: memref<1x8x16x128xf32, #tpu.memory_space<vmem>>, %arg3: memref<1x2x16x128xf32, #tpu.memory_space<vmem>>, %arg4: memref<1x2x16x128xf32, #tpu.memory_space<vmem>>, %arg5: memref<3x384x128xf32, #tpu.memory_space<vmem>>, %arg6: memref<1x128xf32, #tpu.memory_space<vmem>>, %arg7: memref<3x384x128xf32, #tpu.memory_space<vmem>>, %arg8: memref<1x128xf32, #tpu.memory_space<vmem>>, %arg9: memref<1x8x16x128xf32, #tpu.memory_space<vmem>>, %arg10: memref<12x16x384xf32, #tpu.memory_space<vmem>>) attributes {dimension_semantics = [#tpu.dimension_semantics<parallel>, #tpu.dimension_semantics<parallel>], iteration_bounds = array<i64: 2, 2>, scalar_prefetch = 0 : i64, scratch_operands = 1 : i64, tpu.core_type = #tpu.core_type<tc>, window_params = [{transform_indices = @transform_0, window_bounds = array<i64: 1, 8, 16, 128>}, {transform_indices = @transform_1, window_bounds = array<i64: 1, 2, 16, 128>}, {transform_indices = @transform_2, window_bounds = array<i64: 1, 2, 16, 128>}, {pipeline_mode = #tpu.pipeline_mode<synchronous>, transform_indices = @transform_3, window_bounds = array<i64: 3, 384, 128>}, {pipeline_mode = #tpu.pipeline_mode<synchronous>, transform_indices = @transform_4, window_bounds = array<i64: 1, 128>}, {pipeline_mode = #tpu.pipeline_mode<synchronous>, transform_indices = @transform_5, window_bounds = array<i64: 3, 384, 128>}, {pipeline_mode = #tpu.pipeline_mode<synchronous>, transform_indices = @transform_6, window_bounds = array<i64: 1, 128>}, {transform_indices = @transform_7, window_bounds = array<i64: 1, 8, 16, 128>}]} {
    %c0 = arith.constant 0 : index
    %c0_0 = arith.constant 0 : index
    %c0_1 = arith.constant 0 : index
    %c0_2 = arith.constant 0 : index
    %0 = vector.load %arg3[%c0, %c0_0, %c0_1, %c0_2] : memref<1x2x16x128xf32, #tpu.memory_space<vmem>>, vector<1x2x16x128xf32>
    %1 = vector.shape_cast %0 : vector<1x2x16x128xf32> to vector<2x16x128xf32>
    %c0_3 = arith.constant 0 : index
    %c0_4 = arith.constant 0 : index
    %c0_5 = arith.constant 0 : index
    %c0_6 = arith.constant 0 : index
    %2 = vector.load %arg4[%c0_3, %c0_4, %c0_5, %c0_6] : memref<1x2x16x128xf32, #tpu.memory_space<vmem>>, vector<1x2x16x128xf32>
    %3 = vector.shape_cast %2 : vector<1x2x16x128xf32> to vector<2x16x128xf32>
    %c0_i32 = arith.constant 0 : i32
    %4 = arith.cmpi sgt, %arg1, %c0_i32 : i32
    %cst = arith.constant 0.000000e+00 : f32
    %5 = vector.broadcast %cst : f32 to vector<2x16x128xf32>
    %6 = arith.select %4, %1, %5 : vector<2x16x128xf32>
    %c0_7 = arith.constant 0 : index
    %c0_8 = arith.constant 0 : index
    %c0_9 = arith.constant 0 : index
    %c0_10 = arith.constant 0 : index
    %7 = vector.load %arg2[%c0_7, %c0_8, %c0_9, %c0_10] : memref<1x8x16x128xf32, #tpu.memory_space<vmem>>, vector<1x8x16x128xf32>
    %8 = vector.shape_cast %7 : vector<1x8x16x128xf32> to vector<8x16x128xf32>
    %c1_i32 = arith.constant 1 : i32
    %9 = arith.cmpi slt, %arg1, %c1_i32 : i32
    %cst_11 = arith.constant 0.000000e+00 : f32
    %10 = vector.broadcast %cst_11 : f32 to vector<2x16x128xf32>
    %11 = arith.select %9, %3, %10 : vector<2x16x128xf32>
    %12 = tpu.concatenate %6, %8, %11 in 0 : vector<2x16x128xf32>, vector<8x16x128xf32>, vector<2x16x128xf32> -> vector<12x16x128xf32>
    %cst_12 = arith.constant 0.000000e+00 : f32
    %13 = vector.broadcast %cst_12 : f32 to vector<12x1x128xf32>
    %14 = vector.extract_strided_slice %12 {offsets = [0, 0, 0], sizes = [12, 15, 128], strides = [1, 1, 1]} : vector<12x16x128xf32> to vector<12x15x128xf32>
    %15 = tpu.concatenate %13, %14 in 1 : vector<12x1x128xf32>, vector<12x15x128xf32> -> vector<12x16x128xf32>
    %16 = vector.extract_strided_slice %12 {offsets = [0, 1, 0], sizes = [12, 15, 128], strides = [1, 1, 1]} : vector<12x16x128xf32> to vector<12x15x128xf32>
    %17 = tpu.concatenate %16, %13 in 1 : vector<12x15x128xf32>, vector<12x1x128xf32> -> vector<12x16x128xf32>
    %18 = tpu.concatenate %15, %12, %17 in 2 : vector<12x16x128xf32>, vector<12x16x128xf32>, vector<12x16x128xf32> -> vector<12x16x384xf32>
    %c0_13 = arith.constant 0 : index
    %c0_14 = arith.constant 0 : index
    %c0_15 = arith.constant 0 : index
    %19 = vector.load %arg10[%c0_13, %c0_14, %c0_15] : memref<12x16x384xf32, #tpu.memory_space<vmem>>, vector<12x16x384xf32>
    tpu.vector_store %arg10[%c0_13, %c0_14, %c0_15], %18 {strides = array<i32>} : memref<12x16x384xf32, #tpu.memory_space<vmem>>, vector<12x16x384xf32>,
    %c0_16 = arith.constant 0 : index
    %c0_17 = arith.constant 0 : index
    %c0_18 = arith.constant 0 : index
    %20 = vector.load %arg10[%c0_16, %c0_17, %c0_18] : memref<12x16x384xf32, #tpu.memory_space<vmem>>, vector<10x16x384xf32>
    %21 = vector.shape_cast %20 : vector<10x16x384xf32> to vector<160x384xf32>
    %c0_19 = arith.constant 0 : index
    %c0_20 = arith.constant 0 : index
    %c0_21 = arith.constant 0 : index
    %22 = vector.load %arg5[%c0_19, %c0_20, %c0_21] : memref<3x384x128xf32, #tpu.memory_space<vmem>>, vector<1x384x128xf32>
    %23 = vector.shape_cast %22 : vector<1x384x128xf32> to vector<384x128xf32>
    %cst_22 = arith.constant dense<0.000000e+00> : vector<160x128xf32>
    %24 = tpu.matmul %21, %23, %cst_22 {dimension_numbers = #tpu.dot_dimension_numbers<[1], [0], [0], [1], [0, 0, 1, 1], [], []>} : vector<160x384xf32>, vector<384x128xf32>, vector<160x128xf32> -> vector<160x128xf32>
    %c1 = arith.constant 1 : index
    %c0_23 = arith.constant 0 : index
    %c0_24 = arith.constant 0 : index
    %25 = vector.load %arg10[%c1, %c0_23, %c0_24] : memref<12x16x384xf32, #tpu.memory_space<vmem>>, vector<10x16x384xf32>
    %26 = vector.shape_cast %25 : vector<10x16x384xf32> to vector<160x384xf32>
    %c1_25 = arith.constant 1 : index
    %c0_26 = arith.constant 0 : index
    %c0_27 = arith.constant 0 : index
    %27 = vector.load %arg5[%c1_25, %c0_26, %c0_27] : memref<3x384x128xf32, #tpu.memory_space<vmem>>, vector<1x384x128xf32>
    %28 = vector.shape_cast %27 : vector<1x384x128xf32> to vector<384x128xf32>
    %cst_28 = arith.constant dense<0.000000e+00> : vector<160x128xf32>
    %29 = tpu.matmul %26, %28, %cst_28 {dimension_numbers = #tpu.dot_dimension_numbers<[1], [0], [0], [1], [0, 0, 1, 1], [], []>} : vector<160x384xf32>, vector<384x128xf32>, vector<160x128xf32> -> vector<160x128xf32>
    %30 = arith.addf %24, %29 : vector<160x128xf32>
    %c2 = arith.constant 2 : index
    %c0_29 = arith.constant 0 : index
    %c0_30 = arith.constant 0 : index
    %31 = vector.load %arg10[%c2, %c0_29, %c0_30] : memref<12x16x384xf32, #tpu.memory_space<vmem>>, vector<10x16x384xf32>
    %32 = vector.shape_cast %31 : vector<10x16x384xf32> to vector<160x384xf32>
    %c2_31 = arith.constant 2 : index
    %c0_32 = arith.constant 0 : index
    %c0_33 = arith.constant 0 : index
    %33 = vector.load %arg5[%c2_31, %c0_32, %c0_33] : memref<3x384x128xf32, #tpu.memory_space<vmem>>, vector<1x384x128xf32>
    %34 = vector.shape_cast %33 : vector<1x384x128xf32> to vector<384x128xf32>
    %cst_34 = arith.constant dense<0.000000e+00> : vector<160x128xf32>
    %35 = tpu.matmul %32, %34, %cst_34 {dimension_numbers = #tpu.dot_dimension_numbers<[1], [0], [0], [1], [0, 0, 1, 1], [], []>} : vector<160x384xf32>, vector<384x128xf32>, vector<160x128xf32> -> vector<160x128xf32>
    %36 = arith.addf %30, %35 : vector<160x128xf32>
    %c0_35 = arith.constant 0 : index
    %c0_36 = arith.constant 0 : index
    %37 = vector.load %arg6[%c0_35, %c0_36] : memref<1x128xf32, #tpu.memory_space<vmem>>, vector<1x128xf32>
    %38 = vector.broadcast %37 : vector<1x128xf32> to vector<160x128xf32>
    %39 = arith.addf %36, %38 : vector<160x128xf32>
    %cst_37 = arith.constant 0.000000e+00 : f32
    %40 = vector.broadcast %cst_37 : f32 to vector<160x128xf32>
    %41 = arith.maximumf %39, %40 : vector<160x128xf32>
    %42 = vector.shape_cast %41 : vector<160x128xf32> to vector<10x16x128xf32>
    %cst_38 = arith.constant 0.000000e+00 : f32
    %43 = vector.broadcast %cst_38 : f32 to vector<10x1x128xf32>
    %44 = vector.extract_strided_slice %42 {offsets = [0, 0, 0], sizes = [10, 15, 128], strides = [1, 1, 1]} : vector<10x16x128xf32> to vector<10x15x128xf32>
    %45 = tpu.concatenate %43, %44 in 1 : vector<10x1x128xf32>, vector<10x15x128xf32> -> vector<10x16x128xf32>
    %46 = vector.extract_strided_slice %42 {offsets = [0, 1, 0], sizes = [10, 15, 128], strides = [1, 1, 1]} : vector<10x16x128xf32> to vector<10x15x128xf32>
    %47 = tpu.concatenate %46, %43 in 1 : vector<10x15x128xf32>, vector<10x1x128xf32> -> vector<10x16x128xf32>
    %48 = tpu.concatenate %45, %42, %47 in 2 : vector<10x16x128xf32>, vector<10x16x128xf32>, vector<10x16x128xf32> -> vector<10x16x384xf32>
    %c0_39 = arith.constant 0 : index
    %c0_40 = arith.constant 0 : index
    %c0_41 = arith.constant 0 : index
    %49 = vector.load %arg10[%c0_39, %c0_40, %c0_41] : memref<12x16x384xf32, #tpu.memory_space<vmem>>, vector<10x16x384xf32>
    tpu.vector_store %arg10[%c0_39, %c0_40, %c0_41], %48 {strides = array<i32>} : memref<12x16x384xf32, #tpu.memory_space<vmem>>, vector<10x16x384xf32>,
    %c0_i32_42 = arith.constant 0 : i32
    %50 = arith.cmpi eq, %arg1, %c0_i32_42 : i32
    %51 = arith.extui %50 : i1 to i32
    %c0_i32_43 = arith.constant 0 : i32
    %52 = arith.cmpi ne, %51, %c0_i32_43 : i32
    scf.if %52 {
      %cst_77 = arith.constant 0.000000e+00 : f32
      %84 = vector.broadcast %cst_77 : f32 to vector<1x16x384xf32>
      %c0_78 = arith.constant 0 : index
      %c0_79 = arith.constant 0 : index
      %c0_80 = arith.constant 0 : index
      %85 = vector.load %arg10[%c0_78, %c0_79, %c0_80] : memref<12x16x384xf32, #tpu.memory_space<vmem>>, vector<1x16x384xf32>
      tpu.vector_store %arg10[%c0_78, %c0_79, %c0_80], %84 {strides = array<i32>} : memref<12x16x384xf32, #tpu.memory_space<vmem>>, vector<1x16x384xf32>,
    } else {
    }
    %c1_i32_44 = arith.constant 1 : i32
    %53 = arith.cmpi eq, %arg1, %c1_i32_44 : i32
    %54 = arith.extui %53 : i1 to i32
    %c0_i32_45 = arith.constant 0 : i32
    %55 = arith.cmpi ne, %54, %c0_i32_45 : i32
    scf.if %55 {
      %cst_77 = arith.constant 0.000000e+00 : f32
      %84 = vector.broadcast %cst_77 : f32 to vector<1x16x384xf32>
      %c9 = arith.constant 9 : index
      %c0_78 = arith.constant 0 : index
      %c0_79 = arith.constant 0 : index
      %85 = vector.load %arg10[%c9, %c0_78, %c0_79] : memref<12x16x384xf32, #tpu.memory_space<vmem>>, vector<1x16x384xf32>
      tpu.vector_store %arg10[%c9, %c0_78, %c0_79], %84 {strides = array<i32>} : memref<12x16x384xf32, #tpu.memory_space<vmem>>, vector<1x16x384xf32>,
    } else {
    }
    %c0_46 = arith.constant 0 : index
    %c0_47 = arith.constant 0 : index
    %c0_48 = arith.constant 0 : index
    %56 = vector.load %arg10[%c0_46, %c0_47, %c0_48] : memref<12x16x384xf32, #tpu.memory_space<vmem>>, vector<8x16x384xf32>
    %57 = vector.shape_cast %56 : vector<8x16x384xf32> to vector<128x384xf32>
    %c0_49 = arith.constant 0 : index
    %c0_50 = arith.constant 0 : index
    %c0_51 = arith.constant 0 : index
    %58 = vector.load %arg7[%c0_49, %c0_50, %c0_51] : memref<3x384x128xf32, #tpu.memory_space<vmem>>, vector<1x384x128xf32>
    %59 = vector.shape_cast %58 : vector<1x384x128xf32> to vector<384x128xf32>
    %cst_52 = arith.constant dense<0.000000e+00> : vector<128x128xf32>
    %60 = tpu.matmul %57, %59, %cst_52 {dimension_numbers = #tpu.dot_dimension_numbers<[1], [0], [0], [1], [0, 0, 1, 1], [], []>} : vector<128x384xf32>, vector<384x128xf32>, vector<128x128xf32> -> vector<128x128xf32>
    %c1_53 = arith.constant 1 : index
    %c0_54 = arith.constant 0 : index
    %c0_55 = arith.constant 0 : index
    %61 = vector.load %arg10[%c1_53, %c0_54, %c0_55] : memref<12x16x384xf32, #tpu.memory_space<vmem>>, vector<8x16x384xf32>
    %62 = vector.shape_cast %61 : vector<8x16x384xf32> to vector<128x384xf32>
    %c1_56 = arith.constant 1 : index
    %c0_57 = arith.constant 0 : index
    %c0_58 = arith.constant 0 : index
    %63 = vector.load %arg7[%c1_56, %c0_57, %c0_58] : memref<3x384x128xf32, #tpu.memory_space<vmem>>, vector<1x384x128xf32>
    %64 = vector.shape_cast %63 : vector<1x384x128xf32> to vector<384x128xf32>
    %cst_59 = arith.constant dense<0.000000e+00> : vector<128x128xf32>
    %65 = tpu.matmul %62, %64, %cst_59 {dimension_numbers = #tpu.dot_dimension_numbers<[1], [0], [0], [1], [0, 0, 1, 1], [], []>} : vector<128x384xf32>, vector<384x128xf32>, vector<128x128xf32> -> vector<128x128xf32>
    %66 = arith.addf %60, %65 : vector<128x128xf32>
    %c2_60 = arith.constant 2 : index
    %c0_61 = arith.constant 0 : index
    %c0_62 = arith.constant 0 : index
    %67 = vector.load %arg10[%c2_60, %c0_61, %c0_62] : memref<12x16x384xf32, #tpu.memory_space<vmem>>, vector<8x16x384xf32>
    %68 = vector.shape_cast %67 : vector<8x16x384xf32> to vector<128x384xf32>
    %c2_63 = arith.constant 2 : index
    %c0_64 = arith.constant 0 : index
    %c0_65 = arith.constant 0 : index
    %69 = vector.load %arg7[%c2_63, %c0_64, %c0_65] : memref<3x384x128xf32, #tpu.memory_space<vmem>>, vector<1x384x128xf32>
    %70 = vector.shape_cast %69 : vector<1x384x128xf32> to vector<384x128xf32>
    %cst_66 = arith.constant dense<0.000000e+00> : vector<128x128xf32>
    %71 = tpu.matmul %68, %70, %cst_66 {dimension_numbers = #tpu.dot_dimension_numbers<[1], [0], [0], [1], [0, 0, 1, 1], [], []>} : vector<128x384xf32>, vector<384x128xf32>, vector<128x128xf32> -> vector<128x128xf32>
    %72 = arith.addf %66, %71 : vector<128x128xf32>
    %c0_67 = arith.constant 0 : index
    %c0_68 = arith.constant 0 : index
    %73 = vector.load %arg8[%c0_67, %c0_68] : memref<1x128xf32, #tpu.memory_space<vmem>>, vector<1x128xf32>
    %74 = vector.broadcast %73 : vector<1x128xf32> to vector<128x128xf32>
    %75 = arith.addf %72, %74 : vector<128x128xf32>
    %c0_69 = arith.constant 0 : index
    %c0_70 = arith.constant 0 : index
    %c0_71 = arith.constant 0 : index
    %c0_72 = arith.constant 0 : index
    %76 = vector.load %arg2[%c0_69, %c0_70, %c0_71, %c0_72] : memref<1x8x16x128xf32, #tpu.memory_space<vmem>>, vector<1x8x16x128xf32>
    %77 = vector.shape_cast %76 : vector<1x8x16x128xf32> to vector<8x16x128xf32>
    %78 = vector.shape_cast %77 : vector<8x16x128xf32> to vector<128x128xf32>
    %79 = arith.addf %75, %78 : vector<128x128xf32>
    %80 = vector.shape_cast %79 : vector<128x128xf32> to vector<8x16x128xf32>
    %c0_73 = arith.constant 0 : index
    %c0_74 = arith.constant 0 : index
    %c0_75 = arith.constant 0 : index
    %c0_76 = arith.constant 0 : index
    %81 = vector.load %arg9[%c0_73, %c0_74, %c0_75, %c0_76] : memref<1x8x16x128xf32, #tpu.memory_space<vmem>>, vector<1x8x16x128xf32>
    %82 = vector.shape_cast %81 : vector<1x8x16x128xf32> to vector<8x16x128xf32>
    %83 = vector.shape_cast %80 : vector<8x16x128xf32> to vector<1x8x16x128xf32>
    tpu.vector_store %arg9[%c0_73, %c0_74, %c0_75, %c0_76], %83 {strides = array<i32>} : memref<1x8x16x128xf32, #tpu.memory_space<vmem>>, vector<1x8x16x128xf32>,
    return
  }
  func.func @transform_0(%arg0: i32, %arg1: i32) -> (i32, i32, i32, i32) {
    %c0_i32 = arith.constant 0 : i32
    %c0_i32_0 = arith.constant 0 : i32
    %c0_i32_1 = arith.constant 0 : i32
    return %arg0, %arg1, %c0_i32, %c0_i32_0 : i32, i32, i32, i32
  }
  func.func @transform_1(%arg0: i32, %arg1: i32) -> (i32, i32, i32, i32) {
    %c4_i32 = arith.constant 4 : i32
    %0 = arith.muli %arg1, %c4_i32 : i32
    %c1_i32 = arith.constant 1 : i32
    %1 = arith.subi %0, %c1_i32 : i32
    %c0_i32 = arith.constant 0 : i32
    %2 = arith.maxsi %1, %c0_i32 : i32
    %c0_i32_0 = arith.constant 0 : i32
    %c0_i32_1 = arith.constant 0 : i32
    %c0_i32_2 = arith.constant 0 : i32
    return %arg0, %2, %c0_i32_0, %c0_i32_1 : i32, i32, i32, i32
  }
  func.func @transform_2(%arg0: i32, %arg1: i32) -> (i32, i32, i32, i32) {
    %c1_i32 = arith.constant 1 : i32
    %0 = arith.addi %arg1, %c1_i32 : i32
    %c4_i32 = arith.constant 4 : i32
    %1 = arith.muli %0, %c4_i32 : i32
    %c7_i32 = arith.constant 7 : i32
    %2 = arith.minsi %1, %c7_i32 : i32
    %c0_i32 = arith.constant 0 : i32
    %c0_i32_0 = arith.constant 0 : i32
    %c0_i32_1 = arith.constant 0 : i32
    return %arg0, %2, %c0_i32, %c0_i32_0 : i32, i32, i32, i32
  }
  func.func @transform_3(%arg0: i32, %arg1: i32) -> (i32, i32, i32) {
    %c0_i32 = arith.constant 0 : i32
    %c0_i32_0 = arith.constant 0 : i32
    %c0_i32_1 = arith.constant 0 : i32
    %c0_i32_2 = arith.constant 0 : i32
    return %c0_i32, %c0_i32_0, %c0_i32_1 : i32, i32, i32
  }
  func.func @transform_4(%arg0: i32, %arg1: i32) -> (i32, i32) {
    %c0_i32 = arith.constant 0 : i32
    %c0_i32_0 = arith.constant 0 : i32
    %c0_i32_1 = arith.constant 0 : i32
    return %c0_i32, %c0_i32_0 : i32, i32
  }
  func.func @transform_5(%arg0: i32, %arg1: i32) -> (i32, i32, i32) {
    %c0_i32 = arith.constant 0 : i32
    %c0_i32_0 = arith.constant 0 : i32
    %c0_i32_1 = arith.constant 0 : i32
    %c0_i32_2 = arith.constant 0 : i32
    return %c0_i32, %c0_i32_0, %c0_i32_1 : i32, i32, i32
  }
  func.func @transform_6(%arg0: i32, %arg1: i32) -> (i32, i32) {
    %c0_i32 = arith.constant 0 : i32
    %c0_i32_0 = arith.constant 0 : i32
    %c0_i32_1 = arith.constant 0 : i32
    return %c0_i32, %c0_i32_0 : i32, i32
  }
  func.func @transform_7(%arg0: i32, %arg1: i32) -> (i32, i32, i32, i32) {
    %c0_i32 = arith.constant 0 : i32
    %c0_i32_0 = arith.constant 0 : i32
    %c0_i32_1 = arith.constant 0 : i32
    return %arg0, %arg1, %c0_i32, %c0_i32_0 : i32, i32, i32, i32
  }
}

module attributes {stable_mosaic.version = 11 : i64} {
  func.func @_fused_resnet_block_kernel(%arg0: i32, %arg1: i32, %arg2: memref<1x8x16x128xf32, #tpu.memory_space<vmem>>, %arg3: memref<1x2x16x128xf32, #tpu.memory_space<vmem>>, %arg4: memref<1x2x16x128xf32, #tpu.memory_space<vmem>>, %arg5: memref<3x384x128xf32, #tpu.memory_space<vmem>>, %arg6: memref<1x128xf32, #tpu.memory_space<vmem>>, %arg7: memref<3x384x128xf32, #tpu.memory_space<vmem>>, %arg8: memref<1x128xf32, #tpu.memory_space<vmem>>, %arg9: memref<1x8x16x128xf32, #tpu.memory_space<vmem>>, %arg10: memref<12x16x384xf32, #tpu.memory_space<vmem>>) attributes {dimension_semantics = [#tpu.dimension_semantics<parallel>, #tpu.dimension_semantics<parallel>], iteration_bounds = array<i64: 2, 2>, scalar_prefetch = 0 : i64, scratch_operands = 1 : i64, tpu.core_type = #tpu.core_type<tc>, window_params = [{transform_indices = @transform_0, window_bounds = array<i64: 1, 8, 16, 128>}, {transform_indices = @transform_1, window_bounds = array<i64: 1, 2, 16, 128>}, {transform_indices = @transform_2, window_bounds = array<i64: 1, 2, 16, 128>}, {pipeline_mode = #tpu.pipeline_mode<synchronous>, transform_indices = @transform_3, window_bounds = array<i64: 3, 384, 128>}, {pipeline_mode = #tpu.pipeline_mode<synchronous>, transform_indices = @transform_4, window_bounds = array<i64: 1, 128>}, {pipeline_mode = #tpu.pipeline_mode<synchronous>, transform_indices = @transform_5, window_bounds = array<i64: 3, 384, 128>}, {pipeline_mode = #tpu.pipeline_mode<synchronous>, transform_indices = @transform_6, window_bounds = array<i64: 1, 128>}, {transform_indices = @transform_7, window_bounds = array<i64: 1, 8, 16, 128>}]} {
    %c0 = arith.constant 0 : index
    %c0_0 = arith.constant 0 : index
    %c0_1 = arith.constant 0 : index
    %c0_2 = arith.constant 0 : index
    %0 = vector.load %arg3[%c0, %c0_0, %c0_1, %c0_2] : memref<1x2x16x128xf32, #tpu.memory_space<vmem>>, vector<1x2x16x128xf32>
    %1 = vector.shape_cast %0 : vector<1x2x16x128xf32> to vector<2x16x128xf32>
    %c0_3 = arith.constant 0 : index
    %c0_4 = arith.constant 0 : index
    %c0_5 = arith.constant 0 : index
    %c0_6 = arith.constant 0 : index
    %2 = vector.load %arg4[%c0_3, %c0_4, %c0_5, %c0_6] : memref<1x2x16x128xf32, #tpu.memory_space<vmem>>, vector<1x2x16x128xf32>
    %3 = vector.shape_cast %2 : vector<1x2x16x128xf32> to vector<2x16x128xf32>
    %c0_i32 = arith.constant 0 : i32
    %4 = arith.cmpi sgt, %arg1, %c0_i32 : i32
    %cst = arith.constant 0.000000e+00 : f32
    %5 = vector.broadcast %cst : f32 to vector<2x16x128xf32>
    %6 = arith.select %4, %1, %5 : vector<2x16x128xf32>
    %c0_7 = arith.constant 0 : index
    %c0_8 = arith.constant 0 : index
    %c0_9 = arith.constant 0 : index
    %c0_10 = arith.constant 0 : index
    %7 = vector.load %arg2[%c0_7, %c0_8, %c0_9, %c0_10] : memref<1x8x16x128xf32, #tpu.memory_space<vmem>>, vector<1x8x16x128xf32>
    %8 = vector.shape_cast %7 : vector<1x8x16x128xf32> to vector<8x16x128xf32>
    %c1_i32 = arith.constant 1 : i32
    %9 = arith.cmpi slt, %arg1, %c1_i32 : i32
    %cst_11 = arith.constant 0.000000e+00 : f32
    %10 = vector.broadcast %cst_11 : f32 to vector<2x16x128xf32>
    %11 = arith.select %9, %3, %10 : vector<2x16x128xf32>
    %12 = tpu.concatenate %6, %8, %11 in 0 : vector<2x16x128xf32>, vector<8x16x128xf32>, vector<2x16x128xf32> -> vector<12x16x128xf32>
    %cst_12 = arith.constant 0.000000e+00 : f32
    %13 = vector.broadcast %cst_12 : f32 to vector<12x1x128xf32>
    %14 = vector.extract_strided_slice %12 {offsets = [0, 0, 0], sizes = [12, 15, 128], strides = [1, 1, 1]} : vector<12x16x128xf32> to vector<12x15x128xf32>
    %15 = tpu.concatenate %13, %14 in 1 : vector<12x1x128xf32>, vector<12x15x128xf32> -> vector<12x16x128xf32>
    %16 = vector.extract_strided_slice %12 {offsets = [0, 1, 0], sizes = [12, 15, 128], strides = [1, 1, 1]} : vector<12x16x128xf32> to vector<12x15x128xf32>
    %17 = tpu.concatenate %16, %13 in 1 : vector<12x15x128xf32>, vector<12x1x128xf32> -> vector<12x16x128xf32>
    %18 = tpu.concatenate %15, %12, %17 in 2 : vector<12x16x128xf32>, vector<12x16x128xf32>, vector<12x16x128xf32> -> vector<12x16x384xf32>
    %c0_13 = arith.constant 0 : index
    %c0_14 = arith.constant 0 : index
    %c0_15 = arith.constant 0 : index
    %19 = vector.load %arg10[%c0_13, %c0_14, %c0_15] : memref<12x16x384xf32, #tpu.memory_space<vmem>>, vector<12x16x384xf32>
    tpu.vector_store %arg10[%c0_13, %c0_14, %c0_15], %18 {strides = array<i32>} : memref<12x16x384xf32, #tpu.memory_space<vmem>>, vector<12x16x384xf32>,
    %c0_16 = arith.constant 0 : index
    %c0_17 = arith.constant 0 : index
    %c0_18 = arith.constant 0 : index
    %20 = vector.load %arg10[%c0_16, %c0_17, %c0_18] : memref<12x16x384xf32, #tpu.memory_space<vmem>>, vector<10x16x384xf32>
    %21 = vector.shape_cast %20 : vector<10x16x384xf32> to vector<160x384xf32>
    %c0_19 = arith.constant 0 : index
    %c0_20 = arith.constant 0 : index
    %c0_21 = arith.constant 0 : index
    %22 = vector.load %arg5[%c0_19, %c0_20, %c0_21] : memref<3x384x128xf32, #tpu.memory_space<vmem>>, vector<1x384x128xf32>
    %23 = vector.shape_cast %22 : vector<1x384x128xf32> to vector<384x128xf32>
    %cst_22 = arith.constant dense<0.000000e+00> : vector<160x128xf32>
    %24 = tpu.matmul %21, %23, %cst_22 {dimension_numbers = #tpu.dot_dimension_numbers<[1], [0], [0], [1], [0, 0, 1, 1], [], []>} : vector<160x384xf32>, vector<384x128xf32>, vector<160x128xf32> -> vector<160x128xf32>
    %c1 = arith.constant 1 : index
    %c0_23 = arith.constant 0 : index
    %c0_24 = arith.constant 0 : index
    %25 = vector.load %arg10[%c1, %c0_23, %c0_24] : memref<12x16x384xf32, #tpu.memory_space<vmem>>, vector<10x16x384xf32>
    %26 = vector.shape_cast %25 : vector<10x16x384xf32> to vector<160x384xf32>
    %c1_25 = arith.constant 1 : index
    %c0_26 = arith.constant 0 : index
    %c0_27 = arith.constant 0 : index
    %27 = vector.load %arg5[%c1_25, %c0_26, %c0_27] : memref<3x384x128xf32, #tpu.memory_space<vmem>>, vector<1x384x128xf32>
    %28 = vector.shape_cast %27 : vector<1x384x128xf32> to vector<384x128xf32>
    %cst_28 = arith.constant dense<0.000000e+00> : vector<160x128xf32>
    %29 = tpu.matmul %26, %28, %cst_28 {dimension_numbers = #tpu.dot_dimension_numbers<[1], [0], [0], [1], [0, 0, 1, 1], [], []>} : vector<160x384xf32>, vector<384x128xf32>, vector<160x128xf32> -> vector<160x128xf32>
    %30 = arith.addf %24, %29 : vector<160x128xf32>
    %c2 = arith.constant 2 : index
    %c0_29 = arith.constant 0 : index
    %c0_30 = arith.constant 0 : index
    %31 = vector.load %arg10[%c2, %c0_29, %c0_30] : memref<12x16x384xf32, #tpu.memory_space<vmem>>, vector<10x16x384xf32>
    %32 = vector.shape_cast %31 : vector<10x16x384xf32> to vector<160x384xf32>
    %c2_31 = arith.constant 2 : index
    %c0_32 = arith.constant 0 : index
    %c0_33 = arith.constant 0 : index
    %33 = vector.load %arg5[%c2_31, %c0_32, %c0_33] : memref<3x384x128xf32, #tpu.memory_space<vmem>>, vector<1x384x128xf32>
    %34 = vector.shape_cast %33 : vector<1x384x128xf32> to vector<384x128xf32>
    %cst_34 = arith.constant dense<0.000000e+00> : vector<160x128xf32>
    %35 = tpu.matmul %32, %34, %cst_34 {dimension_numbers = #tpu.dot_dimension_numbers<[1], [0], [0], [1], [0, 0, 1, 1], [], []>} : vector<160x384xf32>, vector<384x128xf32>, vector<160x128xf32> -> vector<160x128xf32>
    %36 = arith.addf %30, %35 : vector<160x128xf32>
    %c0_35 = arith.constant 0 : index
    %c0_36 = arith.constant 0 : index
    %37 = vector.load %arg6[%c0_35, %c0_36] : memref<1x128xf32, #tpu.memory_space<vmem>>, vector<1x128xf32>
    %38 = vector.broadcast %37 : vector<1x128xf32> to vector<160x128xf32>
    %39 = arith.addf %36, %38 : vector<160x128xf32>
    %cst_37 = arith.constant 0.000000e+00 : f32
    %40 = vector.broadcast %cst_37 : f32 to vector<160x128xf32>
    %41 = arith.maximumf %39, %40 : vector<160x128xf32>
    %42 = vector.shape_cast %41 : vector<160x128xf32> to vector<10x16x128xf32>
    %cst_38 = arith.constant 0.000000e+00 : f32
    %43 = vector.broadcast %cst_38 : f32 to vector<10x1x128xf32>
    %44 = vector.extract_strided_slice %42 {offsets = [0, 0, 0], sizes = [10, 15, 128], strides = [1, 1, 1]} : vector<10x16x128xf32> to vector<10x15x128xf32>
    %45 = tpu.concatenate %43, %44 in 1 : vector<10x1x128xf32>, vector<10x15x128xf32> -> vector<10x16x128xf32>
    %46 = vector.extract_strided_slice %42 {offsets = [0, 1, 0], sizes = [10, 15, 128], strides = [1, 1, 1]} : vector<10x16x128xf32> to vector<10x15x128xf32>
    %47 = tpu.concatenate %46, %43 in 1 : vector<10x15x128xf32>, vector<10x1x128xf32> -> vector<10x16x128xf32>
    %48 = tpu.concatenate %45, %42, %47 in 2 : vector<10x16x128xf32>, vector<10x16x128xf32>, vector<10x16x128xf32> -> vector<10x16x384xf32>
    %c0_39 = arith.constant 0 : index
    %c0_40 = arith.constant 0 : index
    %c0_41 = arith.constant 0 : index
    %49 = vector.load %arg10[%c0_39, %c0_40, %c0_41] : memref<12x16x384xf32, #tpu.memory_space<vmem>>, vector<10x16x384xf32>
    tpu.vector_store %arg10[%c0_39, %c0_40, %c0_41], %48 {strides = array<i32>} : memref<12x16x384xf32, #tpu.memory_space<vmem>>, vector<10x16x384xf32>,
    %c0_i32_42 = arith.constant 0 : i32
    %50 = arith.cmpi eq, %arg1, %c0_i32_42 : i32
    %51 = arith.extui %50 : i1 to i32
    %c0_i32_43 = arith.constant 0 : i32
    %52 = arith.cmpi ne, %51, %c0_i32_43 : i32
    scf.if %52 {
      %cst_77 = arith.constant 0.000000e+00 : f32
      %84 = vector.broadcast %cst_77 : f32 to vector<1x16x384xf32>
      %c0_78 = arith.constant 0 : index
      %c0_79 = arith.constant 0 : index
      %c0_80 = arith.constant 0 : index
      %85 = vector.load %arg10[%c0_78, %c0_79, %c0_80] : memref<12x16x384xf32, #tpu.memory_space<vmem>>, vector<1x16x384xf32>
      tpu.vector_store %arg10[%c0_78, %c0_79, %c0_80], %84 {strides = array<i32>} : memref<12x16x384xf32, #tpu.memory_space<vmem>>, vector<1x16x384xf32>,
    } else {
    }
    %c1_i32_44 = arith.constant 1 : i32
    %53 = arith.cmpi eq, %arg1, %c1_i32_44 : i32
    %54 = arith.extui %53 : i1 to i32
    %c0_i32_45 = arith.constant 0 : i32
    %55 = arith.cmpi ne, %54, %c0_i32_45 : i32
    scf.if %55 {
      %cst_77 = arith.constant 0.000000e+00 : f32
      %84 = vector.broadcast %cst_77 : f32 to vector<1x16x384xf32>
      %c9 = arith.constant 9 : index
      %c0_78 = arith.constant 0 : index
      %c0_79 = arith.constant 0 : index
      %85 = vector.load %arg10[%c9, %c0_78, %c0_79] : memref<12x16x384xf32, #tpu.memory_space<vmem>>, vector<1x16x384xf32>
      tpu.vector_store %arg10[%c9, %c0_78, %c0_79], %84 {strides = array<i32>} : memref<12x16x384xf32, #tpu.memory_space<vmem>>, vector<1x16x384xf32>,
    } else {
    }
    %c0_46 = arith.constant 0 : index
    %c0_47 = arith.constant 0 : index
    %c0_48 = arith.constant 0 : index
    %56 = vector.load %arg10[%c0_46, %c0_47, %c0_48] : memref<12x16x384xf32, #tpu.memory_space<vmem>>, vector<8x16x384xf32>
    %57 = vector.shape_cast %56 : vector<8x16x384xf32> to vector<128x384xf32>
    %c0_49 = arith.constant 0 : index
    %c0_50 = arith.constant 0 : index
    %c0_51 = arith.constant 0 : index
    %58 = vector.load %arg7[%c0_49, %c0_50, %c0_51] : memref<3x384x128xf32, #tpu.memory_space<vmem>>, vector<1x384x128xf32>
    %59 = vector.shape_cast %58 : vector<1x384x128xf32> to vector<384x128xf32>
    %cst_52 = arith.constant dense<0.000000e+00> : vector<128x128xf32>
    %60 = tpu.matmul %57, %59, %cst_52 {dimension_numbers = #tpu.dot_dimension_numbers<[1], [0], [0], [1], [0, 0, 1, 1], [], []>} : vector<128x384xf32>, vector<384x128xf32>, vector<128x128xf32> -> vector<128x128xf32>
    %c1_53 = arith.constant 1 : index
    %c0_54 = arith.constant 0 : index
    %c0_55 = arith.constant 0 : index
    %61 = vector.load %arg10[%c1_53, %c0_54, %c0_55] : memref<12x16x384xf32, #tpu.memory_space<vmem>>, vector<8x16x384xf32>
    %62 = vector.shape_cast %61 : vector<8x16x384xf32> to vector<128x384xf32>
    %c1_56 = arith.constant 1 : index
    %c0_57 = arith.constant 0 : index
    %c0_58 = arith.constant 0 : index
    %63 = vector.load %arg7[%c1_56, %c0_57, %c0_58] : memref<3x384x128xf32, #tpu.memory_space<vmem>>, vector<1x384x128xf32>
    %64 = vector.shape_cast %63 : vector<1x384x128xf32> to vector<384x128xf32>
    %cst_59 = arith.constant dense<0.000000e+00> : vector<128x128xf32>
    %65 = tpu.matmul %62, %64, %cst_59 {dimension_numbers = #tpu.dot_dimension_numbers<[1], [0], [0], [1], [0, 0, 1, 1], [], []>} : vector<128x384xf32>, vector<384x128xf32>, vector<128x128xf32> -> vector<128x128xf32>
    %66 = arith.addf %60, %65 : vector<128x128xf32>
    %c2_60 = arith.constant 2 : index
    %c0_61 = arith.constant 0 : index
    %c0_62 = arith.constant 0 : index
    %67 = vector.load %arg10[%c2_60, %c0_61, %c0_62] : memref<12x16x384xf32, #tpu.memory_space<vmem>>, vector<8x16x384xf32>
    %68 = vector.shape_cast %67 : vector<8x16x384xf32> to vector<128x384xf32>
    %c2_63 = arith.constant 2 : index
    %c0_64 = arith.constant 0 : index
    %c0_65 = arith.constant 0 : index
    %69 = vector.load %arg7[%c2_63, %c0_64, %c0_65] : memref<3x384x128xf32, #tpu.memory_space<vmem>>, vector<1x384x128xf32>
    %70 = vector.shape_cast %69 : vector<1x384x128xf32> to vector<384x128xf32>
    %cst_66 = arith.constant dense<0.000000e+00> : vector<128x128xf32>
    %71 = tpu.matmul %68, %70, %cst_66 {dimension_numbers = #tpu.dot_dimension_numbers<[1], [0], [0], [1], [0, 0, 1, 1], [], []>} : vector<128x384xf32>, vector<384x128xf32>, vector<128x128xf32> -> vector<128x128xf32>
    %72 = arith.addf %66, %71 : vector<128x128xf32>
    %c0_67 = arith.constant 0 : index
    %c0_68 = arith.constant 0 : index
    %73 = vector.load %arg8[%c0_67, %c0_68] : memref<1x128xf32, #tpu.memory_space<vmem>>, vector<1x128xf32>
    %74 = vector.broadcast %73 : vector<1x128xf32> to vector<128x128xf32>
    %75 = arith.addf %72, %74 : vector<128x128xf32>
    %c0_69 = arith.constant 0 : index
    %c0_70 = arith.constant 0 : index
    %c0_71 = arith.constant 0 : index
    %c0_72 = arith.constant 0 : index
    %76 = vector.load %arg2[%c0_69, %c0_70, %c0_71, %c0_72] : memref<1x8x16x128xf32, #tpu.memory_space<vmem>>, vector<1x8x16x128xf32>
    %77 = vector.shape_cast %76 : vector<1x8x16x128xf32> to vector<8x16x128xf32>
    %78 = vector.shape_cast %77 : vector<8x16x128xf32> to vector<128x128xf32>
    %79 = arith.addf %75, %78 : vector<128x128xf32>
    %80 = vector.shape_cast %79 : vector<128x128xf32> to vector<8x16x128xf32>
    %c0_73 = arith.constant 0 : index
    %c0_74 = arith.constant 0 : index
    %c0_75 = arith.constant 0 : index
    %c0_76 = arith.constant 0 : index
    %81 = vector.load %arg9[%c0_73, %c0_74, %c0_75, %c0_76] : memref<1x8x16x128xf32, #tpu.memory_space<vmem>>, vector<1x8x16x128xf32>
    %82 = vector.shape_cast %81 : vector<1x8x16x128xf32> to vector<8x16x128xf32>
    %83 = vector.shape_cast %80 : vector<8x16x128xf32> to vector<1x8x16x128xf32>
    tpu.vector_store %arg9[%c0_73, %c0_74, %c0_75, %c0_76], %83 {strides = array<i32>} : memref<1x8x16x128xf32, #tpu.memory_space<vmem>>, vector<1x8x16x128xf32>,
    return
  }
  func.func @transform_0(%arg0: i32, %arg1: i32) -> (i32, i32, i32, i32) {
    %c0_i32 = arith.constant 0 : i32
    %c0_i32_0 = arith.constant 0 : i32
    %c0_i32_1 = arith.constant 0 : i32
    return %arg0, %arg1, %c0_i32, %c0_i32_0 : i32, i32, i32, i32
  }
  func.func @transform_1(%arg0: i32, %arg1: i32) -> (i32, i32, i32, i32) {
    %c4_i32 = arith.constant 4 : i32
    %0 = arith.muli %arg1, %c4_i32 : i32
    %c1_i32 = arith.constant 1 : i32
    %1 = arith.subi %0, %c1_i32 : i32
    %c0_i32 = arith.constant 0 : i32
    %2 = arith.maxsi %1, %c0_i32 : i32
    %c0_i32_0 = arith.constant 0 : i32
    %c0_i32_1 = arith.constant 0 : i32
    %c0_i32_2 = arith.constant 0 : i32
    return %arg0, %2, %c0_i32_0, %c0_i32_1 : i32, i32, i32, i32
  }
  func.func @transform_2(%arg0: i32, %arg1: i32) -> (i32, i32, i32, i32) {
    %c1_i32 = arith.constant 1 : i32
    %0 = arith.addi %arg1, %c1_i32 : i32
    %c4_i32 = arith.constant 4 : i32
    %1 = arith.muli %0, %c4_i32 : i32
    %c7_i32 = arith.constant 7 : i32
    %2 = arith.minsi %1, %c7_i32 : i32
    %c0_i32 = arith.constant 0 : i32
    %c0_i32_0 = arith.constant 0 : i32
    %c0_i32_1 = arith.constant 0 : i32
    return %arg0, %2, %c0_i32, %c0_i32_0 : i32, i32, i32, i32
  }
  func.func @transform_3(%arg0: i32, %arg1: i32) -> (i32, i32, i32) {
    %c0_i32 = arith.constant 0 : i32
    %c0_i32_0 = arith.constant 0 : i32
    %c0_i32_1 = arith.constant 0 : i32
    %c0_i32_2 = arith.constant 0 : i32
    return %c0_i32, %c0_i32_0, %c0_i32_1 : i32, i32, i32
  }
  func.func @transform_4(%arg0: i32, %arg1: i32) -> (i32, i32) {
    %c0_i32 = arith.constant 0 : i32
    %c0_i32_0 = arith.constant 0 : i32
    %c0_i32_1 = arith.constant 0 : i32
    return %c0_i32, %c0_i32_0 : i32, i32
  }
  func.func @transform_5(%arg0: i32, %arg1: i32) -> (i32, i32, i32) {
    %c0_i32 = arith.constant 0 : i32
    %c0_i32_0 = arith.constant 0 : i32
    %c0_i32_1 = arith.constant 0 : i32
    %c0_i32_2 = arith.constant 0 : i32
    return %c0_i32, %c0_i32_0, %c0_i32_1 : i32, i32, i32
  }
  func.func @transform_6(%arg0: i32, %arg1: i32) -> (i32, i32) {
    %c0_i32 = arith.constant 0 : i32
    %c0_i32_0 = arith.constant 0 : i32
    %c0_i32_1 = arith.constant 0 : i32
    return %c0_i32, %c0_i32_0 : i32, i32
  }
  func.func @transform_7(%arg0: i32, %arg1: i32) -> (i32, i32, i32, i32) {
    %c0_i32 = arith.constant 0 : i32
    %c0_i32_0 = arith.constant 0 : i32
    %c0_i32_1 = arith.constant 0 : i32
    return %arg0, %arg1, %c0_i32, %c0_i32_0 : i32, i32, i32, i32
  }
}

</mosaic_0001>

<bundles_post_ra>
// kernel: tpu_custom_call.1
= control target key start
LH: loop header
LB: loop body
LE: loop exit
PB: predicated region body
PF: predicated region fallthrough
CT: control target
= control target key end

     0   :  { %s6879_s0 = inlined_call_operand.hbm [shape: f32[2,16,16,128], index: 0, kind: input, shape index: {}]   ;;  %s6880_s1 = inlined_call_operand.hbm [shape: f32[2,16,16,128], index: 1, kind: input, shape index: {}]   ;;  %s6881_s2 = inlined_call_operand.hbm [shape: f32[2,16,16,128], index: 2, kind: input, shape index: {}]   ;;  %s6882_s3 = inlined_call_operand.hbm [shape: f32[3,384,128], index: 3, kind: input, shape index: {}]   ;;  %s6883_s4 = inlined_call_operand.vmem [shape: f32[1,128], index: 4, kind: input, shape index: {}]   ;;  %s6884_s5 = inlined_call_operand.hbm [shape: f32[3,384,128], index: 5, kind: input, shape index: {}]   ;;  %s6885_s6 = inlined_call_operand.vmem [shape: f32[1,128], index: 6, kind: input, shape index: {}]   ;;  %s6886_s7 = inlined_call_operand.hbm [shape: f32[2,16,16,128], index: 7, kind: output, shape index: {}]  }
   0x1   :  { %6909 = sst [smem:[#allocation32_spill]] %s6879_s0 }
   0x2   :  { %6910 = sst [smem:[#allocation33_spill]] %s6880_s1 }
   0x3   :  { %6911 = sst [smem:[#allocation34_spill]] %s6881_s2 }
   0x4   :  { %6912 = sst [smem:[#allocation35_spill]] %s6882_s3 }
   0x5   :  { %6913 = sst [smem:[#allocation36_spill]] %s6883_s4 }
   0x6   :  { %6914 = sst [smem:[#allocation37_spill]] %s6884_s5 }
   0x7   :  { %6915 = sst [smem:[#allocation38_spill]] %s6885_s6 }
   0x8   :  { %6916 = sst [smem:[#allocation39_spill]] %s6886_s7 }
   0x9   :  { %12 = vsyncpa [#allocation4], 0 }
   0xa   :  { %14 = vsyncpa [#allocation4 + $0x1], 0 }
   0xb   :  { %15 = vsyncpa [#allocation7], 0 }
   0xc   :  { %17 = vsyncpa [#allocation7 + $0x1], 0 }
   0xd   :  { %18 = vsyncpa [#allocation10], 0 }
   0xe   :  { %19 = vsyncpa [#allocation5], 0 }
   0xf   :  { %21 = vsyncpa [#allocation5 + $0x1], 0  ;;  %s5250_s24 = smov 0   ;;  %s5252_s25 = smov 0  }
  0x10   :  { %s5254_s26 = smov 0   ;;  %s5256_s27 = smov 0  }
  0x11   :  { %s5258_s28 = smov 0   ;;  %s5260_s29 = smov 0  }
  0x12   :  { %s5262_s30 = smov 0   ;;  %s5264_s8 = smov 0  }
  0x13   :  { %s5266_s9 = smov 0   ;;  %s5268_s10 = smov 0  }
  0x14   :  { %s5270_s11 = smov 0   ;;  %s5272_s12 = smov 0  }
  0x15   :  { %s5274_s13 = smov 0   ;;  %s5276_s14 = smov 0  }
  0x16 LB: > { %6917 = sst [smem:[#allocation18_spill]] %s5143_s24  ;;  %s5321_s15 = sadd.s32 4294967295, %s5195_s14   ;;  %s5195_s14 = sphi %s5276_s14, %s27_s14   ;;  %s5191_s13 = sphi %s5274_s13, %s6990_s13   ;;  %s5187_s12 = sphi %s5272_s12, %s6989_s12   ;;  %s5183_s11 = sphi %s5270_s11, %s6988_s11   ;;  %s5179_s10 = sphi %s5268_s10, %s6987_s10   ;;  %s5175_s9 = sphi %s5266_s9, %s6996_s9   ;;  %s5171_s8 = sphi %s5264_s8, %s6995_s8   ;;  %s5167_s30 = sphi %s5262_s30, %s6994_s30   ;;  %s5163_s29 = sphi %s5260_s29, %s6993_s29   ;;  %s5159_s28 = sphi %s5258_s28, %s6992_s28   ;;  %s5155_s27 = sphi %s5256_s27, %s6985_s27   ;;  %s5151_s26 = sphi %s5254_s26, %s6991_s26   ;;  %s5147_s25 = sphi %s5252_s25, %s6984_s25   ;;  %s5143_s24 = sphi %s5250_s24, %s6983_s24  }
  0x17   : > { %6918 = sst [smem:[#allocation19_spill]] %s5147_s25  ;;  %p3786_p0 = scmp.ge.s32.totalorder %s5195_s14, 1 }
  0x18   : > { %6919 = sst [smem:[#allocation20_spill]] %s5151_s26  ;;  %p6903_p1 = scmp.eq.s32.totalorder %s5321_s15, 0 }
  0x19   : > { %6920 = sst [smem:[#allocation21_spill]] %s5159_s28  ;;  %p256_p3 = scmp.lt.s32.totalorder %s5195_s14, 5 }
  0x1a   : > { %6921 = sst [smem:[#allocation22_spill]] %s5179_s10  ;;  %s5197_s17 = smov [#allocation9]  }
  0x1b   : > { %6922 = sst [smem:[#allocation23_spill]] %s5183_s11  ;;  %p5327_p4 = pnand %p3786_p0, %p256_p3 }
  0x1c   : > { %6923 = sst [smem:[#allocation24_spill]] %s5187_s12  ;;  %s268_s18 = sshll.u32 %s5197_s17, 4  ;;  %s269_s18 = int_to_ptr.vmem [resolvable:$true] %s268_s18 }
  0x1d   : > { %6924 = sst [smem:[#allocation25_spill]] %s5191_s13  ;;  %p4650_p5 = pneg %p5327_p4 }
  0x1e   : > { %s6925_s16 = scalar_select %p5327_p4, 1, 0 }
  0x1f   : > { %p5335_p6 = pnand %p4650_p5, %p6903_p1  ;;  %s4914_s20 = scalar_lea.vmem %s269_s18, 18432 }
  0x20   : > { %6926 = sst [smem:[#allocation26_spill]] %s6925_s16  ;;  %p4915_p8 = scmp.ne.s32.totalorder %s269_s18, %s4914_s20 }
  0x21   : > { %p4905_p7 = pneg %p5335_p6  ;;  %p4922_p11 = scmp.lt.s32.totalorder %s269_s18, %s269_s18 }
  0x22   : > { %p4923_p12 = scmp.lt.s32.totalorder %s4914_s20, %s4914_s20 }
  0x23   : > { %p4917_p9 = pnand %p4915_p8, %p4905_p7 }
  0x24   : > { %p4924_p13 = por %p4923_p12, %p4922_p11 }
  0x25   : > { %p4918_p10 = pneg %p4917_p9 }
  0x27   : > { %p4925_p0 = pnand %p4924_p13, %p4918_p10 }
  0x29   : > { %4928 = shalt.err (!%p4925_p0)
}
  0x2a   : > { %s6889_s21 = smov 128   ;;  %s6891_s22 = smov 8  }
  0x2b   : > { %s6928_s3 = sld [smem:[#allocation35_spill]]  ;;  %s36_s20 = sadd.s32 1, %s5187_s12 }
  0x2c   : > { %s39_s7 = sadd.s32 1, %s5191_s13  ;;  %p37_p3 = scmp.ge.s32.totalorder %s36_s20, 2 }
  0x2d   : > { %p6905_p5 = scmp.eq.s32.totalorder %s5195_s14, 0  ;;  %s3780_s11 = sshll.u32 %s5187_s12, 2 }
  0x2e   : > { %s84_s6 = sadd.s32 1, %s5163_s29  ;;  %s6998_s20 = smov (%p37_p3, %s36_s20), 0 }
  0x2f   : > { %6929 = sst [smem:[#allocation27_spill]] %s6998_s20  ;;  %s7000_s7 = smov (!%p37_p3, %s39_s7), %s5191_s13 }
  0x30   : > { %s44_s4 = ssub.s32 %s5187_s12, %s6998_s20  ;;  %s3781_s10 = sadd.s32 4294967295, %s3780_s11 }
  0x31   : > { %4653 = dma.hbm_to_vmem [thread:$0]  (!%p5335_p6), %s6928_s3, 18432, %s269_s18, [#allocation10], %s6889_s21, %s6889_s21, %s6891_s22  }
  0x32   : > { %p41_p8 = scmp.ge.s32.totalorder %s7000_s7, 2  ;;  %p73_p9 = scmp.gt.s32.totalorder %s3781_s10, 0 }
  0x33   : > { %s3782_s18 = sshll.u32 %s6998_s20, 2  ;;  %p91_p10 = scmp.ne.s32.totalorder %s5163_s29, %s5159_s28 }
  0x34   : > { %s7002_s7 = smov (%p41_p8, %s7000_s7), 0  ;;  %s7004_s10 = smov (!%p73_p9, %s3781_s10), 0 }
  0x35   : > { %6930 = sst [smem:[#allocation28_spill]] %s7002_s7  ;;  %s5369_s23 = ssub.s32 %s5191_s13, %s7002_s7 }
  0x36   : > { %6931 = sst [smem:[#allocation29_spill]] %s5369_s23  ;;  %s3783_s17 = sadd.s32 4294967295, %s3782_s18 }
  0x37   : > { %s5372_s21 = sor.u32 %s44_s4, %s5369_s23  ;;  %p77_p11 = scmp.gt.s32.totalorder %s3783_s17, 0 }
  0x38   : > { %p46_p12 = scmp.eq.s32.totalorder %s5372_s21, 0  ;;  %p5377_p13 = por %p91_p10, %p6905_p5 }
  0x39   : > { %s7006_s17 = smov (!%p77_p11, %s3783_s17), 0  ;;  %p97_p0 = scmp.ne.s32.totalorder %s5159_s28, %s5155_s27 }
  0x3a   : > { %s5383_s3 = sadd.s32 4, %s3780_s11  ;;  %s80_s7 = ssub.s32 %s7004_s10, %s7006_s17 }
  0x3b   : > { %s81_s4 = sor.u32 %s80_s7, %s5369_s23  ;;  %p5389_p8 = por %p97_p0, %p6903_p1 }
  0x3c   : > { %p82_p9 = scmp.eq.s32.totalorder %s81_s4, 0  ;;  %s5393_s16 = sadd.s32 4, %s3782_s18 }
  0x3d   : > { %s6933_s20 = scalar_select %p5389_p8, 1, 0 }
  0x3e   : > { %p6904_p11 = scmp.lt.s32.totalorder %s5195_s14, 4  ;;  %s5401_s11 = sshll.u32 %s5191_s13, 5 }
  0x3f   : > { %6934 = sst [smem:[#allocation30_spill]] %s6933_s20  ;;  %s325_s17 = sand.u32 1, %s5195_s14  }
  0x40   : > { %s5398_s27 = scalar_select %p82_p9, %s5163_s29, %s84_s6  }
  0x41   : > { %s327_s7 = sand.u32 1, %s5163_s29   ;;  %s3831_s2 = sshll.u32 %s7004_s10, 2 }
  0x42   : > { %6935 = sst [smem:[#allocation31_spill]] %s5398_s27  ;;  %s3795_s28 = sshll.u32 %s327_s7, 5 }
  0x43   : > { %s340_s23 = sadd.s32 %s3831_s2, %s5401_s11  ;;  %s329_s20 = scalar_lea.vmem [#allocation6], %s3795_s28 }
  0x44   : > { %s3801_s24 = sshll.u32 %s340_s23, 7  ;;  %s343_s4 = sshll.u32 %s329_s20, 4  ;;  %s344_s4 = int_to_ptr.vmem [resolvable:$true] %s343_s4 }
  0x45   : > { %s6936_s1 = sld [smem:[#allocation33_spill]]  ;;  %p5413_p0 = pnand %p6904_p11, %p5377_p13 }
  0x46   : > { %s5200_s13 = smov [#allocation11]   ;;  %s5419_s2 = scalar_lea.sflag [#allocation7], %s325_s17 }
  0x47   : > { %s284_s27 = sshll.u32 %s5200_s13, 4  ;;  %p4931_p9 = pneg %p5413_p0  ;;  %s5417_s27 = int_to_ptr.vmem [resolvable:$true] %s284_s27 }
  0x48   : > { %s4942_s28 = scalar_lea.vmem %s344_s4, 512 }
  0x49   : > { %p4943_p10 = scmp.ne.s32.totalorder %s344_s4, %s4942_s28 }
  0x4b   : > { %s342_s18 = scalar_lea.hbm %s6936_s1, %s3801_s24  ;;  %p4945_p3 = pnand %p4943_p10, %p4931_p9 }
  0x4c   : > { %s5201_s24 = smov [#allocation6]  }
  0x4d   : > { %p4946_p1 = pneg %p4945_p3  ;;  %s4947_s25 = sshll.u32 %s5201_s24, 4  ;;  %s4948_s25 = int_to_ptr.vmem [resolvable:$false] %s4947_s25 }
  0x4e   : > { %s4949_s26 = scalar_lea.vmem %s4948_s25, 1024  ;;  %p4950_p13 = scmp.lt.s32.totalorder %s344_s4, %s4948_s25 }
  0x4f   : > { %p4951_p11 = scmp.lt.s32.totalorder %s4949_s26, %s4942_s28 }
  0x51   : > { %p4952_p2 = por %p4951_p11, %p4950_p13 }
  0x53   : > { %p4953_p5 = pnand %p4952_p2, %p4946_p1 }
  0x55   : > { %4956 = shalt.err (!%p4953_p5)
}
  0x56   : > { %s6938_s10 = smov 8   ;;  %s6939_s13 = smov 128  }
  0x57   : > { %4663 = dma.hbm_to_vmem [thread:$0]  (!%p5413_p0), %s342_s18, 512, %s344_s4, %s5419_s2, %s6939_s13, %s6939_s13, %s6938_s10  }
  0x58   : > { %s4968_s22 = scalar_lea.vmem %s5417_s27, 18432  ;;  %p4976_p1 = scmp.lt.s32.totalorder %s5417_s27, %s5417_s27 }
  0x59   : > { %p4969_p3 = scmp.ne.s32.totalorder %s5417_s27, %s4968_s22  ;;  %p4977_p2 = scmp.lt.s32.totalorder %s4968_s22, %s4968_s22 }
  0x5b   : > { %p4971_p10 = pnand %p4969_p3, %p4905_p7  ;;  %p4978_p5 = por %p4977_p2, %p4976_p1 }
  0x5d   : > { %p4972_p9 = pneg %p4971_p10 }
  0x5f   : > { %p4979_p11 = pnand %p4978_p5, %p4972_p9 }
  0x61   : > { %4982 = shalt.err (!%p4979_p11)
}
  0x62   : > { %s6940_s5 = sld [smem:[#allocation37_spill]]  ;;  %s3779_s19 = sadd.s32 4294967294, %s5195_s14  }
  0x63   : > { %s48_s17 = sadd.s32 1, %s5175_s9  ;;  %p55_p7 = scmp.ne.s32.totalorder %s5175_s9, %s5171_s8 }
  0x64   : > { %s5452_s7 = scalar_select %p46_p12, %s5175_s9, %s48_s17  }
  0x65   : > { %p6941_p0 = scmp.eq.s32.totalorder %s5195_s14, 0  ;;  %p61_p3 = scmp.ne.s32.totalorder %s5171_s8, %s5167_s30 }
  0x66   : > { %p6943_p10 = scmp.eq.s32.totalorder %s5321_s15, 3  ;;  %p6945_p1 = scmp.eq.s32.totalorder %s5321_s15, 0 }
  0x67   : > { %p5456_p13 = por %p6941_p0, %p55_p7  ;;  %s301_s21 = sand.u32 1, %s5175_s9  }
  0x68   : > { %4656 = dma.hbm_to_vmem [thread:$0]  (!%p5335_p6), %s6940_s5, 18432, %s5417_s27, [#allocation10], %s6939_s13, %s6939_s13, %s6938_s10  }
  0x69   : > { %p5464_p9 = por %p6943_p10, %p55_p7  ;;  %p249_p6 = scmp.eq.s32.totalorder %s3779_s19, 3 }
  0x6a   : > { %p5470_p2 = por %p6945_p1, %p61_p3  ;;  %s3790_s28 = sshll.u32 %s301_s21, 7 }
  0x6b   : > { %s6944_s18 = scalar_select %p5464_p9, 1, 0 }
  0x6c   : > { %p5475_p12 = por %p249_p6, %p61_p3  ;;  %s3830_s24 = sshll.u32 %s5187_s12, 4 }
  0x6d   : > { %s312_s25 = sadd.s32 %s3830_s24, %s5401_s11  ;;  %s305_s22 = scalar_lea.vmem [#allocation3], %s3790_s28 }
  0x6e   : > { %s6947_s6 = scalar_select %p5475_p12, 1, 0 }
  0x6f   : > { %s3794_s26 = sshll.u32 %s312_s25, 7  ;;  %s315_s20 = sshll.u32 %s305_s22, 4  ;;  %s316_s20 = int_to_ptr.vmem [resolvable:$true] %s315_s20 }
  0x70   : > { %s6948_s0 = sld [smem:[#allocation32_spill]]  ;;  %p6949_p5 = scmp.lt.s32.totalorder %s5195_s14, 4 }
  0x71   : > { %s302_s5 = scalar_lea.sflag [#allocation4], %s301_s21  ;;  %s4996_s12 = scalar_lea.vmem %s316_s20, 2048 }
  0x72   : > { %p5488_p11 = pnand %p6949_p5, %p5456_p13  ;;  %p4997_p0 = scmp.ne.s32.totalorder %s316_s20, %s4996_s12 }
  0x73   : > { %s5202_s28 = smov [#allocation3]  }
  0x74   : > { %p4985_p7 = pneg %p5488_p11  ;;  %s5001_s24 = sshll.u32 %s5202_s28, 4  ;;  %s5002_s24 = int_to_ptr.vmem [resolvable:$false] %s5001_s24 }
  0x75   : > { %s5003_s25 = scalar_lea.vmem %s5002_s24, 4096  ;;  %p5004_p6 = scmp.lt.s32.totalorder %s316_s20, %s5002_s24 }
  0x76   : > { %s314_s19 = scalar_lea.hbm %s6948_s0, %s3794_s26  ;;  %p4999_p3 = pnand %p4997_p0, %p4985_p7 }
  0x77   : > { %p5005_p1 = scmp.lt.s32.totalorder %s5003_s25, %s4996_s12 }
  0x78   : > { %p5000_p10 = pneg %p4999_p3 }
  0x79   : > { %p5006_p12 = por %p5005_p1, %p5004_p6 }
  0x7b   : > { %p5007_p9 = pnand %p5006_p12, %p5000_p10 }
  0x7d   : > { %5010 = shalt.err (!%p5007_p9)
}
  0x7e   : > { %s6951_s4 = sld [smem:[#allocation20_spill]]  ;;  %p6955_p13 = scmp.lt.s32.totalorder %s5383_s3, 7 }
  0x7f   : > { %s6952_s21 = sld [smem:[#allocation19_spill]]  ;;  %p6956_p9 = scmp.lt.s32.totalorder %s5393_s16, 7 }
  0x80   : > { %s6953_s26 = sld [smem:[#allocation18_spill]]  ;;  %s7008_s3 = smov (!%p6955_p13, %s5383_s3), 7 }
  0x81   : > { %s6954_s22 = sld [smem:[#allocation29_spill]]  ;;  %s7010_s16 = smov (!%p6956_p9, %s5393_s16), 7 }
  0x82   : > { %4660 = dma.hbm_to_vmem [thread:$0]  (!%p5488_p11), %s314_s19, 2048, %s316_s20, %s302_s5, %s6939_s13, %s6939_s13, %s6938_s10  }
  0x83   : > { %s116_s12 = ssub.s32 %s7008_s3, %s7010_s16  ;;  %p6957_p7 = scmp.eq.s32.totalorder %s5195_s14, 0 }
  0x84   : > { %s120_s1 = sadd.s32 1, %s6951_s4  ;;  %p6959_p10 = scmp.eq.s32.totalorder %s5321_s15, 0 }
  0x85   : > { %p127_p12 = scmp.ne.s32.totalorder %s6951_s4, %s6952_s21  ;;  %s355_s20 = sand.u32 1, %s6951_s4  }
  0x86   : > { %p133_p5 = scmp.ne.s32.totalorder %s6952_s21, %s6953_s26  ;;  %s3834_s19 = sshll.u32 %s7008_s3, 2 }
  0x87   : > { %s117_s23 = sor.u32 %s116_s12, %s6954_s22  ;;  %p5513_p0 = por %p127_p12, %p6957_p7 }
  0x88   : > { %p118_p3 = scmp.eq.s32.totalorder %s117_s23, 0  ;;  %p5519_p6 = por %p133_p5, %p6959_p10 }
  0x89   : > { %s3802_s16 = sshll.u32 %s355_s20, 5  ;;  %s368_s28 = sadd.s32 %s3834_s19, %s5401_s11 }
  0x8a   : > { %s6960_s5 = scalar_select %p5519_p6, 1, 0 }
  0x8b   : > { %s7012_s4 = smov (!%p118_p3, %s6951_s4), %s120_s1  ;;  %s3807_s24 = sshll.u32 %s368_s28, 7 }
  0x8c   : > { %s6961_s26 = sld [smem:[#allocation34_spill]]  ;;  %s357_s12 = scalar_lea.vmem [#allocation8], %s3802_s16 }
  0x8d   : > { %s371_s0 = sshll.u32 %s357_s12, 4  ;;  %p6962_p11 = scmp.lt.s32.totalorder %s5195_s14, 4  ;;  %s372_s0 = int_to_ptr.vmem [resolvable:$true] %s371_s0 }
  0x8e   : > { %s5024_s3 = scalar_lea.vmem %s372_s0, 512  ;;  %s5203_s11 = smov [#allocation8]  }
  0x8f   : > { %p5535_p1 = pnand %p6962_p11, %p5513_p0  ;;  %p5025_p9 = scmp.ne.s32.totalorder %s372_s0, %s5024_s3 }
  0x90   : > { %s5029_s1 = sshll.u32 %s5203_s11, 4  ;;  %s5030_s1 = int_to_ptr.vmem [resolvable:$false] %s5029_s1 }
  0x91   : > { %p5013_p13 = pneg %p5535_p1  ;;  %s5031_s20 = scalar_lea.vmem %s5030_s1, 1024 }
  0x92   : > { %s370_s22 = scalar_lea.hbm %s6961_s26, %s3807_s24  ;;  %p5032_p7 = scmp.lt.s32.totalorder %s372_s0, %s5030_s1 }
  0x93   : > { %p5027_p12 = pnand %p5025_p9, %p5013_p13  ;;  %p5033_p3 = scmp.lt.s32.totalorder %s5031_s20, %s5024_s3 }
  0x95   : > { %p5028_p5 = pneg %p5027_p12  ;;  %p5034_p10 = por %p5033_p3, %p5032_p7 }
  0x97   : > { %p5035_p6 = pnand %p5034_p10, %p5028_p5 }
  0x99   : > { %5038 = shalt.err (!%p5035_p6)
}
  0x9a   : > { %4666 = dma.hbm_to_vmem [thread:$0]  (!%p5535_p1), %s370_s22, 512, %s372_s0, %s5419_s2, %s6939_s13, %s6939_s13, %s6938_s10  }
  0x9b   : > { %383 = sbr.rel (%p5327_p4) target bundleno = 1101 (0x44d), region = 48  ;;  %s5550_s19 = sand.u32 (!%p5327_p4), 1, %s5171_s8  }
  0x9c   : > { %s3809_s16 = sshll.u32 (!%p5327_p4), %s5550_s19, 7  ;;  %s386_s28 = scalar_lea.sflag (!%p5327_p4), [#allocation4], %s5550_s19 }
  0x9d   : > { %s5556_s24 = scalar_lea.vmem (!%p5327_p4), [#allocation3], %s3809_s16 }
  0xa0   : > { %5122 = dma.done.wait (%p5470_p2), %s386_s28, 2048  }
  0xa1   : > { %5124 = vsyncadd (%p5470_p2), %s386_s28, 4294965248  ;;  %s6965_s0 = sld [smem:[#allocation21_spill]]  ;;  %s394_s10 = sand.u32 1, %s5321_s15  }
  0xa2   : > { %s395_s21 = scalar_lea.sflag [#allocation7], %s394_s10 }
  0xa7   : > { %s396_s13 = sand.u32 1, %s6965_s0  }
  0xa8   : > { %s3810_s25 = sshll.u32 %s396_s13, 5 }
  0xa9   : > { %s5564_s26 = scalar_lea.vmem [#allocation6], %s3810_s25 }
  0xaa   : > { %5126 = dma.done.wait (%p5389_p8), %s395_s21, 512  }
  0xab   : > { %5128 = vsyncadd (%p5389_p8), %s395_s21, 4294966784  ;;  %s6967_s22 = sld [smem:[#allocation19_spill]]  ;;  %p6968_p4 = scmp.ne.s32.totalorder %s6960_s5, 0 }
  0xb1   : > { %s405_s12 = sand.u32 1, %s6967_s22  }
  0xb2   : > { %s3811_s23 = sshll.u32 %s405_s12, 5 }
  0xb3   : > { %s5571_s27 = scalar_lea.vmem [#allocation8], %s3811_s23 }
  0xb4   : > { %5130 = dma.done.wait (%p6968_p4), %s395_s21, 512  }
  0xb5   : > { %5132 = vsyncadd (%p6968_p4), %s395_s21, 4294966784  ;;  %p6969_p2 = scmp.eq.s32.totalorder %s5321_s15, 0 }
  0xb7   : > { %5134 = dma.done.wait (%p6969_p2), [#allocation10], 36864   ;;  %p6970_p0 = pmov %p6969_p2 }
  0xb8   : > { %s6971_s3 = sld [smem:[#allocation22_spill]]  ;;  %v5204_v0 = vmov 0.0   ;;  %v935_v1 = vld [vmem:[#allocation9 + $0x1f8] sm:$0xff]  ;;  %v934_v3 = vld [vmem:[#allocation9 + $0x1f0] sm:$0xff]  ;;  %v933_v5 = vld [vmem:[#allocation9 + $0x1e8] sm:$0xff]  ;;  %vm605_vm0 = vcmask 1046528  }
  0xb9   : > { %5136 = vsyncadd (%p6970_p0), [#allocation10], 4294930432  ;;  %968 = vmatprep.subr.mxu0 %v5204_v0  ;;  %v967_v2 = vld [vmem:[#allocation9 + $0x2f8] sm:$0xff]  ;;  %v966_v4 = vld [vmem:[#allocation9 + $0x2f0] sm:$0xff]  ;;  %vm532_vm1 = vcmask 1040384   ;;  %s6974_s20 = sld [smem:[#allocation36_spill]] }
  0xba   : > { %969 = vmatpush1.msra.mxu0 %v935_v1  ;;  %4280 = vmatprep.subr.mxu1 %v967_v2  ;;  %v965_v6 = vld [vmem:[#allocation9 + $0x2e8] sm:$0xff]  ;;  %v932_v7 = vld [vmem:[#allocation9 + $0x1e0] sm:$0xff]  ;;  %v931_v9 = vld [vmem:[#allocation9 + $0x1d8] sm:$0xff]  ;;  %s6374_s17 = scalar_lea.vmem [#allocation12], %s3809_s16 }
  0xbb   : > { %970 = vmatprep.subr.mxu0 %v5204_v0  ;;  %4281 = vmatpush3.msra.mxu1 %v967_v2  ;;  %v964_v8 = vld [vmem:[#allocation9 + $0x2e0] sm:$0xff]  ;;  %v963_v10 = vld [vmem:[#allocation9 + $0x2d8] sm:$0xff]  ;;  %v930_v11 = vld [vmem:[#allocation9 + $0x1d0] sm:$0xff] }
  0xbc   : > { %971 = vmatpush1.msra.mxu0 %v934_v3  ;;  %4282 = vmatprep.subr.mxu1 %v966_v4  ;;  %v962_v12 = vld [vmem:[#allocation9 + $0x2d0] sm:$0xff]  ;;  %v929_v13 = vld [vmem:[#allocation9 + $0x1c8] sm:$0xff]  ;;  %v928_v18 = vld [vmem:[#allocation9 + $0x1c0] sm:$0xff] }
  0xbd   : > { %972 = vmatprep.subr.mxu0 %v5204_v0  ;;  %4283 = vmatpush3.msra.mxu1 %v966_v4  ;;  %v961_v14 = vld [vmem:[#allocation9 + $0x2c8] sm:$0xff]  ;;  %v960_v19 = vld [vmem:[#allocation9 + $0x2c0] sm:$0xff]  ;;  %v927_v21 = vld [vmem:[#allocation9 + $0x1b8] sm:$0xff] }
  0xbe   : > { %p476_p8 = scmp.gt.s32.totalorder %s6971_s3, 0  ;;  %p500_p6 = scmp.lt.s32.totalorder %s6971_s3, 1  ;;  %973 = vmatpush1.msra.mxu0 %v933_v5  ;;  %4284 = vmatprep.subr.mxu1 %v965_v6  ;;  %v959_v22 = vld [vmem:[#allocation9 + $0x2b8] sm:$0xff]  ;;  %v926_v25 = vld [vmem:[#allocation9 + $0x1b0] sm:$0xff]  ;;  %v925_v27 = vld [vmem:[#allocation9 + $0x1a8] sm:$0xff] }
  0xbf   : > { %974 = vmatprep.subr.mxu0 %v5204_v0  ;;  %4285 = vmatpush3.msra.mxu1 %v965_v6  ;;  %v958_v26 = vld [vmem:[#allocation9 + $0x2b0] sm:$0xff]  ;;  %v957_v28 = vld [vmem:[#allocation9 + $0x2a8] sm:$0xff]  ;;  %v924_v29 = vld [vmem:[#allocation9 + $0x1a0] sm:$0xff]  ;;  %p3816_p11 = scmp.ne.s32.totalorder %s6971_s3, 0 }
  0xc0   : > { %s5589_s15 = scalar_select %p476_p8, 255, 0  ;;  %975 = vmatpush1.msra.mxu0 %v932_v7  ;;  %4286 = vmatprep.subr.mxu1 %v964_v8  ;;  %v956_v30 = vld [vmem:[#allocation9 + $0x2a0] sm:$0xff]  ;;  %v5621_v32 = vld [vmem:[%s5556_s24 + $0x8] sm:$0xff]  ;;  %v923_v33 = vld [vmem:[#allocation9 + $0x198] sm:$0xff] }
  0xc1   : > { %976 = vmatprep.subr.mxu0 %v5204_v0  ;;  %4287 = vmatpush3.msra.mxu1 %v964_v8  ;;  %v5618_v31 = vld [vmem:[%s5556_s24] sm:$0xff]  ;;  %v5625_v35 = vrot.slane %v5621_v32, 1  ;;  %694 = vst [vmem:[#allocation2 + $0x180] sm:$0xff] %v5621_v32  ;;  %v955_v37 = vld [vmem:[#allocation9 + $0x298] sm:$0xff]  ;;  %v5634_v38 = vld [vmem:[%s5556_s24 + $0x10] sm:$0xff]  ;;  %v540_v40 = vrot.slane %v5621_v32, 7 }
  0xc2   : > { %977 = vmatpush1.msra.mxu0 %v931_v9  ;;  %4288 = vmatprep.subr.mxu1 %v963_v10  ;;  %v5595_v15 = vld [vmem:[%s5564_s26 + $0x10] sm:%s5589_s15]  ;;  %v5599_v16 = vld [vmem:[%s5564_s26 + $0x18] sm:%s5589_s15]  ;;  %v612_v34 = vrot.slane %v5618_v31, 1  ;;  %691 = vst [vmem:[#allocation2 + $0x110] sm:$0xff] %v5618_v31  ;;  %v5630_v36 = vrot.slane %v5618_v31, 7  ;;  %v615_v43 = vrot.slane %v5634_v38, 1  ;;  %vm5871_vm2 = vmneg %vm532_vm1 }
  0xc3   : > { %978 = vmatprep.subr.mxu0 %v5204_v0  ;;  %4289 = vmatpush3.msra.mxu1 %v963_v10  ;;  %v609_v17 = vrot.slane %v5595_v15, 1  ;;  %v5604_v20 = vrot.slane %v5599_v16, 1  ;;  %v5637_v39 = vld [vmem:[%s5556_s24 + $0x18] sm:$0xff]  ;;  %v668_v42 = vsel %vm605_vm0, %v5625_v35, 0.0  ;;  %697 = vst [vmem:[#allocation2 + $0x1c0] sm:$0xff] %v5634_v38  ;;  %v5653_v45 = vld [vmem:[%s5556_s24 + $0x20] sm:$0xff] }
  0xc4   : > { %979 = vmatpush1.msra.mxu0 %v930_v11  ;;  %4290 = vmatprep.subr.mxu1 %v962_v12  ;;  %v5642_v41 = vsel %vm605_vm0, %v612_v34, %v5625_v35  ;;  %v5648_v44 = vrot.slane %v5637_v39, 1  ;;  %700 = vst [vmem:[#allocation2 + $0x60] sm:$0xff] %v5637_v39  ;;  %s5657_s5 = scalar_select %p500_p6, 255, 0  ;;  %v922_v46 = vld [vmem:[#allocation9 + $0x190] sm:$0xff]  ;;  %695 = vst [vmem:[#allocation2 + $0x190] sm:$0xff] %v668_v42  ;;  %v5670_v51 = vsel %vm532_vm1, %v5630_v36, %v540_v40 }
  0xc5   : > { %980 = vmatprep.subr.mxu0 %v5204_v0  ;;  %4291 = vmatpush3.msra.mxu1 %v962_v12  ;;  %v5609_v23 = vsel %vm605_vm0, %v609_v17, %v5604_v20  ;;  %v667_v24 = vsel %vm605_vm0, %v5604_v20, 0.0  ;;  %v954_v47 = vld [vmem:[#allocation9 + $0x290] sm:$0xff]  ;;  %692 = vst [vmem:[#allocation2 + $0x1f8] sm:$0xff] %v5642_v41  ;;  %v5662_v48 = vld [vmem:[%s5556_s24 + $0x28] sm:$0xff]  ;;  %v618_v49 = vrot.slane %v5653_v45, 1  ;;  %703 = vst [vmem:[#allocation2] sm:$0xff] %v5653_v45 }
  0xc6   : > { %981 = vmatpush1.msra.mxu0 %v929_v13  ;;  %4292 = vmatprep.subr.mxu1 %v961_v14  ;;  %686 = vst [vmem:[#allocation2 + $0xd8] sm:$0xff] %v5609_v23  ;;  %689 = vst [vmem:[#allocation2 + $0x158] sm:$0xff] %v667_v24  ;;  %v595_v50 = vsel %vm532_vm1, 0.0, %v5630_v36  ;;  %v5673_v52 = vrot.slane %v5634_v38, 7  ;;  %v921_v53 = vld [vmem:[#allocation9 + $0x188] sm:$0xff]  ;;  %v5677_v54 = vsel %vm605_vm0, %v615_v43, %v5648_v44  ;;  %v669_v55 = vsel %vm605_vm0, %v5648_v44, 0.0 }
  0xc7   : > { %982 = vmatprep.subr.mxu0 %v5204_v0  ;;  %4293 = vmatpush3.msra.mxu1 %v961_v14  ;;  %v5682_v56 = vrot.slane %v5662_v48, 1  ;;  %706 = vst [vmem:[#allocation2 + $0x1a8] sm:$0xff] %v5662_v48  ;;  %v5686_v57 = vld [vmem:[%s5556_s24 + $0x30] sm:$0xff]  ;;  %v5689_v58 = vld [vmem:[%s5556_s24 + $0x38] sm:$0xff]  ;;  %690 = vst [vmem:[#allocation2 + $0x108] sm:$0xff] %v595_v50 }
  0xc8   : > { %983 = vmatpush1.msra.mxu0 %v928_v18  ;;  %4294 = vmatprep.subr.mxu1 %v960_v19  ;;  %693 = vst [vmem:[#allocation2 + $0xb8] sm:$0xff] %v5670_v51  ;;  %v953_v59 = vld [vmem:[#allocation9 + $0x288] sm:$0xff]  ;;  %698 = vst [vmem:[#allocation2 + $0xd0] sm:$0xff] %v5677_v54  ;;  %v621_v60 = vrot.slane %v5686_v57, 1  ;;  %v5696_v61 = vrot.slane %v5689_v58, 1  ;;  %v5701_v62 = vld [vmem:[%s5556_s24 + $0x40] sm:$0xff] }
  0xc9   : > { %984 = vmatprep.subr.mxu0 %v5204_v0  ;;  %4295 = vmatpush3.msra.mxu1 %v960_v19  ;;  %701 = vst [vmem:[#allocation2 + $0x1b8] sm:$0xff] %v669_v55  ;;  %709 = vst [vmem:[#allocation2 + $0x1c8] sm:$0xff] %v5686_v57  ;;  %v5704_v63 = vld [vmem:[%s5556_s24 + $0x48] sm:$0xff]  ;;  %v596_v1 = vsel %vm532_vm1, 0.0, %v5673_v52  ;;  %v5710_v2 = vsel %vm605_vm0, %v618_v49, %v5682_v56  ;;  %v670_v3 = vsel %vm605_vm0, %v5682_v56, 0.0  ;;  %v624_v4 = vrot.slane %v5701_v62, 1 }
  0xca   : > { %985 = vmatpush1.msra.mxu0 %v927_v21  ;;  %4296 = vmatprep.subr.mxu1 %v959_v22  ;;  %712 = vst [vmem:[#allocation2 + $0x78] sm:$0xff] %v5689_v58  ;;  %v5716_v5 = vrot.slane %v5704_v63, 1  ;;  %715 = vst [vmem:[#allocation2 + $0xe0] sm:$0xff] %v5701_v62  ;;  %v5721_v6 = vld [vmem:[%s5556_s24 + $0x50] sm:$0xff]  ;;  %v920_v7 = vld [vmem:[#allocation9 + $0x180] sm:$0xff]  ;;  %v5727_v9 = vsel %vm605_vm0, %v621_v60, %v5696_v61  ;;  %v671_v10 = vsel %vm605_vm0, %v5696_v61, 0.0 }
  0xcb   : > { %986 = vmatprep.subr.mxu0 %v5204_v0  ;;  %4297 = vmatpush3.msra.mxu1 %v959_v22  ;;  %718 = vst [vmem:[#allocation2 + $0x48] sm:$0xff] %v5704_v63  ;;  %696 = vst [vmem:[#allocation2 + $0x140] sm:$0xff] %v596_v1  ;;  %v952_v8 = vld [vmem:[#allocation9 + $0x280] sm:$0xff]  ;;  %v5732_v11 = vld [vmem:[%s5556_s24 + $0x58] sm:$0xff]  ;;  %v627_v12 = vrot.slane %v5721_v6, 1 }
  0xcc   : > { %987 = vmatpush1.msra.mxu0 %v926_v25  ;;  %4298 = vmatprep.subr.mxu1 %v958_v26  ;;  %704 = vst [vmem:[#allocation2 + $0x188] sm:$0xff] %v5710_v2  ;;  %707 = vst [vmem:[#allocation2 + $0x220] sm:$0xff] %v670_v3  ;;  %v5739_v13 = vsel %vm605_vm0, %v624_v4, %v5716_v5  ;;  %v672_v14 = vsel %vm605_vm0, %v5716_v5, 0.0  ;;  %v5744_v17 = vrot.slane %v5732_v11, 1  ;;  %v5748_v18 = vld [vmem:[%s5556_s24 + $0x60] sm:$0xff]  ;;  %v5751_v19 = vld [vmem:[%s5556_s24 + $0x68] sm:$0xff] }
  0xcd   : > { %988 = vmatprep.subr.mxu0 %v5204_v0  ;;  %4299 = vmatpush3.msra.mxu1 %v958_v26  ;;  %721 = vst [vmem:[#allocation2 + $0x160] sm:$0xff] %v5721_v6  ;;  %710 = vst [vmem:[#allocation2 + $0x80] sm:$0xff] %v5727_v9  ;;  %v951_v21 = vld [vmem:[#allocation9 + $0x278] sm:$0xff]  ;;  %v630_v22 = vrot.slane %v5748_v18, 1  ;;  %v5757_v24 = vrot.slane %v5751_v19, 1  ;;  %v5762_v25 = vld [vmem:[%s5556_s24 + $0x70] sm:$0xff] }
  0xce   : > { %989 = vmatpush1.msra.mxu0 %v925_v27  ;;  %4300 = vmatprep.subr.mxu1 %v957_v28  ;;  %713 = vst [vmem:[#allocation2 + $0x170] sm:$0xff] %v671_v10  ;;  %724 = vst [vmem:[#allocation2 + $0x30] sm:$0xff] %v5732_v11  ;;  %v5765_v26 = vld [vmem:[%s5556_s24 + $0x78] sm:$0xff]  ;;  %v5769_v27 = vsel %vm605_vm0, %v627_v12, %v5744_v17  ;;  %v5793_v42 = vld [vmem:[%s5571_s27 + $0x8] sm:%s5657_s5] }
  0xcf   : > { %990 = vmatprep.subr.mxu0 %v5204_v0  ;;  %4301 = vmatpush3.msra.mxu1 %v957_v28  ;;  %716 = vst [vmem:[#allocation2 + $0x1e0] sm:$0xff] %v5739_v13  ;;  %719 = vst [vmem:[#allocation2 + $0x98] sm:$0xff] %v672_v14  ;;  %v673_v28 = vsel %vm605_vm0, %v5744_v17, 0.0  ;;  %v825_v34 = vld [vmem:[#allocation9 + $0x78] sm:$0xff]  ;;  %v674_v40 = vsel %vm605_vm0, %v5757_v24, 0.0  ;;  %v5806_v50 = vrot.slane %v5793_v42, 1 }
  0xd0   : > { %991 = vmatpush1.msra.mxu0 %v924_v29  ;;  %4302 = vmatprep.subr.mxu1 %v956_v30  ;;  %727 = vst [vmem:[#allocation2 + $0x130] sm:$0xff] %v5748_v18  ;;  %730 = vst [vmem:[#allocation2 + $0x1d8] sm:$0xff] %v5751_v19  ;;  %v633_v29 = vrot.slane %v5762_v25, 1  ;;  %v948_v60 = vld [vmem:[#allocation9 + $0x260] sm:$0xff]  ;;  %v947_v3 = vld [vmem:[#allocation9 + $0x258] sm:$0xff]  ;;  %v564_v10 = vrot.slane %v5793_v42, 7 }
  0xd1   : > { %992 = vmatprep.subr.mxu0 %v5204_v0  ;;  %4303 = vmatpush3.msra.mxu1 %v956_v30  ;;  %v5775_v30 = vrot.slane %v5765_v26, 1  ;;  %733 = vst [vmem:[#allocation2 + $0x200] sm:$0xff] %v5762_v25  ;;  %736 = vst [vmem:[#allocation2 + $0x178] sm:$0xff] %v5765_v26  ;;  %v822_v1 = vld [vmem:[#allocation9 + $0x60] sm:$0xff]  ;;  %v821_v4 = vld [vmem:[#allocation9 + $0x58] sm:$0xff] }
  0xd2   : > { %993 = vmatpush1.msra.mxu0 %v923_v33  ;;  %4304 = vmatprep.subr.mxu1 %v955_v37  ;;  %v5781_v33 = vld [vmem:[%s5571_s27] sm:%s5657_s5]  ;;  %722 = vst [vmem:[#allocation2 + $0x50] sm:$0xff] %v5769_v27  ;;  %725 = vst [vmem:[#allocation2 + $0x1b0] sm:$0xff] %v673_v28  ;;  %v820_v12 = vld [vmem:[#allocation9 + $0x50] sm:$0xff] }
  0xd3   : > { %994 = vmatprep.subr.mxu0 %v5204_v0  ;;  %4305 = vmatpush3.msra.mxu1 %v955_v37  ;;  %v5787_v37 = vsel %vm605_vm0, %v630_v22, %v5757_v24  ;;  %v636_v43 = vrot.slane %v5781_v33, 1  ;;  %739 = vst [vmem:[#allocation2 + $0x1d0] sm:$0xff] %v5781_v33  ;;  %731 = vst [vmem:[#allocation2 + $0x228] sm:$0xff] %v674_v40  ;;  %v675_v49 = vsel %vm605_vm0, %v5775_v30, 0.0  ;;  %v819_v28 = vld [vmem:[#allocation9 + $0x48] sm:$0xff]  ;;  %v943_v40 = vld [vmem:[#allocation9 + $0x238] sm:$0xff] }
  0xd4   : > { %995 = vmatpush1.msra.mxu0 %v922_v46  ;;  %4306 = vmatprep.subr.mxu1 %v954_v47  ;;  %v950_v46 = vld [vmem:[#allocation9 + $0x270] sm:$0xff]  ;;  %728 = vst [vmem:[#allocation2 + $0x68] sm:$0xff] %v5787_v37  ;;  %742 = vst [vmem:[#allocation2 + $0x1a0] sm:$0xff] %v5793_v42 }
  0xd5   : > { %996 = vmatprep.subr.mxu0 %v5204_v0  ;;  %4307 = vmatpush3.msra.mxu1 %v954_v47  ;;  %v5801_v47 = vsel %vm605_vm0, %v633_v29, %v5775_v30  ;;  %737 = vst [vmem:[#allocation2 + $0x208] sm:$0xff] %v675_v49  ;;  %v5816_v55 = vsel %vm605_vm0, %v636_v43, %v5806_v50  ;;  %v944_v29 = vld [vmem:[#allocation9 + $0x240] sm:$0xff]  ;;  %v817_v43 = vld [vmem:[#allocation9 + $0x38] sm:$0xff]  ;;  %v816_v49 = vld [vmem:[#allocation9 + $0x30] sm:$0xff] }
  0xd6   : > { %997 = vmatpush1.msra.mxu0 %v921_v53  ;;  %4308 = vmatprep.subr.mxu1 %v953_v59  ;;  %734 = vst [vmem:[#allocation2 + $0x10] sm:$0xff] %v5801_v47  ;;  %v949_v53 = vld [vmem:[#allocation9 + $0x268] sm:$0xff]  ;;  %740 = vst [vmem:[#allocation2 + $0x168] sm:$0xff] %v5816_v55 }
  0xd7   : > { %998 = vmatprep.subr.mxu0 %v5204_v0  ;;  %4309 = vmatpush3.msra.mxu1 %v953_v59  ;;  %v676_v59 = vsel %vm605_vm0, %v5806_v50, 0.0 }
  0xd8   : > { %999 = vmatpush1.msra.mxu0 %v920_v7  ;;  %4310 = vmatprep.subr.mxu1 %v952_v8  ;;  %743 = vst [vmem:[#allocation2 + $0x58] sm:$0xff] %v676_v59  ;;  %v5827_v7 = vrot.slane %v5781_v33, 7  ;;  %v940_v59 = vld [vmem:[#allocation9 + $0x220] sm:$0xff] }
  0xd9   : > { %1000 = vmatprep.subr.mxu0 %v5204_v0  ;;  %4311 = vmatpush3.msra.mxu1 %v952_v8  ;;  %v946_v8 = vld [vmem:[#allocation9 + $0x250] sm:$0xff] }
  0xda   : > { %4312 = vmatprep.mubr.f32.mxu1 %v5609_v23  ;;  %1001 = vmatpush2.msra.mxu0 %v951_v21  ;;  %v824_v23 = vld [vmem:[#allocation9 + $0x70] sm:$0xff]  ;;  %v603_v14 = vsel %vm532_vm1, 0.0, %v5827_v7  ;;  %v945_v21 = vld [vmem:[#allocation9 + $0x248] sm:$0xff]  ;;  %v5837_v22 = vsel %vm532_vm1, %v5827_v7, %v564_v10  ;;  %v5858_v10 = vrot.slane %v5595_v15, 7 }
  0xdb   : > { %4837 = vmatmul.mubr.msk.f32.vlgmr.msra.gmra.mxu1 %vm605_vm0, %v5604_v20  ;;  %1298 = vmatprep.subr.mxu1 %v5204_v0  ;;  %v823_v20 = vld [vmem:[#allocation9 + $0x68] sm:$0xff]  ;;  %738 = vst [vmem:[#allocation2 + $0x210] sm:$0xff] %v603_v14  ;;  %741 = vst [vmem:[#allocation2 + $0xc0] sm:$0xff] %v5837_v22 }
  0xdc   : > { %1002 = vmatprep.subr.mxu0 %v5204_v0  ;;  %1299 = vmatpush1.msra.mxu1 %v825_v34  ;;  %v818_v34 = vld [vmem:[#allocation9 + $0x40] sm:$0xff]  ;;  %v811_v14 = vld [vmem:[#allocation9 + $0x8] sm:$0xff] }
  0xdd   : > { %1003 = vmatpush2.msra.mxu0 %v950_v46  ;;  %1300 = vmatprep.subr.mxu1 %v5204_v0  ;;  %v942_v46 = vld [vmem:[#allocation9 + $0x230] sm:$0xff] }
  0xde   : > { %1004 = vmatprep.subr.mxu0 %v5204_v0  ;;  %1301 = vmatpush1.msra.mxu1 %v824_v23  ;;  %v941_v23 = vld [vmem:[#allocation9 + $0x228] sm:$0xff] }
  0xdf   : > { %1005 = vmatpush2.msra.mxu0 %v949_v53  ;;  %1302 = vmatprep.subr.mxu1 %v5204_v0  ;;  %v815_v53 = vld [vmem:[#allocation9 + $0x28] sm:$0xff] }
  0xe0   : > { %1006 = vmatprep.subr.mxu0 %v5204_v0  ;;  %1303 = vmatpush1.msra.mxu1 %v823_v20  ;;  %v814_v20 = vld [vmem:[#allocation9 + $0x20] sm:$0xff] }
  0xe1   : > { %1007 = vmatpush2.msra.mxu0 %v948_v60  ;;  %1304 = vmatprep.subr.mxu1 %v5204_v0  ;;  %v939_v60 = vld [vmem:[#allocation9 + $0x218] sm:$0xff] }
  0xe2   : > { %1008 = vmatprep.subr.mxu0 %v5204_v0  ;;  %1305 = vmatpush1.msra.mxu1 %v822_v1  ;;  %v813_v1 = vld [vmem:[#allocation9 + $0x18] sm:$0xff] }
  0xe3   : > { %1009 = vmatpush2.msra.mxu0 %v947_v3  ;;  %1306 = vmatprep.subr.mxu1 %v5204_v0  ;;  %v938_v3 = vld [vmem:[#allocation9 + $0x210] sm:$0xff] }
  0xe4   : > { %1010 = vmatprep.subr.mxu0 %v5204_v0  ;;  %1307 = vmatpush1.msra.mxu1 %v821_v4  ;;  %v937_v4 = vld [vmem:[#allocation9 + $0x208] sm:$0xff] }
  0xe5   : > { %1011 = vmatpush2.msra.mxu0 %v946_v8  ;;  %1308 = vmatprep.subr.mxu1 %v5204_v0  ;;  %v812_v8 = vld [vmem:[#allocation9 + $0x10] sm:$0xff] }
  0xe6   : > { %1012 = vmatprep.subr.mxu0 %v5204_v0  ;;  %1309 = vmatpush1.msra.mxu1 %v820_v12  ;;  %v936_v12 = vld [vmem:[#allocation9 + $0x200] sm:$0xff] }
  0xe7   : > { %1013 = vmatpush2.msra.mxu0 %v945_v21  ;;  %1310 = vmatprep.subr.mxu1 %v5204_v0  ;;  %v810_v21 = vld [vmem:[#allocation9] sm:$0xff] }
  0xe8   : > { %1014 = vmatprep.subr.mxu0 %v5204_v0  ;;  %1311 = vmatpush1.msra.mxu1 %v819_v28  ;;  %v841_v28 = vld [vmem:[#allocation9 + $0xf8] sm:$0xff] }
  0xe9   : > { %1015 = vmatpush2.msra.mxu0 %v944_v29  ;;  %1312 = vmatprep.subr.mxu1 %v5204_v0  ;;  %v857_v29 = vld [vmem:[#allocation9 + $0x178] sm:$0xff] }
  0xea   : > { %1016 = vmatprep.subr.mxu0 %v5204_v0  ;;  %1313 = vmatpush1.msra.mxu1 %v818_v34  ;;  %v840_v34 = vld [vmem:[#allocation9 + $0xf0] sm:$0xff] }
  0xeb   : > { %1017 = vmatpush2.msra.mxu0 %v943_v40  ;;  %1314 = vmatprep.subr.mxu1 %v5204_v0  ;;  %v838_v40 = vld [vmem:[#allocation9 + $0xe0] sm:$0xff] }
  0xec   : > { %1018 = vmatprep.subr.mxu0 %v5204_v0  ;;  %1315 = vmatpush1.msra.mxu1 %v817_v43  ;;  %v835_v43 = vld [vmem:[#allocation9 + $0xc8] sm:$0xff] }
  0xed   : > { %1019 = vmatpush2.msra.mxu0 %v942_v46  ;;  %1316 = vmatprep.subr.mxu1 %v5204_v0 }
  0xee   : > { %1020 = vmatprep.subr.mxu0 %v5204_v0  ;;  %1317 = vmatpush1.msra.mxu1 %v816_v49  ;;  %v5922_v49 = vrot.slane %v5653_v45, 7 }
  0xef   : > { %1021 = vmatpush2.msra.mxu0 %v941_v23  ;;  %1318 = vmatprep.subr.mxu1 %v5204_v0  ;;  %v546_v23 = vrot.slane %v5662_v48, 7 }
  0xf0   : > { %1022 = vmatprep.subr.mxu0 %v5204_v0  ;;  %1319 = vmatpush1.msra.mxu1 %v815_v53 }
  0xf1   : > { %1023 = vmatpush2.msra.mxu0 %v940_v59  ;;  %1320 = vmatprep.subr.mxu1 %v5204_v0  ;;  %v5943_v53 = vsel %vm532_vm1, %v5922_v49, %v546_v23  ;;  %v5950_v59 = vld [vmem:[%s5564_s26] sm:%s5589_s15]  ;;  %v851_v23 = vld [vmem:[#allocation9 + $0x148] sm:$0xff] }
  0xf2   : > { %1024 = vmatprep.subr.mxu0 %v5204_v0  ;;  %1321 = vmatpush1.msra.mxu1 %v814_v20  ;;  %v533_v20 = vrot.slane %v5950_v59, 7 }
  0xf3   : > { %1025 = vmatpush2.msra.mxu0 %v939_v60  ;;  %1322 = vmatprep.subr.mxu1 %v5204_v0  ;;  %v827_v60 = vld [vmem:[#allocation9 + $0x88] sm:$0xff] }
  0xf4   : > { %1026 = vmatprep.subr.mxu0 %v5204_v0  ;;  %1323 = vmatpush1.msra.mxu1 %v813_v1  ;;  %v549_v1 = vrot.slane %v5689_v58, 7 }
  0xf5   : > { %1027 = vmatpush2.msra.mxu0 %v938_v3  ;;  %4315 = vmatprep.mubr.f32.mxu1 %v5642_v41  ;;  %v537_v41 = vrot.slane %v5599_v16, 7  ;;  %v5963_v3 = vld [vmem:[%s5564_s26 + $0x8] sm:%s5589_s15] }
  0xf6   : > { %1324 = vmatprep.subr.mxu1 %v5204_v0  ;;  %1028 = vmatprep.subr.mxu0 %v5204_v0 }
  0xf7   : > { %4838 = vmatmul.mubr.msk.f32.gmra.mxu1 %vm605_vm0, %v5625_v35  ;;  %1029 = vmatpush2.msra.mxu0 %v937_v4  ;;  %v856_v4 = vld [vmem:[#allocation9 + $0x170] sm:$0xff] }
  0xf8   : > { %1325 = vmatpush1.msra.mxu1 %v812_v8  ;;  %1030 = vmatprep.subr.mxu0 %v5204_v0  ;;  %v1705_v8 = vld [vmem:[#allocation9 + $0x378] sm:$0xff] }
  0xf9   : > { %1326 = vmatprep.subr.mxu1 %v5204_v0  ;;  %1031 = vmatpush2.msra.mxu0 %v936_v12 }
  0xfa   : > { %1327 = vmatpush1.msra.mxu1 %v811_v14  ;;  %1032 = vmatprep.mubr.f32.mxu0 %v5595_v15  ;;  %v5979_v14 = vrot.slane %v5701_v62, 7 }
  0xfb   : > { %4318 = vmatprep.mubr.f32.mxu1 %v5677_v54  ;;  %1328 = vmatprep.subr.mxu1 %v5204_v0  ;;  %v5883_v54 = vsel %vm532_vm1, %v5858_v10, %v537_v41  ;;  %v1704_v41 = vld [vmem:[#allocation9 + $0x370] sm:$0xff] }
  0xfc   : > { %4840 = vmatmul.mubr.msk.f32.vlgmr.msra.gmra.mxu0 %vm5871_vm2, %v5858_v10  ;;  %4841 = vmatmul.mubr.msk.f32.gmra.mxu1 %vm605_vm0, %v5648_v44  ;;  %v839_v44 = vld [vmem:[#allocation9 + $0xe8] sm:$0xff] }
  0xfd   : > { %1329 = vmatpush1.msra.mxu1 %v810_v21  ;;  %1037 = vmatprep.mubr.f32.mxu0 %v5599_v16 }
  0xfe   : > { %1330 = vmatprep.subr.mxu1 %v5204_v0  ;;  %4321 = vmatprep.mubr.f32.mxu1 %v5710_v2 }
  0xff   : > { %1331 = vmatpush2.msra.mxu1 %v841_v28  ;;  %4342 = vmatprep.subr.mxu0 %v857_v29  ;;  %v1703_v28 = vld [vmem:[#allocation9 + $0x368] sm:$0xff] }
 0x100   : > { %1332 = vmatprep.subr.mxu1 %v5204_v0  ;;  %1038 = vmatmul.mubr.f32.gmra.mxu0 %v5883_v54 }
 0x101   : > { %4842 = vmatmul.mubr.msk.f32.gmra.mxu1 %vm605_vm0, %v5682_v56  ;;  %1042 = vmatprep.mubr.f32.mxu0 %v5618_v31  ;;  %v837_v56 = vld [vmem:[#allocation9 + $0xd8] sm:$0xff] }
 0x102   : > { %1333 = vmatpush2.msra.mxu1 %v840_v34  ;;  %4324 = vmatprep.mubr.f32.mxu1 %v5727_v9  ;;  %v836_v9 = vld [vmem:[#allocation9 + $0xd0] sm:$0xff]  ;;  %v855_v34 = vld [vmem:[#allocation9 + $0x168] sm:$0xff] }
 0x103   : > { %1334 = vmatprep.subr.mxu1 %v5204_v0  ;;  %4343 = vmatpush3.msra.mxu0 %v857_v29  ;;  %v552_v29 = vrot.slane %v5704_v63, 7 }
 0x104   : > { %1335 = vmatpush2.msra.mxu1 %v839_v44  ;;  %4844 = vmatmul.mubr.msk.f32.gmra.mxu0 %vm5871_vm2, %v5630_v36  ;;  %v1702_v44 = vld [vmem:[#allocation9 + $0x360] sm:$0xff] }
 0x105   : > { %1336 = vmatprep.subr.mxu1 %v5204_v0  ;;  %4845 = vmatmul.mubr.msk.f32.gmra.mxu1 %vm605_vm0, %v5696_v61  ;;  %v543_v61 = vrot.slane %v5637_v39, 7 }
 0x106   : > { %1337 = vmatpush2.msra.mxu1 %v838_v40  ;;  %1047 = vmatprep.mubr.f32.mxu0 %v5621_v32  ;;  %v5998_v40 = vsel %vm532_vm1, %v5979_v14, %v552_v29  ;;  %v845_v29 = vld [vmem:[#allocation9 + $0x118] sm:$0xff] }
 0x107   : > { %1338 = vmatprep.subr.mxu1 %v5204_v0  ;;  %4327 = vmatprep.mubr.f32.mxu1 %v5739_v13  ;;  %v834_v13 = vld [vmem:[#allocation9 + $0xc0] sm:$0xff]  ;;  %v5919_v46 = vsel %vm532_vm1, %v5673_v52, %v543_v61  ;;  %v1699_v61 = vld [vmem:[#allocation9 + $0x348] sm:$0xff] }
 0x108   : > { %1339 = vmatpush2.msra.mxu1 %v837_v56  ;;  %1048 = vmatmul.mubr.f32.gmra.mxu0 %v5670_v51  ;;  %v1701_v56 = vld [vmem:[#allocation9 + $0x358] sm:$0xff] }
 0x109   : > { %1340 = vmatprep.subr.mxu1 %v5204_v0  ;;  %4846 = vmatmul.mubr.msk.f32.gmra.mxu1 %vm605_vm0, %v5716_v5  ;;  %v833_v5 = vld [vmem:[#allocation9 + $0xb8] sm:$0xff] }
 0x10a   : > { %1341 = vmatpush2.msra.mxu1 %v836_v9  ;;  %1052 = vmatprep.mubr.f32.mxu0 %v5634_v38  ;;  %v6004_v9 = vrot.slane %v5721_v6, 7 }
 0x10b   : > { %1342 = vmatprep.subr.mxu1 %v5204_v0  ;;  %4330 = vmatprep.mubr.f32.mxu1 %v5769_v27  ;;  %v832_v27 = vld [vmem:[#allocation9 + $0xb0] sm:$0xff] }
 0x10c   : > { %1343 = vmatpush2.msra.mxu1 %v835_v43  ;;  %4848 = vmatmul.mubr.msk.f32.gmra.mxu0 %vm5871_vm2, %v5673_v52  ;;  %v1700_v43 = vld [vmem:[#allocation9 + $0x350] sm:$0xff] }
 0x10d   : > { %1344 = vmatprep.subr.mxu1 %v5204_v0  ;;  %4849 = vmatmul.mubr.msk.f32.gmra.mxu1 %vm605_vm0, %v5744_v17  ;;  %v831_v17 = vld [vmem:[#allocation9 + $0xa8] sm:$0xff] }
 0x10e   : > { %1345 = vmatpush2.msra.mxu1 %v834_v13  ;;  %1057 = vmatprep.mubr.f32.mxu0 %v5637_v39  ;;  %v6027_v13 = vrot.slane %v5748_v18, 7 }
 0x10f   : > { %1346 = vmatprep.subr.mxu1 %v5204_v0  ;;  %4333 = vmatprep.mubr.f32.mxu1 %v5787_v37  ;;  %v830_v37 = vld [vmem:[#allocation9 + $0xa0] sm:$0xff] }
 0x110   : > { %1347 = vmatpush2.msra.mxu1 %v833_v5  ;;  %1058 = vmatmul.mubr.f32.gmra.mxu0 %v5919_v46  ;;  %v1698_v5 = vld [vmem:[#allocation9 + $0x340] sm:$0xff] }
 0x111   : > { %1348 = vmatprep.subr.mxu1 %v5204_v0  ;;  %4850 = vmatmul.mubr.msk.f32.gmra.mxu1 %vm605_vm0, %v5757_v24  ;;  %v829_v24 = vld [vmem:[#allocation9 + $0x98] sm:$0xff] }
 0x112   : > { %1349 = vmatpush2.msra.mxu1 %v832_v27  ;;  %1062 = vmatprep.mubr.f32.mxu0 %v5653_v45  ;;  %v852_v27 = vld [vmem:[#allocation9 + $0x150] sm:$0xff] }
 0x113   : > { %1350 = vmatprep.subr.mxu1 %v5204_v0  ;;  %4336 = vmatprep.mubr.f32.mxu1 %v5801_v47  ;;  %v5946_v47 = vrot.slane %v5686_v57, 7 }
 0x114   : > { %1351 = vmatpush2.msra.mxu1 %v831_v17  ;;  %4852 = vmatmul.mubr.msk.f32.gmra.mxu0 %vm5871_vm2, %v5922_v49 }
 0x115   : > { %1352 = vmatprep.subr.mxu1 %v5204_v0  ;;  %4853 = vmatmul.mubr.msk.f32.gmra.mxu1 %vm605_vm0, %v5775_v30  ;;  %v828_v30 = vld [vmem:[#allocation9 + $0x90] sm:$0xff]  ;;  %v5976_v12 = vsel %vm532_vm1, %v5946_v47, %v549_v1 }
 0x116   : > { %1353 = vmatpush2.msra.mxu1 %v830_v37  ;;  %1067 = vmatprep.mubr.f32.mxu0 %v5662_v48  ;;  %v850_v37 = vld [vmem:[#allocation9 + $0x140] sm:$0xff] }
 0x117   : > { %1354 = vmatprep.subr.mxu1 %v5204_v0  ;;  %4339 = vmatprep.mubr.f32.mxu1 %v5816_v55  ;;  %v826_v55 = vld [vmem:[#allocation9 + $0x80] sm:$0xff] }
 0x118   : > { %1355 = vmatpush2.msra.mxu1 %v829_v24  ;;  %1068 = vmatmul.mubr.f32.gmra.mxu0 %v5943_v53  ;;  %v1694_v24 = vld [vmem:[#allocation9 + $0x320] sm:$0xff] }
 0x119   : > { %1356 = vmatprep.subr.mxu1 %v5204_v0  ;;  %4854 = vmatmul.mubr.msk.f32.gmra.mxu1 %vm605_vm0, %v5806_v50  ;;  %v534_v50 = vrot.slane %v5963_v3, 7 }
 0x11a   : > { %1357 = vmatpush2.msra.mxu1 %v828_v30  ;;  %1072 = vmatprep.mubr.f32.mxu0 %v5686_v57  ;;  %v1693_v30 = vld [vmem:[#allocation9 + $0x318] sm:$0xff] }
 0x11b   : > { %1358 = vmatprep.subr.mxu1 %v5204_v0  ;;  %1362 = vmatprep.mubr.f32.mxu1 %v5950_v59  ;;  %v535_v21 = vsel %vm532_vm1, %v533_v20, %v534_v50 }
 0x11c   : > { %1359 = vmatpush2.msra.mxu1 %v827_v60  ;;  %4856 = vmatmul.mubr.msk.f32.gmra.mxu0 %vm5871_vm2, %v5946_v47  ;;  %v1692_v60 = vld [vmem:[#allocation9 + $0x310] sm:$0xff] }
 0x11d   : > { %1360 = vmatprep.subr.mxu1 %v5204_v0  ;;  %1077 = vmatprep.mubr.f32.mxu0 %v5689_v58 }
 0x11e   : > { %1361 = vmatpush2.msra.mxu1 %v826_v55  ;;  %4344 = vmatprep.subr.mxu0 %v856_v4  ;;  %v6074_v55 = vld [vmem:[%s5571_s27 + $0x10] sm:%s5657_s5] }
 0x11f   : > { %4858 = vmatmul.mubr.msk.f32.vlgmr.msra.gmra.mxu1 %vm5871_vm2, %v533_v20  ;;  %1738 = vmatprep.subr.mxu1 %v5204_v0  ;;  %v561_v20 = vrot.slane %v5765_v26, 7  ;;  %v639_v50 = vrot.slane %v6074_v55, 1 }
 0x120   : > { %1739 = vmatpush1.msra.mxu1 %v1705_v8  ;;  %1078 = vmatmul.mubr.f32.gmra.mxu0 %v5976_v12 }
 0x121   : > { %1367 = vmatprep.mubr.f32.mxu1 %v5963_v3  ;;  %1740 = vmatprep.subr.mxu1 %v5204_v0 }
 0x122   : > { %4345 = vmatpush3.msra.mxu0 %v856_v4  ;;  %1741 = vmatpush1.msra.mxu1 %v1704_v41  ;;  %v6080_v4 = vld [vmem:[%s5571_s27 + $0x18] sm:%s5657_s5]  ;;  %v1691_v41 = vld [vmem:[#allocation9 + $0x308] sm:$0xff] }
 0x123   : > { %1368 = vmatmul.mubr.f32.gmra.mxu1 %v535_v21  ;;  %1742 = vmatprep.subr.mxu1 %v5204_v0  ;;  %v640_v8 = vrot.slane %v6080_v4, 1  ;;  %v846_v21 = vld [vmem:[#allocation9 + $0x120] sm:$0xff] }
 0x124   : > { %1082 = vmatprep.mubr.f32.mxu0 %v5701_v62  ;;  %1743 = vmatpush1.msra.mxu1 %v1703_v28  ;;  %v566_v28 = vrot.slane %v6074_v55, 7 }
 0x125   : > { %4860 = vmatmul.mubr.msk.f32.gmra.mxu0 %vm5871_vm2, %v5979_v14  ;;  %1372 = vmatprep.mubr.f32.mxu1 %v5595_v15  ;;  %v854_v15 = vld [vmem:[#allocation9 + $0x160] sm:$0xff] }
 0x126   : > { %4346 = vmatprep.subr.mxu0 %v855_v34  ;;  %1744 = vmatprep.subr.mxu1 %v5204_v0 }
 0x127   : > { %4862 = vmatmul.mubr.msk.f32.gmra.mxu1 %vm5871_vm2, %v5858_v10  ;;  %4347 = vmatpush3.msra.mxu0 %v855_v34  ;;  %v555_v10 = vrot.slane %v5732_v11, 7  ;;  %v567_v34 = vrot.slane %v6080_v4, 7 }
 0x128   : > { %1745 = vmatpush1.msra.mxu1 %v1702_v44  ;;  %1087 = vmatprep.mubr.f32.mxu0 %v5704_v63  ;;  %v844_v44 = vld [vmem:[#allocation9 + $0x110] sm:$0xff] }
 0x129   : > { %1746 = vmatprep.subr.mxu1 %v5204_v0  ;;  %1088 = vmatmul.mubr.f32.gmra.mxu0 %v5998_v40 }
 0x12a   : > { %1377 = vmatprep.mubr.f32.mxu1 %v5599_v16  ;;  %1747 = vmatpush1.msra.mxu1 %v1701_v56  ;;  %v853_v16 = vld [vmem:[#allocation9 + $0x158] sm:$0xff] }
 0x12b   : > { %1378 = vmatmul.mubr.f32.gmra.mxu1 %v5883_v54  ;;  %4348 = vmatprep.subr.mxu0 %v854_v15  ;;  %v6024_v54 = vsel %vm532_vm1, %v6004_v9, %v555_v10  ;;  %v1721_v56 = vld [vmem:[#allocation9 + $0x3f8] sm:$0xff]  ;;  %v842_v10 = vld [vmem:[#allocation9 + $0x100] sm:$0xff] }
 0x12c   : > { %1748 = vmatprep.subr.mxu1 %v5204_v0  ;;  %1092 = vmatprep.mubr.f32.mxu0 %v5721_v6 }
 0x12d   : > { %4349 = vmatpush3.msra.mxu0 %v854_v15  ;;  %1749 = vmatpush1.msra.mxu1 %v1700_v43  ;;  %v843_v15 = vld [vmem:[#allocation9 + $0x108] sm:$0xff]  ;;  %v1720_v43 = vld [vmem:[#allocation9 + $0x3f0] sm:$0xff] }
 0x12e   : > { %4864 = vmatmul.mubr.msk.f32.gmra.mxu0 %vm5871_vm2, %v6004_v9  ;;  %1382 = vmatprep.mubr.f32.mxu1 %v5618_v31  ;;  %v1697_v31 = vld [vmem:[#allocation9 + $0x338] sm:$0xff] }
 0x12f   : > { %1750 = vmatprep.subr.mxu1 %v5204_v0  ;;  %4866 = vmatmul.mubr.msk.f32.gmra.mxu1 %vm5871_vm2, %v5630_v36  ;;  %v558_v36 = vrot.slane %v5751_v19, 7 }
 0x130   : > { %1751 = vmatpush1.msra.mxu1 %v1699_v61  ;;  %1097 = vmatprep.mubr.f32.mxu0 %v5732_v11  ;;  %v1717_v61 = vld [vmem:[#allocation9 + $0x3d8] sm:$0xff] }
 0x131   : > { %4350 = vmatprep.subr.mxu0 %v853_v16  ;;  %1752 = vmatprep.subr.mxu1 %v5204_v0  ;;  %v6044_v17 = vsel %vm532_vm1, %v6027_v13, %v558_v36  ;;  %v1736_v36 = vld [vmem:[#allocation9 + $0x470] sm:$0xff] }
 0x132   : > { %1098 = vmatmul.mubr.f32.gmra.mxu0 %v6024_v54  ;;  %1387 = vmatprep.mubr.f32.mxu1 %v5621_v32  ;;  %v1696_v32 = vld [vmem:[#allocation9 + $0x330] sm:$0xff] }
 0x133   : > { %4351 = vmatpush3.msra.mxu0 %v853_v16  ;;  %1753 = vmatpush1.msra.mxu1 %v1698_v5  ;;  %v6127_v16 = vld [vmem:[#allocation2 + $0x1f8] sm:$0xff]  ;;  %v1716_v5 = vld [vmem:[#allocation9 + $0x3d0] sm:$0xff] }
 0x134   : > { %1388 = vmatmul.mubr.f32.gmra.mxu1 %v5670_v51  ;;  %1754 = vmatprep.subr.mxu1 %v5204_v0  ;;  %v1695_v51 = vld [vmem:[#allocation9 + $0x328] sm:$0xff] }
 0x135   : > { %1755 = vmatpush1.msra.mxu1 %v1697_v31  ;;  %1102 = vmatprep.mubr.f32.mxu0 %v5748_v18  ;;  %v1737_v31 = vld [vmem:[#allocation9 + $0x478] sm:$0xff] }
 0x136   : > { %4868 = vmatmul.mubr.msk.f32.gmra.mxu0 %vm5871_vm2, %v6027_v13  ;;  %1392 = vmatprep.mubr.f32.mxu1 %v5634_v38  ;;  %v6051_v38 = vrot.slane %v5762_v25, 7 }
 0x137   : > { %4352 = vmatprep.subr.mxu0 %v852_v27  ;;  %1756 = vmatprep.subr.mxu1 %v5204_v0 }
 0x138   : > { %4870 = vmatmul.mubr.msk.f32.gmra.mxu1 %vm5871_vm2, %v5673_v52  ;;  %4353 = vmatpush3.msra.mxu0 %v852_v27  ;;  %v849_v52 = vld [vmem:[#allocation9 + $0x138] sm:$0xff]  ;;  %v6070_v1 = vsel %vm532_vm1, %v6051_v38, %v561_v20  ;;  %v6137_v27 = vld [vmem:[#allocation2 + $0xd0] sm:$0xff]  ;;  %v1711_v20 = vld [vmem:[#allocation9 + $0x3a8] sm:$0xff] }
 0x139   : > { %1757 = vmatpush1.msra.mxu1 %v1696_v32  ;;  %1107 = vmatprep.mubr.f32.mxu0 %v5751_v19  ;;  %v1714_v32 = vld [vmem:[#allocation9 + $0x3c0] sm:$0xff] }
 0x13a   : > { %1758 = vmatprep.subr.mxu1 %v5204_v0  ;;  %1108 = vmatmul.mubr.f32.gmra.mxu0 %v6044_v17 }
 0x13b   : > { %1759 = vmatpush1.msra.mxu1 %v1695_v51  ;;  %1397 = vmatprep.mubr.f32.mxu1 %v5637_v39  ;;  %v848_v39 = vld [vmem:[#allocation9 + $0x130] sm:$0xff]  ;;  %v4822_v51 = vld [vmem:[#allocation2 + $0x1b8] sm:$0xff] }
 0x13c   : > { %4354 = vmatprep.subr.mxu0 %v851_v23  ;;  %1398 = vmatmul.mubr.f32.gmra.mxu1 %v5919_v46 }
 0x13d   : > { %4355 = vmatpush3.msra.mxu0 %v851_v23  ;;  %1760 = vmatprep.subr.mxu1 %v5204_v0  ;;  %v1713_v23 = vld [vmem:[#allocation9 + $0x3b8] sm:$0xff] }
 0x13e   : > { %4356 = vmatprep.subr.mxu0 %v850_v37  ;;  %1761 = vmatpush1.msra.mxu1 %v1694_v24  ;;  %v1733_v24 = vld [vmem:[#allocation9 + $0x458] sm:$0xff] }
 0x13f   : > { %1112 = vmatprep.mubr.f32.mxu0 %v5762_v25  ;;  %4357 = vmatpush3.msra.mxu0 %v850_v37  ;;  %v1734_v37 = vld [vmem:[#allocation9 + $0x460] sm:$0xff] }
 0x140   : > { %1762 = vmatprep.subr.mxu1 %v5204_v0  ;;  %4872 = vmatmul.mubr.msk.f32.gmra.mxu0 %vm5871_vm2, %v6051_v38 }
 0x141   : > { %1402 = vmatprep.mubr.f32.mxu1 %v5653_v45  ;;  %4358 = vmatprep.subr.mxu0 %v849_v52  ;;  %v847_v45 = vld [vmem:[#allocation9 + $0x128] sm:$0xff] }
 0x142   : > { %1763 = vmatpush1.msra.mxu1 %v1693_v30  ;;  %4359 = vmatpush3.msra.mxu0 %v849_v52  ;;  %v1712_v52 = vld [vmem:[#allocation9 + $0x3b0] sm:$0xff] }
 0x143   : > { %4874 = vmatmul.mubr.msk.f32.gmra.mxu1 %vm5871_vm2, %v5922_v49  ;;  %4360 = vmatprep.subr.mxu0 %v848_v39  ;;  %v1732_v30 = vld [vmem:[#allocation9 + $0x450] sm:$0xff] }
 0x144   : > { %1764 = vmatprep.subr.mxu1 %v5204_v0  ;;  %1117 = vmatprep.mubr.f32.mxu0 %v5765_v26  ;;  %v6090_v26 = vsel %vm605_vm0, %v639_v50, %v640_v8  ;;  %v1709_v50 = vld [vmem:[#allocation9 + $0x398] sm:$0xff] }
 0x145   : > { %4361 = vmatpush3.msra.mxu0 %v848_v39  ;;  %1765 = vmatpush1.msra.mxu1 %v1692_v60  ;;  %v4825_v39 = vld [vmem:[#allocation2 + $0x170] sm:$0xff]  ;;  %v1710_v60 = vld [vmem:[#allocation9 + $0x3a0] sm:$0xff] }
 0x146   : > { %1118 = vmatmul.mubr.f32.gmra.mxu0 %v6070_v1  ;;  %1407 = vmatprep.mubr.f32.mxu1 %v5662_v48  ;;  %v1690_v48 = vld [vmem:[#allocation9 + $0x300] sm:$0xff] }
 0x147   : > { %4362 = vmatprep.subr.mxu0 %v847_v45  ;;  %1766 = vmatprep.subr.mxu1 %v5204_v0 }
 0x148   : > { %1408 = vmatmul.mubr.f32.gmra.mxu1 %v5943_v53  ;;  %4363 = vmatpush3.msra.mxu0 %v847_v45  ;;  %v1730_v45 = vld [vmem:[#allocation9 + $0x440] sm:$0xff] }
 0x149   : > { %1767 = vmatpush1.msra.mxu1 %v1691_v41  ;;  %4364 = vmatprep.subr.mxu0 %v846_v21  ;;  %v4826_v41 = vld [vmem:[#allocation2 + $0x1e0] sm:$0xff] }
 0x14a   : > { %1122 = vmatprep.mubr.f32.mxu0 %v5781_v33  ;;  %4365 = vmatpush3.msra.mxu0 %v846_v21  ;;  %v6104_v33 = vsel %vm532_vm1, %v566_v28, %v567_v34  ;;  %v1729_v21 = vld [vmem:[#allocation9 + $0x438] sm:$0xff]  ;;  %v4828_v34 = vld [vmem:[#allocation2 + $0x50] sm:$0xff] }
 0x14b   : > { %1768 = vmatprep.subr.mxu1 %v5204_v0  ;;  %4876 = vmatmul.mubr.msk.f32.gmra.mxu0 %vm5871_vm2, %v5827_v7  ;;  %v606_v7 = vrot.slane %v5950_v59, 1 }
 0x14c   : > { %1412 = vmatprep.mubr.f32.mxu1 %v5686_v57  ;;  %4366 = vmatprep.subr.mxu0 %v845_v29  ;;  %v607_v57 = vrot.slane %v5963_v3, 1  ;;  %v1719_v3 = vld [vmem:[#allocation9 + $0x3e8] sm:$0xff] }
 0x14d   : > { %1769 = vmatpush1.msra.mxu1 %v1690_v48  ;;  %4367 = vmatpush3.msra.mxu0 %v845_v29  ;;  %v1728_v29 = vld [vmem:[#allocation9 + $0x430] sm:$0xff] }
 0x14e   : > { %4878 = vmatmul.mubr.msk.f32.gmra.mxu1 %vm5871_vm2, %v5946_v47  ;;  %1770 = vmatprep.subr.mxu1 %v5204_v0  ;;  %v608_v59 = vsel %vm605_vm0, %v606_v7, %v607_v57  ;;  %v1708_v48 = vld [vmem:[#allocation9 + $0x390] sm:$0xff]  ;;  %v1707_v7 = vld [vmem:[#allocation9 + $0x388] sm:$0xff] }
 0x14f   : > { %4368 = vmatprep.subr.mxu0 %v844_v44  ;;  %1771 = vmatpush2.msra.mxu1 %v1721_v56  ;;  %v4830_v56 = vld [vmem:[#allocation2 + $0x1b0] sm:$0xff] }
 0x150   : > { %1127 = vmatprep.mubr.f32.mxu0 %v5793_v42  ;;  %4369 = vmatpush3.msra.mxu0 %v844_v44  ;;  %v1718_v42 = vld [vmem:[#allocation9 + $0x3e0] sm:$0xff]  ;;  %v1727_v44 = vld [vmem:[#allocation9 + $0x428] sm:$0xff] }
 0x151   : > { %1128 = vmatmul.mubr.f32.gmra.mxu0 %v5837_v22  ;;  %1417 = vmatprep.mubr.f32.mxu1 %v5689_v58  ;;  %v758_v58 = vld [vmem:[#allocation2 + $0xd8] sm:$0xff] }
 0x152   : > { %4370 = vmatprep.subr.mxu0 %v843_v15  ;;  %1772 = vmatprep.subr.mxu1 %v5204_v0  ;;  %v761_v22 = vld [vmem:[#allocation2 + $0x158] sm:$0xff] }
 0x153   : > { %1418 = vmatmul.mubr.f32.gmra.mxu1 %v5976_v12  ;;  %4371 = vmatpush3.msra.mxu0 %v843_v15  ;;  %v1706_v15 = vld [vmem:[#allocation9 + $0x380] sm:$0xff] }
 0x154   : > { %1773 = vmatpush2.msra.mxu1 %v1720_v43  ;;  %4372 = vmatprep.subr.mxu0 %v842_v10  ;;  %v1630_v43 = vld [vmem:[#allocation2 + $0x110] sm:$0xff] }
 0x155   : > { %1774 = vmatprep.subr.mxu1 %v5204_v0  ;;  %4373 = vmatpush3.msra.mxu0 %v842_v10  ;;  %v4831_v10 = vld [vmem:[#allocation2 + $0x68] sm:$0xff] }
 0x156   : > { %4374 = vmatprep.mubr.f32.mxu0 %v608_v59  ;;  %1775 = vmatpush2.msra.mxu1 %v1719_v3  ;;  %v1725_v59 = vld [vmem:[#allocation9 + $0x418] sm:$0xff]  ;;  %v1629_v3 = vld [vmem:[#allocation2 + $0x108] sm:$0xff] }
 0x157   : > { %1422 = vmatprep.mubr.f32.mxu1 %v5701_v62  ;;  %4879 = vmatmul.mubr.msk.f32.vlgmr.msra.gmra.mxu0 %vm605_vm0, %v607_v57  ;;  %v6131_v62 = vld [vmem:[#allocation2 + $0x190] sm:$0xff]  ;;  %v1726_v57 = vld [vmem:[#allocation9 + $0x420] sm:$0xff] }
 0x158   : > { %4881 = vmatmul.mubr.msk.f32.gmra.mxu1 %vm5871_vm2, %v5979_v14  ;;  %1776 = vmatprep.subr.mxu1 %v5204_v0 }
 0x159   : > { %1777 = vmatpush2.msra.mxu1 %v1718_v42  ;;  %4377 = vmatprep.mubr.f32.mxu0 %v758_v58  ;;  %v4832_v42 = vld [vmem:[#allocation2 + $0x228] sm:$0xff]  ;;  %v1724_v58 = vld [vmem:[#allocation9 + $0x410] sm:$0xff] }
 0x15a   : > { %1778 = vmatprep.subr.mxu1 %v5204_v0  ;;  %1427 = vmatprep.mubr.f32.mxu1 %v5704_v63  ;;  %v1715_v63 = vld [vmem:[#allocation9 + $0x3c8] sm:$0xff] }
 0x15b   : > { %4378 = vmatmul.mubr.f32.gmra.mxu0 %v761_v22  ;;  %1779 = vmatpush2.msra.mxu1 %v1717_v61  ;;  %v1633_v22 = vld [vmem:[#allocation2 + $0x180] sm:$0xff]  ;;  %v4833_v61 = vld [vmem:[#allocation2 + $0x10] sm:$0xff] }
 0x15c   : > { %1428 = vmatmul.mubr.f32.gmra.mxu1 %v5998_v40  ;;  %1780 = vmatprep.subr.mxu1 %v5204_v0 }
 0x15d   : > { %4380 = vmatprep.mubr.f32.mxu0 %v6127_v16  ;;  %1781 = vmatpush2.msra.mxu1 %v1716_v5  ;;  %v1723_v5 = vld [vmem:[#allocation9 + $0x408] sm:$0xff] }
 0x15e   : > { %1432 = vmatprep.mubr.f32.mxu1 %v5721_v6  ;;  %1782 = vmatprep.subr.mxu1 %v5204_v0  ;;  %v1735_v6 = vld [vmem:[#allocation9 + $0x468] sm:$0xff] }
 0x15f   : > { %4381 = vmatmul.mubr.f32.gmra.mxu0 %v6131_v62  ;;  %4404 = vmatprep.subr.mxu0 %v1737_v31 }
 0x160   : > { %4883 = vmatmul.mubr.msk.f32.gmra.mxu1 %vm5871_vm2, %v6004_v9  ;;  %4405 = vmatpush3.msra.mxu0 %v1737_v31  ;;  %v1632_v31 = vld [vmem:[#allocation2 + $0xb8] sm:$0xff] }
 0x161   : > { %1783 = vmatpush2.msra.mxu1 %v1715_v63  ;;  %4406 = vmatprep.subr.mxu0 %v1736_v36  ;;  %v4834_v63 = vld [vmem:[#allocation2 + $0x208] sm:$0xff] }
 0x162   : > { %4383 = vmatprep.mubr.f32.mxu0 %v6137_v27  ;;  %1784 = vmatprep.subr.mxu1 %v5204_v0 }
 0x163   : > { %4407 = vmatpush3.msra.mxu0 %v1736_v36  ;;  %1437 = vmatprep.mubr.f32.mxu1 %v5732_v11  ;;  %v4823_v11 = vld [vmem:[#allocation2 + $0x220] sm:$0xff] }
 0x164   : > { %4384 = vmatmul.mubr.f32.gmra.mxu0 %v4822_v51  ;;  %1785 = vmatpush2.msra.mxu1 %v1714_v32  ;;  %v1636_v36 = vld [vmem:[#allocation2 + $0x1c0] sm:$0xff]  ;;  %v1640_v51 = vld [vmem:[#allocation2 + $0x1b8] sm:$0xff] }
 0x165   : > { %4408 = vmatprep.subr.mxu0 %v1735_v6  ;;  %1438 = vmatmul.mubr.f32.gmra.mxu1 %v6024_v54  ;;  %v1635_v32 = vld [vmem:[#allocation2 + $0x140] sm:$0xff] }
 0x166   : > { %1786 = vmatprep.subr.mxu1 %v5204_v0  ;;  %4409 = vmatpush3.msra.mxu0 %v1735_v6  ;;  %v1639_v6 = vld [vmem:[#allocation2 + $0x60] sm:$0xff] }
 0x167   : > { %1787 = vmatpush2.msra.mxu1 %v1713_v23  ;;  %4410 = vmatprep.subr.mxu0 %v1734_v37  ;;  %v1643_v23 = vld [vmem:[#allocation2 + $0x188] sm:$0xff] }
 0x168   : > { %4386 = vmatprep.mubr.f32.mxu0 %v5710_v2  ;;  %4411 = vmatpush3.msra.mxu0 %v1734_v37  ;;  %v4824_v2 = vld [vmem:[#allocation2 + $0x80] sm:$0xff] }
 0x169   : > { %1442 = vmatprep.mubr.f32.mxu1 %v5748_v18  ;;  %4387 = vmatmul.mubr.f32.gmra.mxu0 %v4823_v11  ;;  %v1731_v18 = vld [vmem:[#allocation9 + $0x448] sm:$0xff]  ;;  %v1642_v37 = vld [vmem:[#allocation2] sm:$0xff] }
 0x16a   : > { %1788 = vmatprep.subr.mxu1 %v5204_v0  ;;  %4412 = vmatprep.subr.mxu0 %v1733_v24  ;;  %v1645_v11 = vld [vmem:[#allocation2 + $0x1a8] sm:$0xff] }
 0x16b   : > { %4885 = vmatmul.mubr.msk.f32.gmra.mxu1 %vm5871_vm2, %v6027_v13  ;;  %4413 = vmatpush3.msra.mxu0 %v1733_v24  ;;  %v1646_v24 = vld [vmem:[#allocation2 + $0x220] sm:$0xff] }
 0x16c   : > { %1789 = vmatpush2.msra.mxu1 %v1712_v52  ;;  %4414 = vmatprep.subr.mxu0 %v1732_v30  ;;  %v1648_v52 = vld [vmem:[#allocation2 + $0x1c8] sm:$0xff] }
 0x16d   : > { %1790 = vmatprep.subr.mxu1 %v5204_v0  ;;  %4389 = vmatprep.mubr.f32.mxu0 %v4824_v2  ;;  %v1667_v2 = vld [vmem:[#allocation2 + $0x68] sm:$0xff] }
 0x16e   : > { %1791 = vmatpush2.msra.mxu1 %v1711_v20  ;;  %4415 = vmatpush3.msra.mxu0 %v1732_v30  ;;  %v1661_v30 = vld [vmem:[#allocation2 + $0x50] sm:$0xff]  ;;  %v1651_v20 = vld [vmem:[#allocation2 + $0x78] sm:$0xff] }
 0x16f   : > { %1447 = vmatprep.mubr.f32.mxu1 %v5751_v19  ;;  %4390 = vmatmul.mubr.f32.gmra.mxu0 %v4825_v39  ;;  %v4827_v19 = vld [vmem:[#allocation2 + $0x98] sm:$0xff]  ;;  %v1673_v39 = vld [vmem:[#allocation2 + $0x10] sm:$0xff] }
 0x170   : > { %4416 = vmatprep.subr.mxu0 %v1731_v18  ;;  %1448 = vmatmul.mubr.f32.gmra.mxu1 %v6044_v17 }
 0x171   : > { %1792 = vmatprep.subr.mxu1 %v5204_v0  ;;  %4417 = vmatpush3.msra.mxu0 %v1731_v18  ;;  %v1654_v18 = vld [vmem:[#allocation2 + $0xe0] sm:$0xff] }
 0x172   : > { %1793 = vmatpush2.msra.mxu1 %v1710_v60  ;;  %4418 = vmatprep.subr.mxu0 %v1730_v45  ;;  %v1657_v60 = vld [vmem:[#allocation2 + $0x48] sm:$0xff] }
 0x173   : > { %4392 = vmatprep.mubr.f32.mxu0 %v4826_v41  ;;  %1794 = vmatprep.subr.mxu1 %v5204_v0  ;;  %v1663_v41 = vld [vmem:[#allocation2 + $0x30] sm:$0xff] }
 0x174   : > { %4419 = vmatpush3.msra.mxu0 %v1730_v45  ;;  %1452 = vmatprep.mubr.f32.mxu1 %v5762_v25  ;;  %v4829_v25 = vld [vmem:[#allocation2 + $0x178] sm:$0xff]  ;;  %v1679_v45 = vld [vmem:[#allocation2 + $0x168] sm:$0xff] }
 0x175   : > { %4393 = vmatmul.mubr.f32.gmra.mxu0 %v4827_v19  ;;  %1795 = vmatpush2.msra.mxu1 %v1709_v50  ;;  %v1660_v50 = vld [vmem:[#allocation2 + $0x160] sm:$0xff] }
 0x176   : > { %4420 = vmatprep.subr.mxu0 %v1729_v21  ;;  %4887 = vmatmul.mubr.msk.f32.gmra.mxu1 %vm5871_vm2, %v6051_v38  ;;  %v1672_v19 = vld [vmem:[#allocation2 + $0x200] sm:$0xff] }
 0x177   : > { %4421 = vmatpush3.msra.mxu0 %v1729_v21  ;;  %1796 = vmatprep.subr.mxu1 %v5204_v0 }
 0x178   : > { %4422 = vmatprep.subr.mxu0 %v1728_v29  ;;  %4395 = vmatprep.mubr.f32.mxu0 %v4828_v34 }
 0x179   : > { %1797 = vmatpush2.msra.mxu1 %v1708_v48  ;;  %4423 = vmatpush3.msra.mxu0 %v1728_v29  ;;  %v1675_v29 = vld [vmem:[#allocation2 + $0x178] sm:$0xff] }
 0x17a   : > { %1457 = vmatprep.mubr.f32.mxu1 %v4829_v25  ;;  %4396 = vmatmul.mubr.f32.gmra.mxu0 %v4830_v56  ;;  %v1681_v56 = vld [vmem:[#allocation2 + $0x1a0] sm:$0xff] }
 0x17b   : > { %1798 = vmatprep.subr.mxu1 %v5204_v0  ;;  %4424 = vmatprep.subr.mxu0 %v1727_v44 }
 0x17c   : > { %1458 = vmatmul.mubr.f32.gmra.mxu1 %v6070_v1  ;;  %4425 = vmatpush3.msra.mxu0 %v1727_v44 }
 0x17d   : > { %1799 = vmatpush2.msra.mxu1 %v1707_v7  ;;  %4426 = vmatprep.subr.mxu0 %v1726_v57 }
 0x17e   : > { %4398 = vmatprep.mubr.f32.mxu0 %v4831_v10  ;;  %1800 = vmatprep.subr.mxu1 %v5204_v0  ;;  %v1722_v0 = vld [vmem:[#allocation9 + $0x400] sm:$0xff] }
 0x17f   : > { %4427 = vmatpush3.msra.mxu0 %v1726_v57  ;;  %1801 = vmatpush2.msra.mxu1 %v1706_v15  ;;  %v4835_v15 = vld [vmem:[#allocation2 + $0x210] sm:$0xff] }
 0x180   : > { %4399 = vmatmul.mubr.f32.gmra.mxu0 %v4832_v42  ;;  %1802 = vmatprep.mubr.f32.mxu1 %v1630_v43  ;;  %v4836_v42 = vld [vmem:[#allocation2 + $0xc0] sm:$0xff] }
 0x181   : > { %4428 = vmatprep.subr.mxu0 %v1725_v59  ;;  %1803 = vmatmul.mubr.f32.vlgmr.msra.gmra.mxu1 %v1629_v3 }
 0x182   : > { %4429 = vmatpush3.msra.mxu0 %v1725_v59  ;;  %4401 = vmatprep.mubr.f32.mxu0 %v4833_v61 }
 0x183   : > { %4430 = vmatprep.subr.mxu0 %v1724_v58  ;;  %1807 = vmatprep.mubr.f32.mxu1 %v1633_v22 }
 0x184   : > { %4431 = vmatpush3.msra.mxu0 %v1724_v58 }
 0x185   : > { %4402 = vmatmul.mubr.f32.gmra.mxu0 %v4834_v63  ;;  %4432 = vmatprep.subr.mxu0 %v1723_v5 }
 0x186   : > { %1808 = vmatmul.mubr.f32.gmra.mxu1 %v1632_v31  ;;  %4433 = vmatpush3.msra.mxu0 %v1723_v5 }
 0x187   : > { %4434 = vmatprep.subr.mxu0 %v1722_v0  ;;  %4436 = vmatprep.mubr.f32.mxu0 %v6127_v16  ;;  %v1649_v16 = vld [vmem:[#allocation2 + $0x80] sm:$0xff] }
 0x188   : > { %4435 = vmatpush3.msra.mxu0 %v1722_v0  ;;  %1812 = vmatprep.mubr.f32.mxu1 %v1636_v36 }
 0x189   : > { %4437 = vmatmul.mubr.f32.vlgmr.msra.gmra.mxu0 %v6131_v62  ;;  %v1652_v62 = vld [vmem:[#allocation2 + $0x170] sm:$0xff] }
 0x18a   : > { %1813 = vmatmul.mubr.f32.gmra.mxu1 %v1635_v32  ;;  %4439 = vmatprep.mubr.f32.mxu0 %v6137_v27  ;;  %v1655_v27 = vld [vmem:[#allocation2 + $0x1e0] sm:$0xff] }
 0x18b   : > { %1817 = vmatprep.mubr.f32.mxu1 %v1639_v6 }
 0x18d   : > { %4440 = vmatmul.mubr.f32.gmra.mxu0 %v1640_v51 }
 0x18e   : > { %1818 = vmatmul.mubr.f32.gmra.mxu1 %v5919_v46  ;;  %4442 = vmatprep.mubr.f32.mxu0 %v1643_v23  ;;  %v1658_v46 = vld [vmem:[#allocation2 + $0x98] sm:$0xff] }
 0x18f   : > { %1822 = vmatprep.mubr.f32.mxu1 %v1642_v37 }
 0x191   : > { %4443 = vmatmul.mubr.f32.gmra.mxu0 %v1646_v24 }
 0x192   : > { %4889 = vmatmul.mubr.msk.f32.gmra.mxu1 %vm5871_vm2, %v5922_v49  ;;  %4445 = vmatprep.mubr.f32.mxu0 %v1649_v16  ;;  %v1664_v49 = vld [vmem:[#allocation2 + $0x1b0] sm:$0xff] }
 0x193   : > { %1827 = vmatprep.mubr.f32.mxu1 %v1645_v11 }
 0x195   : > { %4446 = vmatmul.mubr.f32.gmra.mxu0 %v1652_v62 }
 0x196   : > { %1828 = vmatmul.mubr.f32.gmra.mxu1 %v5943_v53  ;;  %4448 = vmatprep.mubr.f32.mxu0 %v1655_v27  ;;  %v1670_v53 = vld [vmem:[#allocation2 + $0x228] sm:$0xff] }
 0x197   : > { %1832 = vmatprep.mubr.f32.mxu1 %v1648_v52 }
 0x199   : > { %4449 = vmatmul.mubr.f32.gmra.mxu0 %v1658_v46 }
 0x19a   : > { %4891 = vmatmul.mubr.msk.f32.gmra.mxu1 %vm5871_vm2, %v5946_v47  ;;  %4451 = vmatprep.mubr.f32.mxu0 %v1661_v30  ;;  %v1676_v47 = vld [vmem:[#allocation2 + $0x208] sm:$0xff] }
 0x19b   : > { %1837 = vmatprep.mubr.f32.mxu1 %v1651_v20  ;;  %v4314_v21 = vpop.f32.mrf.mxu1 }
 0x19d   : > { %4452 = vmatmul.mubr.f32.gmra.mxu0 %v1664_v49 }
 0x19e   : > { %1838 = vmatmul.mubr.f32.gmra.mxu1 %v5976_v12  ;;  %4454 = vmatprep.mubr.f32.mxu0 %v1667_v2  ;;  %v1682_v12 = vld [vmem:[#allocation2 + $0x58] sm:$0xff] }
 0x19f   : > { %1842 = vmatprep.mubr.f32.mxu1 %v1654_v18 }
 0x1a1   : > { %4455 = vmatmul.mubr.f32.gmra.mxu0 %v1670_v53 }
 0x1a2   : > { %4893 = vmatmul.mubr.msk.f32.gmra.mxu1 %vm5871_vm2, %v5979_v14  ;;  %4457 = vmatprep.mubr.f32.mxu0 %v1673_v39  ;;  %v1666_v14 = vld [vmem:[#allocation2 + $0x130] sm:$0xff] }
 0x1a3   : > { %1847 = vmatprep.mubr.f32.mxu1 %v1657_v60 }
 0x1a5   : > { %4458 = vmatmul.mubr.f32.gmra.mxu0 %v1676_v47 }
 0x1a6   : > { %1848 = vmatmul.mubr.f32.gmra.mxu1 %v5998_v40  ;;  %4460 = vmatprep.mubr.f32.mxu0 %v1679_v45  ;;  %v1669_v40 = vld [vmem:[#allocation2 + $0x1d8] sm:$0xff] }
 0x1a7   : > { %1852 = vmatprep.mubr.f32.mxu1 %v1660_v50 }
 0x1a9   : > { %4461 = vmatmul.mubr.f32.gmra.mxu0 %v1682_v12 }
 0x1aa   : > { %4895 = vmatmul.mubr.msk.f32.gmra.mxu1 %vm5871_vm2, %v6004_v9  ;;  %4463 = vmatprep.mubr.f32.mxu0 %v6090_v26  ;;  %v1199_v9 = vpop.f32.mrf.mxu1 }
 0x1ab   : > { %1857 = vmatprep.mubr.f32.mxu1 %v1663_v41 }
 0x1ad   : > { %4896 = vmatmul.mubr.msk.f32.gmra.mxu0 %vm605_vm0, %v640_v8 }
 0x1ae   : > { %1858 = vmatmul.mubr.f32.gmra.mxu1 %v6024_v54  ;;  %v1678_v54 = vld [vmem:[#allocation2 + $0x1d0] sm:$0xff] }
 0x1af   : > { %1862 = vmatprep.mubr.f32.mxu1 %v1666_v14 }
 0x1b2   : > { %4898 = vmatmul.mubr.msk.f32.gmra.mxu1 %vm5871_vm2, %v6027_v13 }
 0x1b3   : > { %1867 = vmatprep.mubr.f32.mxu1 %v1669_v40 }
 0x1b6   : > { %1868 = vmatmul.mubr.f32.gmra.mxu1 %v6044_v17 }
 0x1b7   : > { %1872 = vmatprep.mubr.f32.mxu1 %v1672_v19  ;;  %v4317_v26 = vpop.f32.mrf.mxu1 }
 0x1b9   : > { %v1209_v48 = vpop.f32.mrf.mxu1 }
 0x1ba   : > { %4900 = vmatmul.mubr.msk.f32.gmra.mxu1 %vm5871_vm2, %v6051_v38 }
 0x1bb   : > { %1877 = vmatprep.mubr.f32.mxu1 %v1675_v29 }
 0x1bc   : > { %v1034_v8 = vpop.f32.mrf.mxu0  ;;  %v4320_v34 = vpop.f32.mrf.mxu1 }
 0x1bd   : > { %v1200_v44 = vadd.f32 %v1199_v9, %v1034_v8 }
 0x1be   : > { %1878 = vmatmul.mubr.f32.gmra.mxu1 %v6070_v1  ;;  %v1036_v13 = vpop.f32.mrf.mxu0  ;;  %v1219_v25 = vpop.f32.mrf.mxu1 }
 0x1bf   : > { %1882 = vmatprep.mubr.f32.mxu1 %v1678_v54 }
 0x1c0   : > { %v1039_v17 = vpop.f32.mrf.mxu0 }
 0x1c1   : > { %v1205_v7 = vadd.f32 %v4314_v21, %v1039_v17  ;;  %v4323_v57 = vpop.f32.mrf.mxu1 }
 0x1c2   : > { %1883 = vmatmul.mubr.f32.gmra.mxu1 %v4835_v15  ;;  %v1041_v43 = vpop.f32.mrf.mxu0 }
 0x1c3   : > { %1887 = vmatprep.mubr.f32.mxu1 %v1681_v56  ;;  %v1229_v10 = vpop.f32.mrf.mxu1 }
 0x1c4   : > { %v1044_v38 = vpop.f32.mrf.mxu0 }
 0x1c5   : > { %v1210_v59 = vadd.f32 %v1209_v48, %v1044_v38  ;;  %v4326_v3 = vpop.f32.mrf.mxu1 }
 0x1c6   : > { %1888 = vmatmul.mubr.f32.gmra.mxu1 %v4836_v42  ;;  %v1046_v58 = vpop.f32.mrf.mxu0 }
 0x1c7   : > { %1892 = vmatprep.mubr.f32.mxu1 %v6074_v55  ;;  %v1239_v1 = vpop.f32.mrf.mxu1 }
 0x1c8   : > { %v1049_v22 = vpop.f32.mrf.mxu0 }
 0x1c9   : > { %v1215_v61 = vadd.f32 %v4317_v26, %v1049_v22  ;;  %v4329_v5 = vpop.f32.mrf.mxu1 }
 0x1ca   : > { %4902 = vmatmul.mubr.msk.f32.gmra.mxu1 %vm5871_vm2, %v566_v28  ;;  %v1051_v31 = vpop.f32.mrf.mxu0 }
 0x1cb   : > { %1897 = vmatprep.mubr.f32.mxu1 %v6080_v4  ;;  %v1249_v0 = vpop.f32.mrf.mxu1 }
 0x1cc   : > { %v1054_v63 = vpop.f32.mrf.mxu0 }
 0x1cd   : > { %v1220_v36 = vadd.f32 %v1219_v25, %v1054_v63  ;;  %v4332_v32 = vpop.f32.mrf.mxu1 }
 0x1ce   : > { %1898 = vmatmul.mubr.f32.gmra.mxu1 %v6104_v33  ;;  %v1056_v6 = vpop.f32.mrf.mxu0 }
 0x1cf   : > { %v1259_v51 = vpop.f32.mrf.mxu1 }
 0x1d0   : > { %v1059_v23 = vpop.f32.mrf.mxu0 }
 0x1d1   : > { %v1225_v37 = vadd.f32 %v4320_v34, %v1059_v23  ;;  %v4335_v24 = vpop.f32.mrf.mxu1 }
 0x1d2   : > { %v1061_v16 = vpop.f32.mrf.mxu0 }
 0x1d3   : > { %v1269_v11 = vpop.f32.mrf.mxu1 }
 0x1d4   : > { %v1064_v55 = vpop.f32.mrf.mxu0 }
 0x1d5   : > { %v1230_v62 = vadd.f32 %v1229_v10, %v1064_v55  ;;  %v6205_v35 = vpop.f32.mrf.mxu1 }
 0x1d6   : > { %v1066_v28 = vpop.f32.mrf.mxu0 }
 0x1d7   : > { %v1279_v27 = vpop.f32.mrf.mxu1 }
 0x1d8   : > { %v1069_v4 = vpop.f32.mrf.mxu0 }
 0x1d9   : > { %v1235_v52 = vadd.f32 %v4323_v57, %v1069_v4  ;;  %v6207_v46 = vpop.f32.mrf.mxu1 }
 0x1da   : > { %v1071_v30 = vpop.f32.mrf.mxu0 }
 0x1db   : > { %v1289_v33 = vpop.f32.mrf.mxu1 }
 0x1dc   : > { %v1074_v20 = vpop.f32.mrf.mxu0 }
 0x1dd   : > { %v1240_v49 = vadd.f32 %v1239_v1, %v1074_v20 }
 0x1de   : > { %v1076_v2 = vpop.f32.mrf.mxu0 }
 0x1df   : > { %v1364_v18 = vpop.f32.mrf.mxu1 }
 0x1e0   : > { %v6209_v53 = vadd.f32 %v1364_v18, %v1200_v44  ;;  %v1079_v39 = vpop.f32.mrf.mxu0 }
 0x1e1   : > { %v1366_v60 = vpop.f32.mrf.mxu1  ;;  %v1245_v47 = vadd.f32 %v4326_v3, %v1079_v39 }
 0x1e2   : > { %v1081_v45 = vpop.f32.mrf.mxu0 }
 0x1e3   : > { %v1369_v50 = vpop.f32.mrf.mxu1 }
 0x1e4   : > { %v6211_v12 = vadd.f32 %v1369_v50, %v1205_v7 }
 0x1e5   : > { %v1371_v41 = vpop.f32.mrf.mxu1  ;;  %v1084_v14 = vpop.f32.mrf.mxu0 }
 0x1e6   : > { %v1250_v40 = vadd.f32 %v1249_v0, %v1084_v14 }
 0x1e7   : > { %v1374_v21 = vpop.f32.mrf.mxu1  ;;  %v1086_v19 = vpop.f32.mrf.mxu0 }
 0x1e8   : > { %v6213_v9 = vadd.f32 %v1374_v21, %v1210_v59 }
 0x1e9   : > { %v1376_v26 = vpop.f32.mrf.mxu1  ;;  %v1089_v29 = vpop.f32.mrf.mxu0 }
 0x1ea   : > { %v1255_v48 = vadd.f32 %v4329_v5, %v1089_v29 }
 0x1eb   : > { %v1379_v54 = vpop.f32.mrf.mxu1  ;;  %v1091_v8 = vpop.f32.mrf.mxu0 }
 0x1ec   : > { %v6215_v34 = vadd.f32 %v1379_v54, %v1215_v61 }
 0x1ed   : > { %v1381_v44 = vpop.f32.mrf.mxu1 }
 0x1ee   : > { %v1094_v13 = vpop.f32.mrf.mxu0 }
 0x1ef   : > { %v1260_v25 = vadd.f32 %v1259_v51, %v1094_v13  ;;  %v1384_v56 = vpop.f32.mrf.mxu1 }
 0x1f0   : > { %v6217_v17 = vadd.f32 %v1384_v56, %v1220_v36  ;;  %v1096_v7 = vpop.f32.mrf.mxu0 }
 0x1f1   : > { %v1386_v57 = vpop.f32.mrf.mxu1 }
 0x1f2   : > { %v1099_v15 = vpop.f32.mrf.mxu0 }
 0x1f3   : > { %v1265_v43 = vadd.f32 %v4332_v32, %v1099_v15 }
 0x1f4   : > { %v1389_v10 = vpop.f32.mrf.mxu1  ;;  %v1101_v38 = vpop.f32.mrf.mxu0 }
 0x1f5   : > { %v6219_v59 = vadd.f32 %v1389_v10, %v1225_v37 }
 0x1f6   : > { %v1391_v3 = vpop.f32.mrf.mxu1  ;;  %v1104_v42 = vpop.f32.mrf.mxu0 }
 0x1f7   : > { %v1270_v58 = vadd.f32 %v1269_v11, %v1104_v42 }
 0x1f8   : > { %v1394_v1 = vpop.f32.mrf.mxu1  ;;  %v1106_v22 = vpop.f32.mrf.mxu0 }
 0x1f9   : > { %v6221_v61 = vadd.f32 %v1394_v1, %v1230_v62 }
 0x1fa   : > { %v1396_v5 = vpop.f32.mrf.mxu1  ;;  %v1109_v31 = vpop.f32.mrf.mxu0 }
 0x1fb   : > { %v1275_v0 = vadd.f32 %v4335_v24, %v1109_v31 }
 0x1fc   : > { %v1399_v63 = vpop.f32.mrf.mxu1  ;;  %v1111_v36 = vpop.f32.mrf.mxu0 }
 0x1fd   : > { %v6223_v6 = vadd.f32 %v1399_v63, %v1235_v52 }
 0x1fe   : > { %v1401_v51 = vpop.f32.mrf.mxu1 }
 0x200   : > { %v1114_v32 = vpop.f32.mrf.mxu0 }
 0x201   : > { %v1280_v23 = vadd.f32 %v1279_v27, %v1114_v32 }
 0x202   : > { %v1116_v16 = vpop.f32.mrf.mxu0 }
 0x203   : > { %v1404_v37 = vpop.f32.mrf.mxu1 }
 0x204   : > { %v6225_v55 = vadd.f32 %v1404_v37, %v1240_v49 }
 0x205   : > { %v1406_v28 = vpop.f32.mrf.mxu1 }
 0x206   : > { %v1119_v11 = vpop.f32.mrf.mxu0 }
 0x207   : > { %v1285_v4 = vadd.f32 %v6205_v35, %v1119_v11 }
 0x208   : > { %v1409_v62 = vpop.f32.mrf.mxu1  ;;  %v1121_v30 = vpop.f32.mrf.mxu0 }
 0x209   : > { %v6228_v20 = vadd.f32 %v1409_v62, %v1245_v47 }
 0x20a   : > { %v1411_v24 = vpop.f32.mrf.mxu1 }
 0x20b   : > { %v1124_v2 = vpop.f32.mrf.mxu0 }
 0x20c   : > { %v1290_v18 = vadd.f32 %v1289_v33, %v1124_v2 }
 0x20d   : > { %v1126_v52 = vpop.f32.mrf.mxu0 }
 0x20e   : > { %v1414_v39 = vpop.f32.mrf.mxu1 }
 0x20f   : > { %v6230_v60 = vadd.f32 %v1414_v39, %v1250_v40 }
 0x210   : > { %v1416_v27 = vpop.f32.mrf.mxu1 }
 0x211   : > { %v1129_v45 = vpop.f32.mrf.mxu0 }
 0x212   : > { %v1295_v49 = vadd.f32 %v6207_v46, %v1129_v45 }
 0x213   : > { %v1419_v50 = vpop.f32.mrf.mxu1  ;;  %v1131_v41 = vpop.f32.mrf.mxu0 }
 0x214   : > { %v6233_v14 = vadd.f32 %v1419_v50, %v1255_v48 }
 0x215   : > { %v1421_v35 = vpop.f32.mrf.mxu1 }
 0x217   : > { %v4376_v21 = vpop.f32.mrf.mxu0 }
 0x218   : > { %v1424_v19 = vpop.f32.mrf.mxu1 }
 0x219   : > { %v6235_v47 = vadd.f32 %v1424_v19, %v1260_v25  ;;  %v1529_v26 = vpop.f32.mrf.mxu0 }
 0x21a   : > { %v1426_v29 = vpop.f32.mrf.mxu1 }
 0x21b   : > { %v4379_v33 = vpop.f32.mrf.mxu0 }
 0x21c   : > { %v1429_v54 = vpop.f32.mrf.mxu1 }
 0x21d   : > { %v6237_v8 = vadd.f32 %v1429_v54, %v1265_v43  ;;  %v1539_v40 = vpop.f32.mrf.mxu0  ;;  %v1535_v54 = vadd.f32 %v4376_v21, %v6211_v12  ;;  %v1545_v12 = vadd.f32 %v4379_v33, %v6215_v34 }
 0x21e   : > { %v1431_v44 = vpop.f32.mrf.mxu1 }
 0x21f   : > { %v6239_v13 = vpop.f32.mrf.mxu0 }
 0x220   : > { %v1434_v46 = vpop.f32.mrf.mxu1 }
 0x221   : > { %v6241_v56 = vadd.f32 %v1434_v46, %v1270_v58  ;;  %v6243_v48 = vpop.f32.mrf.mxu0  ;;  %v6279_v46 = vld [vmem:[%s6974_s20] ss:$0 sm:$0xff] }
 0x222   : > { %v1436_v7 = vpop.f32.mrf.mxu1 }
 0x224   : > { %v6245_v57 = vpop.f32.mrf.mxu0 }
 0x225   : > { %v1439_v25 = vpop.f32.mrf.mxu1 }
 0x226   : > { %v1440_v15 = vadd.f32 %v1439_v25, %v1275_v0  ;;  %v6247_v10 = vpop.f32.mrf.mxu0  ;;  %v1530_v25 = vadd.f32 %v1529_v26, %v6209_v53 }
 0x227   : > { %v1441_v38 = vpop.f32.mrf.mxu1 }
 0x229   : > { %v6249_v3 = vpop.f32.mrf.mxu0 }
 0x22b   : > { %v1444_v43 = vpop.f32.mrf.mxu1  ;;  %v6251_v42 = vpop.f32.mrf.mxu0 }
 0x22c   : > { %v6253_v1 = vadd.f32 %v1444_v43, %v1280_v23 }
 0x22d   : > { %v1446_v22 = vpop.f32.mrf.mxu1 }
 0x22f   : > { %v6255_v58 = vpop.f32.mrf.mxu0 }
 0x230   : > { %v1449_v5 = vpop.f32.mrf.mxu1 }
 0x231   : > { %v1450_v31 = vadd.f32 %v1449_v5, %v1285_v4  ;;  %v6257_v63 = vpop.f32.mrf.mxu0 }
 0x232   : > { %v1451_v36 = vpop.f32.mrf.mxu1 }
 0x235   : > { %v6259_v51 = vpop.f32.mrf.mxu0 }
 0x236   : > { %v1454_v0 = vpop.f32.mrf.mxu1 }
 0x237   : > { %v1455_v32 = vadd.f32 %v1454_v0, %v1290_v18  ;;  %v6261_v16 = vpop.f32.mrf.mxu0 }
 0x238   : > { %v1456_v37 = vpop.f32.mrf.mxu1 }
 0x23a   : > { %v4397_v28 = vpop.f32.mrf.mxu0 }
 0x23b   : > { %v6263_v11 = vadd.f32 %v4397_v28, %v1440_v15 }
 0x23c   : > { %v1459_v23 = vpop.f32.mrf.mxu1  ;;  %v6265_v62 = vpop.f32.mrf.mxu0 }
 0x23d   : > { %v1460_v30 = vadd.f32 %v1459_v23, %v1295_v49 }
 0x23e   : > { %v1461_v24 = vpop.f32.mrf.mxu1 }
 0x240   : > { %v4400_v2 = vpop.f32.mrf.mxu0 }
 0x241   : > { %v6267_v4 = vadd.f32 %v4400_v2, %v1450_v31  ;;  %v1804_v52 = vpop.f32.mrf.mxu1 }
 0x242   : > { %v6269_v39 = vpop.f32.mrf.mxu0 }
 0x243   : > { %v1806_v27 = vpop.f32.mrf.mxu1 }
 0x245   : > { %v4403_v45 = vpop.f32.mrf.mxu0 }
 0x246   : > { %v6271_v18 = vadd.f32 %v4403_v45, %v1460_v30  ;;  %v1809_v50 = vpop.f32.mrf.mxu1 }
 0x247   : > { %v1619_v41 = vpop.f32.mrf.mxu0 }
 0x248   : > { %v6273_v35 = vadd.f32 %v1619_v41, %v1455_v32  ;;  %v1811_v19 = vpop.f32.mrf.mxu1  ;;  %v1540_v32 = vadd.f32 %v1539_v40, %v6213_v9 }
 0x249   : > { %v4438_v29 = vpop.f32.mrf.mxu0 }
 0x24a   : > { %v1975_v49 = vadd.f32 %v4438_v29, %v1809_v50  ;;  %v1814_v44 = vpop.f32.mrf.mxu1  ;;  %v1555_v29 = vadd.f32 %v6239_v13, %v6219_v59 }
 0x24b   : > { %v1969_v7 = vpop.f32.mrf.mxu0 }
 0x24c   : > { %v2069_v15 = vadd.f32 %v1975_v49, %v1535_v54  ;;  %v1970_v38 = vadd.f32 %v1969_v7, %v1804_v52  ;;  %v1816_v43 = vpop.f32.mrf.mxu1  ;;  %v1550_v54 = vadd.f32 %v6243_v48, %v6217_v17 }
 0x24d   : > { %v4441_v22 = vpop.f32.mrf.mxu0 }
 0x24e   : > { %v2096_v5 = vadd.f32 %v6279_v46, %v2069_v15  ;;  %v2068_v31 = vadd.f32 %v1970_v38, %v1530_v25  ;;  %v1819_v36 = vpop.f32.mrf.mxu1 }
 0x24f   : > { %v1985_v21 = vadd.f32 %v4441_v22, %v1819_v36  ;;  %v1979_v0 = vpop.f32.mrf.mxu0 }
 0x250   : > { %v2116_v37 = vmax.f32 %v2096_v5, 0.0  ;;  %v2095_v28 = vadd.f32 %v6279_v46, %v2068_v31  ;;  %v1980_v23 = vadd.f32 %v1979_v0, %v1814_v44  ;;  %v1821_v30 = vpop.f32.mrf.mxu1 }
 0x251   : > { %v2071_v53 = vadd.f32 %v1985_v21, %v1545_v12  ;;  %v4444_v26 = vpop.f32.mrf.mxu0 }
 0x252   : > { %v2216_v24 = vrot.slane %v2116_v37, 1  ;;  %2279 = vst [vmem:[#allocation2 + $0xe8] sm:$0xff] %v2116_v37  ;;  %v2115_v2 = vmax.f32 %v2095_v28, 0.0  ;;  %v2070_v52 = vadd.f32 %v1980_v23, %v1540_v32  ;;  %v1824_v27 = vpop.f32.mrf.mxu1  ;;  %v2156_v45 = vrot.slane %v2116_v37, 7 }
 0x253   : > { %v2098_v50 = vadd.f32 %v6279_v46, %v2071_v53  ;;  %v1989_v34 = vpop.f32.mrf.mxu0  ;;  %v1560_v53 = vadd.f32 %v6247_v10, %v6221_v61  ;;  %v1565_v10 = vadd.f32 %v6245_v57, %v6223_v6 }
 0x254   : > { %v2265_v33 = vsel %vm605_vm0, %v2216_v24, 0.0  ;;  %v2155_v41 = vrot.slane %v2115_v2, 7  ;;  %v2215_v9 = vrot.slane %v2115_v2, 1  ;;  %2276 = vst [vmem:[#allocation2 + $0x8] sm:$0xff] %v2115_v2  ;;  %v2097_v40 = vadd.f32 %v6279_v46, %v2070_v52  ;;  %v1826_v19 = vpop.f32.mrf.mxu1 }
 0x255   : > { %2280 = vst [vmem:[#allocation2 + $0xf0] sm:$0xff] %v2265_v33  ;;  %v2118_v49 = vmax.f32 %v2098_v50, 0.0  ;;  %v1990_v44 = vadd.f32 %v1989_v34, %v1824_v27  ;;  %v4447_v7 = vpop.f32.mrf.mxu0 }
 0x256   : > { %v2157_v25 = vsel %vm532_vm1, %v2155_v41, %v2156_v45  ;;  %v2205_v15 = vsel %vm532_vm1, 0.0, %v2155_v41  ;;  %v2217_v38 = vsel %vm605_vm0, %v2215_v9, %v2216_v24  ;;  %v2117_v43 = vmax.f32 %v2097_v40, 0.0  ;;  %v1829_v22 = vpop.f32.mrf.mxu1 }
 0x257   : > { %2275 = vst [vmem:[#allocation2 + $0xc8] sm:$0xff] %v2205_v15  ;;  %2277 = vst [vmem:[#allocation2 + $0x40] sm:$0xff] %v2217_v38  ;;  %v2159_v5 = vrot.slane %v2118_v49, 7  ;;  %v2219_v59 = vrot.slane %v2118_v49, 1  ;;  %v2072_v13 = vadd.f32 %v1990_v44, %v1550_v54  ;;  %v1995_v17 = vadd.f32 %v4444_v26, %v1829_v22  ;;  %v1999_v12 = vpop.f32.mrf.mxu0 }
 0x258   : > { %2278 = vst [vmem:[#allocation2 + $0x28] sm:$0xff] %v2157_v25  ;;  %2285 = vst [vmem:[#allocation2 + $0xb0] sm:$0xff] %v2118_v49  ;;  %v2158_v48 = vrot.slane %v2117_v43, 7  ;;  %v2218_v31 = vrot.slane %v2117_v43, 1  ;;  %v1831_v36 = vpop.f32.mrf.mxu1 }
 0x259   : > { %2282 = vst [vmem:[#allocation2 + $0x120] sm:$0xff] %v2117_v43  ;;  %v2266_v21 = vsel %vm605_vm0, %v2219_v59, 0.0  ;;  %v2099_v0 = vadd.f32 %v6279_v46, %v2072_v13  ;;  %v2073_v32 = vadd.f32 %v1995_v17, %v1555_v29  ;;  %v4450_v27 = vpop.f32.mrf.mxu0 }
 0x25a   : > { %2286 = vst [vmem:[#allocation2 + $0x158] sm:$0xff] %v2266_v21  ;;  %v2160_v37 = vsel %vm532_vm1, %v2158_v48, %v2159_v5  ;;  %v2206_v28 = vsel %vm532_vm1, 0.0, %v2158_v48  ;;  %v2220_v23 = vsel %vm605_vm0, %v2218_v31, %v2219_v59  ;;  %v1834_v30 = vpop.f32.mrf.mxu1  ;;  %v1570_v5 = vadd.f32 %v6251_v42, %v6225_v55 }
 0x25b   : > { %2281 = vst [vmem:[#allocation2 + $0x70] sm:$0xff] %v2206_v28  ;;  %2283 = vst [vmem:[#allocation2 + $0xd8] sm:$0xff] %v2220_v23  ;;  %v2119_v26 = vmax.f32 %v2099_v0, 0.0  ;;  %v2100_v24 = vadd.f32 %v6279_v46, %v2073_v32  ;;  %v2000_v2 = vadd.f32 %v1999_v12, %v1834_v30  ;;  %v2009_v49 = vpop.f32.mrf.mxu0  ;;  %v1575_v12 = vadd.f32 %v6249_v3, %v6228_v20 }
 0x25c   : > { %2284 = vst [vmem:[#allocation2 + $0x18] sm:$0xff] %v2160_v37  ;;  %v1836_v52 = vpop.f32.mrf.mxu1  ;;  %v1580_v20 = vadd.f32 %v6257_v63, %v6230_v60 }
 0x25d   : > { %v2161_v45 = vrot.slane %v2119_v26, 7  ;;  %2288 = vst [vmem:[#allocation2 + $0x110] sm:$0xff] %v2119_v26  ;;  %v2120_v50 = vmax.f32 %v2100_v24, 0.0  ;;  %v2074_v34 = vadd.f32 %v2000_v2, %v1560_v53  ;;  %v2221_v33 = vrot.slane %v2119_v26, 1  ;;  %v4453_v13 = vpop.f32.mrf.mxu0 }
 0x25e   : > { %v1839_v41 = vpop.f32.mrf.mxu1 }
 0x25f   : > { %v2207_v9 = vsel %vm532_vm1, 0.0, %v2161_v45  ;;  %v2162_v40 = vrot.slane %v2120_v50, 7  ;;  %v2222_v19 = vrot.slane %v2120_v50, 1  ;;  %2291 = vst [vmem:[#allocation2 + $0x180] sm:$0xff] %v2120_v50  ;;  %v2101_v61 = vadd.f32 %v6279_v46, %v2074_v34  ;;  %v2019_v28 = vpop.f32.mrf.mxu0 }
 0x260   : > { %2287 = vst [vmem:[#allocation2 + $0x108] sm:$0xff] %v2207_v9  ;;  %v2005_v29 = vadd.f32 %v4447_v7, %v1839_v41  ;;  %v1841_v54 = vpop.f32.mrf.mxu1 }
 0x261   : > { %v2163_v44 = vsel %vm532_vm1, %v2161_v45, %v2162_v40  ;;  %v2223_v25 = vsel %vm605_vm0, %v2221_v33, %v2222_v19  ;;  %v2267_v15 = vsel %vm605_vm0, %v2222_v19, 0.0  ;;  %v2121_v38 = vmax.f32 %v2101_v61, 0.0  ;;  %v4456_v50 = vpop.f32.mrf.mxu0 }
 0x262   : > { %2289 = vst [vmem:[#allocation2 + $0x1f8] sm:$0xff] %v2223_v25  ;;  %2290 = vst [vmem:[#allocation2 + $0xb8] sm:$0xff] %v2163_v44  ;;  %v2075_v43 = vadd.f32 %v2005_v29, %v1565_v10  ;;  %v1844_v22 = vpop.f32.mrf.mxu1  ;;  %v1585_v10 = vadd.f32 %v6255_v58, %v6233_v14 }
 0x263   : > { %2292 = vst [vmem:[#allocation2 + $0x190] sm:$0xff] %v2267_v15  ;;  %v2164_v6 = vrot.slane %v2121_v38, 7  ;;  %2294 = vst [vmem:[#allocation2 + $0x1c0] sm:$0xff] %v2121_v38  ;;  %v2010_v57 = vadd.f32 %v2009_v49, %v1844_v22  ;;  %v2224_v55 = vrot.slane %v2121_v38, 1  ;;  %v2029_v54 = vpop.f32.mrf.mxu0  ;;  %v1590_v22 = vadd.f32 %v6261_v16, %v6235_v47 }
 0x264   : > { %v2102_v7 = vadd.f32 %v6279_v46, %v2075_v43  ;;  %v1846_v59 = vpop.f32.mrf.mxu1 }
 0x265   : > { %v2208_v17 = vsel %vm532_vm1, 0.0, %v2164_v6  ;;  %v2076_v48 = vadd.f32 %v2010_v57, %v1570_v5  ;;  %v4459_v57 = vpop.f32.mrf.mxu0 }
 0x266   : > { %2293 = vst [vmem:[#allocation2 + $0x140] sm:$0xff] %v2208_v17  ;;  %v2122_v31 = vmax.f32 %v2102_v7, 0.0  ;;  %v1849_v36 = vpop.f32.mrf.mxu1 }
 0x267   : > { %v2103_v21 = vadd.f32 %v6279_v46, %v2076_v48  ;;  %v2015_v0 = vadd.f32 %v4450_v27, %v1849_v36  ;;  %v1595_v48 = vadd.f32 %v6259_v51, %v6237_v8  ;;  %v1600_v8 = vadd.f32 %v6265_v62, %v6241_v56 }
 0x268   : > { %v2165_v42 = vrot.slane %v2122_v31, 7  ;;  %v2225_v32 = vrot.slane %v2122_v31, 1  ;;  %2297 = vst [vmem:[#allocation2 + $0x60] sm:$0xff] %v2122_v31  ;;  %v1851_v37 = vpop.f32.mrf.mxu1 }
 0x269   : > { %v2123_v23 = vmax.f32 %v2103_v21, 0.0  ;;  %v2077_v30 = vadd.f32 %v2015_v0, %v1575_v12  ;;  %v2039_v0 = vpop.f32.mrf.mxu0 }
 0x26a   : > { %v2166_v53 = vsel %vm532_vm1, %v2164_v6, %v2165_v42  ;;  %v2226_v26 = vsel %vm605_vm0, %v2224_v55, %v2225_v32  ;;  %v2268_v24 = vsel %vm605_vm0, %v2225_v32, 0.0  ;;  %v1854_v2 = vpop.f32.mrf.mxu1 }
 0x26b   : > { %2295 = vst [vmem:[#allocation2 + $0xd0] sm:$0xff] %v2226_v26  ;;  %2296 = vst [vmem:[#allocation2 + $0x138] sm:$0xff] %v2166_v53  ;;  %v2167_v3 = vrot.slane %v2123_v23, 7  ;;  %v2104_v52 = vadd.f32 %v6279_v46, %v2077_v30  ;;  %v2020_v27 = vadd.f32 %v2019_v28, %v1854_v2  ;;  %v2227_v9 = vrot.slane %v2123_v23, 1 }
 0x26c   : > { %2298 = vst [vmem:[#allocation2 + $0x1b8] sm:$0xff] %v2268_v24  ;;  %2300 = vst [vmem:[#allocation2] sm:$0xff] %v2123_v23  ;;  %v1856_v45 = vpop.f32.mrf.mxu1  ;;  %v4462_v24 = vpop.f32.mrf.mxu0 }
 0x26d   : > { %v2209_v34 = vsel %vm532_vm1, 0.0, %v2167_v3  ;;  %v2124_v33 = vmax.f32 %v2104_v52, 0.0  ;;  %v2078_v41 = vadd.f32 %v2020_v27, %v1580_v20 }
 0x26e   : > { %2299 = vst [vmem:[#allocation2 + $0x88] sm:$0xff] %v2209_v34  ;;  %v1859_v40 = vpop.f32.mrf.mxu1 }
 0x26f   : > { %v2168_v19 = vrot.slane %v2124_v33, 7  ;;  %v2228_v61 = vrot.slane %v2124_v33, 1  ;;  %2303 = vst [vmem:[#allocation2 + $0x1a8] sm:$0xff] %v2124_v33  ;;  %v2105_v60 = vadd.f32 %v6279_v46, %v2078_v41  ;;  %v2025_v63 = vadd.f32 %v4453_v13, %v1859_v40  ;;  %v2049_v33 = vpop.f32.mrf.mxu0 }
 0x270   : > { %v1861_v29 = vpop.f32.mrf.mxu1 }
 0x271   : > { %v2169_v49 = vsel %vm532_vm1, %v2167_v3, %v2168_v19  ;;  %v2229_v44 = vsel %vm605_vm0, %v2227_v9, %v2228_v61  ;;  %v2269_v25 = vsel %vm605_vm0, %v2228_v61, 0.0  ;;  %v2125_v15 = vmax.f32 %v2105_v60, 0.0 }
 0x272   : > { %2301 = vst [vmem:[#allocation2 + $0x188] sm:$0xff] %v2229_v44  ;;  %2302 = vst [vmem:[#allocation2 + $0x38] sm:$0xff] %v2169_v49  ;;  %v2079_v38 = vadd.f32 %v2025_v63, %v1585_v10  ;;  %v1864_v43 = vpop.f32.mrf.mxu1  ;;  %v1610_v63 = vadd.f32 %v6269_v39, %v6253_v1  ;;  %v4465_v44 = vpop.f32.mrf.mxu0 }
 0x273   : > { %2304 = vst [vmem:[#allocation2 + $0x220] sm:$0xff] %v2269_v25  ;;  %v2170_v5 = vrot.slane %v2125_v15, 7  ;;  %2306 = vst [vmem:[#allocation2 + $0x1c8] sm:$0xff] %v2125_v15  ;;  %v2030_v14 = vadd.f32 %v2029_v54, %v1864_v43  ;;  %v2230_v47 = vrot.slane %v2125_v15, 1 }
 0x274   : > { %v2106_v58 = vadd.f32 %v6279_v46, %v2079_v38  ;;  %v1866_v6 = vpop.f32.mrf.mxu1  ;;  %v2059_v39 = vpop.f32.mrf.mxu0 }
 0x275   : > { %v2210_v7 = vsel %vm532_vm1, 0.0, %v2170_v5  ;;  %v2080_v59 = vadd.f32 %v2030_v14, %v1590_v22 }
 0x276   : > { %2305 = vst [vmem:[#allocation2 + $0x1e8] sm:$0xff] %v2210_v7  ;;  %v2126_v13 = vmax.f32 %v2106_v58, 0.0  ;;  %v1869_v17 = vpop.f32.mrf.mxu1 }
 0x277   : > { %v2107_v31 = vadd.f32 %v6279_v46, %v2080_v59  ;;  %v2035_v36 = vadd.f32 %v4456_v50, %v1869_v17 }
 0x278   : > { %v2171_v16 = vrot.slane %v2126_v13, 7  ;;  %v2231_v12 = vrot.slane %v2126_v13, 1  ;;  %2309 = vst [vmem:[#allocation2 + $0x78] sm:$0xff] %v2126_v13  ;;  %v1871_v21 = vpop.f32.mrf.mxu1 }
 0x279   : > { %v2127_v55 = vmax.f32 %v2107_v31, 0.0  ;;  %v2081_v42 = vadd.f32 %v2035_v36, %v1595_v48 }
 0x27a   : > { %v2172_v32 = vsel %vm532_vm1, %v2170_v5, %v2171_v16  ;;  %v2232_v37 = vsel %vm605_vm0, %v2230_v47, %v2231_v12  ;;  %v2270_v28 = vsel %vm605_vm0, %v2231_v12, 0.0  ;;  %v1874_v23 = vpop.f32.mrf.mxu1 }
 0x27b   : > { %2307 = vst [vmem:[#allocation2 + $0x80] sm:$0xff] %v2232_v37  ;;  %2308 = vst [vmem:[#allocation2 + $0xf8] sm:$0xff] %v2172_v32  ;;  %v2173_v51 = vrot.slane %v2127_v55, 7  ;;  %v2108_v30 = vadd.f32 %v6279_v46, %v2081_v42  ;;  %v2040_v53 = vadd.f32 %v2039_v0, %v1874_v23  ;;  %v2233_v52 = vrot.slane %v2127_v55, 1 }
 0x27c   : > { %2310 = vst [vmem:[#allocation2 + $0x170] sm:$0xff] %v2270_v28  ;;  %2312 = vst [vmem:[#allocation2 + $0xe0] sm:$0xff] %v2127_v55  ;;  %v1876_v26 = vpop.f32.mrf.mxu1 }
 0x27d   : > { %v2211_v2 = vsel %vm532_vm1, 0.0, %v2173_v51  ;;  %v2128_v20 = vmax.f32 %v2108_v30, 0.0  ;;  %v2082_v3 = vadd.f32 %v2040_v53, %v1600_v8 }
 0x27e   : > { %2311 = vst [vmem:[#allocation2 + $0x198] sm:$0xff] %v2211_v2  ;;  %v1879_v27 = vpop.f32.mrf.mxu1 }
 0x27f   : > { %v2174_v45 = vrot.slane %v2128_v20, 7  ;;  %v2234_v50 = vrot.slane %v2128_v20, 1  ;;  %2315 = vst [vmem:[#allocation2 + $0x48] sm:$0xff] %v2128_v20  ;;  %v2109_v56 = vadd.f32 %v6279_v46, %v2082_v3  ;;  %v2045_v62 = vadd.f32 %v4459_v57, %v1879_v27 }
 0x280   : > { %v1881_v34 = vpop.f32.mrf.mxu1 }
 0x281   : > { %v2175_v41 = vsel %vm532_vm1, %v2173_v51, %v2174_v45  ;;  %v2235_v9 = vsel %vm605_vm0, %v2233_v52, %v2234_v50  ;;  %v2271_v40 = vsel %vm605_vm0, %v2234_v50, 0.0  ;;  %v2129_v19 = vmax.f32 %v2109_v56, 0.0 }
 0x282   : > { %2313 = vst [vmem:[#allocation2 + $0x1e0] sm:$0xff] %v2235_v9  ;;  %2314 = vst [vmem:[#allocation2 + $0x1f0] sm:$0xff] %v2175_v41  ;;  %v2083_v61 = vadd.f32 %v2045_v62, %v6263_v11  ;;  %v1884_v60 = vpop.f32.mrf.mxu1 }
 0x283   : > { %2316 = vst [vmem:[#allocation2 + $0x98] sm:$0xff] %v2271_v40  ;;  %v2176_v10 = vrot.slane %v2129_v19, 7  ;;  %2318 = vst [vmem:[#allocation2 + $0x160] sm:$0xff] %v2129_v19  ;;  %v2050_v29 = vadd.f32 %v2049_v33, %v1884_v60  ;;  %v2236_v5 = vrot.slane %v2129_v19, 1 }
 0x284   : > { %v2110_v54 = vadd.f32 %v6279_v46, %v2083_v61  ;;  %v1886_v49 = vpop.f32.mrf.mxu1 }
 0x285   : > { %v2212_v25 = vsel %vm532_vm1, 0.0, %v2176_v10  ;;  %v2084_v15 = vadd.f32 %v2050_v29, %v1610_v63 }
 0x286   : > { %2317 = vst [vmem:[#allocation2 + $0x238] sm:$0xff] %v2212_v25  ;;  %v2130_v38 = vmax.f32 %v2110_v54, 0.0  ;;  %v1889_v43 = vpop.f32.mrf.mxu1 }
 0x287   : > { %v2111_v22 = vadd.f32 %v6279_v46, %v2084_v15  ;;  %v2055_v11 = vadd.f32 %v4462_v24, %v1889_v43 }
 0x288   : > { %v2177_v14 = vrot.slane %v2130_v38, 7  ;;  %v2237_v58 = vrot.slane %v2130_v38, 1  ;;  %2321 = vst [vmem:[#allocation2 + $0x30] sm:$0xff] %v2130_v38  ;;  %v1891_v1 = vpop.f32.mrf.mxu1 }
 0x289   : > { %v2131_v6 = vmax.f32 %v2111_v22, 0.0  ;;  %v2085_v57 = vadd.f32 %v2055_v11, %v6267_v4 }
 0x28a   : > { %v2178_v7 = vsel %vm532_vm1, %v2176_v10, %v2177_v14  ;;  %v2238_v59 = vsel %vm605_vm0, %v2236_v5, %v2237_v58  ;;  %v2272_v13 = vsel %vm605_vm0, %v2237_v58, 0.0  ;;  %v1894_v17 = vpop.f32.mrf.mxu1 }
 0x28b   : > { %2319 = vst [vmem:[#allocation2 + $0x50] sm:$0xff] %v2238_v59  ;;  %2320 = vst [vmem:[#allocation2 + $0x100] sm:$0xff] %v2178_v7  ;;  %v2179_v48 = vrot.slane %v2131_v6, 7  ;;  %v2112_v31 = vadd.f32 %v6279_v46, %v2085_v57  ;;  %v2060_v36 = vadd.f32 %v2059_v39, %v1894_v17  ;;  %v2239_v21 = vrot.slane %v2131_v6, 1 }
 0x28c   : > { %2322 = vst [vmem:[#allocation2 + $0x1b0] sm:$0xff] %v2272_v13  ;;  %2324 = vst [vmem:[#allocation2 + $0x130] sm:$0xff] %v2131_v6  ;;  %v1896_v47 = vpop.f32.mrf.mxu1 }
 0x28d   : > { %v2213_v16 = vsel %vm532_vm1, 0.0, %v2179_v48  ;;  %v2132_v12 = vmax.f32 %v2112_v31, 0.0  ;;  %v2086_v4 = vadd.f32 %v2060_v36, %v6273_v35 }
 0x28e   : > { %2323 = vst [vmem:[#allocation2 + $0x90] sm:$0xff] %v2213_v16  ;;  %v1899_v0 = vpop.f32.mrf.mxu1 }
 0x28f   : > { %v2180_v55 = vrot.slane %v2132_v12, 7  ;;  %v2240_v42 = vrot.slane %v2132_v12, 1  ;;  %2327 = vst [vmem:[#allocation2 + $0x1d8] sm:$0xff] %v2132_v12  ;;  %v2113_v32 = vadd.f32 %v6279_v46, %v2086_v4  ;;  %v2065_v37 = vadd.f32 %v4465_v44, %v1899_v0 }
 0x290   : > { %v1901_v28 = vpop.f32.mrf.mxu1 }
 0x291   : > { %v2181_v23 = vsel %vm532_vm1, %v2179_v48, %v2180_v55  ;;  %v2241_v8 = vsel %vm605_vm0, %v2239_v21, %v2240_v42  ;;  %v2273_v51 = vsel %vm605_vm0, %v2240_v42, 0.0  ;;  %v2133_v30 = vmax.f32 %v2113_v32, 0.0 }
 0x292   : > { %2325 = vst [vmem:[#allocation2 + $0x68] sm:$0xff] %v2241_v8  ;;  %2326 = vst [vmem:[#allocation2 + $0x230] sm:$0xff] %v2181_v23  ;;  %v2087_v35 = vadd.f32 %v2065_v37, %v6271_v18 }
 0x293   : > { %2328 = vst [vmem:[#allocation2 + $0x228] sm:$0xff] %v2273_v51  ;;  %v2182_v53 = vrot.slane %v2133_v30, 7  ;;  %2330 = vst [vmem:[#allocation2 + $0x200] sm:$0xff] %v2133_v30  ;;  %v2242_v20 = vrot.slane %v2133_v30, 1 }
 0x294   : > { %v2114_v26 = vadd.f32 %v6279_v46, %v2087_v35 }
 0x295   : > { %v2214_v24 = vsel %vm532_vm1, 0.0, %v2182_v53 }
 0x296   : > { %2329 = vst [vmem:[#allocation2 + $0x218] sm:$0xff] %v2214_v24  ;;  %v2134_v2 = vmax.f32 %v2114_v26, 0.0 }
 0x298   : > { %v2183_v3 = vrot.slane %v2134_v2, 7  ;;  %v2243_v52 = vrot.slane %v2134_v2, 1  ;;  %2333 = vst [vmem:[#allocation2 + $0x178] sm:$0xff] %v2134_v2  ;;  %2338 = sbr.rel (%p3816_p11) target bundleno = 673 (0x2a1), region = 72 }
 0x29a   : > { %v2184_v27 = vsel %vm532_vm1, %v2182_v53, %v2183_v3  ;;  %v2244_v45 = vsel %vm605_vm0, %v2242_v20, %v2243_v52  ;;  %v2274_v50 = vsel %vm605_vm0, %v2243_v52, 0.0 }
 0x29b   : > { %2331 = vst [vmem:[#allocation2 + $0x10] sm:$0xff] %v2244_v45  ;;  %2332 = vst [vmem:[#allocation2 + $0x128] sm:$0xff] %v2184_v27 }
 0x29c   : > { %2334 = vst [vmem:[#allocation2 + $0x208] sm:$0xff] %v2274_v50 }
 0x29d   : > { %v5205_v18 = vmov 0.0  }
 0x29e   : > { %2339 = vst [vmem:[#allocation2 + $0xc8] sm:$0xff] %v5205_v18  ;;  %2340 = vst [vmem:[#allocation2 + $0x8] sm:$0xff] %v5205_v18 }
 0x29f   : > { %2341 = vst [vmem:[#allocation2 + $0x40] sm:$0xff] %v5205_v18  ;;  %2342 = vst [vmem:[#allocation2 + $0x28] sm:$0xff] %v5205_v18 }
 0x2a0   : > { %2343 = vst [vmem:[#allocation2 + $0xe8] sm:$0xff] %v5205_v18  ;;  %2344 = vst [vmem:[#allocation2 + $0xf0] sm:$0xff] %v5205_v18 }
 0x2a1 PF: > { %s6975_s28 = sld [smem:[#allocation22_spill]] }
 0x2a7   : > { %p3817_p1 = scmp.ne.s32.totalorder %s6975_s28, 1 }
 0x2a9   : > { %2348 = sbr.rel (%p3817_p1) target bundleno = 690 (0x2b2), region = 76 }
 0x2ae   : > { %v5206_v46 = vmov 0.0  }
 0x2af   : > { %2350 = vst [vmem:[#allocation2 + $0x218] sm:$0xff] %v5206_v46  ;;  %2351 = vst [vmem:[#allocation2 + $0x200] sm:$0xff] %v5206_v46 }
 0x2b0   : > { %2352 = vst [vmem:[#allocation2 + $0x10] sm:$0xff] %v5206_v46  ;;  %2353 = vst [vmem:[#allocation2 + $0x128] sm:$0xff] %v5206_v46 }
 0x2b1   : > { %2354 = vst [vmem:[#allocation2 + $0x178] sm:$0xff] %v5206_v46  ;;  %2355 = vst [vmem:[#allocation2 + $0x208] sm:$0xff] %v5206_v46 }
 0x2b2 PF: > { %v2532_v56 = vld [vmem:[#allocation11 + $0x278] sm:$0xff]  ;;  %v2531_v34 = vld [vmem:[#allocation11 + $0x270] sm:$0xff]  ;;  %v2530_v9 = vld [vmem:[#allocation11 + $0x268] sm:$0xff]  ;;  %s6976_s2 = sld [smem:[#allocation38_spill]]  ;;  %s3620_s12 = sshll.u32 %s6374_s17, 4  ;;  %s6800_s12 = int_to_ptr.vmem [resolvable:$true] %s3620_s12 }
 0x2b3   : > { %v2516_v62 = vld [vmem:[#allocation11 + $0x1f8] sm:$0xff]  ;;  %3944 = vmatprep.subr.mxu0 %v2532_v56  ;;  %v2515_v41 = vld [vmem:[#allocation11 + $0x1f0] sm:$0xff]  ;;  %v2514_v19 = vld [vmem:[#allocation11 + $0x1e8] sm:$0xff]  ;;  %s6977_s10 = sld [smem:[#allocation22_spill]]  ;;  %s3604_s5 = scalar_lea.sflag [#allocation5], %s5550_s19 }
 0x2b4   : > { %v2548_v33 = vld [vmem:[#allocation11 + $0x2f8] sm:$0xff]  ;;  %3945 = vmatpush3.msra.mxu0 %v2516_v62  ;;  %v2547_v40 = vld [vmem:[#allocation11 + $0x2f0] sm:$0xff]  ;;  %v2546_v61 = vld [vmem:[#allocation11 + $0x2e8] sm:$0xff]  ;;  %s6978_s13 = sld [smem:[#allocation23_spill]]  ;;  %s5039_s11 = scalar_lea.vmem %s6800_s12, 2048 }
 0x2b5   : > { %4466 = vmatprep.subr.mxu1 %v2548_v33  ;;  %3946 = vmatprep.subr.mxu0 %v2531_v34  ;;  %v2529_v60 = vld [vmem:[#allocation11 + $0x260] sm:$0xff]  ;;  %v2528_v29 = vld [vmem:[#allocation11 + $0x258] sm:$0xff]  ;;  %v2527_v44 = vld [vmem:[#allocation11 + $0x250] sm:$0xff]  ;;  %s6979_s3 = sld [smem:[#allocation39_spill]]  ;;  %p5040_p13 = scmp.ne.s32.totalorder %s6800_s12, %s5039_s11 }
 0x2b6   : > { %4467 = vmatpush3.msra.mxu1 %v2548_v33  ;;  %3947 = vmatpush3.msra.mxu0 %v2515_v41  ;;  %v2513_v63 = vld [vmem:[#allocation11 + $0x1e0] sm:$0xff]  ;;  %v2512_v54 = vld [vmem:[#allocation11 + $0x1d8] sm:$0xff]  ;;  %v2511_v25 = vld [vmem:[#allocation11 + $0x1d0] sm:$0xff]  ;;  %p6980_p9 = scmp.ne.s32.totalorder %s6944_s18, 0 }
 0x2b7   : > { %4468 = vmatprep.subr.mxu1 %v2547_v40  ;;  %3948 = vmatprep.subr.mxu0 %v2530_v9  ;;  %v2545_v10 = vld [vmem:[#allocation11 + $0x2e0] sm:$0xff]  ;;  %v2544_v49 = vld [vmem:[#allocation11 + $0x2d8] sm:$0xff]  ;;  %v2543_v15 = vld [vmem:[#allocation11 + $0x2d0] sm:$0xff] }
 0x2b8   : > { %4469 = vmatpush3.msra.mxu1 %v2547_v40  ;;  %3949 = vmatpush3.msra.mxu0 %v2514_v19  ;;  %v2526_v38 = vld [vmem:[#allocation11 + $0x248] sm:$0xff]  ;;  %v2525_v11 = vld [vmem:[#allocation11 + $0x240] sm:$0xff]  ;;  %v2524_v58 = vld [vmem:[#allocation11 + $0x238] sm:$0xff]  ;;  %p5041_p12 = pnand %p5040_p13, %p6980_p9 }
 0x2b9   : > { %4470 = vmatprep.subr.mxu1 %v2546_v61  ;;  %3950 = vmatprep.subr.mxu0 %v2529_v60  ;;  %v2510_v43 = vld [vmem:[#allocation11 + $0x1c8] sm:$0xff]  ;;  %v2509_v5 = vld [vmem:[#allocation11 + $0x1c0] sm:$0xff]  ;;  %v2508_v1 = vld [vmem:[#allocation11 + $0x1b8] sm:$0xff]  ;;  %s3835_s25 = sshll.u32 %s6977_s10, 4 }
 0x2ba   : > { %4471 = vmatpush3.msra.mxu1 %v2546_v61  ;;  %3951 = vmatpush3.msra.mxu0 %v2513_v63  ;;  %v2542_v22 = vld [vmem:[#allocation11 + $0x2c8] sm:$0xff]  ;;  %v2541_v14 = vld [vmem:[#allocation11 + $0x2c0] sm:$0xff]  ;;  %v2540_v39 = vld [vmem:[#allocation11 + $0x2b8] sm:$0xff]  ;;  %s3822_s21 = sshll.u32 %s6978_s13, 5  ;;  %p5042_p5 = pneg %p5041_p12 }
 0x2bb   : > { %4472 = vmatprep.subr.mxu1 %v2545_v10  ;;  %3952 = vmatprep.subr.mxu0 %v2528_v29  ;;  %v2523_v6 = vld [vmem:[#allocation11 + $0x230] sm:$0xff]  ;;  %v2522_v59 = vld [vmem:[#allocation11 + $0x228] sm:$0xff]  ;;  %v2521_v48 = vld [vmem:[#allocation11 + $0x220] sm:$0xff]  ;;  %s3617_s26 = sadd.s32 %s3835_s25, %s3822_s21 }
 0x2bc   : > { %4473 = vmatpush3.msra.mxu1 %v2545_v10  ;;  %3953 = vmatpush3.msra.mxu0 %v2512_v54  ;;  %v2507_v57 = vld [vmem:[#allocation11 + $0x1b0] sm:$0xff]  ;;  %v2506_v13 = vld [vmem:[#allocation11 + $0x1a8] sm:$0xff]  ;;  %v2505_v31 = vld [vmem:[#allocation11 + $0x1a0] sm:$0xff]  ;;  %s3823_s22 = sshll.u32 %s3617_s26, 7 }
 0x2bd   : > { %4474 = vmatprep.subr.mxu1 %v2544_v49  ;;  %3954 = vmatprep.subr.mxu0 %v2527_v44  ;;  %v2539_v7 = vld [vmem:[#allocation11 + $0x2b0] sm:$0xff]  ;;  %v2538_v17 = vld [vmem:[#allocation11 + $0x2a8] sm:$0xff]  ;;  %v2537_v36 = vld [vmem:[#allocation11 + $0x2a0] sm:$0xff]  ;;  %s6798_s15 = scalar_lea.hbm %s6979_s3, %s3823_s22 }
 0x2be   : > { %4475 = vmatpush3.msra.mxu1 %v2544_v49  ;;  %3955 = vmatpush3.msra.mxu0 %v2511_v25  ;;  %v2520_v47 = vld [vmem:[#allocation11 + $0x218] sm:$0xff]  ;;  %v2519_v4 = vld [vmem:[#allocation11 + $0x210] sm:$0xff]  ;;  %v2518_v55 = vld [vmem:[#allocation11 + $0x208] sm:$0xff] }
 0x2bf   : > { %4476 = vmatprep.subr.mxu1 %v2543_v15  ;;  %3956 = vmatprep.subr.mxu0 %v2526_v38  ;;  %v2504_v16 = vld [vmem:[#allocation11 + $0x198] sm:$0xff]  ;;  %v2503_v21 = vld [vmem:[#allocation11 + $0x190] sm:$0xff]  ;;  %v2502_v42 = vld [vmem:[#allocation11 + $0x188] sm:$0xff] }
 0x2c0   : > { %4477 = vmatpush3.msra.mxu1 %v2543_v15  ;;  %3957 = vmatpush3.msra.mxu0 %v2510_v43  ;;  %v2536_v12 = vld [vmem:[#allocation11 + $0x298] sm:$0xff]  ;;  %v2535_v0 = vld [vmem:[#allocation11 + $0x290] sm:$0xff]  ;;  %v2534_v32 = vld [vmem:[#allocation11 + $0x288] sm:$0xff] }
 0x2c1   : > { %4478 = vmatprep.subr.mxu1 %v2542_v22  ;;  %3958 = vmatprep.subr.mxu0 %v2525_v11  ;;  %v2517_v37 = vld [vmem:[#allocation11 + $0x200] sm:$0xff]  ;;  %v6380_v8 = vld [vmem:[#allocation2 + $0x70] sm:$0xff]  ;;  %v2435_v30 = vld [vmem:[#allocation11 + $0xf8] sm:$0xff] }
 0x2c2   : > { %4479 = vmatpush3.msra.mxu1 %v2542_v22  ;;  %3959 = vmatpush3.msra.mxu0 %v2509_v5  ;;  %v6378_v28 = vld [vmem:[#allocation2 + $0x120] sm:$0xff]  ;;  %v6383_v35 = vld [vmem:[#allocation2 + $0xd8] sm:$0xff]  ;;  %v6388_v24 = vld [vmem:[#allocation2 + $0xb0] sm:$0xff] }
 0x2c3   : > { %4480 = vmatprep.subr.mxu1 %v2541_v14  ;;  %3960 = vmatprep.subr.mxu0 %v2524_v58  ;;  %v2501_v23 = vld [vmem:[#allocation11 + $0x180] sm:$0xff]  ;;  %v2419_v53 = vld [vmem:[#allocation11 + $0x78] sm:$0xff]  ;;  %v2434_v20 = vld [vmem:[#allocation11 + $0xf0] sm:$0xff] }
 0x2c4   : > { %4481 = vmatpush3.msra.mxu1 %v2541_v14  ;;  %3961 = vmatpush3.msra.mxu0 %v2508_v1  ;;  %v2533_v51 = vld [vmem:[#allocation11 + $0x280] sm:$0xff]  ;;  %v6386_v26 = vld [vmem:[#allocation2 + $0x158] sm:$0xff]  ;;  %v2418_v3 = vld [vmem:[#allocation11 + $0x70] sm:$0xff] }
 0x2c5   : > { %4482 = vmatprep.subr.mxu1 %v2540_v39  ;;  %3962 = vmatprep.subr.mxu0 %v2523_v6  ;;  %v6390_v2 = vld [vmem:[#allocation2 + $0x18] sm:$0xff]  ;;  %v6393_v52 = vld [vmem:[#allocation2 + $0x110] sm:$0xff]  ;;  %v2433_v27 = vld [vmem:[#allocation11 + $0xe8] sm:$0xff] }
 0x2c6   : > { %4483 = vmatpush3.msra.mxu1 %v2540_v39  ;;  %3963 = vmatpush3.msra.mxu0 %v2507_v57  ;;  %v6397_v45 = vld [vmem:[#allocation2 + $0x1f8] sm:$0xff]  ;;  %v2417_v50 = vld [vmem:[#allocation11 + $0x68] sm:$0xff]  ;;  %v6400_v18 = vld [vmem:[#allocation2 + $0x190] sm:$0xff] }
 0x2c7   : > { %4484 = vmatprep.subr.mxu1 %v2539_v7  ;;  %3964 = vmatprep.subr.mxu0 %v2522_v59  ;;  %v6403_v46 = vld [vmem:[#allocation2 + $0x108] sm:$0xff]  ;;  %v2432_v56 = vld [vmem:[#allocation11 + $0xe0] sm:$0xff]  ;;  %v2431_v33 = vld [vmem:[#allocation11 + $0xd8] sm:$0xff] }
 0x2c8   : > { %4485 = vmatpush3.msra.mxu1 %v2539_v7  ;;  %3965 = vmatpush3.msra.mxu0 %v2506_v13  ;;  %v6406_v62 = vld [vmem:[#allocation2 + $0x180] sm:$0xff]  ;;  %v6409_v41 = vld [vmem:[#allocation2 + $0xd0] sm:$0xff]  ;;  %v2415_v9 = vld [vmem:[#allocation11 + $0x58] sm:$0xff] }
 0x2c9   : > { %4486 = vmatprep.subr.mxu1 %v2538_v17  ;;  %3966 = vmatprep.subr.mxu0 %v2521_v48  ;;  %v2416_v34 = vld [vmem:[#allocation11 + $0x60] sm:$0xff]  ;;  %v6412_v40 = vld [vmem:[#allocation2 + $0x1b8] sm:$0xff]  ;;  %v2430_v61 = vld [vmem:[#allocation11 + $0xd0] sm:$0xff] }
 0x2ca   : > { %4487 = vmatpush3.msra.mxu1 %v2538_v17  ;;  %3967 = vmatpush3.msra.mxu0 %v2505_v31  ;;  %v6415_v19 = vld [vmem:[#allocation2 + $0xb8] sm:$0xff]  ;;  %v6417_v60 = vld [vmem:[#allocation2 + $0x1c0] sm:$0xff]  ;;  %v2414_v63 = vld [vmem:[#allocation11 + $0x50] sm:$0xff] }
 0x2cb   : > { %4488 = vmatprep.subr.mxu1 %v2537_v36  ;;  %3968 = vmatprep.subr.mxu0 %v2520_v47  ;;  %v2429_v10 = vld [vmem:[#allocation11 + $0xc8] sm:$0xff]  ;;  %v6424_v49 = vld [vmem:[#allocation2 + $0x220] sm:$0xff]  ;;  %v2451_v38 = vld [vmem:[#allocation11 + $0x178] sm:$0xff] }
 0x2cc   : > { %4489 = vmatpush3.msra.mxu1 %v2537_v36  ;;  %3969 = vmatpush3.msra.mxu0 %v2504_v16  ;;  %v6421_v29 = vld [vmem:[#allocation2 + $0x188] sm:$0xff]  ;;  %v6427_v44 = vld [vmem:[#allocation2 + $0x140] sm:$0xff]  ;;  %v2450_v22 = vld [vmem:[#allocation11 + $0x170] sm:$0xff] }
 0x2cd   : > { %4490 = vmatprep.subr.mxu1 %v2536_v12  ;;  %3970 = vmatprep.subr.mxu0 %v2519_v4  ;;  %v2413_v54 = vld [vmem:[#allocation11 + $0x48] sm:$0xff]  ;;  %v2428_v25 = vld [vmem:[#allocation11 + $0xc0] sm:$0xff]  ;;  %v2427_v11 = vld [vmem:[#allocation11 + $0xb8] sm:$0xff] }
 0x2ce   : > { %4491 = vmatpush3.msra.mxu1 %v2536_v12  ;;  %3971 = vmatpush3.msra.mxu0 %v2503_v21  ;;  %v6429_v15 = vld [vmem:[#allocation2 + $0x60] sm:$0xff]  ;;  %v6435_v5 = vld [vmem:[#allocation2 + $0x138] sm:$0xff]  ;;  %v2449_v58 = vld [vmem:[#allocation11 + $0x168] sm:$0xff] }
 0x2cf   : > { %4492 = vmatprep.subr.mxu1 %v2535_v0  ;;  %3972 = vmatprep.subr.mxu0 %v2518_v55  ;;  %v2412_v43 = vld [vmem:[#allocation11 + $0x40] sm:$0xff]  ;;  %v2411_v39 = vld [vmem:[#allocation11 + $0x38] sm:$0xff]  ;;  %v2426_v6 = vld [vmem:[#allocation11 + $0xb0] sm:$0xff] }
 0x2d0   : > { %4493 = vmatpush3.msra.mxu1 %v2535_v0  ;;  %3973 = vmatpush3.msra.mxu0 %v2502_v42  ;;  %v6437_v14 = vld [vmem:[#allocation2] sm:$0xff]  ;;  %v6443_v57 = vld [vmem:[#allocation2 + $0x88] sm:$0xff]  ;;  %v6445_v7 = vld [vmem:[#allocation2 + $0x170] sm:$0xff] }
 0x2d1   : > { %4494 = vmatprep.subr.mxu1 %v2534_v32  ;;  %3974 = vmatprep.subr.mxu0 %v2517_v37  ;;  %v6439_v1 = vld [vmem:[#allocation2 + $0x80] sm:$0xff]  ;;  %v6447_v59 = vld [vmem:[#allocation2 + $0x1a8] sm:$0xff]  ;;  %v2410_v17 = vld [vmem:[#allocation11 + $0x30] sm:$0xff] }
 0x2d2   : > { %2613 = vmatprep.mubr.f32.mxu0 %v6378_v28  ;;  %3975 = vmatpush3.msra.mxu0 %v2501_v23  ;;  %v2448_v13 = vld [vmem:[#allocation11 + $0x160] sm:$0xff]  ;;  %v2447_v48 = vld [vmem:[#allocation11 + $0x158] sm:$0xff]  ;;  %v2425_v31 = vld [vmem:[#allocation11 + $0xa8] sm:$0xff] }
 0x2d3   : > { %4495 = vmatpush3.msra.mxu1 %v2534_v32  ;;  %2614 = vmatmul.mubr.f32.vlgmr.msra.gmra.mxu0 %v6380_v8  ;;  %v6453_v36 = vld [vmem:[#allocation2 + $0x38] sm:$0xff]  ;;  %v6455_v47 = vld [vmem:[#allocation2 + $0x1c8] sm:$0xff]  ;;  %v2446_v16 = vld [vmem:[#allocation11 + $0x150] sm:$0xff] }
 0x2d4   : > { %4496 = vmatprep.subr.mxu1 %v2533_v51  ;;  %4056 = vmatprep.subr.mxu0 %v2435_v30  ;;  %v6457_v12 = vld [vmem:[#allocation2 + $0x1e0] sm:$0xff]  ;;  %v2445_v4 = vld [vmem:[#allocation11 + $0x148] sm:$0xff]  ;;  %v6463_v55 = vld [vmem:[#allocation2 + $0x78] sm:$0xff] }
 0x2d5   : > { %4497 = vmatpush3.msra.mxu1 %v2533_v51  ;;  %4498 = vmatprep.mubr.f32.mxu1 %v6383_v35  ;;  %v2409_v21 = vld [vmem:[#allocation11 + $0x28] sm:$0xff]  ;;  %v6466_v42 = vld [vmem:[#allocation2 + $0x98] sm:$0xff]  ;;  %v2444_v32 = vld [vmem:[#allocation11 + $0x140] sm:$0xff] }
 0x2d6   : > { %4057 = vmatpush3.msra.mxu0 %v2419_v53  ;;  %4499 = vmatmul.mubr.f32.vlgmr.msra.gmra.mxu1 %v6386_v26  ;;  %v6461_v0 = vld [vmem:[#allocation2 + $0x1e8] sm:$0xff]  ;;  %v2424_v37 = vld [vmem:[#allocation11 + $0xa0] sm:$0xff]  ;;  %v6470_v51 = vld [vmem:[#allocation2 + $0xf8] sm:$0xff] }
 0x2d7   : > { %2618 = vmatprep.mubr.f32.mxu0 %v6388_v24  ;;  %4058 = vmatprep.subr.mxu0 %v2434_v20  ;;  %v2408_v23 = vld [vmem:[#allocation11 + $0x20] sm:$0xff]  ;;  %v2443_v30 = vld [vmem:[#allocation11 + $0x138] sm:$0xff]  ;;  %v2442_v20 = vld [vmem:[#allocation11 + $0x130] sm:$0xff] }
 0x2d8   : > { %2619 = vmatmul.mubr.f32.gmra.mxu0 %v6390_v2  ;;  %4501 = vmatprep.mubr.f32.mxu1 %v6397_v45  ;;  %v6473_v53 = vld [vmem:[#allocation2 + $0xe0] sm:$0xff] }
 0x2d9   : > { %4059 = vmatpush3.msra.mxu0 %v2418_v3  ;;  %2623 = vmatprep.mubr.f32.mxu0 %v6393_v52  ;;  %v2423_v3 = vld [vmem:[#allocation11 + $0x98] sm:$0xff] }
 0x2da   : > { %4060 = vmatprep.subr.mxu0 %v2433_v27  ;;  %4502 = vmatmul.mubr.f32.gmra.mxu1 %v6400_v18  ;;  %v6476_v27 = vld [vmem:[#allocation2 + $0x50] sm:$0xff] }
 0x2db   : > { %4061 = vmatpush3.msra.mxu0 %v2417_v50  ;;  %4504 = vmatprep.mubr.f32.mxu1 %v6409_v41  ;;  %v6479_v50 = vld [vmem:[#allocation2 + $0x198] sm:$0xff] }
 0x2dc   : > { %2624 = vmatmul.mubr.f32.gmra.mxu0 %v6403_v46  ;;  %4062 = vmatprep.subr.mxu0 %v2432_v56  ;;  %v2441_v56 = vld [vmem:[#allocation11 + $0x128] sm:$0xff] }
 0x2dd   : > { %2628 = vmatprep.mubr.f32.mxu0 %v6406_v62  ;;  %4063 = vmatpush3.msra.mxu0 %v2416_v34  ;;  %v6481_v34 = vld [vmem:[#allocation2 + $0x48] sm:$0xff] }
 0x2de   : > { %4064 = vmatprep.subr.mxu0 %v2431_v33  ;;  %4505 = vmatmul.mubr.f32.gmra.mxu1 %v6412_v40  ;;  %v2407_v33 = vld [vmem:[#allocation11 + $0x18] sm:$0xff] }
 0x2df   : > { %4065 = vmatpush3.msra.mxu0 %v2415_v9  ;;  %4507 = vmatprep.mubr.f32.mxu1 %v6421_v29  ;;  %v2422_v9 = vld [vmem:[#allocation11 + $0x90] sm:$0xff] }
 0x2e0   : > { %2629 = vmatmul.mubr.f32.gmra.mxu0 %v6415_v19  ;;  %4066 = vmatprep.subr.mxu0 %v2430_v61  ;;  %v6485_v61 = vld [vmem:[#allocation2 + $0x1b0] sm:$0xff] }
 0x2e1   : > { %2633 = vmatprep.mubr.f32.mxu0 %v6417_v60  ;;  %4067 = vmatpush3.msra.mxu0 %v2414_v63  ;;  %v2440_v63 = vld [vmem:[#allocation11 + $0x120] sm:$0xff] }
 0x2e2   : > { %4068 = vmatprep.subr.mxu0 %v2429_v10  ;;  %4508 = vmatmul.mubr.f32.gmra.mxu1 %v6424_v49  ;;  %v6488_v10 = vld [vmem:[#allocation2 + $0x1f0] sm:$0xff] }
 0x2e3   : > { %4069 = vmatpush3.msra.mxu0 %v2413_v54  ;;  %4522 = vmatprep.subr.mxu1 %v2451_v38  ;;  %v6490_v54 = vld [vmem:[#allocation2 + $0x160] sm:$0xff] }
 0x2e4   : > { %2634 = vmatmul.mubr.f32.gmra.mxu0 %v6427_v44  ;;  %4070 = vmatprep.subr.mxu0 %v2428_v25  ;;  %v2439_v25 = vld [vmem:[#allocation11 + $0x118] sm:$0xff] }
 0x2e5   : > { %2638 = vmatprep.mubr.f32.mxu0 %v6429_v15  ;;  %4071 = vmatpush3.msra.mxu0 %v2412_v43  ;;  %v2438_v43 = vld [vmem:[#allocation11 + $0x110] sm:$0xff] }
 0x2e6   : > { %4523 = vmatpush3.msra.mxu1 %v2451_v38  ;;  %4072 = vmatprep.subr.mxu0 %v2427_v11  ;;  %v2406_v38 = vld [vmem:[#allocation11 + $0x10] sm:$0xff]  ;;  %v6497_v11 = vld [vmem:[#allocation2 + $0x238] sm:$0xff] }
 0x2e7   : > { %4524 = vmatprep.subr.mxu1 %v2450_v22  ;;  %4510 = vmatprep.mubr.f32.mxu1 %v6439_v1 }
 0x2e8   : > { %2639 = vmatmul.mubr.f32.gmra.mxu0 %v6435_v5  ;;  %4525 = vmatpush3.msra.mxu1 %v2450_v22  ;;  %v6494_v22 = vld [vmem:[#allocation2 + $0x68] sm:$0xff] }
 0x2e9   : > { %2643 = vmatprep.mubr.f32.mxu0 %v6437_v14  ;;  %4526 = vmatprep.subr.mxu1 %v2449_v58 }
 0x2ea   : > { %4073 = vmatpush3.msra.mxu0 %v2411_v39  ;;  %4527 = vmatpush3.msra.mxu1 %v2449_v58  ;;  %v6499_v58 = vld [vmem:[#allocation2 + $0x30] sm:$0xff]  ;;  %v6501_v39 = vld [vmem:[#allocation2 + $0x228] sm:$0xff] }
 0x2eb   : > { %4074 = vmatprep.subr.mxu0 %v2426_v6  ;;  %4511 = vmatmul.mubr.f32.gmra.mxu1 %v6445_v7  ;;  %v2421_v6 = vld [vmem:[#allocation11 + $0x88] sm:$0xff] }
 0x2ec   : > { %2644 = vmatmul.mubr.f32.gmra.mxu0 %v6443_v57  ;;  %4528 = vmatprep.subr.mxu1 %v2448_v13 }
 0x2ed   : > { %2648 = vmatprep.mubr.f32.mxu0 %v6447_v59  ;;  %4529 = vmatpush3.msra.mxu1 %v2448_v13  ;;  %v2437_v13 = vld [vmem:[#allocation11 + $0x108] sm:$0xff] }
 0x2ee   : > { %4075 = vmatpush3.msra.mxu0 %v2410_v17  ;;  %4530 = vmatprep.subr.mxu1 %v2447_v48  ;;  %v2405_v17 = vld [vmem:[#allocation11 + $0x8] sm:$0xff] }
 0x2ef   : > { %4076 = vmatprep.subr.mxu0 %v2425_v31  ;;  %4531 = vmatpush3.msra.mxu1 %v2447_v48  ;;  %v6506_v48 = vld [vmem:[#allocation2 + $0x100] sm:$0xff] }
 0x2f0   : > { %2649 = vmatmul.mubr.f32.gmra.mxu0 %v6453_v36  ;;  %4532 = vmatprep.subr.mxu1 %v2446_v16  ;;  %v2436_v31 = vld [vmem:[#allocation11 + $0x100] sm:$0xff] }
 0x2f1   : > { %2653 = vmatprep.mubr.f32.mxu0 %v6455_v47  ;;  %4533 = vmatpush3.msra.mxu1 %v2446_v16  ;;  %v6509_v16 = vld [vmem:[#allocation2 + $0x130] sm:$0xff] }
 0x2f2   : > { %4513 = vmatprep.mubr.f32.mxu1 %v6457_v12  ;;  %4534 = vmatprep.subr.mxu1 %v2445_v4 }
 0x2f3   : > { %4077 = vmatpush3.msra.mxu0 %v2409_v21  ;;  %4535 = vmatpush3.msra.mxu1 %v2445_v4  ;;  %v2358_v4 = vld [vmem:[#allocation2 + $0x40] sm:$0xff] }
 0x2f4   : > { %2654 = vmatmul.mubr.f32.gmra.mxu0 %v6461_v0  ;;  %4514 = vmatmul.mubr.f32.gmra.mxu1 %v6466_v42  ;;  %v2420_v21 = vld [vmem:[#allocation11 + $0x80] sm:$0xff] }
 0x2f5   : > { %2658 = vmatprep.mubr.f32.mxu0 %v6463_v55  ;;  %4536 = vmatprep.subr.mxu1 %v2444_v32 }
 0x2f6   : > { %4078 = vmatprep.subr.mxu0 %v2424_v37  ;;  %4537 = vmatpush3.msra.mxu1 %v2444_v32  ;;  %v2361_v32 = vld [vmem:[#allocation2 + $0xf0] sm:$0xff]  ;;  %v3209_v37 = vld [vmem:[#allocation11 + $0x3f8] sm:$0xff] }
 0x2f7   : > { %4079 = vmatpush3.msra.mxu0 %v2408_v23  ;;  %4538 = vmatprep.subr.mxu1 %v2443_v30  ;;  %v6513_v23 = vld [vmem:[#allocation2 + $0x90] sm:$0xff] }
 0x2f8   : > { %2659 = vmatmul.mubr.f32.gmra.mxu0 %v6470_v51  ;;  %4539 = vmatpush3.msra.mxu1 %v2443_v30  ;;  %v3193_v30 = vld [vmem:[#allocation11 + $0x378] sm:$0xff] }
 0x2f9   : > { %2663 = vmatprep.mubr.f32.mxu0 %v6473_v53  ;;  %4540 = vmatprep.subr.mxu1 %v2442_v20 }
 0x2fa   : > { %4080 = vmatprep.subr.mxu0 %v2423_v3  ;;  %4541 = vmatpush3.msra.mxu1 %v2442_v20  ;;  %v6515_v20 = vld [vmem:[#allocation2 + $0x1d8] sm:$0xff]  ;;  %v2404_v3 = vld [vmem:[#allocation11] sm:$0xff] }
 0x2fb   : > { %4516 = vmatprep.mubr.f32.mxu1 %v6476_v27  ;;  %4542 = vmatprep.subr.mxu1 %v2441_v56 }
 0x2fc   : > { %2664 = vmatmul.mubr.f32.gmra.mxu0 %v6479_v50  ;;  %4543 = vmatpush3.msra.mxu1 %v2441_v56  ;;  %v3208_v56 = vld [vmem:[#allocation11 + $0x3f0] sm:$0xff] }
 0x2fd   : > { %2668 = vmatprep.mubr.f32.mxu0 %v6481_v34  ;;  %4081 = vmatpush3.msra.mxu0 %v2407_v33  ;;  %v3192_v33 = vld [vmem:[#allocation11 + $0x370] sm:$0xff] }
 0x2fe   : > { %4082 = vmatprep.subr.mxu0 %v2422_v9  ;;  %4517 = vmatmul.mubr.f32.gmra.mxu1 %v6485_v61  ;;  %v3225_v9 = vld [vmem:[#allocation11 + $0x478] sm:$0xff] }
 0x2ff   : > { %4544 = vmatprep.subr.mxu1 %v2440_v63  ;;  %4083 = vmatpush3.msra.mxu0 %v2406_v38  ;;  %v3207_v38 = vld [vmem:[#allocation11 + $0x3e8] sm:$0xff] }
 0x300   : > { %2669 = vmatmul.mubr.f32.gmra.mxu0 %v6488_v10  ;;  %4545 = vmatpush3.msra.mxu1 %v2440_v63  ;;  %v6519_v63 = vld [vmem:[#allocation2 + $0x230] sm:$0xff] }
 0x301   : > { %2673 = vmatprep.mubr.f32.mxu0 %v6490_v54  ;;  %4546 = vmatprep.subr.mxu1 %v2439_v25 }
 0x302   : > { %4547 = vmatpush3.msra.mxu1 %v2439_v25  ;;  %4519 = vmatprep.mubr.f32.mxu1 %v6494_v22  ;;  %v2357_v25 = vld [vmem:[#allocation2 + $0x8] sm:$0xff] }
 0x303   : > { %4548 = vmatprep.subr.mxu1 %v2438_v43  ;;  %4520 = vmatmul.mubr.f32.gmra.mxu1 %v6501_v39 }
 0x304   : > { %2674 = vmatmul.mubr.f32.gmra.mxu0 %v6497_v11  ;;  %4549 = vmatpush3.msra.mxu1 %v2438_v43  ;;  %v3191_v43 = vld [vmem:[#allocation11 + $0x368] sm:$0xff] }
 0x305   : > { %2678 = vmatprep.mubr.f32.mxu0 %v6499_v58  ;;  %4084 = vmatprep.subr.mxu0 %v2421_v6  ;;  %v3206_v6 = vld [vmem:[#allocation11 + $0x3e0] sm:$0xff] }
 0x306   : > { %4550 = vmatprep.subr.mxu1 %v2437_v13  ;;  %4085 = vmatpush3.msra.mxu0 %v2405_v17  ;;  %v3190_v17 = vld [vmem:[#allocation11 + $0x360] sm:$0xff] }
 0x307   : > { %4551 = vmatpush3.msra.mxu1 %v2437_v13  ;;  %4554 = vmatprep.mubr.f32.mxu1 %v2358_v4  ;;  %v2356_v13 = vld [vmem:[#allocation2 + $0xc8] sm:$0xff]  ;;  %v3205_v4 = vld [vmem:[#allocation11 + $0x3d8] sm:$0xff] }
 0x308   : > { %2679 = vmatmul.mubr.f32.gmra.mxu0 %v6506_v48  ;;  %4552 = vmatprep.subr.mxu1 %v2436_v31 }
 0x309   : > { %2683 = vmatprep.mubr.f32.mxu0 %v6509_v16  ;;  %4553 = vmatpush3.msra.mxu1 %v2436_v31  ;;  %v2360_v31 = vld [vmem:[#allocation2 + $0xe8] sm:$0xff] }
 0x30a   : > { %4086 = vmatprep.subr.mxu0 %v2420_v21  ;;  %4555 = vmatmul.mubr.f32.vlgmr.msra.gmra.mxu1 %v2361_v32  ;;  %v3189_v21 = vld [vmem:[#allocation11 + $0x358] sm:$0xff]  ;;  %v2359_v32 = vld [vmem:[#allocation2 + $0x28] sm:$0xff] }
 0x30b   : > { %4168 = vmatprep.subr.mxu1 %v3209_v37  ;;  %4087 = vmatpush3.msra.mxu0 %v2404_v3  ;;  %v3204_v37 = vld [vmem:[#allocation11 + $0x3d0] sm:$0xff]  ;;  %v3223_v3 = vld [vmem:[#allocation11 + $0x468] sm:$0xff] }
 0x30c   : > { %2684 = vmatmul.mubr.f32.gmra.mxu0 %v6513_v23  ;;  %4169 = vmatpush3.msra.mxu1 %v3193_v30  ;;  %v3203_v30 = vld [vmem:[#allocation11 + $0x3c8] sm:$0xff] }
 0x30d   : > { %2688 = vmatprep.mubr.f32.mxu0 %v6515_v20  ;;  %4170 = vmatprep.subr.mxu1 %v3208_v56  ;;  %v3187_v56 = vld [vmem:[#allocation11 + $0x348] sm:$0xff] }
 0x30e   : > { %4557 = vmatprep.mubr.f32.mxu1 %v6383_v35  ;;  %4171 = vmatpush3.msra.mxu1 %v3192_v33  ;;  %v3224_v35 = vld [vmem:[#allocation11 + $0x470] sm:$0xff]  ;;  %v3202_v33 = vld [vmem:[#allocation11 + $0x3c0] sm:$0xff] }
 0x30f   : > { %4578 = vmatprep.subr.mxu0 %v3225_v9  ;;  %4558 = vmatmul.mubr.f32.gmra.mxu1 %v6386_v26  ;;  %v3188_v26 = vld [vmem:[#allocation11 + $0x350] sm:$0xff] }
 0x310   : > { %2689 = vmatmul.mubr.f32.gmra.mxu0 %v6519_v63  ;;  %4172 = vmatprep.subr.mxu1 %v3207_v38  ;;  %v3185_v38 = vld [vmem:[#allocation11 + $0x338] sm:$0xff] }
 0x311   : > { %2903 = vmatprep.mubr.f32.mxu0 %v2357_v25  ;;  %4173 = vmatpush3.msra.mxu1 %v3191_v43  ;;  %v3201_v25 = vld [vmem:[#allocation11 + $0x3b8] sm:$0xff]  ;;  %v3200_v43 = vld [vmem:[#allocation11 + $0x3b0] sm:$0xff] }
 0x312   : > { %4560 = vmatprep.mubr.f32.mxu1 %v6397_v45  ;;  %4174 = vmatprep.subr.mxu1 %v3206_v6  ;;  %v3221_v6 = vld [vmem:[#allocation11 + $0x458] sm:$0xff] }
 0x313   : > { %4175 = vmatpush3.msra.mxu1 %v3190_v17  ;;  %v3182_v17 = vld [vmem:[#allocation11 + $0x320] sm:$0xff] }
 0x314   : > { %2904 = vmatmul.mubr.f32.vlgmr.msra.gmra.mxu0 %v2356_v13  ;;  %4561 = vmatmul.mubr.f32.gmra.mxu1 %v6400_v18  ;;  %v3183_v13 = vld [vmem:[#allocation11 + $0x328] sm:$0xff] }
 0x315   : > { %4579 = vmatpush3.msra.mxu0 %v3225_v9  ;;  %2908 = vmatprep.mubr.f32.mxu0 %v2360_v31  ;;  %v3186_v9 = vld [vmem:[#allocation11 + $0x340] sm:$0xff]  ;;  %v3197_v31 = vld [vmem:[#allocation11 + $0x398] sm:$0xff] }
 0x316   : > { %4176 = vmatprep.subr.mxu1 %v3205_v4  ;;  %4580 = vmatprep.subr.mxu0 %v3224_v35  ;;  %v3220_v4 = vld [vmem:[#allocation11 + $0x450] sm:$0xff] }
 0x317   : > { %4177 = vmatpush3.msra.mxu1 %v3189_v21  ;;  %4581 = vmatpush3.msra.mxu0 %v3224_v35  ;;  %v3181_v35 = vld [vmem:[#allocation11 + $0x318] sm:$0xff]  ;;  %v3196_v21 = vld [vmem:[#allocation11 + $0x390] sm:$0xff] }
 0x318   : > { %2909 = vmatmul.mubr.f32.gmra.mxu0 %v2359_v32  ;;  %4178 = vmatprep.subr.mxu1 %v3204_v37  ;;  %v3180_v32 = vld [vmem:[#allocation11 + $0x310] sm:$0xff]  ;;  %v3195_v37 = vld [vmem:[#allocation11 + $0x388] sm:$0xff] }
 0x319   : > { %2913 = vmatprep.mubr.f32.mxu0 %v6378_v28  ;;  %4563 = vmatprep.mubr.f32.mxu1 %v6409_v41  ;;  %v3222_v28 = vld [vmem:[#allocation11 + $0x460] sm:$0xff] }
 0x31a   : > { %4179 = vmatpush3.msra.mxu1 %v3188_v26  ;;  %4582 = vmatprep.subr.mxu0 %v3223_v3  ;;  %v3219_v26 = vld [vmem:[#allocation11 + $0x448] sm:$0xff] }
 0x31b   : > { %4564 = vmatmul.mubr.f32.gmra.mxu1 %v6412_v40  ;;  %4180 = vmatprep.subr.mxu1 %v3203_v30  ;;  %v3179_v30 = vld [vmem:[#allocation11 + $0x308] sm:$0xff] }
 0x31c   : > { %2914 = vmatmul.mubr.f32.gmra.mxu0 %v6380_v8  ;;  %4181 = vmatpush3.msra.mxu1 %v3187_v56  ;;  %v3184_v8 = vld [vmem:[#allocation11 + $0x330] sm:$0xff]  ;;  %v3178_v56 = vld [vmem:[#allocation11 + $0x300] sm:$0xff] }
 0x31d   : > { %4583 = vmatpush3.msra.mxu0 %v3223_v3  ;;  %4182 = vmatprep.subr.mxu1 %v3202_v33  ;;  %v3194_v3 = vld [vmem:[#allocation11 + $0x380] sm:$0xff] }
 0x31e   : > { %2918 = vmatprep.mubr.f32.mxu0 %v6388_v24  ;;  %4566 = vmatprep.mubr.f32.mxu1 %v6421_v29  ;;  %v3199_v24 = vld [vmem:[#allocation11 + $0x3a8] sm:$0xff]  ;;  %v3218_v33 = vld [vmem:[#allocation11 + $0x440] sm:$0xff] }
 0x31f   : > { %4183 = vmatpush3.msra.mxu1 %v3186_v9  ;;  %4584 = vmatprep.subr.mxu0 %v3222_v28  ;;  %v3217_v9 = vld [vmem:[#allocation11 + $0x438] sm:$0xff] }
 0x320   : > { %2919 = vmatmul.mubr.f32.gmra.mxu0 %v6390_v2  ;;  %4567 = vmatmul.mubr.f32.gmra.mxu1 %v6424_v49  ;;  %v3198_v2 = vld [vmem:[#allocation11 + $0x3a0] sm:$0xff] }
 0x321   : > { %4184 = vmatprep.subr.mxu1 %v3201_v25  ;;  %4585 = vmatpush3.msra.mxu0 %v3222_v28  ;;  %v3216_v25 = vld [vmem:[#allocation11 + $0x430] sm:$0xff] }
 0x322   : > { %4185 = vmatpush3.msra.mxu1 %v3185_v38  ;;  %2923 = vmatprep.mubr.f32.mxu0 %v6393_v52 }
 0x323   : > { %4186 = vmatprep.subr.mxu1 %v3200_v43  ;;  %4569 = vmatprep.mubr.f32.mxu1 %v6439_v1 }
 0x324   : > { %4187 = vmatpush3.msra.mxu1 %v3184_v8  ;;  %2924 = vmatmul.mubr.f32.gmra.mxu0 %v6403_v46 }
 0x325   : > { %4570 = vmatmul.mubr.f32.gmra.mxu1 %v6445_v7  ;;  %4188 = vmatprep.subr.mxu1 %v3199_v24 }
 0x326   : > { %4586 = vmatprep.subr.mxu0 %v3221_v6  ;;  %4189 = vmatpush3.msra.mxu1 %v3183_v13 }
 0x327   : > { %4587 = vmatpush3.msra.mxu0 %v3221_v6  ;;  %4190 = vmatprep.subr.mxu1 %v3198_v2 }
 0x328   : > { %2928 = vmatprep.mubr.f32.mxu0 %v6406_v62  ;;  %4572 = vmatprep.mubr.f32.mxu1 %v6457_v12 }
 0x329   : > { %4191 = vmatpush3.msra.mxu1 %v3182_v17  ;;  %2929 = vmatmul.mubr.f32.gmra.mxu0 %v6415_v19 }
 0x32a   : > { %4573 = vmatmul.mubr.f32.gmra.mxu1 %v6466_v42  ;;  %4192 = vmatprep.subr.mxu1 %v3197_v31 }
 0x32b   : > { %4588 = vmatprep.subr.mxu0 %v3220_v4  ;;  %4193 = vmatpush3.msra.mxu1 %v3181_v35 }
 0x32c   : > { %4589 = vmatpush3.msra.mxu0 %v3220_v4  ;;  %4194 = vmatprep.subr.mxu1 %v3196_v21 }
 0x32d   : > { %2933 = vmatprep.mubr.f32.mxu0 %v6417_v60  ;;  %4575 = vmatprep.mubr.f32.mxu1 %v6476_v27 }
 0x32e   : > { %4195 = vmatpush3.msra.mxu1 %v3180_v32  ;;  %2934 = vmatmul.mubr.f32.gmra.mxu0 %v6427_v44 }
 0x32f   : > { %4576 = vmatmul.mubr.f32.gmra.mxu1 %v6485_v61  ;;  %4196 = vmatprep.subr.mxu1 %v3195_v37 }
 0x330   : > { %4590 = vmatprep.subr.mxu0 %v3219_v26  ;;  %4197 = vmatpush3.msra.mxu1 %v3179_v30 }
 0x331   : > { %4591 = vmatpush3.msra.mxu0 %v3219_v26  ;;  %4198 = vmatprep.subr.mxu1 %v3194_v3 }
 0x332   : > { %2938 = vmatprep.mubr.f32.mxu0 %v6429_v15  ;;  %4199 = vmatpush3.msra.mxu1 %v3178_v56 }
 0x333   : > { %3290 = vmatprep.mubr.f32.mxu1 %v6393_v52  ;;  %2939 = vmatmul.mubr.f32.gmra.mxu0 %v6435_v5  ;;  %v3215_v52 = vld [vmem:[#allocation11 + $0x428] sm:$0xff] }
 0x334   : > { %3291 = vmatmul.mubr.f32.vlgmr.msra.gmra.mxu1 %v6403_v46  ;;  %4592 = vmatprep.subr.mxu0 %v3218_v33  ;;  %v3214_v46 = vld [vmem:[#allocation11 + $0x420] sm:$0xff] }
 0x335   : > { %2943 = vmatprep.mubr.f32.mxu0 %v6437_v14  ;;  %4593 = vmatpush3.msra.mxu0 %v3218_v33 }
 0x336   : > { %3295 = vmatprep.mubr.f32.mxu1 %v6406_v62  ;;  %4594 = vmatprep.subr.mxu0 %v3217_v9  ;;  %v3213_v62 = vld [vmem:[#allocation11 + $0x418] sm:$0xff] }
 0x337   : > { %2944 = vmatmul.mubr.f32.gmra.mxu0 %v6443_v57 }
 0x338   : > { %3296 = vmatmul.mubr.f32.gmra.mxu1 %v6415_v19  ;;  %4595 = vmatpush3.msra.mxu0 %v3217_v9  ;;  %v3212_v19 = vld [vmem:[#allocation11 + $0x410] sm:$0xff] }
 0x339   : > { %2948 = vmatprep.mubr.f32.mxu0 %v6447_v59  ;;  %3300 = vmatprep.mubr.f32.mxu1 %v6417_v60  ;;  %v3211_v60 = vld [vmem:[#allocation11 + $0x408] sm:$0xff] }
 0x33a   : > { %4596 = vmatprep.subr.mxu0 %v3216_v25 }
 0x33b   : > { %4597 = vmatpush3.msra.mxu0 %v3216_v25 }
 0x33c   : > { %2949 = vmatmul.mubr.f32.gmra.mxu0 %v6453_v36  ;;  %3301 = vmatmul.mubr.f32.gmra.mxu1 %v6427_v44  ;;  %v3210_v44 = vld [vmem:[#allocation11 + $0x400] sm:$0xff] }
 0x33d   : > { %2953 = vmatprep.mubr.f32.mxu0 %v6455_v47  ;;  %3305 = vmatprep.mubr.f32.mxu1 %v6429_v15 }
 0x33e   : > { %4598 = vmatprep.subr.mxu0 %v3215_v52 }
 0x33f   : > { %4599 = vmatpush3.msra.mxu0 %v3215_v52 }
 0x340   : > { %2954 = vmatmul.mubr.f32.gmra.mxu0 %v6461_v0  ;;  %3306 = vmatmul.mubr.f32.gmra.mxu1 %v6435_v5 }
 0x341   : > { %2958 = vmatprep.mubr.f32.mxu0 %v6463_v55  ;;  %3310 = vmatprep.mubr.f32.mxu1 %v6437_v14 }
 0x342   : > { %4600 = vmatprep.subr.mxu0 %v3214_v46 }
 0x343   : > { %4601 = vmatpush3.msra.mxu0 %v3214_v46 }
 0x344   : > { %2959 = vmatmul.mubr.f32.gmra.mxu0 %v6470_v51  ;;  %3311 = vmatmul.mubr.f32.gmra.mxu1 %v6443_v57 }
 0x345   : > { %2963 = vmatprep.mubr.f32.mxu0 %v6473_v53  ;;  %3315 = vmatprep.mubr.f32.mxu1 %v6447_v59 }
 0x346   : > { %4602 = vmatprep.subr.mxu0 %v3213_v62 }
 0x347   : > { %4603 = vmatpush3.msra.mxu0 %v3213_v62 }
 0x348   : > { %2964 = vmatmul.mubr.f32.gmra.mxu0 %v6479_v50  ;;  %3316 = vmatmul.mubr.f32.gmra.mxu1 %v6453_v36 }
 0x349   : > { %2968 = vmatprep.mubr.f32.mxu0 %v6481_v34  ;;  %3320 = vmatprep.mubr.f32.mxu1 %v6455_v47 }
 0x34a   : > { %4604 = vmatprep.subr.mxu0 %v3212_v19 }
 0x34b   : > { %4605 = vmatpush3.msra.mxu0 %v3212_v19 }
 0x34c   : > { %2969 = vmatmul.mubr.f32.gmra.mxu0 %v6488_v10  ;;  %3321 = vmatmul.mubr.f32.gmra.mxu1 %v6461_v0 }
 0x34d   : > { %2973 = vmatprep.mubr.f32.mxu0 %v6490_v54  ;;  %3325 = vmatprep.mubr.f32.mxu1 %v6463_v55 }
 0x34e   : > { %4606 = vmatprep.subr.mxu0 %v3211_v60 }
 0x34f   : > { %4607 = vmatpush3.msra.mxu0 %v3211_v60 }
 0x350   : > { %2974 = vmatmul.mubr.f32.gmra.mxu0 %v6497_v11  ;;  %3326 = vmatmul.mubr.f32.gmra.mxu1 %v6470_v51 }
 0x351   : > { %2978 = vmatprep.mubr.f32.mxu0 %v6499_v58  ;;  %3330 = vmatprep.mubr.f32.mxu1 %v6473_v53 }
 0x352   : > { %4608 = vmatprep.subr.mxu0 %v3210_v44 }
 0x353   : > { %4609 = vmatpush3.msra.mxu0 %v3210_v44 }
 0x354   : > { %2979 = vmatmul.mubr.f32.gmra.mxu0 %v6506_v48  ;;  %3331 = vmatmul.mubr.f32.gmra.mxu1 %v6479_v50 }
 0x355   : > { %3335 = vmatprep.mubr.f32.mxu1 %v6481_v34  ;;  %4610 = vmatprep.mubr.f32.mxu0 %v6397_v45  ;;  %v3172_v45 = vld [vmem:[#allocation2 + $0x200] sm:$0xff] }
 0x358   : > { %3336 = vmatmul.mubr.f32.gmra.mxu1 %v6488_v10  ;;  %4611 = vmatmul.mubr.f32.vlgmr.msra.gmra.mxu0 %v6400_v18  ;;  %v3171_v18 = vld [vmem:[#allocation2 + $0x218] sm:$0xff] }
 0x359   : > { %3340 = vmatprep.mubr.f32.mxu1 %v6490_v54  ;;  %4613 = vmatprep.mubr.f32.mxu0 %v6409_v41  ;;  %v3175_v41 = vld [vmem:[#allocation2 + $0x178] sm:$0xff] }
 0x35c   : > { %3341 = vmatmul.mubr.f32.gmra.mxu1 %v6497_v11  ;;  %4614 = vmatmul.mubr.f32.gmra.mxu0 %v6412_v40  ;;  %v3174_v40 = vld [vmem:[#allocation2 + $0x128] sm:$0xff] }
 0x35d   : > { %3345 = vmatprep.mubr.f32.mxu1 %v6499_v58  ;;  %4616 = vmatprep.mubr.f32.mxu0 %v6421_v29  ;;  %v3173_v29 = vld [vmem:[#allocation2 + $0x10] sm:$0xff] }
 0x360   : > { %3346 = vmatmul.mubr.f32.gmra.mxu1 %v6506_v48  ;;  %4617 = vmatmul.mubr.f32.gmra.mxu0 %v6424_v49  ;;  %v3176_v49 = vld [vmem:[#allocation2 + $0x208] sm:$0xff] }
 0x361   : > { %3350 = vmatprep.mubr.f32.mxu1 %v6509_v16  ;;  %4619 = vmatprep.mubr.f32.mxu0 %v6439_v1 }
 0x364   : > { %3351 = vmatmul.mubr.f32.gmra.mxu1 %v6513_v23  ;;  %4620 = vmatmul.mubr.f32.gmra.mxu0 %v6445_v7 }
 0x365   : > { %3355 = vmatprep.mubr.f32.mxu1 %v6515_v20  ;;  %4622 = vmatprep.mubr.f32.mxu0 %v6457_v12 }
 0x368   : > { %3356 = vmatmul.mubr.f32.gmra.mxu1 %v6519_v63  ;;  %4623 = vmatmul.mubr.f32.gmra.mxu0 %v6466_v42 }
 0x369   : > { %3360 = vmatprep.mubr.f32.mxu1 %v3172_v45  ;;  %4625 = vmatprep.mubr.f32.mxu0 %v6476_v27 }
 0x36c   : > { %3361 = vmatmul.mubr.f32.gmra.mxu1 %v3171_v18  ;;  %4626 = vmatmul.mubr.f32.gmra.mxu0 %v6485_v61 }
 0x36d   : > { %3365 = vmatprep.mubr.f32.mxu1 %v3175_v41  ;;  %4628 = vmatprep.mubr.f32.mxu0 %v6494_v22 }
 0x370   : > { %3366 = vmatmul.mubr.f32.gmra.mxu1 %v3174_v40  ;;  %4629 = vmatmul.mubr.f32.gmra.mxu0 %v6501_v39 }
 0x371   : > { %4631 = vmatprep.mubr.f32.mxu0 %v3173_v29 }
 0x374   : > { %4632 = vmatmul.mubr.f32.gmra.mxu0 %v3176_v49 }
 0x393   : > { %v3976_v15 = vpop.f32.mrf.mxu0 }
 0x395   : > { %v3977_v5 = vpop.f32.mrf.mxu0 }
 0x396   : > { %v3978_v14 = vadd.f32 %v3977_v5, %v3976_v15  ;;  %v4500_v1 = vpop.f32.mrf.mxu1 }
 0x398   : > { %v3979_v57 = vpop.f32.mrf.mxu0  ;;  %v2760_v7 = vpop.f32.mrf.mxu1 }
 0x399   : > { %v6606_v59 = vadd.f32 %v3978_v14, %v2760_v7 }
 0x39a   : > { %v3980_v36 = vpop.f32.mrf.mxu0  ;;  %v4503_v12 = vpop.f32.mrf.mxu1 }
 0x39b   : > { %v3981_v47 = vadd.f32 %v3980_v36, %v3979_v57 }
 0x39c   : > { %v3982_v0 = vpop.f32.mrf.mxu0  ;;  %v2770_v51 = vpop.f32.mrf.mxu1 }
 0x39d   : > { %v6608_v55 = vadd.f32 %v4500_v1, %v3981_v47 }
 0x39e   : > { %v3983_v42 = vpop.f32.mrf.mxu0  ;;  %v4506_v61 = vpop.f32.mrf.mxu1 }
 0x39f   : > { %v3984_v53 = vadd.f32 %v3983_v42, %v3982_v0 }
 0x3a0   : > { %v3985_v27 = vpop.f32.mrf.mxu0  ;;  %v2780_v58 = vpop.f32.mrf.mxu1 }
 0x3a1   : > { %v6610_v50 = vadd.f32 %v3984_v53, %v2770_v51 }
 0x3a2   : > { %v3986_v34 = vpop.f32.mrf.mxu0  ;;  %v4509_v20 = vpop.f32.mrf.mxu1 }
 0x3a3   : > { %v3987_v10 = vadd.f32 %v3986_v34, %v3985_v27 }
 0x3a4   : > { %v3988_v54 = vpop.f32.mrf.mxu0  ;;  %v2790_v8 = vpop.f32.mrf.mxu1 }
 0x3a5   : > { %v6612_v22 = vadd.f32 %v4503_v12, %v3987_v10 }
 0x3a6   : > { %v3989_v11 = vpop.f32.mrf.mxu0 }
 0x3a7   : > { %v3990_v39 = vadd.f32 %v3989_v11, %v3988_v54 }
 0x3a8   : > { %v3991_v48 = vpop.f32.mrf.mxu0 }
 0x3a9   : > { %v6614_v16 = vadd.f32 %v3990_v39, %v2780_v58 }
 0x3aa   : > { %v3992_v23 = vpop.f32.mrf.mxu0 }
 0x3ab   : > { %v3993_v63 = vadd.f32 %v3992_v23, %v3991_v48  ;;  %v4512_v17 = vpop.f32.mrf.mxu1 }
 0x3ac   : > { %v3994_v28 = vpop.f32.mrf.mxu0 }
 0x3ad   : > { %v6616_v38 = vadd.f32 %v4506_v61, %v3993_v63  ;;  %v2800_v32 = vpop.f32.mrf.mxu1 }
 0x3ae   : > { %v3995_v43 = vpop.f32.mrf.mxu0 }
 0x3af   : > { %v3996_v24 = vadd.f32 %v3995_v43, %v3994_v28 }
 0x3b0   : > { %v3997_v6 = vpop.f32.mrf.mxu0 }
 0x3b1   : > { %v6618_v13 = vadd.f32 %v3996_v24, %v2790_v8 }
 0x3b2   : > { %v3998_v2 = vpop.f32.mrf.mxu0 }
 0x3b3   : > { %v3999_v31 = vadd.f32 %v3998_v2, %v3997_v6 }
 0x3b4   : > { %v4000_v4 = vpop.f32.mrf.mxu0  ;;  %v4515_v3 = vpop.f32.mrf.mxu1 }
 0x3b5   : > { %v6620_v35 = vadd.f32 %v4509_v20, %v3999_v31 }
 0x3b6   : > { %v4001_v21 = vpop.f32.mrf.mxu0  ;;  %v2810_v52 = vpop.f32.mrf.mxu1 }
 0x3b7   : > { %v4002_v37 = vadd.f32 %v4001_v21, %v4000_v4 }
 0x3b8   : > { %v4003_v26 = vpop.f32.mrf.mxu0 }
 0x3b9   : > { %v6622_v30 = vadd.f32 %v4002_v37, %v2800_v32 }
 0x3ba   : > { %v4004_v56 = vpop.f32.mrf.mxu0 }
 0x3bb   : > { %v4005_v33 = vadd.f32 %v4004_v56, %v4003_v26 }
 0x3bc   : > { %v4006_v9 = vpop.f32.mrf.mxu0 }
 0x3bd   : > { %v6624_v25 = vadd.f32 %v4512_v17, %v4005_v33 }
 0x3be   : > { %v4007_v46 = vpop.f32.mrf.mxu0  ;;  %v4518_v19 = vpop.f32.mrf.mxu1 }
 0x3bf   : > { %v4008_v62 = vadd.f32 %v4007_v46, %v4006_v9 }
 0x3c0   : > { %v4009_v60 = vpop.f32.mrf.mxu0  ;;  %v2820_v41 = vpop.f32.mrf.mxu1 }
 0x3c1   : > { %v6626_v44 = vadd.f32 %v4008_v62, %v2810_v52 }
 0x3c2   : > { %v4010_v45 = vpop.f32.mrf.mxu0 }
 0x3c3   : > { %v4011_v18 = vadd.f32 %v4010_v45, %v4009_v60  ;;  %v4521_v49 = vpop.f32.mrf.mxu1 }
 0x3c4   : > { %v4012_v40 = vpop.f32.mrf.mxu0 }
 0x3c5   : > { %v6628_v29 = vadd.f32 %v4515_v3, %v4011_v18  ;;  %v2830_v14 = vpop.f32.mrf.mxu1 }
 0x3c6   : > { %v4013_v15 = vpop.f32.mrf.mxu0 }
 0x3c7   : > { %v4014_v5 = vadd.f32 %v4013_v15, %v4012_v40 }
 0x3c8   : > { %v4015_v1 = vpop.f32.mrf.mxu0 }
 0x3c9   : > { %v6630_v57 = vadd.f32 %v4014_v5, %v2820_v41 }
 0x3ca   : > { %v4016_v7 = vpop.f32.mrf.mxu0  ;;  %v4556_v47 = vpop.f32.mrf.mxu1 }
 0x3cb   : > { %v4017_v36 = vadd.f32 %v4016_v7, %v4015_v1 }
 0x3cc   : > { %v4018_v12 = vpop.f32.mrf.mxu0  ;;  %v3050_v42 = vpop.f32.mrf.mxu1 }
 0x3cd   : > { %v6632_v0 = vadd.f32 %v4518_v19, %v4017_v36 }
 0x3ce   : > { %v4019_v51 = vpop.f32.mrf.mxu0 }
 0x3cf   : > { %v4020_v53 = vadd.f32 %v4019_v51, %v4018_v12  ;;  %v4559_v34 = vpop.f32.mrf.mxu1 }
 0x3d0   : > { %v4021_v27 = vpop.f32.mrf.mxu0 }
 0x3d1   : > { %v6634_v61 = vadd.f32 %v4020_v53, %v2830_v14  ;;  %v3060_v54 = vpop.f32.mrf.mxu1 }
 0x3d2   : > { %v4022_v10 = vpop.f32.mrf.mxu0 }
 0x3d3   : > { %v4023_v11 = vadd.f32 %v4022_v10, %v4021_v27 }
 0x3d4   : > { %v4088_v58 = vpop.f32.mrf.mxu0  ;;  %v4562_v23 = vpop.f32.mrf.mxu1 }
 0x3d5   : > { %v6636_v39 = vadd.f32 %v4521_v49, %v4023_v11 }
 0x3d6   : > { %v4089_v48 = vpop.f32.mrf.mxu0  ;;  %v3070_v28 = vpop.f32.mrf.mxu1 }
 0x3d7   : > { %v4090_v20 = vadd.f32 %v4089_v48, %v4088_v58 }
 0x3d8   : > { %v4091_v63 = vpop.f32.mrf.mxu0 }
 0x3d9   : > { %v2906_v43 = vadd.f32 %v4090_v20, %v6606_v59 }
 0x3da   : > { %v4092_v8 = vpop.f32.mrf.mxu0 }
 0x3db   : > { %v4093_v24 = vadd.f32 %v4092_v8, %v4091_v63  ;;  %v4565_v6 = vpop.f32.mrf.mxu1  ;;  %v6639_v2 = vadd.f32 %v3050_v42, %v2906_v43 }
 0x3dc   : > { %v4094_v17 = vpop.f32.mrf.mxu0 }
 0x3dd   : > { %v2911_v31 = vadd.f32 %v4093_v24, %v6608_v55  ;;  %v3080_v4 = vpop.f32.mrf.mxu1 }
 0x3de   : > { %v4095_v21 = vpop.f32.mrf.mxu0 }
 0x3df   : > { %v4096_v32 = vadd.f32 %v4095_v21, %v4094_v17  ;;  %v6642_v37 = vadd.f32 %v4556_v47, %v2911_v31 }
 0x3e0   : > { %v4097_v26 = vpop.f32.mrf.mxu0  ;;  %v4568_v3 = vpop.f32.mrf.mxu1 }
 0x3e1   : > { %v2916_v56 = vadd.f32 %v4096_v32, %v6610_v50 }
 0x3e2   : > { %v4098_v33 = vpop.f32.mrf.mxu0  ;;  %v3090_v9 = vpop.f32.mrf.mxu1 }
 0x3e3   : > { %v4099_v59 = vadd.f32 %v4098_v33, %v4097_v26  ;;  %v6645_v52 = vadd.f32 %v3060_v54, %v2916_v56 }
 0x3e4   : > { %v4100_v62 = vpop.f32.mrf.mxu0 }
 0x3e5   : > { %v2921_v46 = vadd.f32 %v4099_v59, %v6612_v22  ;;  %v4571_v19 = vpop.f32.mrf.mxu1 }
 0x3e6   : > { %v4101_v60 = vpop.f32.mrf.mxu0 }
 0x3e7   : > { %v3100_v55 = vpop.f32.mrf.mxu1  ;;  %v6648_v45 = vadd.f32 %v4559_v34, %v2921_v46  ;;  %v4102_v18 = vadd.f32 %v4101_v60, %v4100_v62 }
 0x3e9   : > { %v2926_v41 = vadd.f32 %v4102_v18, %v6614_v16  ;;  %v4103_v40 = vpop.f32.mrf.mxu0 }
 0x3ea   : > { %v6651_v49 = vpop.f32.mrf.mxu1 }
 0x3eb   : > { %v4104_v50 = vpop.f32.mrf.mxu0  ;;  %v6653_v5 = vadd.f32 %v3070_v28, %v2926_v41 }
 0x3ec   : > { %v3110_v15 = vpop.f32.mrf.mxu1  ;;  %v4105_v14 = vadd.f32 %v4104_v50, %v4103_v40 }
 0x3ee   : > { %v2931_v1 = vadd.f32 %v4105_v14, %v6616_v38  ;;  %v4106_v22 = vpop.f32.mrf.mxu0 }
 0x3ef   : > { %v6656_v7 = vpop.f32.mrf.mxu1 }
 0x3f0   : > { %v4107_v36 = vpop.f32.mrf.mxu0  ;;  %v6660_v12 = vadd.f32 %v4562_v23, %v2931_v1 }
 0x3f1   : > { %v6658_v47 = vpop.f32.mrf.mxu1  ;;  %v4108_v42 = vadd.f32 %v4107_v36, %v4106_v22 }
 0x3f3   : > { %v2936_v16 = vadd.f32 %v4108_v42, %v6618_v13  ;;  %v4109_v51 = vpop.f32.mrf.mxu0 }
 0x3f4   : > { %v6663_v53 = vpop.f32.mrf.mxu1 }
 0x3f5   : > { %v4110_v27 = vpop.f32.mrf.mxu0  ;;  %v6665_v10 = vadd.f32 %v3080_v4, %v2936_v16 }
 0x3f6   : > { %v4201_v34 = vpop.f32.mrf.mxu1  ;;  %v4111_v54 = vadd.f32 %v4110_v27, %v4109_v51 }
 0x3f7   : > { %v4112_v38 = vpop.f32.mrf.mxu0 }
 0x3f8   : > { %v4203_v11 = vpop.f32.mrf.mxu1  ;;  %v2941_v58 = vadd.f32 %v4111_v54, %v6620_v35 }
 0x3f9   : > { %v4113_v48 = vpop.f32.mrf.mxu0 }
 0x3fa   : > { %v4204_v20 = vpop.f32.mrf.mxu1  ;;  %v4114_v63 = vadd.f32 %v4113_v48, %v4112_v38  ;;  %v6668_v23 = vadd.f32 %v4565_v6, %v2941_v58 }
 0x3fc   : > { %v4115_v28 = vpop.f32.mrf.mxu0  ;;  %v6670_v43 = vpop.f32.mrf.mxu1  ;;  %v2946_v13 = vadd.f32 %v4114_v63, %v6622_v30 }
 0x3fe   : > { %v4116_v8 = vpop.f32.mrf.mxu0  ;;  %v6673_v24 = vpop.f32.mrf.mxu1  ;;  %v6675_v31 = vadd.f32 %v3090_v9, %v2946_v13 }
 0x3ff   : > { %v4117_v17 = vadd.f32 %v4116_v8, %v4115_v28 }
 0x400   : > { %v4118_v4 = vpop.f32.mrf.mxu0  ;;  %v4209_v21 = vpop.f32.mrf.mxu1 }
 0x401   : > { %v2951_v35 = vadd.f32 %v4117_v17, %v6624_v25 }
 0x402   : > { %v4119_v32 = vpop.f32.mrf.mxu0  ;;  %v4210_v26 = vpop.f32.mrf.mxu1 }
 0x403   : > { %v4120_v56 = vadd.f32 %v4119_v32, %v4118_v4  ;;  %v6678_v6 = vadd.f32 %v4568_v3, %v2951_v35  ;;  %v4202_v35 = vadd.f32 %v4201_v34, %v6663_v53  ;;  %v3556_v53 = vld [vmem:[%s5556_s24 + $0x8] sm:$0xff] }
 0x404   : > { %v4121_v33 = vpop.f32.mrf.mxu0  ;;  %v6680_v59 = vpop.f32.mrf.mxu1 }
 0x405   : > { %v2956_v30 = vadd.f32 %v4120_v56, %v6626_v44 }
 0x406   : > { %v4122_v46 = vpop.f32.mrf.mxu0  ;;  %v4213_v62 = vpop.f32.mrf.mxu1 }
 0x407   : > { %v4123_v60 = vadd.f32 %v4122_v46, %v4121_v33  ;;  %v6683_v18 = vadd.f32 %v3100_v55, %v2956_v30 }
 0x408   : > { %v4124_v9 = vpop.f32.mrf.mxu0  ;;  %v4215_v41 = vpop.f32.mrf.mxu1 }
 0x409   : > { %v2961_v40 = vadd.f32 %v4123_v60, %v6628_v29 }
 0x40a   : > { %v4125_v25 = vpop.f32.mrf.mxu0  ;;  %v4216_v50 = vpop.f32.mrf.mxu1 }
 0x40b   : > { %v4126_v14 = vadd.f32 %v4125_v25, %v4124_v9  ;;  %v6686_v1 = vadd.f32 %v4571_v19, %v2961_v40  ;;  %v4217_v25 = vadd.f32 %v4216_v50, %v4215_v41 }
 0x40c   : > { %v4127_v3 = vpop.f32.mrf.mxu0  ;;  %v6688_v22 = vpop.f32.mrf.mxu1 }
 0x40d   : > { %v2966_v36 = vadd.f32 %v4126_v14, %v6630_v57 }
 0x40e   : > { %v4128_v44 = vpop.f32.mrf.mxu0  ;;  %v6691_v42 = vpop.f32.mrf.mxu1 }
 0x40f   : > { %v4129_v16 = vadd.f32 %v4128_v44, %v4127_v3  ;;  %v6693_v55 = vadd.f32 %v3110_v15, %v2966_v36  ;;  %v4205_v15 = vadd.f32 %v4204_v20, %v4203_v11  ;;  %v4211_v11 = vadd.f32 %v4210_v26, %v4209_v21  ;;  %v3555_v26 = vld [vmem:[%s5556_s24] sm:$0xff]  ;;  %v3558_v36 = vld [vmem:[%s5556_s24 + $0x18] sm:$0xff] }
 0x410   : > { %v4130_v51 = vpop.f32.mrf.mxu0  ;;  %v4221_v27 = vpop.f32.mrf.mxu1  ;;  %v4208_v21 = vadd.f32 %v6673_v24, %v6670_v43 }
 0x411   : > { %v2971_v29 = vadd.f32 %v4129_v16, %v6632_v0 }
 0x412   : > { %v4131_v54 = vpop.f32.mrf.mxu0  ;;  %v4222_v38 = vpop.f32.mrf.mxu1 }
 0x413   : > { %v4132_v58 = vadd.f32 %v4131_v54, %v4130_v51  ;;  %v6697_v19 = vadd.f32 %v6651_v49, %v2971_v29  ;;  %v4214_v51 = vadd.f32 %v4213_v62, %v6680_v59  ;;  %v3560_v62 = vld [vmem:[%s5556_s24 + $0x28] sm:$0xff] }
 0x414   : > { %v4133_v48 = vpop.f32.mrf.mxu0  ;;  %v6699_v63 = vpop.f32.mrf.mxu1 }
 0x415   : > { %v2976_v57 = vadd.f32 %v4132_v58, %v6634_v61  ;;  %v6712_v61 = vld [vmem:[%s6976_s2] ss:$0 sm:$0xff]  ;;  %v4223_v58 = vadd.f32 %v4222_v38, %v4221_v27  ;;  %v4220_v38 = vadd.f32 %v6691_v42, %v6688_v22 }
 0x416   : > { %v4134_v28 = vpop.f32.mrf.mxu0  ;;  %v6702_v13 = vpop.f32.mrf.mxu1 }
 0x417   : > { %v4135_v8 = vadd.f32 %v4134_v28, %v4133_v48  ;;  %v6705_v17 = vadd.f32 %v6658_v47, %v2976_v57  ;;  %v3557_v48 = vld [vmem:[%s5556_s24 + $0x10] sm:$0xff]  ;;  %v4226_v22 = vadd.f32 %v6702_v13, %v6699_v63  ;;  %v3564_v13 = vld [vmem:[%s5556_s24 + $0x48] sm:$0xff] }
 0x418   : > { %v4227_v0 = vpop.f32.mrf.mxu1  ;;  %v4612_v4 = vpop.f32.mrf.mxu0 }
 0x419   : > { %v2981_v49 = vadd.f32 %v4135_v8, %v6636_v39  ;;  %v3443_v32 = vadd.f32 %v4612_v4, %v4205_v15 }
 0x41a   : > { %v4228_v56 = vpop.f32.mrf.mxu1  ;;  %v3437_v33 = vpop.f32.mrf.mxu0 }
 0x41b   : > { %v3517_v20 = vadd.f32 %v3443_v32, %v6642_v37  ;;  %v3438_v47 = vadd.f32 %v4202_v35, %v3437_v33  ;;  %v6716_v30 = vadd.f32 %v6656_v7, %v2981_v49  ;;  %v4229_v33 = vadd.f32 %v4228_v56, %v4227_v0 }
 0x41c   : > { %v6719_v34 = vpop.f32.mrf.mxu1  ;;  %v4615_v39 = vpop.f32.mrf.mxu0 }
 0x41d   : > { %v3540_v46 = vadd.f32 %v6712_v61, %v3517_v20  ;;  %v3516_v60 = vadd.f32 %v3438_v47, %v6639_v2  ;;  %v3453_v9 = vadd.f32 %v4615_v39, %v4211_v11 }
 0x41e   : > { %v6726_v37 = vpop.f32.mrf.mxu1  ;;  %v3447_v40 = vpop.f32.mrf.mxu0 }
 0x41f   : > { %v3572_v7 = vadd.f32 %v3556_v53, %v3540_v46  ;;  %v3539_v14 = vadd.f32 %v6712_v61, %v3516_v60  ;;  %v3519_v3 = vadd.f32 %v3453_v9, %v6648_v45  ;;  %v3448_v44 = vadd.f32 %v4208_v21, %v3447_v40  ;;  %v3562_v53 = vld [vmem:[%s5556_s24 + $0x38] sm:$0xff]  ;;  %v3561_v40 = vld [vmem:[%s5556_s24 + $0x30] sm:$0xff] }
 0x420   : > { %v4233_v16 = vpop.f32.mrf.mxu1  ;;  %v4618_v2 = vpop.f32.mrf.mxu0 }
 0x421   : > { %3588 = vst [vmem:[%s6374_s17 + $0x8] sm:$0xff] %v3572_v7  ;;  %v3571_v43 = vadd.f32 %v3555_v26, %v3539_v14  ;;  %v3542_v24 = vadd.f32 %v6712_v61, %v3519_v3  ;;  %v3463_v41 = vadd.f32 %v4618_v2, %v4217_v25  ;;  %v3518_v50 = vadd.f32 %v3448_v44, %v6645_v52 }
 0x422   : > { %v4234_v29 = vpop.f32.mrf.mxu1  ;;  %v3457_v54 = vpop.f32.mrf.mxu0 }
 0x423   : > { %3587 = vst [vmem:[%s6374_s17] sm:$0xff] %v3571_v43  ;;  %v3574_v45 = vadd.f32 %v3558_v36, %v3542_v24  ;;  %v3521_v57 = vadd.f32 %v3463_v41, %v6660_v12  ;;  %v3458_v28 = vadd.f32 %v4214_v51, %v3457_v54  ;;  %v3541_v59 = vadd.f32 %v6712_v61, %v3518_v50  ;;  %v3559_v12 = vld [vmem:[%s5556_s24 + $0x20] sm:$0xff]  ;;  %v3566_v54 = vld [vmem:[%s5556_s24 + $0x58] sm:$0xff] }
 0x424   : > { %v4236_v15 = vpop.f32.mrf.mxu1  ;;  %v4621_v8 = vpop.f32.mrf.mxu0  ;;  %v4235_v21 = vadd.f32 %v4234_v29, %v4233_v16  ;;  %v4232_v16 = vadd.f32 %v6726_v37, %v6719_v34 }
 0x425   : > { %3590 = vst [vmem:[%s6374_s17 + $0x18] sm:$0xff] %v3574_v45  ;;  %v3544_v52 = vadd.f32 %v6712_v61, %v3521_v57  ;;  %v3520_v4 = vadd.f32 %v3458_v28, %v6653_v5  ;;  %v3473_v27 = vadd.f32 %v4621_v8, %v4223_v58  ;;  %v3573_v35 = vadd.f32 %v3557_v48, %v3541_v59  ;;  %v3565_v8 = vld [vmem:[%s5556_s24 + $0x50] sm:$0xff] }
 0x426   : > { %v4237_v49 = vpop.f32.mrf.mxu1  ;;  %v3467_v32 = vpop.f32.mrf.mxu0 }
 0x427   : > { %v3576_v11 = vadd.f32 %v3560_v62, %v3544_v52  ;;  %v3543_v20 = vadd.f32 %v6712_v61, %v3520_v4  ;;  %v3523_v47 = vadd.f32 %v3473_v27, %v6668_v23  ;;  %3589 = vst [vmem:[%s6374_s17 + $0x10] sm:$0xff] %v3573_v35  ;;  %v3468_v5 = vadd.f32 %v4220_v38, %v3467_v32  ;;  %v3568_v38 = vld [vmem:[%s5556_s24 + $0x68] sm:$0xff] }
 0x428   : > { %v4239_v39 = vpop.f32.mrf.mxu1  ;;  %v4624_v46 = vpop.f32.mrf.mxu0  ;;  %v4238_v34 = vadd.f32 %v4237_v49, %v4236_v15 }
 0x429   : > { %3592 = vst [vmem:[%s6374_s17 + $0x28] sm:$0xff] %v3576_v11  ;;  %v3575_v42 = vadd.f32 %v3559_v12, %v3543_v20  ;;  %v3546_v0 = vadd.f32 %v6712_v61, %v3523_v47  ;;  %v3483_v56 = vadd.f32 %v4624_v46, %v4229_v33  ;;  %v3522_v60 = vadd.f32 %v3468_v5, %v6665_v10  ;;  %v3567_v33 = vld [vmem:[%s5556_s24 + $0x60] sm:$0xff] }
 0x42a   : > { %v4240_v9 = vpop.f32.mrf.mxu1  ;;  %v3477_v23 = vpop.f32.mrf.mxu0 }
 0x42b   : > { %3591 = vst [vmem:[%s6374_s17 + $0x20] sm:$0xff] %v3575_v42  ;;  %v3578_v26 = vadd.f32 %v3562_v53, %v3546_v0  ;;  %v3525_v25 = vadd.f32 %v3483_v56, %v6678_v6  ;;  %v3478_v7 = vadd.f32 %v4226_v22, %v3477_v23  ;;  %v3545_v63 = vadd.f32 %v6712_v61, %v3522_v60  ;;  %v3563_v6 = vld [vmem:[%s5556_s24 + $0x40] sm:$0xff]  ;;  %v3569_v42 = vld [vmem:[%s5556_s24 + $0x70] sm:$0xff] }
 0x42c   : > { %v4242_v14 = vpop.f32.mrf.mxu1  ;;  %v4627_v3 = vpop.f32.mrf.mxu0  ;;  %v4241_v41 = vadd.f32 %v4240_v9, %v4239_v39  ;;  %v3570_v39 = vld [vmem:[%s5556_s24 + $0x78] sm:$0xff]  ;;  %s5207_s24 = smov [#allocation12]  }
 0x42d   : > { %3594 = vst [vmem:[%s6374_s17 + $0x38] sm:$0xff] %v3578_v26  ;;  %v3548_v10 = vadd.f32 %v6712_v61, %v3525_v25  ;;  %v3524_v36 = vadd.f32 %v3478_v7, %v6675_v31  ;;  %v3493_v44 = vadd.f32 %v4627_v3, %v4235_v21  ;;  %v3577_v2 = vadd.f32 %v3561_v40, %v3545_v63  ;;  %s5043_s1 = sshll.u32 %s5207_s24, 4  ;;  %s5044_s1 = int_to_ptr.vmem [resolvable:$false] %s5043_s1 }
 0x42e   : > { %v4243_v51 = vpop.f32.mrf.mxu1  ;;  %v3487_v43 = vpop.f32.mrf.mxu0  ;;  %s5045_s20 = scalar_lea.vmem %s5044_s1, 4096  ;;  %p5046_p7 = scmp.lt.s32.totalorder %s6800_s12, %s5044_s1 }
 0x42f   : > { %v3580_v24 = vadd.f32 %v3564_v13, %v3548_v10  ;;  %v3547_v50 = vadd.f32 %v6712_v61, %v3524_v36  ;;  %v3527_v29 = vadd.f32 %v3493_v44, %v6686_v1  ;;  %3593 = vst [vmem:[%s6374_s17 + $0x30] sm:$0xff] %v3577_v2  ;;  %v3488_v31 = vadd.f32 %v4232_v16, %v3487_v43  ;;  %p5047_p3 = scmp.lt.s32.totalorder %s5045_s20, %s5039_s11 }
 0x430   : > { %v4245_v58 = vpop.f32.mrf.mxu1  ;;  %v4630_v45 = vpop.f32.mrf.mxu0 }
 0x431   : > { %3596 = vst [vmem:[%s6374_s17 + $0x48] sm:$0xff] %v3580_v24  ;;  %v3579_v37 = vadd.f32 %v3563_v6, %v3547_v50  ;;  %v3550_v48 = vadd.f32 %v6712_v61, %v3527_v29  ;;  %v3503_v57 = vadd.f32 %v4630_v45, %v4241_v41  ;;  %v3526_v28 = vadd.f32 %v3488_v31, %v6683_v18  ;;  %p5048_p10 = por %p5047_p3, %p5046_p7 }
 0x432   : > { %v4246_v59 = vpop.f32.mrf.mxu1  ;;  %v3497_v1 = vpop.f32.mrf.mxu0  ;;  %v4244_v18 = vadd.f32 %v4243_v51, %v4242_v14 }
 0x433   : > { %3595 = vst [vmem:[%s6374_s17 + $0x40] sm:$0xff] %v3579_v37  ;;  %v3582_v62 = vadd.f32 %v3566_v54, %v3550_v48  ;;  %v3529_v52 = vadd.f32 %v3503_v57, %v6697_v19  ;;  %v4247_v4 = vadd.f32 %v4246_v59, %v4245_v58  ;;  %v3498_v27 = vadd.f32 %v4238_v34, %v3497_v1  ;;  %p5049_p4 = pnand %p5048_p10, %p5042_p5 }
 0x434   : > { %v3549_v15 = vadd.f32 %v6712_v61, %v3526_v28  ;;  %v4633_v35 = vpop.f32.mrf.mxu0 }
 0x435   : > { %3598 = vst [vmem:[%s6374_s17 + $0x58] sm:$0xff] %v3582_v62  ;;  %v3552_v12 = vadd.f32 %v6712_v61, %v3529_v52  ;;  %v3528_v49 = vadd.f32 %v3498_v27, %v6693_v55  ;;  %v3513_v32 = vadd.f32 %v4633_v35, %v4247_v4 }
 0x436   : > { %v3581_v19 = vadd.f32 %v3565_v8, %v3549_v15  ;;  %v3507_v11 = vpop.f32.mrf.mxu0 }
 0x437   : > { %v3584_v20 = vadd.f32 %v3568_v38, %v3552_v12  ;;  %v3551_v47 = vadd.f32 %v6712_v61, %v3528_v49  ;;  %v3531_v53 = vadd.f32 %v3513_v32, %v6716_v30  ;;  %v3508_v5 = vadd.f32 %v4244_v18, %v3507_v11 }
 0x438   : > { %3597 = vst [vmem:[%s6374_s17 + $0x50] sm:$0xff] %v3581_v19 }
 0x439   : > { %3600 = vst [vmem:[%s6374_s17 + $0x68] sm:$0xff] %v3584_v20  ;;  %v3583_v55 = vadd.f32 %v3567_v33, %v3551_v47  ;;  %v3554_v46 = vadd.f32 %v6712_v61, %v3531_v53  ;;  %v3530_v22 = vadd.f32 %v3508_v5, %v6705_v17 }
 0x43b   : > { %3599 = vst [vmem:[%s6374_s17 + $0x60] sm:$0xff] %v3583_v55  ;;  %v3586_v0 = vadd.f32 %v3570_v39, %v3554_v46  ;;  %v3553_v30 = vadd.f32 %v6712_v61, %v3530_v22 }
 0x43d   : > { %3602 = vst [vmem:[%s6374_s17 + $0x78] sm:$0xff] %v3586_v0  ;;  %v3585_v56 = vadd.f32 %v3569_v42, %v3553_v30 }
 0x43f   : > { %3601 = vst [vmem:[%s6374_s17 + $0x70] sm:$0xff] %v3585_v56 }
 0x440   : > { %5052 = shalt.err (!%p5049_p4)
}
 0x441   : > { %s5053_s17 = scalar_lea.hbm %s6798_s15, 2048  ;;  %s5057_s0 = scalar_lea.hbm %s6979_s3, 8192 }
 0x442   : > { %p5054_p2 = scmp.ne.s32.totalorder %s6798_s15, %s5053_s17  ;;  %p5058_p6 = scmp.lt.s32.totalorder %s6798_s15, %s6979_s3 }
 0x443   : > { %p5059_p11 = scmp.lt.s32.totalorder %s5057_s0, %s5053_s17 }
 0x444   : > { %p5055_p0 = pnand %p5054_p2, %p6980_p9 }
 0x445   : > { %p5060_p1 = por %p5059_p11, %p5058_p6 }
 0x446   : > { %p5056_p8 = pneg %p5055_p0 }
 0x448   : > { %p5061_p13 = pnand %p5060_p1, %p5056_p8 }
 0x44a   : > { %5064 = shalt.err (!%p5061_p13)
}
 0x44b   : > { %s5208_s13 = smov 128   ;;  %s5209_s25 = smov 8  }
 0x44c   : > { %4648 = dma.vmem_to_hbm [thread:$0]  (%p6980_p9), %s6800_s12, 2048, %s6798_s15, %s3604_s5, %s5208_s13, %s5208_s13, %s5209_s25  }
 0x44d PF: > { %p4676_p12 = scmp.ge.s32.totalorder %s5195_s14, 2  ;;  %s3635_s21 = sand.u32 1, %s5167_s30  }
 0x44e   : > { %p6981_p5 = scmp.ne.s32.totalorder %s6947_s6, 0  ;;  %s3636_s26 = scalar_lea.sflag [#allocation5], %s3635_s21 }
 0x450   : > { %p4668_p7 = pnand %p4676_p12, %p6981_p5 }
 0x452   : > { %p4669_p3 = pneg %p4668_p7 }
 0x454   : > { %5138 = dma.done.wait (%p4669_p3), %s3636_s26, 2048  }
 0x455   : > { %5140 = vsyncadd (%p4669_p3), %s3636_s26, 4294965248  ;;  %s27_s14 = sadd.s32 1, %s5195_s14   ;;  %s6983_s24 = sld [smem:[#allocation19_spill]] }
 0x456   : > { %p6832_p10 = scmp.ge.s32.totalorder %s27_s14, 6   ;;  %s6984_s25 = sld [smem:[#allocation20_spill]] }
 0x457   : > { %s6985_s27 = sld [smem:[#allocation21_spill]]  ;;  %s6991_s26 = smov %s7012_s4 }
 0x458   : > { %s6986_s18 = sld [smem:[#allocation31_spill]]  ;;  %s6992_s28 = smov %s5163_s29 }
 0x459   : > { %s6987_s10 = sld [smem:[#allocation24_spill]]  ;;  %s6994_s30 = smov %s5171_s8 }
 0x45a   : > { %s6988_s11 = sld [smem:[#allocation25_spill]]  ;;  %s6995_s8 = smov %s5175_s9 }
 0x45b   : > { %s6989_s12 = sld [smem:[#allocation27_spill]]  ;;  %s6996_s9 = smov %s5452_s7 }
 0x45c   : > { %s6990_s13 = sld [smem:[#allocation28_spill]]  ;;  %26 = sbr.rel (!%p6832_p10) target bundleno = 22 (0x16), region = 140 }
 0x45e   : > { %s6993_s29 = smov %s6986_s18 }
 0x461   :  { %3641 = vsyncpa [#allocation4], 1 }
 0x462   :  { %3643 = vsyncpa [#allocation4 + $0x1], 1 }
 0x463   :  { %3644 = vsyncpa [#allocation7], 1 }
 0x464   :  { %3646 = vsyncpa [#allocation7 + $0x1], 1 }
 0x465   :  { %3647 = vsyncpa [#allocation10], 1 }
 0x466   :  { %3648 = vsyncpa [#allocation5], 1 }
 0x467   :  { %3650 = vsyncpa [#allocation5 + $0x1], 1 }

// kernel: tpu_custom_call.1
= control target key start
LH: loop header
LB: loop body
LE: loop exit
PB: predicated region body
PF: predicated region fallthrough
CT: control target
= control target key end

     0   :  { %s6879_s0 = inlined_call_operand.hbm [shape: f32[2,16,16,128], index: 0, kind: input, shape index: {}]   ;;  %s6880_s1 = inlined_call_operand.hbm [shape: f32[2,16,16,128], index: 1, kind: input, shape index: {}]   ;;  %s6881_s2 = inlined_call_operand.hbm [shape: f32[2,16,16,128], index: 2, kind: input, shape index: {}]   ;;  %s6882_s3 = inlined_call_operand.hbm [shape: f32[3,384,128], index: 3, kind: input, shape index: {}]   ;;  %s6883_s4 = inlined_call_operand.vmem [shape: f32[1,128], index: 4, kind: input, shape index: {}]   ;;  %s6884_s5 = inlined_call_operand.hbm [shape: f32[3,384,128], index: 5, kind: input, shape index: {}]   ;;  %s6885_s6 = inlined_call_operand.vmem [shape: f32[1,128], index: 6, kind: input, shape index: {}]   ;;  %s6886_s7 = inlined_call_operand.hbm [shape: f32[2,16,16,128], index: 7, kind: output, shape index: {}]  }
   0x1   :  { %6909 = sst [smem:[#allocation32_spill]] %s6879_s0 }
   0x2   :  { %6910 = sst [smem:[#allocation33_spill]] %s6880_s1 }
   0x3   :  { %6911 = sst [smem:[#allocation34_spill]] %s6881_s2 }
   0x4   :  { %6912 = sst [smem:[#allocation35_spill]] %s6882_s3 }
   0x5   :  { %6913 = sst [smem:[#allocation36_spill]] %s6883_s4 }
   0x6   :  { %6914 = sst [smem:[#allocation37_spill]] %s6884_s5 }
   0x7   :  { %6915 = sst [smem:[#allocation38_spill]] %s6885_s6 }
   0x8   :  { %6916 = sst [smem:[#allocation39_spill]] %s6886_s7 }
   0x9   :  { %12 = vsyncpa [#allocation4], 0 }
   0xa   :  { %14 = vsyncpa [#allocation4 + $0x1], 0 }
   0xb   :  { %15 = vsyncpa [#allocation7], 0 }
   0xc   :  { %17 = vsyncpa [#allocation7 + $0x1], 0 }
   0xd   :  { %18 = vsyncpa [#allocation10], 0 }
   0xe   :  { %19 = vsyncpa [#allocation5], 0 }
   0xf   :  { %21 = vsyncpa [#allocation5 + $0x1], 0  ;;  %s5250_s24 = smov 0   ;;  %s5252_s25 = smov 0  }
  0x10   :  { %s5254_s26 = smov 0   ;;  %s5256_s27 = smov 0  }
  0x11   :  { %s5258_s28 = smov 0   ;;  %s5260_s29 = smov 0  }
  0x12   :  { %s5262_s30 = smov 0   ;;  %s5264_s8 = smov 0  }
  0x13   :  { %s5266_s9 = smov 0   ;;  %s5268_s10 = smov 0  }
  0x14   :  { %s5270_s11 = smov 0   ;;  %s5272_s12 = smov 0  }
  0x15   :  { %s5274_s13 = smov 0   ;;  %s5276_s14 = smov 0  }
  0x16 LB: > { %6917 = sst [smem:[#allocation18_spill]] %s5143_s24  ;;  %s5321_s15 = sadd.s32 4294967295, %s5195_s14   ;;  %s5195_s14 = sphi %s5276_s14, %s27_s14   ;;  %s5191_s13 = sphi %s5274_s13, %s6990_s13   ;;  %s5187_s12 = sphi %s5272_s12, %s6989_s12   ;;  %s5183_s11 = sphi %s5270_s11, %s6988_s11   ;;  %s5179_s10 = sphi %s5268_s10, %s6987_s10   ;;  %s5175_s9 = sphi %s5266_s9, %s6996_s9   ;;  %s5171_s8 = sphi %s5264_s8, %s6995_s8   ;;  %s5167_s30 = sphi %s5262_s30, %s6994_s30   ;;  %s5163_s29 = sphi %s5260_s29, %s6993_s29   ;;  %s5159_s28 = sphi %s5258_s28, %s6992_s28   ;;  %s5155_s27 = sphi %s5256_s27, %s6985_s27   ;;  %s5151_s26 = sphi %s5254_s26, %s6991_s26   ;;  %s5147_s25 = sphi %s5252_s25, %s6984_s25   ;;  %s5143_s24 = sphi %s5250_s24, %s6983_s24  }
  0x17   : > { %6918 = sst [smem:[#allocation19_spill]] %s5147_s25  ;;  %p3786_p0 = scmp.ge.s32.totalorder %s5195_s14, 1 }
  0x18   : > { %6919 = sst [smem:[#allocation20_spill]] %s5151_s26  ;;  %p6903_p1 = scmp.eq.s32.totalorder %s5321_s15, 0 }
  0x19   : > { %6920 = sst [smem:[#allocation21_spill]] %s5159_s28  ;;  %p256_p3 = scmp.lt.s32.totalorder %s5195_s14, 5 }
  0x1a   : > { %6921 = sst [smem:[#allocation22_spill]] %s5179_s10  ;;  %s5197_s17 = smov [#allocation9]  }
  0x1b   : > { %6922 = sst [smem:[#allocation23_spill]] %s5183_s11  ;;  %p5327_p4 = pnand %p3786_p0, %p256_p3 }
  0x1c   : > { %6923 = sst [smem:[#allocation24_spill]] %s5187_s12  ;;  %s268_s18 = sshll.u32 %s5197_s17, 4  ;;  %s269_s18 = int_to_ptr.vmem [resolvable:$true] %s268_s18 }
  0x1d   : > { %6924 = sst [smem:[#allocation25_spill]] %s5191_s13  ;;  %p4650_p5 = pneg %p5327_p4 }
  0x1e   : > { %s6925_s16 = scalar_select %p5327_p4, 1, 0 }
  0x1f   : > { %p5335_p6 = pnand %p4650_p5, %p6903_p1  ;;  %s4914_s20 = scalar_lea.vmem %s269_s18, 18432 }
  0x20   : > { %6926 = sst [smem:[#allocation26_spill]] %s6925_s16  ;;  %p4915_p8 = scmp.ne.s32.totalorder %s269_s18, %s4914_s20 }
  0x21   : > { %p4905_p7 = pneg %p5335_p6  ;;  %p4922_p11 = scmp.lt.s32.totalorder %s269_s18, %s269_s18 }
  0x22   : > { %p4923_p12 = scmp.lt.s32.totalorder %s4914_s20, %s4914_s20 }
  0x23   : > { %p4917_p9 = pnand %p4915_p8, %p4905_p7 }
  0x24   : > { %p4924_p13 = por %p4923_p12, %p4922_p11 }
  0x25   : > { %p4918_p10 = pneg %p4917_p9 }
  0x27   : > { %p4925_p0 = pnand %p4924_p13, %p4918_p10 }
  0x29   : > { %4928 = shalt.err (!%p4925_p0)
}
  0x2a   : > { %s6889_s21 = smov 128   ;;  %s6891_s22 = smov 8  }
  0x2b   : > { %s6928_s3 = sld [smem:[#allocation35_spill]]  ;;  %s36_s20 = sadd.s32 1, %s5187_s12 }
  0x2c   : > { %s39_s7 = sadd.s32 1, %s5191_s13  ;;  %p37_p3 = scmp.ge.s32.totalorder %s36_s20, 2 }
  0x2d   : > { %p6905_p5 = scmp.eq.s32.totalorder %s5195_s14, 0  ;;  %s3780_s11 = sshll.u32 %s5187_s12, 2 }
  0x2e   : > { %s84_s6 = sadd.s32 1, %s5163_s29  ;;  %s6998_s20 = smov (%p37_p3, %s36_s20), 0 }
  0x2f   : > { %6929 = sst [smem:[#allocation27_spill]] %s6998_s20  ;;  %s7000_s7 = smov (!%p37_p3, %s39_s7), %s5191_s13 }
  0x30   : > { %s44_s4 = ssub.s32 %s5187_s12, %s6998_s20  ;;  %s3781_s10 = sadd.s32 4294967295, %s3780_s11 }
  0x31   : > { %4653 = dma.hbm_to_vmem [thread:$0]  (!%p5335_p6), %s6928_s3, 18432, %s269_s18, [#allocation10], %s6889_s21, %s6889_s21, %s6891_s22  }
  0x32   : > { %p41_p8 = scmp.ge.s32.totalorder %s7000_s7, 2  ;;  %p73_p9 = scmp.gt.s32.totalorder %s3781_s10, 0 }
  0x33   : > { %s3782_s18 = sshll.u32 %s6998_s20, 2  ;;  %p91_p10 = scmp.ne.s32.totalorder %s5163_s29, %s5159_s28 }
  0x34   : > { %s7002_s7 = smov (%p41_p8, %s7000_s7), 0  ;;  %s7004_s10 = smov (!%p73_p9, %s3781_s10), 0 }
  0x35   : > { %6930 = sst [smem:[#allocation28_spill]] %s7002_s7  ;;  %s5369_s23 = ssub.s32 %s5191_s13, %s7002_s7 }
  0x36   : > { %6931 = sst [smem:[#allocation29_spill]] %s5369_s23  ;;  %s3783_s17 = sadd.s32 4294967295, %s3782_s18 }
  0x37   : > { %s5372_s21 = sor.u32 %s44_s4, %s5369_s23  ;;  %p77_p11 = scmp.gt.s32.totalorder %s3783_s17, 0 }
  0x38   : > { %p46_p12 = scmp.eq.s32.totalorder %s5372_s21, 0  ;;  %p5377_p13 = por %p91_p10, %p6905_p5 }
  0x39   : > { %s7006_s17 = smov (!%p77_p11, %s3783_s17), 0  ;;  %p97_p0 = scmp.ne.s32.totalorder %s5159_s28, %s5155_s27 }
  0x3a   : > { %s5383_s3 = sadd.s32 4, %s3780_s11  ;;  %s80_s7 = ssub.s32 %s7004_s10, %s7006_s17 }
  0x3b   : > { %s81_s4 = sor.u32 %s80_s7, %s5369_s23  ;;  %p5389_p8 = por %p97_p0, %p6903_p1 }
  0x3c   : > { %p82_p9 = scmp.eq.s32.totalorder %s81_s4, 0  ;;  %s5393_s16 = sadd.s32 4, %s3782_s18 }
  0x3d   : > { %s6933_s20 = scalar_select %p5389_p8, 1, 0 }
  0x3e   : > { %p6904_p11 = scmp.lt.s32.totalorder %s5195_s14, 4  ;;  %s5401_s11 = sshll.u32 %s5191_s13, 5 }
  0x3f   : > { %6934 = sst [smem:[#allocation30_spill]] %s6933_s20  ;;  %s325_s17 = sand.u32 1, %s5195_s14  }
  0x40   : > { %s5398_s27 = scalar_select %p82_p9, %s5163_s29, %s84_s6  }
  0x41   : > { %s327_s7 = sand.u32 1, %s5163_s29   ;;  %s3831_s2 = sshll.u32 %s7004_s10, 2 }
  0x42   : > { %6935 = sst [smem:[#allocation31_spill]] %s5398_s27  ;;  %s3795_s28 = sshll.u32 %s327_s7, 5 }
  0x43   : > { %s340_s23 = sadd.s32 %s3831_s2, %s5401_s11  ;;  %s329_s20 = scalar_lea.vmem [#allocation6], %s3795_s28 }
  0x44   : > { %s3801_s24 = sshll.u32 %s340_s23, 7  ;;  %s343_s4 = sshll.u32 %s329_s20, 4  ;;  %s344_s4 = int_to_ptr.vmem [resolvable:$true] %s343_s4 }
  0x45   : > { %s6936_s1 = sld [smem:[#allocation33_spill]]  ;;  %p5413_p0 = pnand %p6904_p11, %p5377_p13 }
  0x46   : > { %s5200_s13 = smov [#allocation11]   ;;  %s5419_s2 = scalar_lea.sflag [#allocation7], %s325_s17 }
  0x47   : > { %s284_s27 = sshll.u32 %s5200_s13, 4  ;;  %p4931_p9 = pneg %p5413_p0  ;;  %s5417_s27 = int_to_ptr.vmem [resolvable:$true] %s284_s27 }
  0x48   : > { %s4942_s28 = scalar_lea.vmem %s344_s4, 512 }
  0x49   : > { %p4943_p10 = scmp.ne.s32.totalorder %s344_s4, %s4942_s28 }
  0x4b   : > { %s342_s18 = scalar_lea.hbm %s6936_s1, %s3801_s24  ;;  %p4945_p3 = pnand %p4943_p10, %p4931_p9 }
  0x4c   : > { %s5201_s24 = smov [#allocation6]  }
  0x4d   : > { %p4946_p1 = pneg %p4945_p3  ;;  %s4947_s25 = sshll.u32 %s5201_s24, 4  ;;  %s4948_s25 = int_to_ptr.vmem [resolvable:$false] %s4947_s25 }
  0x4e   : > { %s4949_s26 = scalar_lea.vmem %s4948_s25, 1024  ;;  %p4950_p13 = scmp.lt.s32.totalorder %s344_s4, %s4948_s25 }
  0x4f   : > { %p4951_p11 = scmp.lt.s32.totalorder %s4949_s26, %s4942_s28 }
  0x51   : > { %p4952_p2 = por %p4951_p11, %p4950_p13 }
  0x53   : > { %p4953_p5 = pnand %p4952_p2, %p4946_p1 }
  0x55   : > { %4956 = shalt.err (!%p4953_p5)
}
  0x56   : > { %s6938_s10 = smov 8   ;;  %s6939_s13 = smov 128  }
  0x57   : > { %4663 = dma.hbm_to_vmem [thread:$0]  (!%p5413_p0), %s342_s18, 512, %s344_s4, %s5419_s2, %s6939_s13, %s6939_s13, %s6938_s10  }
  0x58   : > { %s4968_s22 = scalar_lea.vmem %s5417_s27, 18432  ;;  %p4976_p1 = scmp.lt.s32.totalorder %s5417_s27, %s5417_s27 }
  0x59   : > { %p4969_p3 = scmp.ne.s32.totalorder %s5417_s27, %s4968_s22  ;;  %p4977_p2 = scmp.lt.s32.totalorder %s4968_s22, %s4968_s22 }
  0x5b   : > { %p4971_p10 = pnand %p4969_p3, %p4905_p7  ;;  %p4978_p5 = por %p4977_p2, %p4976_p1 }
  0x5d   : > { %p4972_p9 = pneg %p4971_p10 }
  0x5f   : > { %p4979_p11 = pnand %p4978_p5, %p4972_p9 }
  0x61   : > { %4982 = shalt.err (!%p4979_p11)
}
  0x62   : > { %s6940_s5 = sld [smem:[#allocation37_spill]]  ;;  %s3779_s19 = sadd.s32 4294967294, %s5195_s14  }
  0x63   : > { %s48_s17 = sadd.s32 1, %s5175_s9  ;;  %p55_p7 = scmp.ne.s32.totalorder %s5175_s9, %s5171_s8 }
  0x64   : > { %s5452_s7 = scalar_select %p46_p12, %s5175_s9, %s48_s17  }
  0x65   : > { %p6941_p0 = scmp.eq.s32.totalorder %s5195_s14, 0  ;;  %p61_p3 = scmp.ne.s32.totalorder %s5171_s8, %s5167_s30 }
  0x66   : > { %p6943_p10 = scmp.eq.s32.totalorder %s5321_s15, 3  ;;  %p6945_p1 = scmp.eq.s32.totalorder %s5321_s15, 0 }
  0x67   : > { %p5456_p13 = por %p6941_p0, %p55_p7  ;;  %s301_s21 = sand.u32 1, %s5175_s9  }
  0x68   : > { %4656 = dma.hbm_to_vmem [thread:$0]  (!%p5335_p6), %s6940_s5, 18432, %s5417_s27, [#allocation10], %s6939_s13, %s6939_s13, %s6938_s10  }
  0x69   : > { %p5464_p9 = por %p6943_p10, %p55_p7  ;;  %p249_p6 = scmp.eq.s32.totalorder %s3779_s19, 3 }
  0x6a   : > { %p5470_p2 = por %p6945_p1, %p61_p3  ;;  %s3790_s28 = sshll.u32 %s301_s21, 7 }
  0x6b   : > { %s6944_s18 = scalar_select %p5464_p9, 1, 0 }
  0x6c   : > { %p5475_p12 = por %p249_p6, %p61_p3  ;;  %s3830_s24 = sshll.u32 %s5187_s12, 4 }
  0x6d   : > { %s312_s25 = sadd.s32 %s3830_s24, %s5401_s11  ;;  %s305_s22 = scalar_lea.vmem [#allocation3], %s3790_s28 }
  0x6e   : > { %s6947_s6 = scalar_select %p5475_p12, 1, 0 }
  0x6f   : > { %s3794_s26 = sshll.u32 %s312_s25, 7  ;;  %s315_s20 = sshll.u32 %s305_s22, 4  ;;  %s316_s20 = int_to_ptr.vmem [resolvable:$true] %s315_s20 }
  0x70   : > { %s6948_s0 = sld [smem:[#allocation32_spill]]  ;;  %p6949_p5 = scmp.lt.s32.totalorder %s5195_s14, 4 }
  0x71   : > { %s302_s5 = scalar_lea.sflag [#allocation4], %s301_s21  ;;  %s4996_s12 = scalar_lea.vmem %s316_s20, 2048 }
  0x72   : > { %p5488_p11 = pnand %p6949_p5, %p5456_p13  ;;  %p4997_p0 = scmp.ne.s32.totalorder %s316_s20, %s4996_s12 }
  0x73   : > { %s5202_s28 = smov [#allocation3]  }
  0x74   : > { %p4985_p7 = pneg %p5488_p11  ;;  %s5001_s24 = sshll.u32 %s5202_s28, 4  ;;  %s5002_s24 = int_to_ptr.vmem [resolvable:$false] %s5001_s24 }
  0x75   : > { %s5003_s25 = scalar_lea.vmem %s5002_s24, 4096  ;;  %p5004_p6 = scmp.lt.s32.totalorder %s316_s20, %s5002_s24 }
  0x76   : > { %s314_s19 = scalar_lea.hbm %s6948_s0, %s3794_s26  ;;  %p4999_p3 = pnand %p4997_p0, %p4985_p7 }
  0x77   : > { %p5005_p1 = scmp.lt.s32.totalorder %s5003_s25, %s4996_s12 }
  0x78   : > { %p5000_p10 = pneg %p4999_p3 }
  0x79   : > { %p5006_p12 = por %p5005_p1, %p5004_p6 }
  0x7b   : > { %p5007_p9 = pnand %p5006_p12, %p5000_p10 }
  0x7d   : > { %5010 = shalt.err (!%p5007_p9)
}
  0x7e   : > { %s6951_s4 = sld [smem:[#allocation20_spill]]  ;;  %p6955_p13 = scmp.lt.s32.totalorder %s5383_s3, 7 }
  0x7f   : > { %s6952_s21 = sld [smem:[#allocation19_spill]]  ;;  %p6956_p9 = scmp.lt.s32.totalorder %s5393_s16, 7 }
  0x80   : > { %s6953_s26 = sld [smem:[#allocation18_spill]]  ;;  %s7008_s3 = smov (!%p6955_p13, %s5383_s3), 7 }
  0x81   : > { %s6954_s22 = sld [smem:[#allocation29_spill]]  ;;  %s7010_s16 = smov (!%p6956_p9, %s5393_s16), 7 }
  0x82   : > { %4660 = dma.hbm_to_vmem [thread:$0]  (!%p5488_p11), %s314_s19, 2048, %s316_s20, %s302_s5, %s6939_s13, %s6939_s13, %s6938_s10  }
  0x83   : > { %s116_s12 = ssub.s32 %s7008_s3, %s7010_s16  ;;  %p6957_p7 = scmp.eq.s32.totalorder %s5195_s14, 0 }
  0x84   : > { %s120_s1 = sadd.s32 1, %s6951_s4  ;;  %p6959_p10 = scmp.eq.s32.totalorder %s5321_s15, 0 }
  0x85   : > { %p127_p12 = scmp.ne.s32.totalorder %s6951_s4, %s6952_s21  ;;  %s355_s20 = sand.u32 1, %s6951_s4  }
  0x86   : > { %p133_p5 = scmp.ne.s32.totalorder %s6952_s21, %s6953_s26  ;;  %s3834_s19 = sshll.u32 %s7008_s3, 2 }
  0x87   : > { %s117_s23 = sor.u32 %s116_s12, %s6954_s22  ;;  %p5513_p0 = por %p127_p12, %p6957_p7 }
  0x88   : > { %p118_p3 = scmp.eq.s32.totalorder %s117_s23, 0  ;;  %p5519_p6 = por %p133_p5, %p6959_p10 }
  0x89   : > { %s3802_s16 = sshll.u32 %s355_s20, 5  ;;  %s368_s28 = sadd.s32 %s3834_s19, %s5401_s11 }
  0x8a   : > { %s6960_s5 = scalar_select %p5519_p6, 1, 0 }
  0x8b   : > { %s7012_s4 = smov (!%p118_p3, %s6951_s4), %s120_s1  ;;  %s3807_s24 = sshll.u32 %s368_s28, 7 }
  0x8c   : > { %s6961_s26 = sld [smem:[#allocation34_spill]]  ;;  %s357_s12 = scalar_lea.vmem [#allocation8], %s3802_s16 }
  0x8d   : > { %s371_s0 = sshll.u32 %s357_s12, 4  ;;  %p6962_p11 = scmp.lt.s32.totalorder %s5195_s14, 4  ;;  %s372_s0 = int_to_ptr.vmem [resolvable:$true] %s371_s0 }
  0x8e   : > { %s5024_s3 = scalar_lea.vmem %s372_s0, 512  ;;  %s5203_s11 = smov [#allocation8]  }
  0x8f   : > { %p5535_p1 = pnand %p6962_p11, %p5513_p0  ;;  %p5025_p9 = scmp.ne.s32.totalorder %s372_s0, %s5024_s3 }
  0x90   : > { %s5029_s1 = sshll.u32 %s5203_s11, 4  ;;  %s5030_s1 = int_to_ptr.vmem [resolvable:$false] %s5029_s1 }
  0x91   : > { %p5013_p13 = pneg %p5535_p1  ;;  %s5031_s20 = scalar_lea.vmem %s5030_s1, 1024 }
  0x92   : > { %s370_s22 = scalar_lea.hbm %s6961_s26, %s3807_s24  ;;  %p5032_p7 = scmp.lt.s32.totalorder %s372_s0, %s5030_s1 }
  0x93   : > { %p5027_p12 = pnand %p5025_p9, %p5013_p13  ;;  %p5033_p3 = scmp.lt.s32.totalorder %s5031_s20, %s5024_s3 }
  0x95   : > { %p5028_p5 = pneg %p5027_p12  ;;  %p5034_p10 = por %p5033_p3, %p5032_p7 }
  0x97   : > { %p5035_p6 = pnand %p5034_p10, %p5028_p5 }
  0x99   : > { %5038 = shalt.err (!%p5035_p6)
}
  0x9a   : > { %4666 = dma.hbm_to_vmem [thread:$0]  (!%p5535_p1), %s370_s22, 512, %s372_s0, %s5419_s2, %s6939_s13, %s6939_s13, %s6938_s10  }
  0x9b   : > { %383 = sbr.rel (%p5327_p4) target bundleno = 1101 (0x44d), region = 48  ;;  %s5550_s19 = sand.u32 (!%p5327_p4), 1, %s5171_s8  }
  0x9c   : > { %s3809_s16 = sshll.u32 (!%p5327_p4), %s5550_s19, 7  ;;  %s386_s28 = scalar_lea.sflag (!%p5327_p4), [#allocation4], %s5550_s19 }
  0x9d   : > { %s5556_s24 = scalar_lea.vmem (!%p5327_p4), [#allocation3], %s3809_s16 }
  0xa0   : > { %5122 = dma.done.wait (%p5470_p2), %s386_s28, 2048  }
  0xa1   : > { %5124 = vsyncadd (%p5470_p2), %s386_s28, 4294965248  ;;  %s6965_s0 = sld [smem:[#allocation21_spill]]  ;;  %s394_s10 = sand.u32 1, %s5321_s15  }
  0xa2   : > { %s395_s21 = scalar_lea.sflag [#allocation7], %s394_s10 }
  0xa7   : > { %s396_s13 = sand.u32 1, %s6965_s0  }
  0xa8   : > { %s3810_s25 = sshll.u32 %s396_s13, 5 }
  0xa9   : > { %s5564_s26 = scalar_lea.vmem [#allocation6], %s3810_s25 }
  0xaa   : > { %5126 = dma.done.wait (%p5389_p8), %s395_s21, 512  }
  0xab   : > { %5128 = vsyncadd (%p5389_p8), %s395_s21, 4294966784  ;;  %s6967_s22 = sld [smem:[#allocation19_spill]]  ;;  %p6968_p4 = scmp.ne.s32.totalorder %s6960_s5, 0 }
  0xb1   : > { %s405_s12 = sand.u32 1, %s6967_s22  }
  0xb2   : > { %s3811_s23 = sshll.u32 %s405_s12, 5 }
  0xb3   : > { %s5571_s27 = scalar_lea.vmem [#allocation8], %s3811_s23 }
  0xb4   : > { %5130 = dma.done.wait (%p6968_p4), %s395_s21, 512  }
  0xb5   : > { %5132 = vsyncadd (%p6968_p4), %s395_s21, 4294966784  ;;  %p6969_p2 = scmp.eq.s32.totalorder %s5321_s15, 0 }
  0xb7   : > { %5134 = dma.done.wait (%p6969_p2), [#allocation10], 36864   ;;  %p6970_p0 = pmov %p6969_p2 }
  0xb8   : > { %s6971_s3 = sld [smem:[#allocation22_spill]]  ;;  %v5204_v0 = vmov 0.0   ;;  %v935_v1 = vld [vmem:[#allocation9 + $0x1f8] sm:$0xff]  ;;  %v934_v3 = vld [vmem:[#allocation9 + $0x1f0] sm:$0xff]  ;;  %v933_v5 = vld [vmem:[#allocation9 + $0x1e8] sm:$0xff]  ;;  %vm605_vm0 = vcmask 1046528  }
  0xb9   : > { %5136 = vsyncadd (%p6970_p0), [#allocation10], 4294930432  ;;  %968 = vmatprep.subr.mxu0 %v5204_v0  ;;  %v967_v2 = vld [vmem:[#allocation9 + $0x2f8] sm:$0xff]  ;;  %v966_v4 = vld [vmem:[#allocation9 + $0x2f0] sm:$0xff]  ;;  %vm532_vm1 = vcmask 1040384   ;;  %s6974_s20 = sld [smem:[#allocation36_spill]] }
  0xba   : > { %969 = vmatpush1.msra.mxu0 %v935_v1  ;;  %4280 = vmatprep.subr.mxu1 %v967_v2  ;;  %v965_v6 = vld [vmem:[#allocation9 + $0x2e8] sm:$0xff]  ;;  %v932_v7 = vld [vmem:[#allocation9 + $0x1e0] sm:$0xff]  ;;  %v931_v9 = vld [vmem:[#allocation9 + $0x1d8] sm:$0xff]  ;;  %s6374_s17 = scalar_lea.vmem [#allocation12], %s3809_s16 }
  0xbb   : > { %970 = vmatprep.subr.mxu0 %v5204_v0  ;;  %4281 = vmatpush3.msra.mxu1 %v967_v2  ;;  %v964_v8 = vld [vmem:[#allocation9 + $0x2e0] sm:$0xff]  ;;  %v963_v10 = vld [vmem:[#allocation9 + $0x2d8] sm:$0xff]  ;;  %v930_v11 = vld [vmem:[#allocation9 + $0x1d0] sm:$0xff] }
  0xbc   : > { %971 = vmatpush1.msra.mxu0 %v934_v3  ;;  %4282 = vmatprep.subr.mxu1 %v966_v4  ;;  %v962_v12 = vld [vmem:[#allocation9 + $0x2d0] sm:$0xff]  ;;  %v929_v13 = vld [vmem:[#allocation9 + $0x1c8] sm:$0xff]  ;;  %v928_v18 = vld [vmem:[#allocation9 + $0x1c0] sm:$0xff] }
  0xbd   : > { %972 = vmatprep.subr.mxu0 %v5204_v0  ;;  %4283 = vmatpush3.msra.mxu1 %v966_v4  ;;  %v961_v14 = vld [vmem:[#allocation9 + $0x2c8] sm:$0xff]  ;;  %v960_v19 = vld [vmem:[#allocation9 + $0x2c0] sm:$0xff]  ;;  %v927_v21 = vld [vmem:[#allocation9 + $0x1b8] sm:$0xff] }
  0xbe   : > { %p476_p8 = scmp.gt.s32.totalorder %s6971_s3, 0  ;;  %p500_p6 = scmp.lt.s32.totalorder %s6971_s3, 1  ;;  %973 = vmatpush1.msra.mxu0 %v933_v5  ;;  %4284 = vmatprep.subr.mxu1 %v965_v6  ;;  %v959_v22 = vld [vmem:[#allocation9 + $0x2b8] sm:$0xff]  ;;  %v926_v25 = vld [vmem:[#allocation9 + $0x1b0] sm:$0xff]  ;;  %v925_v27 = vld [vmem:[#allocation9 + $0x1a8] sm:$0xff] }
  0xbf   : > { %974 = vmatprep.subr.mxu0 %v5204_v0  ;;  %4285 = vmatpush3.msra.mxu1 %v965_v6  ;;  %v958_v26 = vld [vmem:[#allocation9 + $0x2b0] sm:$0xff]  ;;  %v957_v28 = vld [vmem:[#allocation9 + $0x2a8] sm:$0xff]  ;;  %v924_v29 = vld [vmem:[#allocation9 + $0x1a0] sm:$0xff]  ;;  %p3816_p11 = scmp.ne.s32.totalorder %s6971_s3, 0 }
  0xc0   : > { %s5589_s15 = scalar_select %p476_p8, 255, 0  ;;  %975 = vmatpush1.msra.mxu0 %v932_v7  ;;  %4286 = vmatprep.subr.mxu1 %v964_v8  ;;  %v956_v30 = vld [vmem:[#allocation9 + $0x2a0] sm:$0xff]  ;;  %v5621_v32 = vld [vmem:[%s5556_s24 + $0x8] sm:$0xff]  ;;  %v923_v33 = vld [vmem:[#allocation9 + $0x198] sm:$0xff] }
  0xc1   : > { %976 = vmatprep.subr.mxu0 %v5204_v0  ;;  %4287 = vmatpush3.msra.mxu1 %v964_v8  ;;  %v5618_v31 = vld [vmem:[%s5556_s24] sm:$0xff]  ;;  %v5625_v35 = vrot.slane %v5621_v32, 1  ;;  %694 = vst [vmem:[#allocation2 + $0x180] sm:$0xff] %v5621_v32  ;;  %v955_v37 = vld [vmem:[#allocation9 + $0x298] sm:$0xff]  ;;  %v5634_v38 = vld [vmem:[%s5556_s24 + $0x10] sm:$0xff]  ;;  %v540_v40 = vrot.slane %v5621_v32, 7 }
  0xc2   : > { %977 = vmatpush1.msra.mxu0 %v931_v9  ;;  %4288 = vmatprep.subr.mxu1 %v963_v10  ;;  %v5595_v15 = vld [vmem:[%s5564_s26 + $0x10] sm:%s5589_s15]  ;;  %v5599_v16 = vld [vmem:[%s5564_s26 + $0x18] sm:%s5589_s15]  ;;  %v612_v34 = vrot.slane %v5618_v31, 1  ;;  %691 = vst [vmem:[#allocation2 + $0x110] sm:$0xff] %v5618_v31  ;;  %v5630_v36 = vrot.slane %v5618_v31, 7  ;;  %v615_v43 = vrot.slane %v5634_v38, 1  ;;  %vm5871_vm2 = vmneg %vm532_vm1 }
  0xc3   : > { %978 = vmatprep.subr.mxu0 %v5204_v0  ;;  %4289 = vmatpush3.msra.mxu1 %v963_v10  ;;  %v609_v17 = vrot.slane %v5595_v15, 1  ;;  %v5604_v20 = vrot.slane %v5599_v16, 1  ;;  %v5637_v39 = vld [vmem:[%s5556_s24 + $0x18] sm:$0xff]  ;;  %v668_v42 = vsel %vm605_vm0, %v5625_v35, 0.0  ;;  %697 = vst [vmem:[#allocation2 + $0x1c0] sm:$0xff] %v5634_v38  ;;  %v5653_v45 = vld [vmem:[%s5556_s24 + $0x20] sm:$0xff] }
  0xc4   : > { %979 = vmatpush1.msra.mxu0 %v930_v11  ;;  %4290 = vmatprep.subr.mxu1 %v962_v12  ;;  %v5642_v41 = vsel %vm605_vm0, %v612_v34, %v5625_v35  ;;  %v5648_v44 = vrot.slane %v5637_v39, 1  ;;  %700 = vst [vmem:[#allocation2 + $0x60] sm:$0xff] %v5637_v39  ;;  %s5657_s5 = scalar_select %p500_p6, 255, 0  ;;  %v922_v46 = vld [vmem:[#allocation9 + $0x190] sm:$0xff]  ;;  %695 = vst [vmem:[#allocation2 + $0x190] sm:$0xff] %v668_v42  ;;  %v5670_v51 = vsel %vm532_vm1, %v5630_v36, %v540_v40 }
  0xc5   : > { %980 = vmatprep.subr.mxu0 %v5204_v0  ;;  %4291 = vmatpush3.msra.mxu1 %v962_v12  ;;  %v5609_v23 = vsel %vm605_vm0, %v609_v17, %v5604_v20  ;;  %v667_v24 = vsel %vm605_vm0, %v5604_v20, 0.0  ;;  %v954_v47 = vld [vmem:[#allocation9 + $0x290] sm:$0xff]  ;;  %692 = vst [vmem:[#allocation2 + $0x1f8] sm:$0xff] %v5642_v41  ;;  %v5662_v48 = vld [vmem:[%s5556_s24 + $0x28] sm:$0xff]  ;;  %v618_v49 = vrot.slane %v5653_v45, 1  ;;  %703 = vst [vmem:[#allocation2] sm:$0xff] %v5653_v45 }
  0xc6   : > { %981 = vmatpush1.msra.mxu0 %v929_v13  ;;  %4292 = vmatprep.subr.mxu1 %v961_v14  ;;  %686 = vst [vmem:[#allocation2 + $0xd8] sm:$0xff] %v5609_v23  ;;  %689 = vst [vmem:[#allocation2 + $0x158] sm:$0xff] %v667_v24  ;;  %v595_v50 = vsel %vm532_vm1, 0.0, %v5630_v36  ;;  %v5673_v52 = vrot.slane %v5634_v38, 7  ;;  %v921_v53 = vld [vmem:[#allocation9 + $0x188] sm:$0xff]  ;;  %v5677_v54 = vsel %vm605_vm0, %v615_v43, %v5648_v44  ;;  %v669_v55 = vsel %vm605_vm0, %v5648_v44, 0.0 }
  0xc7   : > { %982 = vmatprep.subr.mxu0 %v5204_v0  ;;  %4293 = vmatpush3.msra.mxu1 %v961_v14  ;;  %v5682_v56 = vrot.slane %v5662_v48, 1  ;;  %706 = vst [vmem:[#allocation2 + $0x1a8] sm:$0xff] %v5662_v48  ;;  %v5686_v57 = vld [vmem:[%s5556_s24 + $0x30] sm:$0xff]  ;;  %v5689_v58 = vld [vmem:[%s5556_s24 + $0x38] sm:$0xff]  ;;  %690 = vst [vmem:[#allocation2 + $0x108] sm:$0xff] %v595_v50 }
  0xc8   : > { %983 = vmatpush1.msra.mxu0 %v928_v18  ;;  %4294 = vmatprep.subr.mxu1 %v960_v19  ;;  %693 = vst [vmem:[#allocation2 + $0xb8] sm:$0xff] %v5670_v51  ;;  %v953_v59 = vld [vmem:[#allocation9 + $0x288] sm:$0xff]  ;;  %698 = vst [vmem:[#allocation2 + $0xd0] sm:$0xff] %v5677_v54  ;;  %v621_v60 = vrot.slane %v5686_v57, 1  ;;  %v5696_v61 = vrot.slane %v5689_v58, 1  ;;  %v5701_v62 = vld [vmem:[%s5556_s24 + $0x40] sm:$0xff] }
  0xc9   : > { %984 = vmatprep.subr.mxu0 %v5204_v0  ;;  %4295 = vmatpush3.msra.mxu1 %v960_v19  ;;  %701 = vst [vmem:[#allocation2 + $0x1b8] sm:$0xff] %v669_v55  ;;  %709 = vst [vmem:[#allocation2 + $0x1c8] sm:$0xff] %v5686_v57  ;;  %v5704_v63 = vld [vmem:[%s5556_s24 + $0x48] sm:$0xff]  ;;  %v596_v1 = vsel %vm532_vm1, 0.0, %v5673_v52  ;;  %v5710_v2 = vsel %vm605_vm0, %v618_v49, %v5682_v56  ;;  %v670_v3 = vsel %vm605_vm0, %v5682_v56, 0.0  ;;  %v624_v4 = vrot.slane %v5701_v62, 1 }
  0xca   : > { %985 = vmatpush1.msra.mxu0 %v927_v21  ;;  %4296 = vmatprep.subr.mxu1 %v959_v22  ;;  %712 = vst [vmem:[#allocation2 + $0x78] sm:$0xff] %v5689_v58  ;;  %v5716_v5 = vrot.slane %v5704_v63, 1  ;;  %715 = vst [vmem:[#allocation2 + $0xe0] sm:$0xff] %v5701_v62  ;;  %v5721_v6 = vld [vmem:[%s5556_s24 + $0x50] sm:$0xff]  ;;  %v920_v7 = vld [vmem:[#allocation9 + $0x180] sm:$0xff]  ;;  %v5727_v9 = vsel %vm605_vm0, %v621_v60, %v5696_v61  ;;  %v671_v10 = vsel %vm605_vm0, %v5696_v61, 0.0 }
  0xcb   : > { %986 = vmatprep.subr.mxu0 %v5204_v0  ;;  %4297 = vmatpush3.msra.mxu1 %v959_v22  ;;  %718 = vst [vmem:[#allocation2 + $0x48] sm:$0xff] %v5704_v63  ;;  %696 = vst [vmem:[#allocation2 + $0x140] sm:$0xff] %v596_v1  ;;  %v952_v8 = vld [vmem:[#allocation9 + $0x280] sm:$0xff]  ;;  %v5732_v11 = vld [vmem:[%s5556_s24 + $0x58] sm:$0xff]  ;;  %v627_v12 = vrot.slane %v5721_v6, 1 }
  0xcc   : > { %987 = vmatpush1.msra.mxu0 %v926_v25  ;;  %4298 = vmatprep.subr.mxu1 %v958_v26  ;;  %704 = vst [vmem:[#allocation2 + $0x188] sm:$0xff] %v5710_v2  ;;  %707 = vst [vmem:[#allocation2 + $0x220] sm:$0xff] %v670_v3  ;;  %v5739_v13 = vsel %vm605_vm0, %v624_v4, %v5716_v5  ;;  %v672_v14 = vsel %vm605_vm0, %v5716_v5, 0.0  ;;  %v5744_v17 = vrot.slane %v5732_v11, 1  ;;  %v5748_v18 = vld [vmem:[%s5556_s24 + $0x60] sm:$0xff]  ;;  %v5751_v19 = vld [vmem:[%s5556_s24 + $0x68] sm:$0xff] }
  0xcd   : > { %988 = vmatprep.subr.mxu0 %v5204_v0  ;;  %4299 = vmatpush3.msra.mxu1 %v958_v26  ;;  %721 = vst [vmem:[#allocation2 + $0x160] sm:$0xff] %v5721_v6  ;;  %710 = vst [vmem:[#allocation2 + $0x80] sm:$0xff] %v5727_v9  ;;  %v951_v21 = vld [vmem:[#allocation9 + $0x278] sm:$0xff]  ;;  %v630_v22 = vrot.slane %v5748_v18, 1  ;;  %v5757_v24 = vrot.slane %v5751_v19, 1  ;;  %v5762_v25 = vld [vmem:[%s5556_s24 + $0x70] sm:$0xff] }
  0xce   : > { %989 = vmatpush1.msra.mxu0 %v925_v27  ;;  %4300 = vmatprep.subr.mxu1 %v957_v28  ;;  %713 = vst [vmem:[#allocation2 + $0x170] sm:$0xff] %v671_v10  ;;  %724 = vst [vmem:[#allocation2 + $0x30] sm:$0xff] %v5732_v11  ;;  %v5765_v26 = vld [vmem:[%s5556_s24 + $0x78] sm:$0xff]  ;;  %v5769_v27 = vsel %vm605_vm0, %v627_v12, %v5744_v17  ;;  %v5793_v42 = vld [vmem:[%s5571_s27 + $0x8] sm:%s5657_s5] }
  0xcf   : > { %990 = vmatprep.subr.mxu0 %v5204_v0  ;;  %4301 = vmatpush3.msra.mxu1 %v957_v28  ;;  %716 = vst [vmem:[#allocation2 + $0x1e0] sm:$0xff] %v5739_v13  ;;  %719 = vst [vmem:[#allocation2 + $0x98] sm:$0xff] %v672_v14  ;;  %v673_v28 = vsel %vm605_vm0, %v5744_v17, 0.0  ;;  %v825_v34 = vld [vmem:[#allocation9 + $0x78] sm:$0xff]  ;;  %v674_v40 = vsel %vm605_vm0, %v5757_v24, 0.0  ;;  %v5806_v50 = vrot.slane %v5793_v42, 1 }
  0xd0   : > { %991 = vmatpush1.msra.mxu0 %v924_v29  ;;  %4302 = vmatprep.subr.mxu1 %v956_v30  ;;  %727 = vst [vmem:[#allocation2 + $0x130] sm:$0xff] %v5748_v18  ;;  %730 = vst [vmem:[#allocation2 + $0x1d8] sm:$0xff] %v5751_v19  ;;  %v633_v29 = vrot.slane %v5762_v25, 1  ;;  %v948_v60 = vld [vmem:[#allocation9 + $0x260] sm:$0xff]  ;;  %v947_v3 = vld [vmem:[#allocation9 + $0x258] sm:$0xff]  ;;  %v564_v10 = vrot.slane %v5793_v42, 7 }
  0xd1   : > { %992 = vmatprep.subr.mxu0 %v5204_v0  ;;  %4303 = vmatpush3.msra.mxu1 %v956_v30  ;;  %v5775_v30 = vrot.slane %v5765_v26, 1  ;;  %733 = vst [vmem:[#allocation2 + $0x200] sm:$0xff] %v5762_v25  ;;  %736 = vst [vmem:[#allocation2 + $0x178] sm:$0xff] %v5765_v26  ;;  %v822_v1 = vld [vmem:[#allocation9 + $0x60] sm:$0xff]  ;;  %v821_v4 = vld [vmem:[#allocation9 + $0x58] sm:$0xff] }
  0xd2   : > { %993 = vmatpush1.msra.mxu0 %v923_v33  ;;  %4304 = vmatprep.subr.mxu1 %v955_v37  ;;  %v5781_v33 = vld [vmem:[%s5571_s27] sm:%s5657_s5]  ;;  %722 = vst [vmem:[#allocation2 + $0x50] sm:$0xff] %v5769_v27  ;;  %725 = vst [vmem:[#allocation2 + $0x1b0] sm:$0xff] %v673_v28  ;;  %v820_v12 = vld [vmem:[#allocation9 + $0x50] sm:$0xff] }
  0xd3   : > { %994 = vmatprep.subr.mxu0 %v5204_v0  ;;  %4305 = vmatpush3.msra.mxu1 %v955_v37  ;;  %v5787_v37 = vsel %vm605_vm0, %v630_v22, %v5757_v24  ;;  %v636_v43 = vrot.slane %v5781_v33, 1  ;;  %739 = vst [vmem:[#allocation2 + $0x1d0] sm:$0xff] %v5781_v33  ;;  %731 = vst [vmem:[#allocation2 + $0x228] sm:$0xff] %v674_v40  ;;  %v675_v49 = vsel %vm605_vm0, %v5775_v30, 0.0  ;;  %v819_v28 = vld [vmem:[#allocation9 + $0x48] sm:$0xff]  ;;  %v943_v40 = vld [vmem:[#allocation9 + $0x238] sm:$0xff] }
  0xd4   : > { %995 = vmatpush1.msra.mxu0 %v922_v46  ;;  %4306 = vmatprep.subr.mxu1 %v954_v47  ;;  %v950_v46 = vld [vmem:[#allocation9 + $0x270] sm:$0xff]  ;;  %728 = vst [vmem:[#allocation2 + $0x68] sm:$0xff] %v5787_v37  ;;  %742 = vst [vmem:[#allocation2 + $0x1a0] sm:$0xff] %v5793_v42 }
  0xd5   : > { %996 = vmatprep.subr.mxu0 %v5204_v0  ;;  %4307 = vmatpush3.msra.mxu1 %v954_v47  ;;  %v5801_v47 = vsel %vm605_vm0, %v633_v29, %v5775_v30  ;;  %737 = vst [vmem:[#allocation2 + $0x208] sm:$0xff] %v675_v49  ;;  %v5816_v55 = vsel %vm605_vm0, %v636_v43, %v5806_v50  ;;  %v944_v29 = vld [vmem:[#allocation9 + $0x240] sm:$0xff]  ;;  %v817_v43 = vld [vmem:[#allocation9 + $0x38] sm:$0xff]  ;;  %v816_v49 = vld [vmem:[#allocation9 + $0x30] sm:$0xff] }
  0xd6   : > { %997 = vmatpush1.msra.mxu0 %v921_v53  ;;  %4308 = vmatprep.subr.mxu1 %v953_v59  ;;  %734 = vst [vmem:[#allocation2 + $0x10] sm:$0xff] %v5801_v47  ;;  %v949_v53 = vld [vmem:[#allocation9 + $0x268] sm:$0xff]  ;;  %740 = vst [vmem:[#allocation2 + $0x168] sm:$0xff] %v5816_v55 }
  0xd7   : > { %998 = vmatprep.subr.mxu0 %v5204_v0  ;;  %4309 = vmatpush3.msra.mxu1 %v953_v59  ;;  %v676_v59 = vsel %vm605_vm0, %v5806_v50, 0.0 }
  0xd8   : > { %999 = vmatpush1.msra.mxu0 %v920_v7  ;;  %4310 = vmatprep.subr.mxu1 %v952_v8  ;;  %743 = vst [vmem:[#allocation2 + $0x58] sm:$0xff] %v676_v59  ;;  %v5827_v7 = vrot.slane %v5781_v33, 7  ;;  %v940_v59 = vld [vmem:[#allocation9 + $0x220] sm:$0xff] }
  0xd9   : > { %1000 = vmatprep.subr.mxu0 %v5204_v0  ;;  %4311 = vmatpush3.msra.mxu1 %v952_v8  ;;  %v946_v8 = vld [vmem:[#allocation9 + $0x250] sm:$0xff] }
  0xda   : > { %4312 = vmatprep.mubr.f32.mxu1 %v5609_v23  ;;  %1001 = vmatpush2.msra.mxu0 %v951_v21  ;;  %v824_v23 = vld [vmem:[#allocation9 + $0x70] sm:$0xff]  ;;  %v603_v14 = vsel %vm532_vm1, 0.0, %v5827_v7  ;;  %v945_v21 = vld [vmem:[#allocation9 + $0x248] sm:$0xff]  ;;  %v5837_v22 = vsel %vm532_vm1, %v5827_v7, %v564_v10  ;;  %v5858_v10 = vrot.slane %v5595_v15, 7 }
  0xdb   : > { %4837 = vmatmul.mubr.msk.f32.vlgmr.msra.gmra.mxu1 %vm605_vm0, %v5604_v20  ;;  %1298 = vmatprep.subr.mxu1 %v5204_v0  ;;  %v823_v20 = vld [vmem:[#allocation9 + $0x68] sm:$0xff]  ;;  %738 = vst [vmem:[#allocation2 + $0x210] sm:$0xff] %v603_v14  ;;  %741 = vst [vmem:[#allocation2 + $0xc0] sm:$0xff] %v5837_v22 }
  0xdc   : > { %1002 = vmatprep.subr.mxu0 %v5204_v0  ;;  %1299 = vmatpush1.msra.mxu1 %v825_v34  ;;  %v818_v34 = vld [vmem:[#allocation9 + $0x40] sm:$0xff]  ;;  %v811_v14 = vld [vmem:[#allocation9 + $0x8] sm:$0xff] }
  0xdd   : > { %1003 = vmatpush2.msra.mxu0 %v950_v46  ;;  %1300 = vmatprep.subr.mxu1 %v5204_v0  ;;  %v942_v46 = vld [vmem:[#allocation9 + $0x230] sm:$0xff] }
  0xde   : > { %1004 = vmatprep.subr.mxu0 %v5204_v0  ;;  %1301 = vmatpush1.msra.mxu1 %v824_v23  ;;  %v941_v23 = vld [vmem:[#allocation9 + $0x228] sm:$0xff] }
  0xdf   : > { %1005 = vmatpush2.msra.mxu0 %v949_v53  ;;  %1302 = vmatprep.subr.mxu1 %v5204_v0  ;;  %v815_v53 = vld [vmem:[#allocation9 + $0x28] sm:$0xff] }
  0xe0   : > { %1006 = vmatprep.subr.mxu0 %v5204_v0  ;;  %1303 = vmatpush1.msra.mxu1 %v823_v20  ;;  %v814_v20 = vld [vmem:[#allocation9 + $0x20] sm:$0xff] }
  0xe1   : > { %1007 = vmatpush2.msra.mxu0 %v948_v60  ;;  %1304 = vmatprep.subr.mxu1 %v5204_v0  ;;  %v939_v60 = vld [vmem:[#allocation9 + $0x218] sm:$0xff] }
  0xe2   : > { %1008 = vmatprep.subr.mxu0 %v5204_v0  ;;  %1305 = vmatpush1.msra.mxu1 %v822_v1  ;;  %v813_v1 = vld [vmem:[#allocation9 + $0x18] sm:$0xff] }
  0xe3   : > { %1009 = vmatpush2.msra.mxu0 %v947_v3  ;;  %1306 = vmatprep.subr.mxu1 %v5204_v0  ;;  %v938_v3 = vld [vmem:[#allocation9 + $0x210] sm:$0xff] }
  0xe4   : > { %1010 = vmatprep.subr.mxu0 %v5204_v0  ;;  %1307 = vmatpush1.msra.mxu1 %v821_v4  ;;  %v937_v4 = vld [vmem:[#allocation9 + $0x208] sm:$0xff] }
  0xe5   : > { %1011 = vmatpush2.msra.mxu0 %v946_v8  ;;  %1308 = vmatprep.subr.mxu1 %v5204_v0  ;;  %v812_v8 = vld [vmem:[#allocation9 + $0x10] sm:$0xff] }
  0xe6   : > { %1012 = vmatprep.subr.mxu0 %v5204_v0  ;;  %1309 = vmatpush1.msra.mxu1 %v820_v12  ;;  %v936_v12 = vld [vmem:[#allocation9 + $0x200] sm:$0xff] }
  0xe7   : > { %1013 = vmatpush2.msra.mxu0 %v945_v21  ;;  %1310 = vmatprep.subr.mxu1 %v5204_v0  ;;  %v810_v21 = vld [vmem:[#allocation9] sm:$0xff] }
  0xe8   : > { %1014 = vmatprep.subr.mxu0 %v5204_v0  ;;  %1311 = vmatpush1.msra.mxu1 %v819_v28  ;;  %v841_v28 = vld [vmem:[#allocation9 + $0xf8] sm:$0xff] }
  0xe9   : > { %1015 = vmatpush2.msra.mxu0 %v944_v29  ;;  %1312 = vmatprep.subr.mxu1 %v5204_v0  ;;  %v857_v29 = vld [vmem:[#allocation9 + $0x178] sm:$0xff] }
  0xea   : > { %1016 = vmatprep.subr.mxu0 %v5204_v0  ;;  %1313 = vmatpush1.msra.mxu1 %v818_v34  ;;  %v840_v34 = vld [vmem:[#allocation9 + $0xf0] sm:$0xff] }
  0xeb   : > { %1017 = vmatpush2.msra.mxu0 %v943_v40  ;;  %1314 = vmatprep.subr.mxu1 %v5204_v0  ;;  %v838_v40 = vld [vmem:[#allocation9 + $0xe0] sm:$0xff] }
  0xec   : > { %1018 = vmatprep.subr.mxu0 %v5204_v0  ;;  %1315 = vmatpush1.msra.mxu1 %v817_v43  ;;  %v835_v43 = vld [vmem:[#allocation9 + $0xc8] sm:$0xff] }
  0xed   : > { %1019 = vmatpush2.msra.mxu0 %v942_v46  ;;  %1316 = vmatprep.subr.mxu1 %v5204_v0 }
  0xee   : > { %1020 = vmatprep.subr.mxu0 %v5204_v0  ;;  %1317 = vmatpush1.msra.mxu1 %v816_v49  ;;  %v5922_v49 = vrot.slane %v5653_v45, 7 }
  0xef   : > { %1021 = vmatpush2.msra.mxu0 %v941_v23  ;;  %1318 = vmatprep.subr.mxu1 %v5204_v0  ;;  %v546_v23 = vrot.slane %v5662_v48, 7 }
  0xf0   : > { %1022 = vmatprep.subr.mxu0 %v5204_v0  ;;  %1319 = vmatpush1.msra.mxu1 %v815_v53 }
  0xf1   : > { %1023 = vmatpush2.msra.mxu0 %v940_v59  ;;  %1320 = vmatprep.subr.mxu1 %v5204_v0  ;;  %v5943_v53 = vsel %vm532_vm1, %v5922_v49, %v546_v23  ;;  %v5950_v59 = vld [vmem:[%s5564_s26] sm:%s5589_s15]  ;;  %v851_v23 = vld [vmem:[#allocation9 + $0x148] sm:$0xff] }
  0xf2   : > { %1024 = vmatprep.subr.mxu0 %v5204_v0  ;;  %1321 = vmatpush1.msra.mxu1 %v814_v20  ;;  %v533_v20 = vrot.slane %v5950_v59, 7 }
  0xf3   : > { %1025 = vmatpush2.msra.mxu0 %v939_v60  ;;  %1322 = vmatprep.subr.mxu1 %v5204_v0  ;;  %v827_v60 = vld [vmem:[#allocation9 + $0x88] sm:$0xff] }
  0xf4   : > { %1026 = vmatprep.subr.mxu0 %v5204_v0  ;;  %1323 = vmatpush1.msra.mxu1 %v813_v1  ;;  %v549_v1 = vrot.slane %v5689_v58, 7 }
  0xf5   : > { %1027 = vmatpush2.msra.mxu0 %v938_v3  ;;  %4315 = vmatprep.mubr.f32.mxu1 %v5642_v41  ;;  %v537_v41 = vrot.slane %v5599_v16, 7  ;;  %v5963_v3 = vld [vmem:[%s5564_s26 + $0x8] sm:%s5589_s15] }
  0xf6   : > { %1324 = vmatprep.subr.mxu1 %v5204_v0  ;;  %1028 = vmatprep.subr.mxu0 %v5204_v0 }
  0xf7   : > { %4838 = vmatmul.mubr.msk.f32.gmra.mxu1 %vm605_vm0, %v5625_v35  ;;  %1029 = vmatpush2.msra.mxu0 %v937_v4  ;;  %v856_v4 = vld [vmem:[#allocation9 + $0x170] sm:$0xff] }
  0xf8   : > { %1325 = vmatpush1.msra.mxu1 %v812_v8  ;;  %1030 = vmatprep.subr.mxu0 %v5204_v0  ;;  %v1705_v8 = vld [vmem:[#allocation9 + $0x378] sm:$0xff] }
  0xf9   : > { %1326 = vmatprep.subr.mxu1 %v5204_v0  ;;  %1031 = vmatpush2.msra.mxu0 %v936_v12 }
  0xfa   : > { %1327 = vmatpush1.msra.mxu1 %v811_v14  ;;  %1032 = vmatprep.mubr.f32.mxu0 %v5595_v15  ;;  %v5979_v14 = vrot.slane %v5701_v62, 7 }
  0xfb   : > { %4318 = vmatprep.mubr.f32.mxu1 %v5677_v54  ;;  %1328 = vmatprep.subr.mxu1 %v5204_v0  ;;  %v5883_v54 = vsel %vm532_vm1, %v5858_v10, %v537_v41  ;;  %v1704_v41 = vld [vmem:[#allocation9 + $0x370] sm:$0xff] }
  0xfc   : > { %4840 = vmatmul.mubr.msk.f32.vlgmr.msra.gmra.mxu0 %vm5871_vm2, %v5858_v10  ;;  %4841 = vmatmul.mubr.msk.f32.gmra.mxu1 %vm605_vm0, %v5648_v44  ;;  %v839_v44 = vld [vmem:[#allocation9 + $0xe8] sm:$0xff] }
  0xfd   : > { %1329 = vmatpush1.msra.mxu1 %v810_v21  ;;  %1037 = vmatprep.mubr.f32.mxu0 %v5599_v16 }
  0xfe   : > { %1330 = vmatprep.subr.mxu1 %v5204_v0  ;;  %4321 = vmatprep.mubr.f32.mxu1 %v5710_v2 }
  0xff   : > { %1331 = vmatpush2.msra.mxu1 %v841_v28  ;;  %4342 = vmatprep.subr.mxu0 %v857_v29  ;;  %v1703_v28 = vld [vmem:[#allocation9 + $0x368] sm:$0xff] }
 0x100   : > { %1332 = vmatprep.subr.mxu1 %v5204_v0  ;;  %1038 = vmatmul.mubr.f32.gmra.mxu0 %v5883_v54 }
 0x101   : > { %4842 = vmatmul.mubr.msk.f32.gmra.mxu1 %vm605_vm0, %v5682_v56  ;;  %1042 = vmatprep.mubr.f32.mxu0 %v5618_v31  ;;  %v837_v56 = vld [vmem:[#allocation9 + $0xd8] sm:$0xff] }
 0x102   : > { %1333 = vmatpush2.msra.mxu1 %v840_v34  ;;  %4324 = vmatprep.mubr.f32.mxu1 %v5727_v9  ;;  %v836_v9 = vld [vmem:[#allocation9 + $0xd0] sm:$0xff]  ;;  %v855_v34 = vld [vmem:[#allocation9 + $0x168] sm:$0xff] }
 0x103   : > { %1334 = vmatprep.subr.mxu1 %v5204_v0  ;;  %4343 = vmatpush3.msra.mxu0 %v857_v29  ;;  %v552_v29 = vrot.slane %v5704_v63, 7 }
 0x104   : > { %1335 = vmatpush2.msra.mxu1 %v839_v44  ;;  %4844 = vmatmul.mubr.msk.f32.gmra.mxu0 %vm5871_vm2, %v5630_v36  ;;  %v1702_v44 = vld [vmem:[#allocation9 + $0x360] sm:$0xff] }
 0x105   : > { %1336 = vmatprep.subr.mxu1 %v5204_v0  ;;  %4845 = vmatmul.mubr.msk.f32.gmra.mxu1 %vm605_vm0, %v5696_v61  ;;  %v543_v61 = vrot.slane %v5637_v39, 7 }
 0x106   : > { %1337 = vmatpush2.msra.mxu1 %v838_v40  ;;  %1047 = vmatprep.mubr.f32.mxu0 %v5621_v32  ;;  %v5998_v40 = vsel %vm532_vm1, %v5979_v14, %v552_v29  ;;  %v845_v29 = vld [vmem:[#allocation9 + $0x118] sm:$0xff] }
 0x107   : > { %1338 = vmatprep.subr.mxu1 %v5204_v0  ;;  %4327 = vmatprep.mubr.f32.mxu1 %v5739_v13  ;;  %v834_v13 = vld [vmem:[#allocation9 + $0xc0] sm:$0xff]  ;;  %v5919_v46 = vsel %vm532_vm1, %v5673_v52, %v543_v61  ;;  %v1699_v61 = vld [vmem:[#allocation9 + $0x348] sm:$0xff] }
 0x108   : > { %1339 = vmatpush2.msra.mxu1 %v837_v56  ;;  %1048 = vmatmul.mubr.f32.gmra.mxu0 %v5670_v51  ;;  %v1701_v56 = vld [vmem:[#allocation9 + $0x358] sm:$0xff] }
 0x109   : > { %1340 = vmatprep.subr.mxu1 %v5204_v0  ;;  %4846 = vmatmul.mubr.msk.f32.gmra.mxu1 %vm605_vm0, %v5716_v5  ;;  %v833_v5 = vld [vmem:[#allocation9 + $0xb8] sm:$0xff] }
 0x10a   : > { %1341 = vmatpush2.msra.mxu1 %v836_v9  ;;  %1052 = vmatprep.mubr.f32.mxu0 %v5634_v38  ;;  %v6004_v9 = vrot.slane %v5721_v6, 7 }
 0x10b   : > { %1342 = vmatprep.subr.mxu1 %v5204_v0  ;;  %4330 = vmatprep.mubr.f32.mxu1 %v5769_v27  ;;  %v832_v27 = vld [vmem:[#allocation9 + $0xb0] sm:$0xff] }
 0x10c   : > { %1343 = vmatpush2.msra.mxu1 %v835_v43  ;;  %4848 = vmatmul.mubr.msk.f32.gmra.mxu0 %vm5871_vm2, %v5673_v52  ;;  %v1700_v43 = vld [vmem:[#allocation9 + $0x350] sm:$0xff] }
 0x10d   : > { %1344 = vmatprep.subr.mxu1 %v5204_v0  ;;  %4849 = vmatmul.mubr.msk.f32.gmra.mxu1 %vm605_vm0, %v5744_v17  ;;  %v831_v17 = vld [vmem:[#allocation9 + $0xa8] sm:$0xff] }
 0x10e   : > { %1345 = vmatpush2.msra.mxu1 %v834_v13  ;;  %1057 = vmatprep.mubr.f32.mxu0 %v5637_v39  ;;  %v6027_v13 = vrot.slane %v5748_v18, 7 }
 0x10f   : > { %1346 = vmatprep.subr.mxu1 %v5204_v0  ;;  %4333 = vmatprep.mubr.f32.mxu1 %v5787_v37  ;;  %v830_v37 = vld [vmem:[#allocation9 + $0xa0] sm:$0xff] }
 0x110   : > { %1347 = vmatpush2.msra.mxu1 %v833_v5  ;;  %1058 = vmatmul.mubr.f32.gmra.mxu0 %v5919_v46  ;;  %v1698_v5 = vld [vmem:[#allocation9 + $0x340] sm:$0xff] }
 0x111   : > { %1348 = vmatprep.subr.mxu1 %v5204_v0  ;;  %4850 = vmatmul.mubr.msk.f32.gmra.mxu1 %vm605_vm0, %v5757_v24  ;;  %v829_v24 = vld [vmem:[#allocation9 + $0x98] sm:$0xff] }
 0x112   : > { %1349 = vmatpush2.msra.mxu1 %v832_v27  ;;  %1062 = vmatprep.mubr.f32.mxu0 %v5653_v45  ;;  %v852_v27 = vld [vmem:[#allocation9 + $0x150] sm:$0xff] }
 0x113   : > { %1350 = vmatprep.subr.mxu1 %v5204_v0  ;;  %4336 = vmatprep.mubr.f32.mxu1 %v5801_v47  ;;  %v5946_v47 = vrot.slane %v5686_v57, 7 }
 0x114   : > { %1351 = vmatpush2.msra.mxu1 %v831_v17  ;;  %4852 = vmatmul.mubr.msk.f32.gmra.mxu0 %vm5871_vm2, %v5922_v49 }
 0x115   : > { %1352 = vmatprep.subr.mxu1 %v5204_v0  ;;  %4853 = vmatmul.mubr.msk.f32.gmra.mxu1 %vm605_vm0, %v5775_v30  ;;  %v828_v30 = vld [vmem:[#allocation9 + $0x90] sm:$0xff]  ;;  %v5976_v12 = vsel %vm532_vm1, %v5946_v47, %v549_v1 }
 0x116   : > { %1353 = vmatpush2.msra.mxu1 %v830_v37  ;;  %1067 = vmatprep.mubr.f32.mxu0 %v5662_v48  ;;  %v850_v37 = vld [vmem:[#allocation9 + $0x140] sm:$0xff] }
 0x117   : > { %1354 = vmatprep.subr.mxu1 %v5204_v0  ;;  %4339 = vmatprep.mubr.f32.mxu1 %v5816_v55  ;;  %v826_v55 = vld [vmem:[#allocation9 + $0x80] sm:$0xff] }
 0x118   : > { %1355 = vmatpush2.msra.mxu1 %v829_v24  ;;  %1068 = vmatmul.mubr.f32.gmra.mxu0 %v5943_v53  ;;  %v1694_v24 = vld [vmem:[#allocation9 + $0x320] sm:$0xff] }
 0x119   : > { %1356 = vmatprep.subr.mxu1 %v5204_v0  ;;  %4854 = vmatmul.mubr.msk.f32.gmra.mxu1 %vm605_vm0, %v5806_v50  ;;  %v534_v50 = vrot.slane %v5963_v3, 7 }
 0x11a   : > { %1357 = vmatpush2.msra.mxu1 %v828_v30  ;;  %1072 = vmatprep.mubr.f32.mxu0 %v5686_v57  ;;  %v1693_v30 = vld [vmem:[#allocation9 + $0x318] sm:$0xff] }
 0x11b   : > { %1358 = vmatprep.subr.mxu1 %v5204_v0  ;;  %1362 = vmatprep.mubr.f32.mxu1 %v5950_v59  ;;  %v535_v21 = vsel %vm532_vm1, %v533_v20, %v534_v50 }
 0x11c   : > { %1359 = vmatpush2.msra.mxu1 %v827_v60  ;;  %4856 = vmatmul.mubr.msk.f32.gmra.mxu0 %vm5871_vm2, %v5946_v47  ;;  %v1692_v60 = vld [vmem:[#allocation9 + $0x310] sm:$0xff] }
 0x11d   : > { %1360 = vmatprep.subr.mxu1 %v5204_v0  ;;  %1077 = vmatprep.mubr.f32.mxu0 %v5689_v58 }
 0x11e   : > { %1361 = vmatpush2.msra.mxu1 %v826_v55  ;;  %4344 = vmatprep.subr.mxu0 %v856_v4  ;;  %v6074_v55 = vld [vmem:[%s5571_s27 + $0x10] sm:%s5657_s5] }
 0x11f   : > { %4858 = vmatmul.mubr.msk.f32.vlgmr.msra.gmra.mxu1 %vm5871_vm2, %v533_v20  ;;  %1738 = vmatprep.subr.mxu1 %v5204_v0  ;;  %v561_v20 = vrot.slane %v5765_v26, 7  ;;  %v639_v50 = vrot.slane %v6074_v55, 1 }
 0x120   : > { %1739 = vmatpush1.msra.mxu1 %v1705_v8  ;;  %1078 = vmatmul.mubr.f32.gmra.mxu0 %v5976_v12 }
 0x121   : > { %1367 = vmatprep.mubr.f32.mxu1 %v5963_v3  ;;  %1740 = vmatprep.subr.mxu1 %v5204_v0 }
 0x122   : > { %4345 = vmatpush3.msra.mxu0 %v856_v4  ;;  %1741 = vmatpush1.msra.mxu1 %v1704_v41  ;;  %v6080_v4 = vld [vmem:[%s5571_s27 + $0x18] sm:%s5657_s5]  ;;  %v1691_v41 = vld [vmem:[#allocation9 + $0x308] sm:$0xff] }
 0x123   : > { %1368 = vmatmul.mubr.f32.gmra.mxu1 %v535_v21  ;;  %1742 = vmatprep.subr.mxu1 %v5204_v0  ;;  %v640_v8 = vrot.slane %v6080_v4, 1  ;;  %v846_v21 = vld [vmem:[#allocation9 + $0x120] sm:$0xff] }
 0x124   : > { %1082 = vmatprep.mubr.f32.mxu0 %v5701_v62  ;;  %1743 = vmatpush1.msra.mxu1 %v1703_v28  ;;  %v566_v28 = vrot.slane %v6074_v55, 7 }
 0x125   : > { %4860 = vmatmul.mubr.msk.f32.gmra.mxu0 %vm5871_vm2, %v5979_v14  ;;  %1372 = vmatprep.mubr.f32.mxu1 %v5595_v15  ;;  %v854_v15 = vld [vmem:[#allocation9 + $0x160] sm:$0xff] }
 0x126   : > { %4346 = vmatprep.subr.mxu0 %v855_v34  ;;  %1744 = vmatprep.subr.mxu1 %v5204_v0 }
 0x127   : > { %4862 = vmatmul.mubr.msk.f32.gmra.mxu1 %vm5871_vm2, %v5858_v10  ;;  %4347 = vmatpush3.msra.mxu0 %v855_v34  ;;  %v555_v10 = vrot.slane %v5732_v11, 7  ;;  %v567_v34 = vrot.slane %v6080_v4, 7 }
 0x128   : > { %1745 = vmatpush1.msra.mxu1 %v1702_v44  ;;  %1087 = vmatprep.mubr.f32.mxu0 %v5704_v63  ;;  %v844_v44 = vld [vmem:[#allocation9 + $0x110] sm:$0xff] }
 0x129   : > { %1746 = vmatprep.subr.mxu1 %v5204_v0  ;;  %1088 = vmatmul.mubr.f32.gmra.mxu0 %v5998_v40 }
 0x12a   : > { %1377 = vmatprep.mubr.f32.mxu1 %v5599_v16  ;;  %1747 = vmatpush1.msra.mxu1 %v1701_v56  ;;  %v853_v16 = vld [vmem:[#allocation9 + $0x158] sm:$0xff] }
 0x12b   : > { %1378 = vmatmul.mubr.f32.gmra.mxu1 %v5883_v54  ;;  %4348 = vmatprep.subr.mxu0 %v854_v15  ;;  %v6024_v54 = vsel %vm532_vm1, %v6004_v9, %v555_v10  ;;  %v1721_v56 = vld [vmem:[#allocation9 + $0x3f8] sm:$0xff]  ;;  %v842_v10 = vld [vmem:[#allocation9 + $0x100] sm:$0xff] }
 0x12c   : > { %1748 = vmatprep.subr.mxu1 %v5204_v0  ;;  %1092 = vmatprep.mubr.f32.mxu0 %v5721_v6 }
 0x12d   : > { %4349 = vmatpush3.msra.mxu0 %v854_v15  ;;  %1749 = vmatpush1.msra.mxu1 %v1700_v43  ;;  %v843_v15 = vld [vmem:[#allocation9 + $0x108] sm:$0xff]  ;;  %v1720_v43 = vld [vmem:[#allocation9 + $0x3f0] sm:$0xff] }
 0x12e   : > { %4864 = vmatmul.mubr.msk.f32.gmra.mxu0 %vm5871_vm2, %v6004_v9  ;;  %1382 = vmatprep.mubr.f32.mxu1 %v5618_v31  ;;  %v1697_v31 = vld [vmem:[#allocation9 + $0x338] sm:$0xff] }
 0x12f   : > { %1750 = vmatprep.subr.mxu1 %v5204_v0  ;;  %4866 = vmatmul.mubr.msk.f32.gmra.mxu1 %vm5871_vm2, %v5630_v36  ;;  %v558_v36 = vrot.slane %v5751_v19, 7 }
 0x130   : > { %1751 = vmatpush1.msra.mxu1 %v1699_v61  ;;  %1097 = vmatprep.mubr.f32.mxu0 %v5732_v11  ;;  %v1717_v61 = vld [vmem:[#allocation9 + $0x3d8] sm:$0xff] }
 0x131   : > { %4350 = vmatprep.subr.mxu0 %v853_v16  ;;  %1752 = vmatprep.subr.mxu1 %v5204_v0  ;;  %v6044_v17 = vsel %vm532_vm1, %v6027_v13, %v558_v36  ;;  %v1736_v36 = vld [vmem:[#allocation9 + $0x470] sm:$0xff] }
 0x132   : > { %1098 = vmatmul.mubr.f32.gmra.mxu0 %v6024_v54  ;;  %1387 = vmatprep.mubr.f32.mxu1 %v5621_v32  ;;  %v1696_v32 = vld [vmem:[#allocation9 + $0x330] sm:$0xff] }
 0x133   : > { %4351 = vmatpush3.msra.mxu0 %v853_v16  ;;  %1753 = vmatpush1.msra.mxu1 %v1698_v5  ;;  %v6127_v16 = vld [vmem:[#allocation2 + $0x1f8] sm:$0xff]  ;;  %v1716_v5 = vld [vmem:[#allocation9 + $0x3d0] sm:$0xff] }
 0x134   : > { %1388 = vmatmul.mubr.f32.gmra.mxu1 %v5670_v51  ;;  %1754 = vmatprep.subr.mxu1 %v5204_v0  ;;  %v1695_v51 = vld [vmem:[#allocation9 + $0x328] sm:$0xff] }
 0x135   : > { %1755 = vmatpush1.msra.mxu1 %v1697_v31  ;;  %1102 = vmatprep.mubr.f32.mxu0 %v5748_v18  ;;  %v1737_v31 = vld [vmem:[#allocation9 + $0x478] sm:$0xff] }
 0x136   : > { %4868 = vmatmul.mubr.msk.f32.gmra.mxu0 %vm5871_vm2, %v6027_v13  ;;  %1392 = vmatprep.mubr.f32.mxu1 %v5634_v38  ;;  %v6051_v38 = vrot.slane %v5762_v25, 7 }
 0x137   : > { %4352 = vmatprep.subr.mxu0 %v852_v27  ;;  %1756 = vmatprep.subr.mxu1 %v5204_v0 }
 0x138   : > { %4870 = vmatmul.mubr.msk.f32.gmra.mxu1 %vm5871_vm2, %v5673_v52  ;;  %4353 = vmatpush3.msra.mxu0 %v852_v27  ;;  %v849_v52 = vld [vmem:[#allocation9 + $0x138] sm:$0xff]  ;;  %v6070_v1 = vsel %vm532_vm1, %v6051_v38, %v561_v20  ;;  %v6137_v27 = vld [vmem:[#allocation2 + $0xd0] sm:$0xff]  ;;  %v1711_v20 = vld [vmem:[#allocation9 + $0x3a8] sm:$0xff] }
 0x139   : > { %1757 = vmatpush1.msra.mxu1 %v1696_v32  ;;  %1107 = vmatprep.mubr.f32.mxu0 %v5751_v19  ;;  %v1714_v32 = vld [vmem:[#allocation9 + $0x3c0] sm:$0xff] }
 0x13a   : > { %1758 = vmatprep.subr.mxu1 %v5204_v0  ;;  %1108 = vmatmul.mubr.f32.gmra.mxu0 %v6044_v17 }
 0x13b   : > { %1759 = vmatpush1.msra.mxu1 %v1695_v51  ;;  %1397 = vmatprep.mubr.f32.mxu1 %v5637_v39  ;;  %v848_v39 = vld [vmem:[#allocation9 + $0x130] sm:$0xff]  ;;  %v4822_v51 = vld [vmem:[#allocation2 + $0x1b8] sm:$0xff] }
 0x13c   : > { %4354 = vmatprep.subr.mxu0 %v851_v23  ;;  %1398 = vmatmul.mubr.f32.gmra.mxu1 %v5919_v46 }
 0x13d   : > { %4355 = vmatpush3.msra.mxu0 %v851_v23  ;;  %1760 = vmatprep.subr.mxu1 %v5204_v0  ;;  %v1713_v23 = vld [vmem:[#allocation9 + $0x3b8] sm:$0xff] }
 0x13e   : > { %4356 = vmatprep.subr.mxu0 %v850_v37  ;;  %1761 = vmatpush1.msra.mxu1 %v1694_v24  ;;  %v1733_v24 = vld [vmem:[#allocation9 + $0x458] sm:$0xff] }
 0x13f   : > { %1112 = vmatprep.mubr.f32.mxu0 %v5762_v25  ;;  %4357 = vmatpush3.msra.mxu0 %v850_v37  ;;  %v1734_v37 = vld [vmem:[#allocation9 + $0x460] sm:$0xff] }
 0x140   : > { %1762 = vmatprep.subr.mxu1 %v5204_v0  ;;  %4872 = vmatmul.mubr.msk.f32.gmra.mxu0 %vm5871_vm2, %v6051_v38 }
 0x141   : > { %1402 = vmatprep.mubr.f32.mxu1 %v5653_v45  ;;  %4358 = vmatprep.subr.mxu0 %v849_v52  ;;  %v847_v45 = vld [vmem:[#allocation9 + $0x128] sm:$0xff] }
 0x142   : > { %1763 = vmatpush1.msra.mxu1 %v1693_v30  ;;  %4359 = vmatpush3.msra.mxu0 %v849_v52  ;;  %v1712_v52 = vld [vmem:[#allocation9 + $0x3b0] sm:$0xff] }
 0x143   : > { %4874 = vmatmul.mubr.msk.f32.gmra.mxu1 %vm5871_vm2, %v5922_v49  ;;  %4360 = vmatprep.subr.mxu0 %v848_v39  ;;  %v1732_v30 = vld [vmem:[#allocation9 + $0x450] sm:$0xff] }
 0x144   : > { %1764 = vmatprep.subr.mxu1 %v5204_v0  ;;  %1117 = vmatprep.mubr.f32.mxu0 %v5765_v26  ;;  %v6090_v26 = vsel %vm605_vm0, %v639_v50, %v640_v8  ;;  %v1709_v50 = vld [vmem:[#allocation9 + $0x398] sm:$0xff] }
 0x145   : > { %4361 = vmatpush3.msra.mxu0 %v848_v39  ;;  %1765 = vmatpush1.msra.mxu1 %v1692_v60  ;;  %v4825_v39 = vld [vmem:[#allocation2 + $0x170] sm:$0xff]  ;;  %v1710_v60 = vld [vmem:[#allocation9 + $0x3a0] sm:$0xff] }
 0x146   : > { %1118 = vmatmul.mubr.f32.gmra.mxu0 %v6070_v1  ;;  %1407 = vmatprep.mubr.f32.mxu1 %v5662_v48  ;;  %v1690_v48 = vld [vmem:[#allocation9 + $0x300] sm:$0xff] }
 0x147   : > { %4362 = vmatprep.subr.mxu0 %v847_v45  ;;  %1766 = vmatprep.subr.mxu1 %v5204_v0 }
 0x148   : > { %1408 = vmatmul.mubr.f32.gmra.mxu1 %v5943_v53  ;;  %4363 = vmatpush3.msra.mxu0 %v847_v45  ;;  %v1730_v45 = vld [vmem:[#allocation9 + $0x440] sm:$0xff] }
 0x149   : > { %1767 = vmatpush1.msra.mxu1 %v1691_v41  ;;  %4364 = vmatprep.subr.mxu0 %v846_v21  ;;  %v4826_v41 = vld [vmem:[#allocation2 + $0x1e0] sm:$0xff] }
 0x14a   : > { %1122 = vmatprep.mubr.f32.mxu0 %v5781_v33  ;;  %4365 = vmatpush3.msra.mxu0 %v846_v21  ;;  %v6104_v33 = vsel %vm532_vm1, %v566_v28, %v567_v34  ;;  %v1729_v21 = vld [vmem:[#allocation9 + $0x438] sm:$0xff]  ;;  %v4828_v34 = vld [vmem:[#allocation2 + $0x50] sm:$0xff] }
 0x14b   : > { %1768 = vmatprep.subr.mxu1 %v5204_v0  ;;  %4876 = vmatmul.mubr.msk.f32.gmra.mxu0 %vm5871_vm2, %v5827_v7  ;;  %v606_v7 = vrot.slane %v5950_v59, 1 }
 0x14c   : > { %1412 = vmatprep.mubr.f32.mxu1 %v5686_v57  ;;  %4366 = vmatprep.subr.mxu0 %v845_v29  ;;  %v607_v57 = vrot.slane %v5963_v3, 1  ;;  %v1719_v3 = vld [vmem:[#allocation9 + $0x3e8] sm:$0xff] }
 0x14d   : > { %1769 = vmatpush1.msra.mxu1 %v1690_v48  ;;  %4367 = vmatpush3.msra.mxu0 %v845_v29  ;;  %v1728_v29 = vld [vmem:[#allocation9 + $0x430] sm:$0xff] }
 0x14e   : > { %4878 = vmatmul.mubr.msk.f32.gmra.mxu1 %vm5871_vm2, %v5946_v47  ;;  %1770 = vmatprep.subr.mxu1 %v5204_v0  ;;  %v608_v59 = vsel %vm605_vm0, %v606_v7, %v607_v57  ;;  %v1708_v48 = vld [vmem:[#allocation9 + $0x390] sm:$0xff]  ;;  %v1707_v7 = vld [vmem:[#allocation9 + $0x388] sm:$0xff] }
 0x14f   : > { %4368 = vmatprep.subr.mxu0 %v844_v44  ;;  %1771 = vmatpush2.msra.mxu1 %v1721_v56  ;;  %v4830_v56 = vld [vmem:[#allocation2 + $0x1b0] sm:$0xff] }
 0x150   : > { %1127 = vmatprep.mubr.f32.mxu0 %v5793_v42  ;;  %4369 = vmatpush3.msra.mxu0 %v844_v44  ;;  %v1718_v42 = vld [vmem:[#allocation9 + $0x3e0] sm:$0xff]  ;;  %v1727_v44 = vld [vmem:[#allocation9 + $0x428] sm:$0xff] }
 0x151   : > { %1128 = vmatmul.mubr.f32.gmra.mxu0 %v5837_v22  ;;  %1417 = vmatprep.mubr.f32.mxu1 %v5689_v58  ;;  %v758_v58 = vld [vmem:[#allocation2 + $0xd8] sm:$0xff] }
 0x152   : > { %4370 = vmatprep.subr.mxu0 %v843_v15  ;;  %1772 = vmatprep.subr.mxu1 %v5204_v0  ;;  %v761_v22 = vld [vmem:[#allocation2 + $0x158] sm:$0xff] }
 0x153   : > { %1418 = vmatmul.mubr.f32.gmra.mxu1 %v5976_v12  ;;  %4371 = vmatpush3.msra.mxu0 %v843_v15  ;;  %v1706_v15 = vld [vmem:[#allocation9 + $0x380] sm:$0xff] }
 0x154   : > { %1773 = vmatpush2.msra.mxu1 %v1720_v43  ;;  %4372 = vmatprep.subr.mxu0 %v842_v10  ;;  %v1630_v43 = vld [vmem:[#allocation2 + $0x110] sm:$0xff] }
 0x155   : > { %1774 = vmatprep.subr.mxu1 %v5204_v0  ;;  %4373 = vmatpush3.msra.mxu0 %v842_v10  ;;  %v4831_v10 = vld [vmem:[#allocation2 + $0x68] sm:$0xff] }
 0x156   : > { %4374 = vmatprep.mubr.f32.mxu0 %v608_v59  ;;  %1775 = vmatpush2.msra.mxu1 %v1719_v3  ;;  %v1725_v59 = vld [vmem:[#allocation9 + $0x418] sm:$0xff]  ;;  %v1629_v3 = vld [vmem:[#allocation2 + $0x108] sm:$0xff] }
 0x157   : > { %1422 = vmatprep.mubr.f32.mxu1 %v5701_v62  ;;  %4879 = vmatmul.mubr.msk.f32.vlgmr.msra.gmra.mxu0 %vm605_vm0, %v607_v57  ;;  %v6131_v62 = vld [vmem:[#allocation2 + $0x190] sm:$0xff]  ;;  %v1726_v57 = vld [vmem:[#allocation9 + $0x420] sm:$0xff] }
 0x158   : > { %4881 = vmatmul.mubr.msk.f32.gmra.mxu1 %vm5871_vm2, %v5979_v14  ;;  %1776 = vmatprep.subr.mxu1 %v5204_v0 }
 0x159   : > { %1777 = vmatpush2.msra.mxu1 %v1718_v42  ;;  %4377 = vmatprep.mubr.f32.mxu0 %v758_v58  ;;  %v4832_v42 = vld [vmem:[#allocation2 + $0x228] sm:$0xff]  ;;  %v1724_v58 = vld [vmem:[#allocation9 + $0x410] sm:$0xff] }
 0x15a   : > { %1778 = vmatprep.subr.mxu1 %v5204_v0  ;;  %1427 = vmatprep.mubr.f32.mxu1 %v5704_v63  ;;  %v1715_v63 = vld [vmem:[#allocation9 + $0x3c8] sm:$0xff] }
 0x15b   : > { %4378 = vmatmul.mubr.f32.gmra.mxu0 %v761_v22  ;;  %1779 = vmatpush2.msra.mxu1 %v1717_v61  ;;  %v1633_v22 = vld [vmem:[#allocation2 + $0x180] sm:$0xff]  ;;  %v4833_v61 = vld [vmem:[#allocation2 + $0x10] sm:$0xff] }
 0x15c   : > { %1428 = vmatmul.mubr.f32.gmra.mxu1 %v5998_v40  ;;  %1780 = vmatprep.subr.mxu1 %v5204_v0 }
 0x15d   : > { %4380 = vmatprep.mubr.f32.mxu0 %v6127_v16  ;;  %1781 = vmatpush2.msra.mxu1 %v1716_v5  ;;  %v1723_v5 = vld [vmem:[#allocation9 + $0x408] sm:$0xff] }
 0x15e   : > { %1432 = vmatprep.mubr.f32.mxu1 %v5721_v6  ;;  %1782 = vmatprep.subr.mxu1 %v5204_v0  ;;  %v1735_v6 = vld [vmem:[#allocation9 + $0x468] sm:$0xff] }
 0x15f   : > { %4381 = vmatmul.mubr.f32.gmra.mxu0 %v6131_v62  ;;  %4404 = vmatprep.subr.mxu0 %v1737_v31 }
 0x160   : > { %4883 = vmatmul.mubr.msk.f32.gmra.mxu1 %vm5871_vm2, %v6004_v9  ;;  %4405 = vmatpush3.msra.mxu0 %v1737_v31  ;;  %v1632_v31 = vld [vmem:[#allocation2 + $0xb8] sm:$0xff] }
 0x161   : > { %1783 = vmatpush2.msra.mxu1 %v1715_v63  ;;  %4406 = vmatprep.subr.mxu0 %v1736_v36  ;;  %v4834_v63 = vld [vmem:[#allocation2 + $0x208] sm:$0xff] }
 0x162   : > { %4383 = vmatprep.mubr.f32.mxu0 %v6137_v27  ;;  %1784 = vmatprep.subr.mxu1 %v5204_v0 }
 0x163   : > { %4407 = vmatpush3.msra.mxu0 %v1736_v36  ;;  %1437 = vmatprep.mubr.f32.mxu1 %v5732_v11  ;;  %v4823_v11 = vld [vmem:[#allocation2 + $0x220] sm:$0xff] }
 0x164   : > { %4384 = vmatmul.mubr.f32.gmra.mxu0 %v4822_v51  ;;  %1785 = vmatpush2.msra.mxu1 %v1714_v32  ;;  %v1636_v36 = vld [vmem:[#allocation2 + $0x1c0] sm:$0xff]  ;;  %v1640_v51 = vld [vmem:[#allocation2 + $0x1b8] sm:$0xff] }
 0x165   : > { %4408 = vmatprep.subr.mxu0 %v1735_v6  ;;  %1438 = vmatmul.mubr.f32.gmra.mxu1 %v6024_v54  ;;  %v1635_v32 = vld [vmem:[#allocation2 + $0x140] sm:$0xff] }
 0x166   : > { %1786 = vmatprep.subr.mxu1 %v5204_v0  ;;  %4409 = vmatpush3.msra.mxu0 %v1735_v6  ;;  %v1639_v6 = vld [vmem:[#allocation2 + $0x60] sm:$0xff] }
 0x167   : > { %1787 = vmatpush2.msra.mxu1 %v1713_v23  ;;  %4410 = vmatprep.subr.mxu0 %v1734_v37  ;;  %v1643_v23 = vld [vmem:[#allocation2 + $0x188] sm:$0xff] }
 0x168   : > { %4386 = vmatprep.mubr.f32.mxu0 %v5710_v2  ;;  %4411 = vmatpush3.msra.mxu0 %v1734_v37  ;;  %v4824_v2 = vld [vmem:[#allocation2 + $0x80] sm:$0xff] }
 0x169   : > { %1442 = vmatprep.mubr.f32.mxu1 %v5748_v18  ;;  %4387 = vmatmul.mubr.f32.gmra.mxu0 %v4823_v11  ;;  %v1731_v18 = vld [vmem:[#allocation9 + $0x448] sm:$0xff]  ;;  %v1642_v37 = vld [vmem:[#allocation2] sm:$0xff] }
 0x16a   : > { %1788 = vmatprep.subr.mxu1 %v5204_v0  ;;  %4412 = vmatprep.subr.mxu0 %v1733_v24  ;;  %v1645_v11 = vld [vmem:[#allocation2 + $0x1a8] sm:$0xff] }
 0x16b   : > { %4885 = vmatmul.mubr.msk.f32.gmra.mxu1 %vm5871_vm2, %v6027_v13  ;;  %4413 = vmatpush3.msra.mxu0 %v1733_v24  ;;  %v1646_v24 = vld [vmem:[#allocation2 + $0x220] sm:$0xff] }
 0x16c   : > { %1789 = vmatpush2.msra.mxu1 %v1712_v52  ;;  %4414 = vmatprep.subr.mxu0 %v1732_v30  ;;  %v1648_v52 = vld [vmem:[#allocation2 + $0x1c8] sm:$0xff] }
 0x16d   : > { %1790 = vmatprep.subr.mxu1 %v5204_v0  ;;  %4389 = vmatprep.mubr.f32.mxu0 %v4824_v2  ;;  %v1667_v2 = vld [vmem:[#allocation2 + $0x68] sm:$0xff] }
 0x16e   : > { %1791 = vmatpush2.msra.mxu1 %v1711_v20  ;;  %4415 = vmatpush3.msra.mxu0 %v1732_v30  ;;  %v1661_v30 = vld [vmem:[#allocation2 + $0x50] sm:$0xff]  ;;  %v1651_v20 = vld [vmem:[#allocation2 + $0x78] sm:$0xff] }
 0x16f   : > { %1447 = vmatprep.mubr.f32.mxu1 %v5751_v19  ;;  %4390 = vmatmul.mubr.f32.gmra.mxu0 %v4825_v39  ;;  %v4827_v19 = vld [vmem:[#allocation2 + $0x98] sm:$0xff]  ;;  %v1673_v39 = vld [vmem:[#allocation2 + $0x10] sm:$0xff] }
 0x170   : > { %4416 = vmatprep.subr.mxu0 %v1731_v18  ;;  %1448 = vmatmul.mubr.f32.gmra.mxu1 %v6044_v17 }
 0x171   : > { %1792 = vmatprep.subr.mxu1 %v5204_v0  ;;  %4417 = vmatpush3.msra.mxu0 %v1731_v18  ;;  %v1654_v18 = vld [vmem:[#allocation2 + $0xe0] sm:$0xff] }
 0x172   : > { %1793 = vmatpush2.msra.mxu1 %v1710_v60  ;;  %4418 = vmatprep.subr.mxu0 %v1730_v45  ;;  %v1657_v60 = vld [vmem:[#allocation2 + $0x48] sm:$0xff] }
 0x173   : > { %4392 = vmatprep.mubr.f32.mxu0 %v4826_v41  ;;  %1794 = vmatprep.subr.mxu1 %v5204_v0  ;;  %v1663_v41 = vld [vmem:[#allocation2 + $0x30] sm:$0xff] }
 0x174   : > { %4419 = vmatpush3.msra.mxu0 %v1730_v45  ;;  %1452 = vmatprep.mubr.f32.mxu1 %v5762_v25  ;;  %v4829_v25 = vld [vmem:[#allocation2 + $0x178] sm:$0xff]  ;;  %v1679_v45 = vld [vmem:[#allocation2 + $0x168] sm:$0xff] }
 0x175   : > { %4393 = vmatmul.mubr.f32.gmra.mxu0 %v4827_v19  ;;  %1795 = vmatpush2.msra.mxu1 %v1709_v50  ;;  %v1660_v50 = vld [vmem:[#allocation2 + $0x160] sm:$0xff] }
 0x176   : > { %4420 = vmatprep.subr.mxu0 %v1729_v21  ;;  %4887 = vmatmul.mubr.msk.f32.gmra.mxu1 %vm5871_vm2, %v6051_v38  ;;  %v1672_v19 = vld [vmem:[#allocation2 + $0x200] sm:$0xff] }
 0x177   : > { %4421 = vmatpush3.msra.mxu0 %v1729_v21  ;;  %1796 = vmatprep.subr.mxu1 %v5204_v0 }
 0x178   : > { %4422 = vmatprep.subr.mxu0 %v1728_v29  ;;  %4395 = vmatprep.mubr.f32.mxu0 %v4828_v34 }
 0x179   : > { %1797 = vmatpush2.msra.mxu1 %v1708_v48  ;;  %4423 = vmatpush3.msra.mxu0 %v1728_v29  ;;  %v1675_v29 = vld [vmem:[#allocation2 + $0x178] sm:$0xff] }
 0x17a   : > { %1457 = vmatprep.mubr.f32.mxu1 %v4829_v25  ;;  %4396 = vmatmul.mubr.f32.gmra.mxu0 %v4830_v56  ;;  %v1681_v56 = vld [vmem:[#allocation2 + $0x1a0] sm:$0xff] }
 0x17b   : > { %1798 = vmatprep.subr.mxu1 %v5204_v0  ;;  %4424 = vmatprep.subr.mxu0 %v1727_v44 }
 0x17c   : > { %1458 = vmatmul.mubr.f32.gmra.mxu1 %v6070_v1  ;;  %4425 = vmatpush3.msra.mxu0 %v1727_v44 }
 0x17d   : > { %1799 = vmatpush2.msra.mxu1 %v1707_v7  ;;  %4426 = vmatprep.subr.mxu0 %v1726_v57 }
 0x17e   : > { %4398 = vmatprep.mubr.f32.mxu0 %v4831_v10  ;;  %1800 = vmatprep.subr.mxu1 %v5204_v0  ;;  %v1722_v0 = vld [vmem:[#allocation9 + $0x400] sm:$0xff] }
 0x17f   : > { %4427 = vmatpush3.msra.mxu0 %v1726_v57  ;;  %1801 = vmatpush2.msra.mxu1 %v1706_v15  ;;  %v4835_v15 = vld [vmem:[#allocation2 + $0x210] sm:$0xff] }
 0x180   : > { %4399 = vmatmul.mubr.f32.gmra.mxu0 %v4832_v42  ;;  %1802 = vmatprep.mubr.f32.mxu1 %v1630_v43  ;;  %v4836_v42 = vld [vmem:[#allocation2 + $0xc0] sm:$0xff] }
 0x181   : > { %4428 = vmatprep.subr.mxu0 %v1725_v59  ;;  %1803 = vmatmul.mubr.f32.vlgmr.msra.gmra.mxu1 %v1629_v3 }
 0x182   : > { %4429 = vmatpush3.msra.mxu0 %v1725_v59  ;;  %4401 = vmatprep.mubr.f32.mxu0 %v4833_v61 }
 0x183   : > { %4430 = vmatprep.subr.mxu0 %v1724_v58  ;;  %1807 = vmatprep.mubr.f32.mxu1 %v1633_v22 }
 0x184   : > { %4431 = vmatpush3.msra.mxu0 %v1724_v58 }
 0x185   : > { %4402 = vmatmul.mubr.f32.gmra.mxu0 %v4834_v63  ;;  %4432 = vmatprep.subr.mxu0 %v1723_v5 }
 0x186   : > { %1808 = vmatmul.mubr.f32.gmra.mxu1 %v1632_v31  ;;  %4433 = vmatpush3.msra.mxu0 %v1723_v5 }
 0x187   : > { %4434 = vmatprep.subr.mxu0 %v1722_v0  ;;  %4436 = vmatprep.mubr.f32.mxu0 %v6127_v16  ;;  %v1649_v16 = vld [vmem:[#allocation2 + $0x80] sm:$0xff] }
 0x188   : > { %4435 = vmatpush3.msra.mxu0 %v1722_v0  ;;  %1812 = vmatprep.mubr.f32.mxu1 %v1636_v36 }
 0x189   : > { %4437 = vmatmul.mubr.f32.vlgmr.msra.gmra.mxu0 %v6131_v62  ;;  %v1652_v62 = vld [vmem:[#allocation2 + $0x170] sm:$0xff] }
 0x18a   : > { %1813 = vmatmul.mubr.f32.gmra.mxu1 %v1635_v32  ;;  %4439 = vmatprep.mubr.f32.mxu0 %v6137_v27  ;;  %v1655_v27 = vld [vmem:[#allocation2 + $0x1e0] sm:$0xff] }
 0x18b   : > { %1817 = vmatprep.mubr.f32.mxu1 %v1639_v6 }
 0x18d   : > { %4440 = vmatmul.mubr.f32.gmra.mxu0 %v1640_v51 }
 0x18e   : > { %1818 = vmatmul.mubr.f32.gmra.mxu1 %v5919_v46  ;;  %4442 = vmatprep.mubr.f32.mxu0 %v1643_v23  ;;  %v1658_v46 = vld [vmem:[#allocation2 + $0x98] sm:$0xff] }
 0x18f   : > { %1822 = vmatprep.mubr.f32.mxu1 %v1642_v37 }
 0x191   : > { %4443 = vmatmul.mubr.f32.gmra.mxu0 %v1646_v24 }
 0x192   : > { %4889 = vmatmul.mubr.msk.f32.gmra.mxu1 %vm5871_vm2, %v5922_v49  ;;  %4445 = vmatprep.mubr.f32.mxu0 %v1649_v16  ;;  %v1664_v49 = vld [vmem:[#allocation2 + $0x1b0] sm:$0xff] }
 0x193   : > { %1827 = vmatprep.mubr.f32.mxu1 %v1645_v11 }
 0x195   : > { %4446 = vmatmul.mubr.f32.gmra.mxu0 %v1652_v62 }
 0x196   : > { %1828 = vmatmul.mubr.f32.gmra.mxu1 %v5943_v53  ;;  %4448 = vmatprep.mubr.f32.mxu0 %v1655_v27  ;;  %v1670_v53 = vld [vmem:[#allocation2 + $0x228] sm:$0xff] }
 0x197   : > { %1832 = vmatprep.mubr.f32.mxu1 %v1648_v52 }
 0x199   : > { %4449 = vmatmul.mubr.f32.gmra.mxu0 %v1658_v46 }
 0x19a   : > { %4891 = vmatmul.mubr.msk.f32.gmra.mxu1 %vm5871_vm2, %v5946_v47  ;;  %4451 = vmatprep.mubr.f32.mxu0 %v1661_v30  ;;  %v1676_v47 = vld [vmem:[#allocation2 + $0x208] sm:$0xff] }
 0x19b   : > { %1837 = vmatprep.mubr.f32.mxu1 %v1651_v20  ;;  %v4314_v21 = vpop.f32.mrf.mxu1 }
 0x19d   : > { %4452 = vmatmul.mubr.f32.gmra.mxu0 %v1664_v49 }
 0x19e   : > { %1838 = vmatmul.mubr.f32.gmra.mxu1 %v5976_v12  ;;  %4454 = vmatprep.mubr.f32.mxu0 %v1667_v2  ;;  %v1682_v12 = vld [vmem:[#allocation2 + $0x58] sm:$0xff] }
 0x19f   : > { %1842 = vmatprep.mubr.f32.mxu1 %v1654_v18 }
 0x1a1   : > { %4455 = vmatmul.mubr.f32.gmra.mxu0 %v1670_v53 }
 0x1a2   : > { %4893 = vmatmul.mubr.msk.f32.gmra.mxu1 %vm5871_vm2, %v5979_v14  ;;  %4457 = vmatprep.mubr.f32.mxu0 %v1673_v39  ;;  %v1666_v14 = vld [vmem:[#allocation2 + $0x130] sm:$0xff] }
 0x1a3   : > { %1847 = vmatprep.mubr.f32.mxu1 %v1657_v60 }
 0x1a5   : > { %4458 = vmatmul.mubr.f32.gmra.mxu0 %v1676_v47 }
 0x1a6   : > { %1848 = vmatmul.mubr.f32.gmra.mxu1 %v5998_v40  ;;  %4460 = vmatprep.mubr.f32.mxu0 %v1679_v45  ;;  %v1669_v40 = vld [vmem:[#allocation2 + $0x1d8] sm:$0xff] }
 0x1a7   : > { %1852 = vmatprep.mubr.f32.mxu1 %v1660_v50 }
 0x1a9   : > { %4461 = vmatmul.mubr.f32.gmra.mxu0 %v1682_v12 }
 0x1aa   : > { %4895 = vmatmul.mubr.msk.f32.gmra.mxu1 %vm5871_vm2, %v6004_v9  ;;  %4463 = vmatprep.mubr.f32.mxu0 %v6090_v26  ;;  %v1199_v9 = vpop.f32.mrf.mxu1 }
 0x1ab   : > { %1857 = vmatprep.mubr.f32.mxu1 %v1663_v41 }
 0x1ad   : > { %4896 = vmatmul.mubr.msk.f32.gmra.mxu0 %vm605_vm0, %v640_v8 }
 0x1ae   : > { %1858 = vmatmul.mubr.f32.gmra.mxu1 %v6024_v54  ;;  %v1678_v54 = vld [vmem:[#allocation2 + $0x1d0] sm:$0xff] }
 0x1af   : > { %1862 = vmatprep.mubr.f32.mxu1 %v1666_v14 }
 0x1b2   : > { %4898 = vmatmul.mubr.msk.f32.gmra.mxu1 %vm5871_vm2, %v6027_v13 }
 0x1b3   : > { %1867 = vmatprep.mubr.f32.mxu1 %v1669_v40 }
 0x1b6   : > { %1868 = vmatmul.mubr.f32.gmra.mxu1 %v6044_v17 }
 0x1b7   : > { %1872 = vmatprep.mubr.f32.mxu1 %v1672_v19  ;;  %v4317_v26 = vpop.f32.mrf.mxu1 }
 0x1b9   : > { %v1209_v48 = vpop.f32.mrf.mxu1 }
 0x1ba   : > { %4900 = vmatmul.mubr.msk.f32.gmra.mxu1 %vm5871_vm2, %v6051_v38 }
 0x1bb   : > { %1877 = vmatprep.mubr.f32.mxu1 %v1675_v29 }
 0x1bc   : > { %v1034_v8 = vpop.f32.mrf.mxu0  ;;  %v4320_v34 = vpop.f32.mrf.mxu1 }
 0x1bd   : > { %v1200_v44 = vadd.f32 %v1199_v9, %v1034_v8 }
 0x1be   : > { %1878 = vmatmul.mubr.f32.gmra.mxu1 %v6070_v1  ;;  %v1036_v13 = vpop.f32.mrf.mxu0  ;;  %v1219_v25 = vpop.f32.mrf.mxu1 }
 0x1bf   : > { %1882 = vmatprep.mubr.f32.mxu1 %v1678_v54 }
 0x1c0   : > { %v1039_v17 = vpop.f32.mrf.mxu0 }
 0x1c1   : > { %v1205_v7 = vadd.f32 %v4314_v21, %v1039_v17  ;;  %v4323_v57 = vpop.f32.mrf.mxu1 }
 0x1c2   : > { %1883 = vmatmul.mubr.f32.gmra.mxu1 %v4835_v15  ;;  %v1041_v43 = vpop.f32.mrf.mxu0 }
 0x1c3   : > { %1887 = vmatprep.mubr.f32.mxu1 %v1681_v56  ;;  %v1229_v10 = vpop.f32.mrf.mxu1 }
 0x1c4   : > { %v1044_v38 = vpop.f32.mrf.mxu0 }
 0x1c5   : > { %v1210_v59 = vadd.f32 %v1209_v48, %v1044_v38  ;;  %v4326_v3 = vpop.f32.mrf.mxu1 }
 0x1c6   : > { %1888 = vmatmul.mubr.f32.gmra.mxu1 %v4836_v42  ;;  %v1046_v58 = vpop.f32.mrf.mxu0 }
 0x1c7   : > { %1892 = vmatprep.mubr.f32.mxu1 %v6074_v55  ;;  %v1239_v1 = vpop.f32.mrf.mxu1 }
 0x1c8   : > { %v1049_v22 = vpop.f32.mrf.mxu0 }
 0x1c9   : > { %v1215_v61 = vadd.f32 %v4317_v26, %v1049_v22  ;;  %v4329_v5 = vpop.f32.mrf.mxu1 }
 0x1ca   : > { %4902 = vmatmul.mubr.msk.f32.gmra.mxu1 %vm5871_vm2, %v566_v28  ;;  %v1051_v31 = vpop.f32.mrf.mxu0 }
 0x1cb   : > { %1897 = vmatprep.mubr.f32.mxu1 %v6080_v4  ;;  %v1249_v0 = vpop.f32.mrf.mxu1 }
 0x1cc   : > { %v1054_v63 = vpop.f32.mrf.mxu0 }
 0x1cd   : > { %v1220_v36 = vadd.f32 %v1219_v25, %v1054_v63  ;;  %v4332_v32 = vpop.f32.mrf.mxu1 }
 0x1ce   : > { %1898 = vmatmul.mubr.f32.gmra.mxu1 %v6104_v33  ;;  %v1056_v6 = vpop.f32.mrf.mxu0 }
 0x1cf   : > { %v1259_v51 = vpop.f32.mrf.mxu1 }
 0x1d0   : > { %v1059_v23 = vpop.f32.mrf.mxu0 }
 0x1d1   : > { %v1225_v37 = vadd.f32 %v4320_v34, %v1059_v23  ;;  %v4335_v24 = vpop.f32.mrf.mxu1 }
 0x1d2   : > { %v1061_v16 = vpop.f32.mrf.mxu0 }
 0x1d3   : > { %v1269_v11 = vpop.f32.mrf.mxu1 }
 0x1d4   : > { %v1064_v55 = vpop.f32.mrf.mxu0 }
 0x1d5   : > { %v1230_v62 = vadd.f32 %v1229_v10, %v1064_v55  ;;  %v6205_v35 = vpop.f32.mrf.mxu1 }
 0x1d6   : > { %v1066_v28 = vpop.f32.mrf.mxu0 }
 0x1d7   : > { %v1279_v27 = vpop.f32.mrf.mxu1 }
 0x1d8   : > { %v1069_v4 = vpop.f32.mrf.mxu0 }
 0x1d9   : > { %v1235_v52 = vadd.f32 %v4323_v57, %v1069_v4  ;;  %v6207_v46 = vpop.f32.mrf.mxu1 }
 0x1da   : > { %v1071_v30 = vpop.f32.mrf.mxu0 }
 0x1db   : > { %v1289_v33 = vpop.f32.mrf.mxu1 }
 0x1dc   : > { %v1074_v20 = vpop.f32.mrf.mxu0 }
 0x1dd   : > { %v1240_v49 = vadd.f32 %v1239_v1, %v1074_v20 }
 0x1de   : > { %v1076_v2 = vpop.f32.mrf.mxu0 }
 0x1df   : > { %v1364_v18 = vpop.f32.mrf.mxu1 }
 0x1e0   : > { %v6209_v53 = vadd.f32 %v1364_v18, %v1200_v44  ;;  %v1079_v39 = vpop.f32.mrf.mxu0 }
 0x1e1   : > { %v1366_v60 = vpop.f32.mrf.mxu1  ;;  %v1245_v47 = vadd.f32 %v4326_v3, %v1079_v39 }
 0x1e2   : > { %v1081_v45 = vpop.f32.mrf.mxu0 }
 0x1e3   : > { %v1369_v50 = vpop.f32.mrf.mxu1 }
 0x1e4   : > { %v6211_v12 = vadd.f32 %v1369_v50, %v1205_v7 }
 0x1e5   : > { %v1371_v41 = vpop.f32.mrf.mxu1  ;;  %v1084_v14 = vpop.f32.mrf.mxu0 }
 0x1e6   : > { %v1250_v40 = vadd.f32 %v1249_v0, %v1084_v14 }
 0x1e7   : > { %v1374_v21 = vpop.f32.mrf.mxu1  ;;  %v1086_v19 = vpop.f32.mrf.mxu0 }
 0x1e8   : > { %v6213_v9 = vadd.f32 %v1374_v21, %v1210_v59 }
 0x1e9   : > { %v1376_v26 = vpop.f32.mrf.mxu1  ;;  %v1089_v29 = vpop.f32.mrf.mxu0 }
 0x1ea   : > { %v1255_v48 = vadd.f32 %v4329_v5, %v1089_v29 }
 0x1eb   : > { %v1379_v54 = vpop.f32.mrf.mxu1  ;;  %v1091_v8 = vpop.f32.mrf.mxu0 }
 0x1ec   : > { %v6215_v34 = vadd.f32 %v1379_v54, %v1215_v61 }
 0x1ed   : > { %v1381_v44 = vpop.f32.mrf.mxu1 }
 0x1ee   : > { %v1094_v13 = vpop.f32.mrf.mxu0 }
 0x1ef   : > { %v1260_v25 = vadd.f32 %v1259_v51, %v1094_v13  ;;  %v1384_v56 = vpop.f32.mrf.mxu1 }
 0x1f0   : > { %v6217_v17 = vadd.f32 %v1384_v56, %v1220_v36  ;;  %v1096_v7 = vpop.f32.mrf.mxu0 }
 0x1f1   : > { %v1386_v57 = vpop.f32.mrf.mxu1 }
 0x1f2   : > { %v1099_v15 = vpop.f32.mrf.mxu0 }
 0x1f3   : > { %v1265_v43 = vadd.f32 %v4332_v32, %v1099_v15 }
 0x1f4   : > { %v1389_v10 = vpop.f32.mrf.mxu1  ;;  %v1101_v38 = vpop.f32.mrf.mxu0 }
 0x1f5   : > { %v6219_v59 = vadd.f32 %v1389_v10, %v1225_v37 }
 0x1f6   : > { %v1391_v3 = vpop.f32.mrf.mxu1  ;;  %v1104_v42 = vpop.f32.mrf.mxu0 }
 0x1f7   : > { %v1270_v58 = vadd.f32 %v1269_v11, %v1104_v42 }
 0x1f8   : > { %v1394_v1 = vpop.f32.mrf.mxu1  ;;  %v1106_v22 = vpop.f32.mrf.mxu0 }
 0x1f9   : > { %v6221_v61 = vadd.f32 %v1394_v1, %v1230_v62 }
 0x1fa   : > { %v1396_v5 = vpop.f32.mrf.mxu1  ;;  %v1109_v31 = vpop.f32.mrf.mxu0 }
 0x1fb   : > { %v1275_v0 = vadd.f32 %v4335_v24, %v1109_v31 }
 0x1fc   : > { %v1399_v63 = vpop.f32.mrf.mxu1  ;;  %v1111_v36 = vpop.f32.mrf.mxu0 }
 0x1fd   : > { %v6223_v6 = vadd.f32 %v1399_v63, %v1235_v52 }
 0x1fe   : > { %v1401_v51 = vpop.f32.mrf.mxu1 }
 0x200   : > { %v1114_v32 = vpop.f32.mrf.mxu0 }
 0x201   : > { %v1280_v23 = vadd.f32 %v1279_v27, %v1114_v32 }
 0x202   : > { %v1116_v16 = vpop.f32.mrf.mxu0 }
 0x203   : > { %v1404_v37 = vpop.f32.mrf.mxu1 }
 0x204   : > { %v6225_v55 = vadd.f32 %v1404_v37, %v1240_v49 }
 0x205   : > { %v1406_v28 = vpop.f32.mrf.mxu1 }
 0x206   : > { %v1119_v11 = vpop.f32.mrf.mxu0 }
 0x207   : > { %v1285_v4 = vadd.f32 %v6205_v35, %v1119_v11 }
 0x208   : > { %v1409_v62 = vpop.f32.mrf.mxu1  ;;  %v1121_v30 = vpop.f32.mrf.mxu0 }
 0x209   : > { %v6228_v20 = vadd.f32 %v1409_v62, %v1245_v47 }
 0x20a   : > { %v1411_v24 = vpop.f32.mrf.mxu1 }
 0x20b   : > { %v1124_v2 = vpop.f32.mrf.mxu0 }
 0x20c   : > { %v1290_v18 = vadd.f32 %v1289_v33, %v1124_v2 }
 0x20d   : > { %v1126_v52 = vpop.f32.mrf.mxu0 }
 0x20e   : > { %v1414_v39 = vpop.f32.mrf.mxu1 }
 0x20f   : > { %v6230_v60 = vadd.f32 %v1414_v39, %v1250_v40 }
 0x210   : > { %v1416_v27 = vpop.f32.mrf.mxu1 }
 0x211   : > { %v1129_v45 = vpop.f32.mrf.mxu0 }
 0x212   : > { %v1295_v49 = vadd.f32 %v6207_v46, %v1129_v45 }
 0x213   : > { %v1419_v50 = vpop.f32.mrf.mxu1  ;;  %v1131_v41 = vpop.f32.mrf.mxu0 }
 0x214   : > { %v6233_v14 = vadd.f32 %v1419_v50, %v1255_v48 }
 0x215   : > { %v1421_v35 = vpop.f32.mrf.mxu1 }
 0x217   : > { %v4376_v21 = vpop.f32.mrf.mxu0 }
 0x218   : > { %v1424_v19 = vpop.f32.mrf.mxu1 }
 0x219   : > { %v6235_v47 = vadd.f32 %v1424_v19, %v1260_v25  ;;  %v1529_v26 = vpop.f32.mrf.mxu0 }
 0x21a   : > { %v1426_v29 = vpop.f32.mrf.mxu1 }
 0x21b   : > { %v4379_v33 = vpop.f32.mrf.mxu0 }
 0x21c   : > { %v1429_v54 = vpop.f32.mrf.mxu1 }
 0x21d   : > { %v6237_v8 = vadd.f32 %v1429_v54, %v1265_v43  ;;  %v1539_v40 = vpop.f32.mrf.mxu0  ;;  %v1535_v54 = vadd.f32 %v4376_v21, %v6211_v12  ;;  %v1545_v12 = vadd.f32 %v4379_v33, %v6215_v34 }
 0x21e   : > { %v1431_v44 = vpop.f32.mrf.mxu1 }
 0x21f   : > { %v6239_v13 = vpop.f32.mrf.mxu0 }
 0x220   : > { %v1434_v46 = vpop.f32.mrf.mxu1 }
 0x221   : > { %v6241_v56 = vadd.f32 %v1434_v46, %v1270_v58  ;;  %v6243_v48 = vpop.f32.mrf.mxu0  ;;  %v6279_v46 = vld [vmem:[%s6974_s20] ss:$0 sm:$0xff] }
 0x222   : > { %v1436_v7 = vpop.f32.mrf.mxu1 }
 0x224   : > { %v6245_v57 = vpop.f32.mrf.mxu0 }
 0x225   : > { %v1439_v25 = vpop.f32.mrf.mxu1 }
 0x226   : > { %v1440_v15 = vadd.f32 %v1439_v25, %v1275_v0  ;;  %v6247_v10 = vpop.f32.mrf.mxu0  ;;  %v1530_v25 = vadd.f32 %v1529_v26, %v6209_v53 }
 0x227   : > { %v1441_v38 = vpop.f32.mrf.mxu1 }
 0x229   : > { %v6249_v3 = vpop.f32.mrf.mxu0 }
 0x22b   : > { %v1444_v43 = vpop.f32.mrf.mxu1  ;;  %v6251_v42 = vpop.f32.mrf.mxu0 }
 0x22c   : > { %v6253_v1 = vadd.f32 %v1444_v43, %v1280_v23 }
 0x22d   : > { %v1446_v22 = vpop.f32.mrf.mxu1 }
 0x22f   : > { %v6255_v58 = vpop.f32.mrf.mxu0 }
 0x230   : > { %v1449_v5 = vpop.f32.mrf.mxu1 }
 0x231   : > { %v1450_v31 = vadd.f32 %v1449_v5, %v1285_v4  ;;  %v6257_v63 = vpop.f32.mrf.mxu0 }
 0x232   : > { %v1451_v36 = vpop.f32.mrf.mxu1 }
 0x235   : > { %v6259_v51 = vpop.f32.mrf.mxu0 }
 0x236   : > { %v1454_v0 = vpop.f32.mrf.mxu1 }
 0x237   : > { %v1455_v32 = vadd.f32 %v1454_v0, %v1290_v18  ;;  %v6261_v16 = vpop.f32.mrf.mxu0 }
 0x238   : > { %v1456_v37 = vpop.f32.mrf.mxu1 }
 0x23a   : > { %v4397_v28 = vpop.f32.mrf.mxu0 }
 0x23b   : > { %v6263_v11 = vadd.f32 %v4397_v28, %v1440_v15 }
 0x23c   : > { %v1459_v23 = vpop.f32.mrf.mxu1  ;;  %v6265_v62 = vpop.f32.mrf.mxu0 }
 0x23d   : > { %v1460_v30 = vadd.f32 %v1459_v23, %v1295_v49 }
 0x23e   : > { %v1461_v24 = vpop.f32.mrf.mxu1 }
 0x240   : > { %v4400_v2 = vpop.f32.mrf.mxu0 }
 0x241   : > { %v6267_v4 = vadd.f32 %v4400_v2, %v1450_v31  ;;  %v1804_v52 = vpop.f32.mrf.mxu1 }
 0x242   : > { %v6269_v39 = vpop.f32.mrf.mxu0 }
 0x243   : > { %v1806_v27 = vpop.f32.mrf.mxu1 }
 0x245   : > { %v4403_v45 = vpop.f32.mrf.mxu0 }
 0x246   : > { %v6271_v18 = vadd.f32 %v4403_v45, %v1460_v30  ;;  %v1809_v50 = vpop.f32.mrf.mxu1 }
 0x247   : > { %v1619_v41 = vpop.f32.mrf.mxu0 }
 0x248   : > { %v6273_v35 = vadd.f32 %v1619_v41, %v1455_v32  ;;  %v1811_v19 = vpop.f32.mrf.mxu1  ;;  %v1540_v32 = vadd.f32 %v1539_v40, %v6213_v9 }
 0x249   : > { %v4438_v29 = vpop.f32.mrf.mxu0 }
 0x24a   : > { %v1975_v49 = vadd.f32 %v4438_v29, %v1809_v50  ;;  %v1814_v44 = vpop.f32.mrf.mxu1  ;;  %v1555_v29 = vadd.f32 %v6239_v13, %v6219_v59 }
 0x24b   : > { %v1969_v7 = vpop.f32.mrf.mxu0 }
 0x24c   : > { %v2069_v15 = vadd.f32 %v1975_v49, %v1535_v54  ;;  %v1970_v38 = vadd.f32 %v1969_v7, %v1804_v52  ;;  %v1816_v43 = vpop.f32.mrf.mxu1  ;;  %v1550_v54 = vadd.f32 %v6243_v48, %v6217_v17 }
 0x24d   : > { %v4441_v22 = vpop.f32.mrf.mxu0 }
 0x24e   : > { %v2096_v5 = vadd.f32 %v6279_v46, %v2069_v15  ;;  %v2068_v31 = vadd.f32 %v1970_v38, %v1530_v25  ;;  %v1819_v36 = vpop.f32.mrf.mxu1 }
 0x24f   : > { %v1985_v21 = vadd.f32 %v4441_v22, %v1819_v36  ;;  %v1979_v0 = vpop.f32.mrf.mxu0 }
 0x250   : > { %v2116_v37 = vmax.f32 %v2096_v5, 0.0  ;;  %v2095_v28 = vadd.f32 %v6279_v46, %v2068_v31  ;;  %v1980_v23 = vadd.f32 %v1979_v0, %v1814_v44  ;;  %v1821_v30 = vpop.f32.mrf.mxu1 }
 0x251   : > { %v2071_v53 = vadd.f32 %v1985_v21, %v1545_v12  ;;  %v4444_v26 = vpop.f32.mrf.mxu0 }
 0x252   : > { %v2216_v24 = vrot.slane %v2116_v37, 1  ;;  %2279 = vst [vmem:[#allocation2 + $0xe8] sm:$0xff] %v2116_v37  ;;  %v2115_v2 = vmax.f32 %v2095_v28, 0.0  ;;  %v2070_v52 = vadd.f32 %v1980_v23, %v1540_v32  ;;  %v1824_v27 = vpop.f32.mrf.mxu1  ;;  %v2156_v45 = vrot.slane %v2116_v37, 7 }
 0x253   : > { %v2098_v50 = vadd.f32 %v6279_v46, %v2071_v53  ;;  %v1989_v34 = vpop.f32.mrf.mxu0  ;;  %v1560_v53 = vadd.f32 %v6247_v10, %v6221_v61  ;;  %v1565_v10 = vadd.f32 %v6245_v57, %v6223_v6 }
 0x254   : > { %v2265_v33 = vsel %vm605_vm0, %v2216_v24, 0.0  ;;  %v2155_v41 = vrot.slane %v2115_v2, 7  ;;  %v2215_v9 = vrot.slane %v2115_v2, 1  ;;  %2276 = vst [vmem:[#allocation2 + $0x8] sm:$0xff] %v2115_v2  ;;  %v2097_v40 = vadd.f32 %v6279_v46, %v2070_v52  ;;  %v1826_v19 = vpop.f32.mrf.mxu1 }
 0x255   : > { %2280 = vst [vmem:[#allocation2 + $0xf0] sm:$0xff] %v2265_v33  ;;  %v2118_v49 = vmax.f32 %v2098_v50, 0.0  ;;  %v1990_v44 = vadd.f32 %v1989_v34, %v1824_v27  ;;  %v4447_v7 = vpop.f32.mrf.mxu0 }
 0x256   : > { %v2157_v25 = vsel %vm532_vm1, %v2155_v41, %v2156_v45  ;;  %v2205_v15 = vsel %vm532_vm1, 0.0, %v2155_v41  ;;  %v2217_v38 = vsel %vm605_vm0, %v2215_v9, %v2216_v24  ;;  %v2117_v43 = vmax.f32 %v2097_v40, 0.0  ;;  %v1829_v22 = vpop.f32.mrf.mxu1 }
 0x257   : > { %2275 = vst [vmem:[#allocation2 + $0xc8] sm:$0xff] %v2205_v15  ;;  %2277 = vst [vmem:[#allocation2 + $0x40] sm:$0xff] %v2217_v38  ;;  %v2159_v5 = vrot.slane %v2118_v49, 7  ;;  %v2219_v59 = vrot.slane %v2118_v49, 1  ;;  %v2072_v13 = vadd.f32 %v1990_v44, %v1550_v54  ;;  %v1995_v17 = vadd.f32 %v4444_v26, %v1829_v22  ;;  %v1999_v12 = vpop.f32.mrf.mxu0 }
 0x258   : > { %2278 = vst [vmem:[#allocation2 + $0x28] sm:$0xff] %v2157_v25  ;;  %2285 = vst [vmem:[#allocation2 + $0xb0] sm:$0xff] %v2118_v49  ;;  %v2158_v48 = vrot.slane %v2117_v43, 7  ;;  %v2218_v31 = vrot.slane %v2117_v43, 1  ;;  %v1831_v36 = vpop.f32.mrf.mxu1 }
 0x259   : > { %2282 = vst [vmem:[#allocation2 + $0x120] sm:$0xff] %v2117_v43  ;;  %v2266_v21 = vsel %vm605_vm0, %v2219_v59, 0.0  ;;  %v2099_v0 = vadd.f32 %v6279_v46, %v2072_v13  ;;  %v2073_v32 = vadd.f32 %v1995_v17, %v1555_v29  ;;  %v4450_v27 = vpop.f32.mrf.mxu0 }
 0x25a   : > { %2286 = vst [vmem:[#allocation2 + $0x158] sm:$0xff] %v2266_v21  ;;  %v2160_v37 = vsel %vm532_vm1, %v2158_v48, %v2159_v5  ;;  %v2206_v28 = vsel %vm532_vm1, 0.0, %v2158_v48  ;;  %v2220_v23 = vsel %vm605_vm0, %v2218_v31, %v2219_v59  ;;  %v1834_v30 = vpop.f32.mrf.mxu1  ;;  %v1570_v5 = vadd.f32 %v6251_v42, %v6225_v55 }
 0x25b   : > { %2281 = vst [vmem:[#allocation2 + $0x70] sm:$0xff] %v2206_v28  ;;  %2283 = vst [vmem:[#allocation2 + $0xd8] sm:$0xff] %v2220_v23  ;;  %v2119_v26 = vmax.f32 %v2099_v0, 0.0  ;;  %v2100_v24 = vadd.f32 %v6279_v46, %v2073_v32  ;;  %v2000_v2 = vadd.f32 %v1999_v12, %v1834_v30  ;;  %v2009_v49 = vpop.f32.mrf.mxu0  ;;  %v1575_v12 = vadd.f32 %v6249_v3, %v6228_v20 }
 0x25c   : > { %2284 = vst [vmem:[#allocation2 + $0x18] sm:$0xff] %v2160_v37  ;;  %v1836_v52 = vpop.f32.mrf.mxu1  ;;  %v1580_v20 = vadd.f32 %v6257_v63, %v6230_v60 }
 0x25d   : > { %v2161_v45 = vrot.slane %v2119_v26, 7  ;;  %2288 = vst [vmem:[#allocation2 + $0x110] sm:$0xff] %v2119_v26  ;;  %v2120_v50 = vmax.f32 %v2100_v24, 0.0  ;;  %v2074_v34 = vadd.f32 %v2000_v2, %v1560_v53  ;;  %v2221_v33 = vrot.slane %v2119_v26, 1  ;;  %v4453_v13 = vpop.f32.mrf.mxu0 }
 0x25e   : > { %v1839_v41 = vpop.f32.mrf.mxu1 }
 0x25f   : > { %v2207_v9 = vsel %vm532_vm1, 0.0, %v2161_v45  ;;  %v2162_v40 = vrot.slane %v2120_v50, 7  ;;  %v2222_v19 = vrot.slane %v2120_v50, 1  ;;  %2291 = vst [vmem:[#allocation2 + $0x180] sm:$0xff] %v2120_v50  ;;  %v2101_v61 = vadd.f32 %v6279_v46, %v2074_v34  ;;  %v2019_v28 = vpop.f32.mrf.mxu0 }
 0x260   : > { %2287 = vst [vmem:[#allocation2 + $0x108] sm:$0xff] %v2207_v9  ;;  %v2005_v29 = vadd.f32 %v4447_v7, %v1839_v41  ;;  %v1841_v54 = vpop.f32.mrf.mxu1 }
 0x261   : > { %v2163_v44 = vsel %vm532_vm1, %v2161_v45, %v2162_v40  ;;  %v2223_v25 = vsel %vm605_vm0, %v2221_v33, %v2222_v19  ;;  %v2267_v15 = vsel %vm605_vm0, %v2222_v19, 0.0  ;;  %v2121_v38 = vmax.f32 %v2101_v61, 0.0  ;;  %v4456_v50 = vpop.f32.mrf.mxu0 }
 0x262   : > { %2289 = vst [vmem:[#allocation2 + $0x1f8] sm:$0xff] %v2223_v25  ;;  %2290 = vst [vmem:[#allocation2 + $0xb8] sm:$0xff] %v2163_v44  ;;  %v2075_v43 = vadd.f32 %v2005_v29, %v1565_v10  ;;  %v1844_v22 = vpop.f32.mrf.mxu1  ;;  %v1585_v10 = vadd.f32 %v6255_v58, %v6233_v14 }
 0x263   : > { %2292 = vst [vmem:[#allocation2 + $0x190] sm:$0xff] %v2267_v15  ;;  %v2164_v6 = vrot.slane %v2121_v38, 7  ;;  %2294 = vst [vmem:[#allocation2 + $0x1c0] sm:$0xff] %v2121_v38  ;;  %v2010_v57 = vadd.f32 %v2009_v49, %v1844_v22  ;;  %v2224_v55 = vrot.slane %v2121_v38, 1  ;;  %v2029_v54 = vpop.f32.mrf.mxu0  ;;  %v1590_v22 = vadd.f32 %v6261_v16, %v6235_v47 }
 0x264   : > { %v2102_v7 = vadd.f32 %v6279_v46, %v2075_v43  ;;  %v1846_v59 = vpop.f32.mrf.mxu1 }
 0x265   : > { %v2208_v17 = vsel %vm532_vm1, 0.0, %v2164_v6  ;;  %v2076_v48 = vadd.f32 %v2010_v57, %v1570_v5  ;;  %v4459_v57 = vpop.f32.mrf.mxu0 }
 0x266   : > { %2293 = vst [vmem:[#allocation2 + $0x140] sm:$0xff] %v2208_v17  ;;  %v2122_v31 = vmax.f32 %v2102_v7, 0.0  ;;  %v1849_v36 = vpop.f32.mrf.mxu1 }
 0x267   : > { %v2103_v21 = vadd.f32 %v6279_v46, %v2076_v48  ;;  %v2015_v0 = vadd.f32 %v4450_v27, %v1849_v36  ;;  %v1595_v48 = vadd.f32 %v6259_v51, %v6237_v8  ;;  %v1600_v8 = vadd.f32 %v6265_v62, %v6241_v56 }
 0x268   : > { %v2165_v42 = vrot.slane %v2122_v31, 7  ;;  %v2225_v32 = vrot.slane %v2122_v31, 1  ;;  %2297 = vst [vmem:[#allocation2 + $0x60] sm:$0xff] %v2122_v31  ;;  %v1851_v37 = vpop.f32.mrf.mxu1 }
 0x269   : > { %v2123_v23 = vmax.f32 %v2103_v21, 0.0  ;;  %v2077_v30 = vadd.f32 %v2015_v0, %v1575_v12  ;;  %v2039_v0 = vpop.f32.mrf.mxu0 }
 0x26a   : > { %v2166_v53 = vsel %vm532_vm1, %v2164_v6, %v2165_v42  ;;  %v2226_v26 = vsel %vm605_vm0, %v2224_v55, %v2225_v32  ;;  %v2268_v24 = vsel %vm605_vm0, %v2225_v32, 0.0  ;;  %v1854_v2 = vpop.f32.mrf.mxu1 }
 0x26b   : > { %2295 = vst [vmem:[#allocation2 + $0xd0] sm:$0xff] %v2226_v26  ;;  %2296 = vst [vmem:[#allocation2 + $0x138] sm:$0xff] %v2166_v53  ;;  %v2167_v3 = vrot.slane %v2123_v23, 7  ;;  %v2104_v52 = vadd.f32 %v6279_v46, %v2077_v30  ;;  %v2020_v27 = vadd.f32 %v2019_v28, %v1854_v2  ;;  %v2227_v9 = vrot.slane %v2123_v23, 1 }
 0x26c   : > { %2298 = vst [vmem:[#allocation2 + $0x1b8] sm:$0xff] %v2268_v24  ;;  %2300 = vst [vmem:[#allocation2] sm:$0xff] %v2123_v23  ;;  %v1856_v45 = vpop.f32.mrf.mxu1  ;;  %v4462_v24 = vpop.f32.mrf.mxu0 }
 0x26d   : > { %v2209_v34 = vsel %vm532_vm1, 0.0, %v2167_v3  ;;  %v2124_v33 = vmax.f32 %v2104_v52, 0.0  ;;  %v2078_v41 = vadd.f32 %v2020_v27, %v1580_v20 }
 0x26e   : > { %2299 = vst [vmem:[#allocation2 + $0x88] sm:$0xff] %v2209_v34  ;;  %v1859_v40 = vpop.f32.mrf.mxu1 }
 0x26f   : > { %v2168_v19 = vrot.slane %v2124_v33, 7  ;;  %v2228_v61 = vrot.slane %v2124_v33, 1  ;;  %2303 = vst [vmem:[#allocation2 + $0x1a8] sm:$0xff] %v2124_v33  ;;  %v2105_v60 = vadd.f32 %v6279_v46, %v2078_v41  ;;  %v2025_v63 = vadd.f32 %v4453_v13, %v1859_v40  ;;  %v2049_v33 = vpop.f32.mrf.mxu0 }
 0x270   : > { %v1861_v29 = vpop.f32.mrf.mxu1 }
 0x271   : > { %v2169_v49 = vsel %vm532_vm1, %v2167_v3, %v2168_v19  ;;  %v2229_v44 = vsel %vm605_vm0, %v2227_v9, %v2228_v61  ;;  %v2269_v25 = vsel %vm605_vm0, %v2228_v61, 0.0  ;;  %v2125_v15 = vmax.f32 %v2105_v60, 0.0 }
 0x272   : > { %2301 = vst [vmem:[#allocation2 + $0x188] sm:$0xff] %v2229_v44  ;;  %2302 = vst [vmem:[#allocation2 + $0x38] sm:$0xff] %v2169_v49  ;;  %v2079_v38 = vadd.f32 %v2025_v63, %v1585_v10  ;;  %v1864_v43 = vpop.f32.mrf.mxu1  ;;  %v1610_v63 = vadd.f32 %v6269_v39, %v6253_v1  ;;  %v4465_v44 = vpop.f32.mrf.mxu0 }
 0x273   : > { %2304 = vst [vmem:[#allocation2 + $0x220] sm:$0xff] %v2269_v25  ;;  %v2170_v5 = vrot.slane %v2125_v15, 7  ;;  %2306 = vst [vmem:[#allocation2 + $0x1c8] sm:$0xff] %v2125_v15  ;;  %v2030_v14 = vadd.f32 %v2029_v54, %v1864_v43  ;;  %v2230_v47 = vrot.slane %v2125_v15, 1 }
 0x274   : > { %v2106_v58 = vadd.f32 %v6279_v46, %v2079_v38  ;;  %v1866_v6 = vpop.f32.mrf.mxu1  ;;  %v2059_v39 = vpop.f32.mrf.mxu0 }
 0x275   : > { %v2210_v7 = vsel %vm532_vm1, 0.0, %v2170_v5  ;;  %v2080_v59 = vadd.f32 %v2030_v14, %v1590_v22 }
 0x276   : > { %2305 = vst [vmem:[#allocation2 + $0x1e8] sm:$0xff] %v2210_v7  ;;  %v2126_v13 = vmax.f32 %v2106_v58, 0.0  ;;  %v1869_v17 = vpop.f32.mrf.mxu1 }
 0x277   : > { %v2107_v31 = vadd.f32 %v6279_v46, %v2080_v59  ;;  %v2035_v36 = vadd.f32 %v4456_v50, %v1869_v17 }
 0x278   : > { %v2171_v16 = vrot.slane %v2126_v13, 7  ;;  %v2231_v12 = vrot.slane %v2126_v13, 1  ;;  %2309 = vst [vmem:[#allocation2 + $0x78] sm:$0xff] %v2126_v13  ;;  %v1871_v21 = vpop.f32.mrf.mxu1 }
 0x279   : > { %v2127_v55 = vmax.f32 %v2107_v31, 0.0  ;;  %v2081_v42 = vadd.f32 %v2035_v36, %v1595_v48 }
 0x27a   : > { %v2172_v32 = vsel %vm532_vm1, %v2170_v5, %v2171_v16  ;;  %v2232_v37 = vsel %vm605_vm0, %v2230_v47, %v2231_v12  ;;  %v2270_v28 = vsel %vm605_vm0, %v2231_v12, 0.0  ;;  %v1874_v23 = vpop.f32.mrf.mxu1 }
 0x27b   : > { %2307 = vst [vmem:[#allocation2 + $0x80] sm:$0xff] %v2232_v37  ;;  %2308 = vst [vmem:[#allocation2 + $0xf8] sm:$0xff] %v2172_v32  ;;  %v2173_v51 = vrot.slane %v2127_v55, 7  ;;  %v2108_v30 = vadd.f32 %v6279_v46, %v2081_v42  ;;  %v2040_v53 = vadd.f32 %v2039_v0, %v1874_v23  ;;  %v2233_v52 = vrot.slane %v2127_v55, 1 }
 0x27c   : > { %2310 = vst [vmem:[#allocation2 + $0x170] sm:$0xff] %v2270_v28  ;;  %2312 = vst [vmem:[#allocation2 + $0xe0] sm:$0xff] %v2127_v55  ;;  %v1876_v26 = vpop.f32.mrf.mxu1 }
 0x27d   : > { %v2211_v2 = vsel %vm532_vm1, 0.0, %v2173_v51  ;;  %v2128_v20 = vmax.f32 %v2108_v30, 0.0  ;;  %v2082_v3 = vadd.f32 %v2040_v53, %v1600_v8 }
 0x27e   : > { %2311 = vst [vmem:[#allocation2 + $0x198] sm:$0xff] %v2211_v2  ;;  %v1879_v27 = vpop.f32.mrf.mxu1 }
 0x27f   : > { %v2174_v45 = vrot.slane %v2128_v20, 7  ;;  %v2234_v50 = vrot.slane %v2128_v20, 1  ;;  %2315 = vst [vmem:[#allocation2 + $0x48] sm:$0xff] %v2128_v20  ;;  %v2109_v56 = vadd.f32 %v6279_v46, %v2082_v3  ;;  %v2045_v62 = vadd.f32 %v4459_v57, %v1879_v27 }
 0x280   : > { %v1881_v34 = vpop.f32.mrf.mxu1 }
 0x281   : > { %v2175_v41 = vsel %vm532_vm1, %v2173_v51, %v2174_v45  ;;  %v2235_v9 = vsel %vm605_vm0, %v2233_v52, %v2234_v50  ;;  %v2271_v40 = vsel %vm605_vm0, %v2234_v50, 0.0  ;;  %v2129_v19 = vmax.f32 %v2109_v56, 0.0 }
 0x282   : > { %2313 = vst [vmem:[#allocation2 + $0x1e0] sm:$0xff] %v2235_v9  ;;  %2314 = vst [vmem:[#allocation2 + $0x1f0] sm:$0xff] %v2175_v41  ;;  %v2083_v61 = vadd.f32 %v2045_v62, %v6263_v11  ;;  %v1884_v60 = vpop.f32.mrf.mxu1 }
 0x283   : > { %2316 = vst [vmem:[#allocation2 + $0x98] sm:$0xff] %v2271_v40  ;;  %v2176_v10 = vrot.slane %v2129_v19, 7  ;;  %2318 = vst [vmem:[#allocation2 + $0x160] sm:$0xff] %v2129_v19  ;;  %v2050_v29 = vadd.f32 %v2049_v33, %v1884_v60  ;;  %v2236_v5 = vrot.slane %v2129_v19, 1 }
 0x284   : > { %v2110_v54 = vadd.f32 %v6279_v46, %v2083_v61  ;;  %v1886_v49 = vpop.f32.mrf.mxu1 }
 0x285   : > { %v2212_v25 = vsel %vm532_vm1, 0.0, %v2176_v10  ;;  %v2084_v15 = vadd.f32 %v2050_v29, %v1610_v63 }
 0x286   : > { %2317 = vst [vmem:[#allocation2 + $0x238] sm:$0xff] %v2212_v25  ;;  %v2130_v38 = vmax.f32 %v2110_v54, 0.0  ;;  %v1889_v43 = vpop.f32.mrf.mxu1 }
 0x287   : > { %v2111_v22 = vadd.f32 %v6279_v46, %v2084_v15  ;;  %v2055_v11 = vadd.f32 %v4462_v24, %v1889_v43 }
 0x288   : > { %v2177_v14 = vrot.slane %v2130_v38, 7  ;;  %v2237_v58 = vrot.slane %v2130_v38, 1  ;;  %2321 = vst [vmem:[#allocation2 + $0x30] sm:$0xff] %v2130_v38  ;;  %v1891_v1 = vpop.f32.mrf.mxu1 }
 0x289   : > { %v2131_v6 = vmax.f32 %v2111_v22, 0.0  ;;  %v2085_v57 = vadd.f32 %v2055_v11, %v6267_v4 }
 0x28a   : > { %v2178_v7 = vsel %vm532_vm1, %v2176_v10, %v2177_v14  ;;  %v2238_v59 = vsel %vm605_vm0, %v2236_v5, %v2237_v58  ;;  %v2272_v13 = vsel %vm605_vm0, %v2237_v58, 0.0  ;;  %v1894_v17 = vpop.f32.mrf.mxu1 }
 0x28b   : > { %2319 = vst [vmem:[#allocation2 + $0x50] sm:$0xff] %v2238_v59  ;;  %2320 = vst [vmem:[#allocation2 + $0x100] sm:$0xff] %v2178_v7  ;;  %v2179_v48 = vrot.slane %v2131_v6, 7  ;;  %v2112_v31 = vadd.f32 %v6279_v46, %v2085_v57  ;;  %v2060_v36 = vadd.f32 %v2059_v39, %v1894_v17  ;;  %v2239_v21 = vrot.slane %v2131_v6, 1 }
 0x28c   : > { %2322 = vst [vmem:[#allocation2 + $0x1b0] sm:$0xff] %v2272_v13  ;;  %2324 = vst [vmem:[#allocation2 + $0x130] sm:$0xff] %v2131_v6  ;;  %v1896_v47 = vpop.f32.mrf.mxu1 }
 0x28d   : > { %v2213_v16 = vsel %vm532_vm1, 0.0, %v2179_v48  ;;  %v2132_v12 = vmax.f32 %v2112_v31, 0.0  ;;  %v2086_v4 = vadd.f32 %v2060_v36, %v6273_v35 }
 0x28e   : > { %2323 = vst [vmem:[#allocation2 + $0x90] sm:$0xff] %v2213_v16  ;;  %v1899_v0 = vpop.f32.mrf.mxu1 }
 0x28f   : > { %v2180_v55 = vrot.slane %v2132_v12, 7  ;;  %v2240_v42 = vrot.slane %v2132_v12, 1  ;;  %2327 = vst [vmem:[#allocation2 + $0x1d8] sm:$0xff] %v2132_v12  ;;  %v2113_v32 = vadd.f32 %v6279_v46, %v2086_v4  ;;  %v2065_v37 = vadd.f32 %v4465_v44, %v1899_v0 }
 0x290   : > { %v1901_v28 = vpop.f32.mrf.mxu1 }
 0x291   : > { %v2181_v23 = vsel %vm532_vm1, %v2179_v48, %v2180_v55  ;;  %v2241_v8 = vsel %vm605_vm0, %v2239_v21, %v2240_v42  ;;  %v2273_v51 = vsel %vm605_vm0, %v2240_v42, 0.0  ;;  %v2133_v30 = vmax.f32 %v2113_v32, 0.0 }
 0x292   : > { %2325 = vst [vmem:[#allocation2 + $0x68] sm:$0xff] %v2241_v8  ;;  %2326 = vst [vmem:[#allocation2 + $0x230] sm:$0xff] %v2181_v23  ;;  %v2087_v35 = vadd.f32 %v2065_v37, %v6271_v18 }
 0x293   : > { %2328 = vst [vmem:[#allocation2 + $0x228] sm:$0xff] %v2273_v51  ;;  %v2182_v53 = vrot.slane %v2133_v30, 7  ;;  %2330 = vst [vmem:[#allocation2 + $0x200] sm:$0xff] %v2133_v30  ;;  %v2242_v20 = vrot.slane %v2133_v30, 1 }
 0x294   : > { %v2114_v26 = vadd.f32 %v6279_v46, %v2087_v35 }
 0x295   : > { %v2214_v24 = vsel %vm532_vm1, 0.0, %v2182_v53 }
 0x296   : > { %2329 = vst [vmem:[#allocation2 + $0x218] sm:$0xff] %v2214_v24  ;;  %v2134_v2 = vmax.f32 %v2114_v26, 0.0 }
 0x298   : > { %v2183_v3 = vrot.slane %v2134_v2, 7  ;;  %v2243_v52 = vrot.slane %v2134_v2, 1  ;;  %2333 = vst [vmem:[#allocation2 + $0x178] sm:$0xff] %v2134_v2  ;;  %2338 = sbr.rel (%p3816_p11) target bundleno = 673 (0x2a1), region = 72 }
 0x29a   : > { %v2184_v27 = vsel %vm532_vm1, %v2182_v53, %v2183_v3  ;;  %v2244_v45 = vsel %vm605_vm0, %v2242_v20, %v2243_v52  ;;  %v2274_v50 = vsel %vm605_vm0, %v2243_v52, 0.0 }
 0x29b   : > { %2331 = vst [vmem:[#allocation2 + $0x10] sm:$0xff] %v2244_v45  ;;  %2332 = vst [vmem:[#allocation2 + $0x128] sm:$0xff] %v2184_v27 }
 0x29c   : > { %2334 = vst [vmem:[#allocation2 + $0x208] sm:$0xff] %v2274_v50 }
 0x29d   : > { %v5205_v18 = vmov 0.0  }
 0x29e   : > { %2339 = vst [vmem:[#allocation2 + $0xc8] sm:$0xff] %v5205_v18  ;;  %2340 = vst [vmem:[#allocation2 + $0x8] sm:$0xff] %v5205_v18 }
 0x29f   : > { %2341 = vst [vmem:[#allocation2 + $0x40] sm:$0xff] %v5205_v18  ;;  %2342 = vst [vmem:[#allocation2 + $0x28] sm:$0xff] %v5205_v18 }
 0x2a0   : > { %2343 = vst [vmem:[#allocation2 + $0xe8] sm:$0xff] %v5205_v18  ;;  %2344 = vst [vmem:[#allocation2 + $0xf0] sm:$0xff] %v5205_v18 }
 0x2a1 PF: > { %s6975_s28 = sld [smem:[#allocation22_spill]] }
 0x2a7   : > { %p3817_p1 = scmp.ne.s32.totalorder %s6975_s28, 1 }
 0x2a9   : > { %2348 = sbr.rel (%p3817_p1) target bundleno = 690 (0x2b2), region = 76 }
 0x2ae   : > { %v5206_v46 = vmov 0.0  }
 0x2af   : > { %2350 = vst [vmem:[#allocation2 + $0x218] sm:$0xff] %v5206_v46  ;;  %2351 = vst [vmem:[#allocation2 + $0x200] sm:$0xff] %v5206_v46 }
 0x2b0   : > { %2352 = vst [vmem:[#allocation2 + $0x10] sm:$0xff] %v5206_v46  ;;  %2353 = vst [vmem:[#allocation2 + $0x128] sm:$0xff] %v5206_v46 }
 0x2b1   : > { %2354 = vst [vmem:[#allocation2 + $0x178] sm:$0xff] %v5206_v46  ;;  %2355 = vst [vmem:[#allocation2 + $0x208] sm:$0xff] %v5206_v46 }
 0x2b2 PF: > { %v2532_v56 = vld [vmem:[#allocation11 + $0x278] sm:$0xff]  ;;  %v2531_v34 = vld [vmem:[#allocation11 + $0x270] sm:$0xff]  ;;  %v2530_v9 = vld [vmem:[#allocation11 + $0x268] sm:$0xff]  ;;  %s6976_s2 = sld [smem:[#allocation38_spill]]  ;;  %s3620_s12 = sshll.u32 %s6374_s17, 4  ;;  %s6800_s12 = int_to_ptr.vmem [resolvable:$true] %s3620_s12 }
 0x2b3   : > { %v2516_v62 = vld [vmem:[#allocation11 + $0x1f8] sm:$0xff]  ;;  %3944 = vmatprep.subr.mxu0 %v2532_v56  ;;  %v2515_v41 = vld [vmem:[#allocation11 + $0x1f0] sm:$0xff]  ;;  %v2514_v19 = vld [vmem:[#allocation11 + $0x1e8] sm:$0xff]  ;;  %s6977_s10 = sld [smem:[#allocation22_spill]]  ;;  %s3604_s5 = scalar_lea.sflag [#allocation5], %s5550_s19 }
 0x2b4   : > { %v2548_v33 = vld [vmem:[#allocation11 + $0x2f8] sm:$0xff]  ;;  %3945 = vmatpush3.msra.mxu0 %v2516_v62  ;;  %v2547_v40 = vld [vmem:[#allocation11 + $0x2f0] sm:$0xff]  ;;  %v2546_v61 = vld [vmem:[#allocation11 + $0x2e8] sm:$0xff]  ;;  %s6978_s13 = sld [smem:[#allocation23_spill]]  ;;  %s5039_s11 = scalar_lea.vmem %s6800_s12, 2048 }
 0x2b5   : > { %4466 = vmatprep.subr.mxu1 %v2548_v33  ;;  %3946 = vmatprep.subr.mxu0 %v2531_v34  ;;  %v2529_v60 = vld [vmem:[#allocation11 + $0x260] sm:$0xff]  ;;  %v2528_v29 = vld [vmem:[#allocation11 + $0x258] sm:$0xff]  ;;  %v2527_v44 = vld [vmem:[#allocation11 + $0x250] sm:$0xff]  ;;  %s6979_s3 = sld [smem:[#allocation39_spill]]  ;;  %p5040_p13 = scmp.ne.s32.totalorder %s6800_s12, %s5039_s11 }
 0x2b6   : > { %4467 = vmatpush3.msra.mxu1 %v2548_v33  ;;  %3947 = vmatpush3.msra.mxu0 %v2515_v41  ;;  %v2513_v63 = vld [vmem:[#allocation11 + $0x1e0] sm:$0xff]  ;;  %v2512_v54 = vld [vmem:[#allocation11 + $0x1d8] sm:$0xff]  ;;  %v2511_v25 = vld [vmem:[#allocation11 + $0x1d0] sm:$0xff]  ;;  %p6980_p9 = scmp.ne.s32.totalorder %s6944_s18, 0 }
 0x2b7   : > { %4468 = vmatprep.subr.mxu1 %v2547_v40  ;;  %3948 = vmatprep.subr.mxu0 %v2530_v9  ;;  %v2545_v10 = vld [vmem:[#allocation11 + $0x2e0] sm:$0xff]  ;;  %v2544_v49 = vld [vmem:[#allocation11 + $0x2d8] sm:$0xff]  ;;  %v2543_v15 = vld [vmem:[#allocation11 + $0x2d0] sm:$0xff] }
 0x2b8   : > { %4469 = vmatpush3.msra.mxu1 %v2547_v40  ;;  %3949 = vmatpush3.msra.mxu0 %v2514_v19  ;;  %v2526_v38 = vld [vmem:[#allocation11 + $0x248] sm:$0xff]  ;;  %v2525_v11 = vld [vmem:[#allocation11 + $0x240] sm:$0xff]  ;;  %v2524_v58 = vld [vmem:[#allocation11 + $0x238] sm:$0xff]  ;;  %p5041_p12 = pnand %p5040_p13, %p6980_p9 }
 0x2b9   : > { %4470 = vmatprep.subr.mxu1 %v2546_v61  ;;  %3950 = vmatprep.subr.mxu0 %v2529_v60  ;;  %v2510_v43 = vld [vmem:[#allocation11 + $0x1c8] sm:$0xff]  ;;  %v2509_v5 = vld [vmem:[#allocation11 + $0x1c0] sm:$0xff]  ;;  %v2508_v1 = vld [vmem:[#allocation11 + $0x1b8] sm:$0xff]  ;;  %s3835_s25 = sshll.u32 %s6977_s10, 4 }
 0x2ba   : > { %4471 = vmatpush3.msra.mxu1 %v2546_v61  ;;  %3951 = vmatpush3.msra.mxu0 %v2513_v63  ;;  %v2542_v22 = vld [vmem:[#allocation11 + $0x2c8] sm:$0xff]  ;;  %v2541_v14 = vld [vmem:[#allocation11 + $0x2c0] sm:$0xff]  ;;  %v2540_v39 = vld [vmem:[#allocation11 + $0x2b8] sm:$0xff]  ;;  %s3822_s21 = sshll.u32 %s6978_s13, 5  ;;  %p5042_p5 = pneg %p5041_p12 }
 0x2bb   : > { %4472 = vmatprep.subr.mxu1 %v2545_v10  ;;  %3952 = vmatprep.subr.mxu0 %v2528_v29  ;;  %v2523_v6 = vld [vmem:[#allocation11 + $0x230] sm:$0xff]  ;;  %v2522_v59 = vld [vmem:[#allocation11 + $0x228] sm:$0xff]  ;;  %v2521_v48 = vld [vmem:[#allocation11 + $0x220] sm:$0xff]  ;;  %s3617_s26 = sadd.s32 %s3835_s25, %s3822_s21 }
 0x2bc   : > { %4473 = vmatpush3.msra.mxu1 %v2545_v10  ;;  %3953 = vmatpush3.msra.mxu0 %v2512_v54  ;;  %v2507_v57 = vld [vmem:[#allocation11 + $0x1b0] sm:$0xff]  ;;  %v2506_v13 = vld [vmem:[#allocation11 + $0x1a8] sm:$0xff]  ;;  %v2505_v31 = vld [vmem:[#allocation11 + $0x1a0] sm:$0xff]  ;;  %s3823_s22 = sshll.u32 %s3617_s26, 7 }
 0x2bd   : > { %4474 = vmatprep.subr.mxu1 %v2544_v49  ;;  %3954 = vmatprep.subr.mxu0 %v2527_v44  ;;  %v2539_v7 = vld [vmem:[#allocation11 + $0x2b0] sm:$0xff]  ;;  %v2538_v17 = vld [vmem:[#allocation11 + $0x2a8] sm:$0xff]  ;;  %v2537_v36 = vld [vmem:[#allocation11 + $0x2a0] sm:$0xff]  ;;  %s6798_s15 = scalar_lea.hbm %s6979_s3, %s3823_s22 }
 0x2be   : > { %4475 = vmatpush3.msra.mxu1 %v2544_v49  ;;  %3955 = vmatpush3.msra.mxu0 %v2511_v25  ;;  %v2520_v47 = vld [vmem:[#allocation11 + $0x218] sm:$0xff]  ;;  %v2519_v4 = vld [vmem:[#allocation11 + $0x210] sm:$0xff]  ;;  %v2518_v55 = vld [vmem:[#allocation11 + $0x208] sm:$0xff] }
 0x2bf   : > { %4476 = vmatprep.subr.mxu1 %v2543_v15  ;;  %3956 = vmatprep.subr.mxu0 %v2526_v38  ;;  %v2504_v16 = vld [vmem:[#allocation11 + $0x198] sm:$0xff]  ;;  %v2503_v21 = vld [vmem:[#allocation11 + $0x190] sm:$0xff]  ;;  %v2502_v42 = vld [vmem:[#allocation11 + $0x188] sm:$0xff] }
 0x2c0   : > { %4477 = vmatpush3.msra.mxu1 %v2543_v15  ;;  %3957 = vmatpush3.msra.mxu0 %v2510_v43  ;;  %v2536_v12 = vld [vmem:[#allocation11 + $0x298] sm:$0xff]  ;;  %v2535_v0 = vld [vmem:[#allocation11 + $0x290] sm:$0xff]  ;;  %v2534_v32 = vld [vmem:[#allocation11 + $0x288] sm:$0xff] }
 0x2c1   : > { %4478 = vmatprep.subr.mxu1 %v2542_v22  ;;  %3958 = vmatprep.subr.mxu0 %v2525_v11  ;;  %v2517_v37 = vld [vmem:[#allocation11 + $0x200] sm:$0xff]  ;;  %v6380_v8 = vld [vmem:[#allocation2 + $0x70] sm:$0xff]  ;;  %v2435_v30 = vld [vmem:[#allocation11 + $0xf8] sm:$0xff] }
 0x2c2   : > { %4479 = vmatpush3.msra.mxu1 %v2542_v22  ;;  %3959 = vmatpush3.msra.mxu0 %v2509_v5  ;;  %v6378_v28 = vld [vmem:[#allocation2 + $0x120] sm:$0xff]  ;;  %v6383_v35 = vld [vmem:[#allocation2 + $0xd8] sm:$0xff]  ;;  %v6388_v24 = vld [vmem:[#allocation2 + $0xb0] sm:$0xff] }
 0x2c3   : > { %4480 = vmatprep.subr.mxu1 %v2541_v14  ;;  %3960 = vmatprep.subr.mxu0 %v2524_v58  ;;  %v2501_v23 = vld [vmem:[#allocation11 + $0x180] sm:$0xff]  ;;  %v2419_v53 = vld [vmem:[#allocation11 + $0x78] sm:$0xff]  ;;  %v2434_v20 = vld [vmem:[#allocation11 + $0xf0] sm:$0xff] }
 0x2c4   : > { %4481 = vmatpush3.msra.mxu1 %v2541_v14  ;;  %3961 = vmatpush3.msra.mxu0 %v2508_v1  ;;  %v2533_v51 = vld [vmem:[#allocation11 + $0x280] sm:$0xff]  ;;  %v6386_v26 = vld [vmem:[#allocation2 + $0x158] sm:$0xff]  ;;  %v2418_v3 = vld [vmem:[#allocation11 + $0x70] sm:$0xff] }
 0x2c5   : > { %4482 = vmatprep.subr.mxu1 %v2540_v39  ;;  %3962 = vmatprep.subr.mxu0 %v2523_v6  ;;  %v6390_v2 = vld [vmem:[#allocation2 + $0x18] sm:$0xff]  ;;  %v6393_v52 = vld [vmem:[#allocation2 + $0x110] sm:$0xff]  ;;  %v2433_v27 = vld [vmem:[#allocation11 + $0xe8] sm:$0xff] }
 0x2c6   : > { %4483 = vmatpush3.msra.mxu1 %v2540_v39  ;;  %3963 = vmatpush3.msra.mxu0 %v2507_v57  ;;  %v6397_v45 = vld [vmem:[#allocation2 + $0x1f8] sm:$0xff]  ;;  %v2417_v50 = vld [vmem:[#allocation11 + $0x68] sm:$0xff]  ;;  %v6400_v18 = vld [vmem:[#allocation2 + $0x190] sm:$0xff] }
 0x2c7   : > { %4484 = vmatprep.subr.mxu1 %v2539_v7  ;;  %3964 = vmatprep.subr.mxu0 %v2522_v59  ;;  %v6403_v46 = vld [vmem:[#allocation2 + $0x108] sm:$0xff]  ;;  %v2432_v56 = vld [vmem:[#allocation11 + $0xe0] sm:$0xff]  ;;  %v2431_v33 = vld [vmem:[#allocation11 + $0xd8] sm:$0xff] }
 0x2c8   : > { %4485 = vmatpush3.msra.mxu1 %v2539_v7  ;;  %3965 = vmatpush3.msra.mxu0 %v2506_v13  ;;  %v6406_v62 = vld [vmem:[#allocation2 + $0x180] sm:$0xff]  ;;  %v6409_v41 = vld [vmem:[#allocation2 + $0xd0] sm:$0xff]  ;;  %v2415_v9 = vld [vmem:[#allocation11 + $0x58] sm:$0xff] }
 0x2c9   : > { %4486 = vmatprep.subr.mxu1 %v2538_v17  ;;  %3966 = vmatprep.subr.mxu0 %v2521_v48  ;;  %v2416_v34 = vld [vmem:[#allocation11 + $0x60] sm:$0xff]  ;;  %v6412_v40 = vld [vmem:[#allocation2 + $0x1b8] sm:$0xff]  ;;  %v2430_v61 = vld [vmem:[#allocation11 + $0xd0] sm:$0xff] }
 0x2ca   : > { %4487 = vmatpush3.msra.mxu1 %v2538_v17  ;;  %3967 = vmatpush3.msra.mxu0 %v2505_v31  ;;  %v6415_v19 = vld [vmem:[#allocation2 + $0xb8] sm:$0xff]  ;;  %v6417_v60 = vld [vmem:[#allocation2 + $0x1c0] sm:$0xff]  ;;  %v2414_v63 = vld [vmem:[#allocation11 + $0x50] sm:$0xff] }
 0x2cb   : > { %4488 = vmatprep.subr.mxu1 %v2537_v36  ;;  %3968 = vmatprep.subr.mxu0 %v2520_v47  ;;  %v2429_v10 = vld [vmem:[#allocation11 + $0xc8] sm:$0xff]  ;;  %v6424_v49 = vld [vmem:[#allocation2 + $0x220] sm:$0xff]  ;;  %v2451_v38 = vld [vmem:[#allocation11 + $0x178] sm:$0xff] }
 0x2cc   : > { %4489 = vmatpush3.msra.mxu1 %v2537_v36  ;;  %3969 = vmatpush3.msra.mxu0 %v2504_v16  ;;  %v6421_v29 = vld [vmem:[#allocation2 + $0x188] sm:$0xff]  ;;  %v6427_v44 = vld [vmem:[#allocation2 + $0x140] sm:$0xff]  ;;  %v2450_v22 = vld [vmem:[#allocation11 + $0x170] sm:$0xff] }
 0x2cd   : > { %4490 = vmatprep.subr.mxu1 %v2536_v12  ;;  %3970 = vmatprep.subr.mxu0 %v2519_v4  ;;  %v2413_v54 = vld [vmem:[#allocation11 + $0x48] sm:$0xff]  ;;  %v2428_v25 = vld [vmem:[#allocation11 + $0xc0] sm:$0xff]  ;;  %v2427_v11 = vld [vmem:[#allocation11 + $0xb8] sm:$0xff] }
 0x2ce   : > { %4491 = vmatpush3.msra.mxu1 %v2536_v12  ;;  %3971 = vmatpush3.msra.mxu0 %v2503_v21  ;;  %v6429_v15 = vld [vmem:[#allocation2 + $0x60] sm:$0xff]  ;;  %v6435_v5 = vld [vmem:[#allocation2 + $0x138] sm:$0xff]  ;;  %v2449_v58 = vld [vmem:[#allocation11 + $0x168] sm:$0xff] }
 0x2cf   : > { %4492 = vmatprep.subr.mxu1 %v2535_v0  ;;  %3972 = vmatprep.subr.mxu0 %v2518_v55  ;;  %v2412_v43 = vld [vmem:[#allocation11 + $0x40] sm:$0xff]  ;;  %v2411_v39 = vld [vmem:[#allocation11 + $0x38] sm:$0xff]  ;;  %v2426_v6 = vld [vmem:[#allocation11 + $0xb0] sm:$0xff] }
 0x2d0   : > { %4493 = vmatpush3.msra.mxu1 %v2535_v0  ;;  %3973 = vmatpush3.msra.mxu0 %v2502_v42  ;;  %v6437_v14 = vld [vmem:[#allocation2] sm:$0xff]  ;;  %v6443_v57 = vld [vmem:[#allocation2 + $0x88] sm:$0xff]  ;;  %v6445_v7 = vld [vmem:[#allocation2 + $0x170] sm:$0xff] }
 0x2d1   : > { %4494 = vmatprep.subr.mxu1 %v2534_v32  ;;  %3974 = vmatprep.subr.mxu0 %v2517_v37  ;;  %v6439_v1 = vld [vmem:[#allocation2 + $0x80] sm:$0xff]  ;;  %v6447_v59 = vld [vmem:[#allocation2 + $0x1a8] sm:$0xff]  ;;  %v2410_v17 = vld [vmem:[#allocation11 + $0x30] sm:$0xff] }
 0x2d2   : > { %2613 = vmatprep.mubr.f32.mxu0 %v6378_v28  ;;  %3975 = vmatpush3.msra.mxu0 %v2501_v23  ;;  %v2448_v13 = vld [vmem:[#allocation11 + $0x160] sm:$0xff]  ;;  %v2447_v48 = vld [vmem:[#allocation11 + $0x158] sm:$0xff]  ;;  %v2425_v31 = vld [vmem:[#allocation11 + $0xa8] sm:$0xff] }
 0x2d3   : > { %4495 = vmatpush3.msra.mxu1 %v2534_v32  ;;  %2614 = vmatmul.mubr.f32.vlgmr.msra.gmra.mxu0 %v6380_v8  ;;  %v6453_v36 = vld [vmem:[#allocation2 + $0x38] sm:$0xff]  ;;  %v6455_v47 = vld [vmem:[#allocation2 + $0x1c8] sm:$0xff]  ;;  %v2446_v16 = vld [vmem:[#allocation11 + $0x150] sm:$0xff] }
 0x2d4   : > { %4496 = vmatprep.subr.mxu1 %v2533_v51  ;;  %4056 = vmatprep.subr.mxu0 %v2435_v30  ;;  %v6457_v12 = vld [vmem:[#allocation2 + $0x1e0] sm:$0xff]  ;;  %v2445_v4 = vld [vmem:[#allocation11 + $0x148] sm:$0xff]  ;;  %v6463_v55 = vld [vmem:[#allocation2 + $0x78] sm:$0xff] }
 0x2d5   : > { %4497 = vmatpush3.msra.mxu1 %v2533_v51  ;;  %4498 = vmatprep.mubr.f32.mxu1 %v6383_v35  ;;  %v2409_v21 = vld [vmem:[#allocation11 + $0x28] sm:$0xff]  ;;  %v6466_v42 = vld [vmem:[#allocation2 + $0x98] sm:$0xff]  ;;  %v2444_v32 = vld [vmem:[#allocation11 + $0x140] sm:$0xff] }
 0x2d6   : > { %4057 = vmatpush3.msra.mxu0 %v2419_v53  ;;  %4499 = vmatmul.mubr.f32.vlgmr.msra.gmra.mxu1 %v6386_v26  ;;  %v6461_v0 = vld [vmem:[#allocation2 + $0x1e8] sm:$0xff]  ;;  %v2424_v37 = vld [vmem:[#allocation11 + $0xa0] sm:$0xff]  ;;  %v6470_v51 = vld [vmem:[#allocation2 + $0xf8] sm:$0xff] }
 0x2d7   : > { %2618 = vmatprep.mubr.f32.mxu0 %v6388_v24  ;;  %4058 = vmatprep.subr.mxu0 %v2434_v20  ;;  %v2408_v23 = vld [vmem:[#allocation11 + $0x20] sm:$0xff]  ;;  %v2443_v30 = vld [vmem:[#allocation11 + $0x138] sm:$0xff]  ;;  %v2442_v20 = vld [vmem:[#allocation11 + $0x130] sm:$0xff] }
 0x2d8   : > { %2619 = vmatmul.mubr.f32.gmra.mxu0 %v6390_v2  ;;  %4501 = vmatprep.mubr.f32.mxu1 %v6397_v45  ;;  %v6473_v53 = vld [vmem:[#allocation2 + $0xe0] sm:$0xff] }
 0x2d9   : > { %4059 = vmatpush3.msra.mxu0 %v2418_v3  ;;  %2623 = vmatprep.mubr.f32.mxu0 %v6393_v52  ;;  %v2423_v3 = vld [vmem:[#allocation11 + $0x98] sm:$0xff] }
 0x2da   : > { %4060 = vmatprep.subr.mxu0 %v2433_v27  ;;  %4502 = vmatmul.mubr.f32.gmra.mxu1 %v6400_v18  ;;  %v6476_v27 = vld [vmem:[#allocation2 + $0x50] sm:$0xff] }
 0x2db   : > { %4061 = vmatpush3.msra.mxu0 %v2417_v50  ;;  %4504 = vmatprep.mubr.f32.mxu1 %v6409_v41  ;;  %v6479_v50 = vld [vmem:[#allocation2 + $0x198] sm:$0xff] }
 0x2dc   : > { %2624 = vmatmul.mubr.f32.gmra.mxu0 %v6403_v46  ;;  %4062 = vmatprep.subr.mxu0 %v2432_v56  ;;  %v2441_v56 = vld [vmem:[#allocation11 + $0x128] sm:$0xff] }
 0x2dd   : > { %2628 = vmatprep.mubr.f32.mxu0 %v6406_v62  ;;  %4063 = vmatpush3.msra.mxu0 %v2416_v34  ;;  %v6481_v34 = vld [vmem:[#allocation2 + $0x48] sm:$0xff] }
 0x2de   : > { %4064 = vmatprep.subr.mxu0 %v2431_v33  ;;  %4505 = vmatmul.mubr.f32.gmra.mxu1 %v6412_v40  ;;  %v2407_v33 = vld [vmem:[#allocation11 + $0x18] sm:$0xff] }
 0x2df   : > { %4065 = vmatpush3.msra.mxu0 %v2415_v9  ;;  %4507 = vmatprep.mubr.f32.mxu1 %v6421_v29  ;;  %v2422_v9 = vld [vmem:[#allocation11 + $0x90] sm:$0xff] }
 0x2e0   : > { %2629 = vmatmul.mubr.f32.gmra.mxu0 %v6415_v19  ;;  %4066 = vmatprep.subr.mxu0 %v2430_v61  ;;  %v6485_v61 = vld [vmem:[#allocation2 + $0x1b0] sm:$0xff] }
 0x2e1   : > { %2633 = vmatprep.mubr.f32.mxu0 %v6417_v60  ;;  %4067 = vmatpush3.msra.mxu0 %v2414_v63  ;;  %v2440_v63 = vld [vmem:[#allocation11 + $0x120] sm:$0xff] }
 0x2e2   : > { %4068 = vmatprep.subr.mxu0 %v2429_v10  ;;  %4508 = vmatmul.mubr.f32.gmra.mxu1 %v6424_v49  ;;  %v6488_v10 = vld [vmem:[#allocation2 + $0x1f0] sm:$0xff] }
 0x2e3   : > { %4069 = vmatpush3.msra.mxu0 %v2413_v54  ;;  %4522 = vmatprep.subr.mxu1 %v2451_v38  ;;  %v6490_v54 = vld [vmem:[#allocation2 + $0x160] sm:$0xff] }
 0x2e4   : > { %2634 = vmatmul.mubr.f32.gmra.mxu0 %v6427_v44  ;;  %4070 = vmatprep.subr.mxu0 %v2428_v25  ;;  %v2439_v25 = vld [vmem:[#allocation11 + $0x118] sm:$0xff] }
 0x2e5   : > { %2638 = vmatprep.mubr.f32.mxu0 %v6429_v15  ;;  %4071 = vmatpush3.msra.mxu0 %v2412_v43  ;;  %v2438_v43 = vld [vmem:[#allocation11 + $0x110] sm:$0xff] }
 0x2e6   : > { %4523 = vmatpush3.msra.mxu1 %v2451_v38  ;;  %4072 = vmatprep.subr.mxu0 %v2427_v11  ;;  %v2406_v38 = vld [vmem:[#allocation11 + $0x10] sm:$0xff]  ;;  %v6497_v11 = vld [vmem:[#allocation2 + $0x238] sm:$0xff] }
 0x2e7   : > { %4524 = vmatprep.subr.mxu1 %v2450_v22  ;;  %4510 = vmatprep.mubr.f32.mxu1 %v6439_v1 }
 0x2e8   : > { %2639 = vmatmul.mubr.f32.gmra.mxu0 %v6435_v5  ;;  %4525 = vmatpush3.msra.mxu1 %v2450_v22  ;;  %v6494_v22 = vld [vmem:[#allocation2 + $0x68] sm:$0xff] }
 0x2e9   : > { %2643 = vmatprep.mubr.f32.mxu0 %v6437_v14  ;;  %4526 = vmatprep.subr.mxu1 %v2449_v58 }
 0x2ea   : > { %4073 = vmatpush3.msra.mxu0 %v2411_v39  ;;  %4527 = vmatpush3.msra.mxu1 %v2449_v58  ;;  %v6499_v58 = vld [vmem:[#allocation2 + $0x30] sm:$0xff]  ;;  %v6501_v39 = vld [vmem:[#allocation2 + $0x228] sm:$0xff] }
 0x2eb   : > { %4074 = vmatprep.subr.mxu0 %v2426_v6  ;;  %4511 = vmatmul.mubr.f32.gmra.mxu1 %v6445_v7  ;;  %v2421_v6 = vld [vmem:[#allocation11 + $0x88] sm:$0xff] }
 0x2ec   : > { %2644 = vmatmul.mubr.f32.gmra.mxu0 %v6443_v57  ;;  %4528 = vmatprep.subr.mxu1 %v2448_v13 }
 0x2ed   : > { %2648 = vmatprep.mubr.f32.mxu0 %v6447_v59  ;;  %4529 = vmatpush3.msra.mxu1 %v2448_v13  ;;  %v2437_v13 = vld [vmem:[#allocation11 + $0x108] sm:$0xff] }
 0x2ee   : > { %4075 = vmatpush3.msra.mxu0 %v2410_v17  ;;  %4530 = vmatprep.subr.mxu1 %v2447_v48  ;;  %v2405_v17 = vld [vmem:[#allocation11 + $0x8] sm:$0xff] }
 0x2ef   : > { %4076 = vmatprep.subr.mxu0 %v2425_v31  ;;  %4531 = vmatpush3.msra.mxu1 %v2447_v48  ;;  %v6506_v48 = vld [vmem:[#allocation2 + $0x100] sm:$0xff] }
 0x2f0   : > { %2649 = vmatmul.mubr.f32.gmra.mxu0 %v6453_v36  ;;  %4532 = vmatprep.subr.mxu1 %v2446_v16  ;;  %v2436_v31 = vld [vmem:[#allocation11 + $0x100] sm:$0xff] }
 0x2f1   : > { %2653 = vmatprep.mubr.f32.mxu0 %v6455_v47  ;;  %4533 = vmatpush3.msra.mxu1 %v2446_v16  ;;  %v6509_v16 = vld [vmem:[#allocation2 + $0x130] sm:$0xff] }
 0x2f2   : > { %4513 = vmatprep.mubr.f32.mxu1 %v6457_v12  ;;  %4534 = vmatprep.subr.mxu1 %v2445_v4 }
 0x2f3   : > { %4077 = vmatpush3.msra.mxu0 %v2409_v21  ;;  %4535 = vmatpush3.msra.mxu1 %v2445_v4  ;;  %v2358_v4 = vld [vmem:[#allocation2 + $0x40] sm:$0xff] }
 0x2f4   : > { %2654 = vmatmul.mubr.f32.gmra.mxu0 %v6461_v0  ;;  %4514 = vmatmul.mubr.f32.gmra.mxu1 %v6466_v42  ;;  %v2420_v21 = vld [vmem:[#allocation11 + $0x80] sm:$0xff] }
 0x2f5   : > { %2658 = vmatprep.mubr.f32.mxu0 %v6463_v55  ;;  %4536 = vmatprep.subr.mxu1 %v2444_v32 }
 0x2f6   : > { %4078 = vmatprep.subr.mxu0 %v2424_v37  ;;  %4537 = vmatpush3.msra.mxu1 %v2444_v32  ;;  %v2361_v32 = vld [vmem:[#allocation2 + $0xf0] sm:$0xff]  ;;  %v3209_v37 = vld [vmem:[#allocation11 + $0x3f8] sm:$0xff] }
 0x2f7   : > { %4079 = vmatpush3.msra.mxu0 %v2408_v23  ;;  %4538 = vmatprep.subr.mxu1 %v2443_v30  ;;  %v6513_v23 = vld [vmem:[#allocation2 + $0x90] sm:$0xff] }
 0x2f8   : > { %2659 = vmatmul.mubr.f32.gmra.mxu0 %v6470_v51  ;;  %4539 = vmatpush3.msra.mxu1 %v2443_v30  ;;  %v3193_v30 = vld [vmem:[#allocation11 + $0x378] sm:$0xff] }
 0x2f9   : > { %2663 = vmatprep.mubr.f32.mxu0 %v6473_v53  ;;  %4540 = vmatprep.subr.mxu1 %v2442_v20 }
 0x2fa   : > { %4080 = vmatprep.subr.mxu0 %v2423_v3  ;;  %4541 = vmatpush3.msra.mxu1 %v2442_v20  ;;  %v6515_v20 = vld [vmem:[#allocation2 + $0x1d8] sm:$0xff]  ;;  %v2404_v3 = vld [vmem:[#allocation11] sm:$0xff] }
 0x2fb   : > { %4516 = vmatprep.mubr.f32.mxu1 %v6476_v27  ;;  %4542 = vmatprep.subr.mxu1 %v2441_v56 }
 0x2fc   : > { %2664 = vmatmul.mubr.f32.gmra.mxu0 %v6479_v50  ;;  %4543 = vmatpush3.msra.mxu1 %v2441_v56  ;;  %v3208_v56 = vld [vmem:[#allocation11 + $0x3f0] sm:$0xff] }
 0x2fd   : > { %2668 = vmatprep.mubr.f32.mxu0 %v6481_v34  ;;  %4081 = vmatpush3.msra.mxu0 %v2407_v33  ;;  %v3192_v33 = vld [vmem:[#allocation11 + $0x370] sm:$0xff] }
 0x2fe   : > { %4082 = vmatprep.subr.mxu0 %v2422_v9  ;;  %4517 = vmatmul.mubr.f32.gmra.mxu1 %v6485_v61  ;;  %v3225_v9 = vld [vmem:[#allocation11 + $0x478] sm:$0xff] }
 0x2ff   : > { %4544 = vmatprep.subr.mxu1 %v2440_v63  ;;  %4083 = vmatpush3.msra.mxu0 %v2406_v38  ;;  %v3207_v38 = vld [vmem:[#allocation11 + $0x3e8] sm:$0xff] }
 0x300   : > { %2669 = vmatmul.mubr.f32.gmra.mxu0 %v6488_v10  ;;  %4545 = vmatpush3.msra.mxu1 %v2440_v63  ;;  %v6519_v63 = vld [vmem:[#allocation2 + $0x230] sm:$0xff] }
 0x301   : > { %2673 = vmatprep.mubr.f32.mxu0 %v6490_v54  ;;  %4546 = vmatprep.subr.mxu1 %v2439_v25 }
 0x302   : > { %4547 = vmatpush3.msra.mxu1 %v2439_v25  ;;  %4519 = vmatprep.mubr.f32.mxu1 %v6494_v22  ;;  %v2357_v25 = vld [vmem:[#allocation2 + $0x8] sm:$0xff] }
 0x303   : > { %4548 = vmatprep.subr.mxu1 %v2438_v43  ;;  %4520 = vmatmul.mubr.f32.gmra.mxu1 %v6501_v39 }
 0x304   : > { %2674 = vmatmul.mubr.f32.gmra.mxu0 %v6497_v11  ;;  %4549 = vmatpush3.msra.mxu1 %v2438_v43  ;;  %v3191_v43 = vld [vmem:[#allocation11 + $0x368] sm:$0xff] }
 0x305   : > { %2678 = vmatprep.mubr.f32.mxu0 %v6499_v58  ;;  %4084 = vmatprep.subr.mxu0 %v2421_v6  ;;  %v3206_v6 = vld [vmem:[#allocation11 + $0x3e0] sm:$0xff] }
 0x306   : > { %4550 = vmatprep.subr.mxu1 %v2437_v13  ;;  %4085 = vmatpush3.msra.mxu0 %v2405_v17  ;;  %v3190_v17 = vld [vmem:[#allocation11 + $0x360] sm:$0xff] }
 0x307   : > { %4551 = vmatpush3.msra.mxu1 %v2437_v13  ;;  %4554 = vmatprep.mubr.f32.mxu1 %v2358_v4  ;;  %v2356_v13 = vld [vmem:[#allocation2 + $0xc8] sm:$0xff]  ;;  %v3205_v4 = vld [vmem:[#allocation11 + $0x3d8] sm:$0xff] }
 0x308   : > { %2679 = vmatmul.mubr.f32.gmra.mxu0 %v6506_v48  ;;  %4552 = vmatprep.subr.mxu1 %v2436_v31 }
 0x309   : > { %2683 = vmatprep.mubr.f32.mxu0 %v6509_v16  ;;  %4553 = vmatpush3.msra.mxu1 %v2436_v31  ;;  %v2360_v31 = vld [vmem:[#allocation2 + $0xe8] sm:$0xff] }
 0x30a   : > { %4086 = vmatprep.subr.mxu0 %v2420_v21  ;;  %4555 = vmatmul.mubr.f32.vlgmr.msra.gmra.mxu1 %v2361_v32  ;;  %v3189_v21 = vld [vmem:[#allocation11 + $0x358] sm:$0xff]  ;;  %v2359_v32 = vld [vmem:[#allocation2 + $0x28] sm:$0xff] }
 0x30b   : > { %4168 = vmatprep.subr.mxu1 %v3209_v37  ;;  %4087 = vmatpush3.msra.mxu0 %v2404_v3  ;;  %v3204_v37 = vld [vmem:[#allocation11 + $0x3d0] sm:$0xff]  ;;  %v3223_v3 = vld [vmem:[#allocation11 + $0x468] sm:$0xff] }
 0x30c   : > { %2684 = vmatmul.mubr.f32.gmra.mxu0 %v6513_v23  ;;  %4169 = vmatpush3.msra.mxu1 %v3193_v30  ;;  %v3203_v30 = vld [vmem:[#allocation11 + $0x3c8] sm:$0xff] }
 0x30d   : > { %2688 = vmatprep.mubr.f32.mxu0 %v6515_v20  ;;  %4170 = vmatprep.subr.mxu1 %v3208_v56  ;;  %v3187_v56 = vld [vmem:[#allocation11 + $0x348] sm:$0xff] }
 0x30e   : > { %4557 = vmatprep.mubr.f32.mxu1 %v6383_v35  ;;  %4171 = vmatpush3.msra.mxu1 %v3192_v33  ;;  %v3224_v35 = vld [vmem:[#allocation11 + $0x470] sm:$0xff]  ;;  %v3202_v33 = vld [vmem:[#allocation11 + $0x3c0] sm:$0xff] }
 0x30f   : > { %4578 = vmatprep.subr.mxu0 %v3225_v9  ;;  %4558 = vmatmul.mubr.f32.gmra.mxu1 %v6386_v26  ;;  %v3188_v26 = vld [vmem:[#allocation11 + $0x350] sm:$0xff] }
 0x310   : > { %2689 = vmatmul.mubr.f32.gmra.mxu0 %v6519_v63  ;;  %4172 = vmatprep.subr.mxu1 %v3207_v38  ;;  %v3185_v38 = vld [vmem:[#allocation11 + $0x338] sm:$0xff] }
 0x311   : > { %2903 = vmatprep.mubr.f32.mxu0 %v2357_v25  ;;  %4173 = vmatpush3.msra.mxu1 %v3191_v43  ;;  %v3201_v25 = vld [vmem:[#allocation11 + $0x3b8] sm:$0xff]  ;;  %v3200_v43 = vld [vmem:[#allocation11 + $0x3b0] sm:$0xff] }
 0x312   : > { %4560 = vmatprep.mubr.f32.mxu1 %v6397_v45  ;;  %4174 = vmatprep.subr.mxu1 %v3206_v6  ;;  %v3221_v6 = vld [vmem:[#allocation11 + $0x458] sm:$0xff] }
 0x313   : > { %4175 = vmatpush3.msra.mxu1 %v3190_v17  ;;  %v3182_v17 = vld [vmem:[#allocation11 + $0x320] sm:$0xff] }
 0x314   : > { %2904 = vmatmul.mubr.f32.vlgmr.msra.gmra.mxu0 %v2356_v13  ;;  %4561 = vmatmul.mubr.f32.gmra.mxu1 %v6400_v18  ;;  %v3183_v13 = vld [vmem:[#allocation11 + $0x328] sm:$0xff] }
 0x315   : > { %4579 = vmatpush3.msra.mxu0 %v3225_v9  ;;  %2908 = vmatprep.mubr.f32.mxu0 %v2360_v31  ;;  %v3186_v9 = vld [vmem:[#allocation11 + $0x340] sm:$0xff]  ;;  %v3197_v31 = vld [vmem:[#allocation11 + $0x398] sm:$0xff] }
 0x316   : > { %4176 = vmatprep.subr.mxu1 %v3205_v4  ;;  %4580 = vmatprep.subr.mxu0 %v3224_v35  ;;  %v3220_v4 = vld [vmem:[#allocation11 + $0x450] sm:$0xff] }
 0x317   : > { %4177 = vmatpush3.msra.mxu1 %v3189_v21  ;;  %4581 = vmatpush3.msra.mxu0 %v3224_v35  ;;  %v3181_v35 = vld [vmem:[#allocation11 + $0x318] sm:$0xff]  ;;  %v3196_v21 = vld [vmem:[#allocation11 + $0x390] sm:$0xff] }
 0x318   : > { %2909 = vmatmul.mubr.f32.gmra.mxu0 %v2359_v32  ;;  %4178 = vmatprep.subr.mxu1 %v3204_v37  ;;  %v3180_v32 = vld [vmem:[#allocation11 + $0x310] sm:$0xff]  ;;  %v3195_v37 = vld [vmem:[#allocation11 + $0x388] sm:$0xff] }
 0x319   : > { %2913 = vmatprep.mubr.f32.mxu0 %v6378_v28  ;;  %4563 = vmatprep.mubr.f32.mxu1 %v6409_v41  ;;  %v3222_v28 = vld [vmem:[#allocation11 + $0x460] sm:$0xff] }
 0x31a   : > { %4179 = vmatpush3.msra.mxu1 %v3188_v26  ;;  %4582 = vmatprep.subr.mxu0 %v3223_v3  ;;  %v3219_v26 = vld [vmem:[#allocation11 + $0x448] sm:$0xff] }
 0x31b   : > { %4564 = vmatmul.mubr.f32.gmra.mxu1 %v6412_v40  ;;  %4180 = vmatprep.subr.mxu1 %v3203_v30  ;;  %v3179_v30 = vld [vmem:[#allocation11 + $0x308] sm:$0xff] }
 0x31c   : > { %2914 = vmatmul.mubr.f32.gmra.mxu0 %v6380_v8  ;;  %4181 = vmatpush3.msra.mxu1 %v3187_v56  ;;  %v3184_v8 = vld [vmem:[#allocation11 + $0x330] sm:$0xff]  ;;  %v3178_v56 = vld [vmem:[#allocation11 + $0x300] sm:$0xff] }
 0x31d   : > { %4583 = vmatpush3.msra.mxu0 %v3223_v3  ;;  %4182 = vmatprep.subr.mxu1 %v3202_v33  ;;  %v3194_v3 = vld [vmem:[#allocation11 + $0x380] sm:$0xff] }
 0x31e   : > { %2918 = vmatprep.mubr.f32.mxu0 %v6388_v24  ;;  %4566 = vmatprep.mubr.f32.mxu1 %v6421_v29  ;;  %v3199_v24 = vld [vmem:[#allocation11 + $0x3a8] sm:$0xff]  ;;  %v3218_v33 = vld [vmem:[#allocation11 + $0x440] sm:$0xff] }
 0x31f   : > { %4183 = vmatpush3.msra.mxu1 %v3186_v9  ;;  %4584 = vmatprep.subr.mxu0 %v3222_v28  ;;  %v3217_v9 = vld [vmem:[#allocation11 + $0x438] sm:$0xff] }
 0x320   : > { %2919 = vmatmul.mubr.f32.gmra.mxu0 %v6390_v2  ;;  %4567 = vmatmul.mubr.f32.gmra.mxu1 %v6424_v49  ;;  %v3198_v2 = vld [vmem:[#allocation11 + $0x3a0] sm:$0xff] }
 0x321   : > { %4184 = vmatprep.subr.mxu1 %v3201_v25  ;;  %4585 = vmatpush3.msra.mxu0 %v3222_v28  ;;  %v3216_v25 = vld [vmem:[#allocation11 + $0x430] sm:$0xff] }
 0x322   : > { %4185 = vmatpush3.msra.mxu1 %v3185_v38  ;;  %2923 = vmatprep.mubr.f32.mxu0 %v6393_v52 }
 0x323   : > { %4186 = vmatprep.subr.mxu1 %v3200_v43  ;;  %4569 = vmatprep.mubr.f32.mxu1 %v6439_v1 }
 0x324   : > { %4187 = vmatpush3.msra.mxu1 %v3184_v8  ;;  %2924 = vmatmul.mubr.f32.gmra.mxu0 %v6403_v46 }
 0x325   : > { %4570 = vmatmul.mubr.f32.gmra.mxu1 %v6445_v7  ;;  %4188 = vmatprep.subr.mxu1 %v3199_v24 }
 0x326   : > { %4586 = vmatprep.subr.mxu0 %v3221_v6  ;;  %4189 = vmatpush3.msra.mxu1 %v3183_v13 }
 0x327   : > { %4587 = vmatpush3.msra.mxu0 %v3221_v6  ;;  %4190 = vmatprep.subr.mxu1 %v3198_v2 }
 0x328   : > { %2928 = vmatprep.mubr.f32.mxu0 %v6406_v62  ;;  %4572 = vmatprep.mubr.f32.mxu1 %v6457_v12 }
 0x329   : > { %4191 = vmatpush3.msra.mxu1 %v3182_v17  ;;  %2929 = vmatmul.mubr.f32.gmra.mxu0 %v6415_v19 }
 0x32a   : > { %4573 = vmatmul.mubr.f32.gmra.mxu1 %v6466_v42  ;;  %4192 = vmatprep.subr.mxu1 %v3197_v31 }
 0x32b   : > { %4588 = vmatprep.subr.mxu0 %v3220_v4  ;;  %4193 = vmatpush3.msra.mxu1 %v3181_v35 }
 0x32c   : > { %4589 = vmatpush3.msra.mxu0 %v3220_v4  ;;  %4194 = vmatprep.subr.mxu1 %v3196_v21 }
 0x32d   : > { %2933 = vmatprep.mubr.f32.mxu0 %v6417_v60  ;;  %4575 = vmatprep.mubr.f32.mxu1 %v6476_v27 }
 0x32e   : > { %4195 = vmatpush3.msra.mxu1 %v3180_v32  ;;  %2934 = vmatmul.mubr.f32.gmra.mxu0 %v6427_v44 }
 0x32f   : > { %4576 = vmatmul.mubr.f32.gmra.mxu1 %v6485_v61  ;;  %4196 = vmatprep.subr.mxu1 %v3195_v37 }
 0x330   : > { %4590 = vmatprep.subr.mxu0 %v3219_v26  ;;  %4197 = vmatpush3.msra.mxu1 %v3179_v30 }
 0x331   : > { %4591 = vmatpush3.msra.mxu0 %v3219_v26  ;;  %4198 = vmatprep.subr.mxu1 %v3194_v3 }
 0x332   : > { %2938 = vmatprep.mubr.f32.mxu0 %v6429_v15  ;;  %4199 = vmatpush3.msra.mxu1 %v3178_v56 }
 0x333   : > { %3290 = vmatprep.mubr.f32.mxu1 %v6393_v52  ;;  %2939 = vmatmul.mubr.f32.gmra.mxu0 %v6435_v5  ;;  %v3215_v52 = vld [vmem:[#allocation11 + $0x428] sm:$0xff] }
 0x334   : > { %3291 = vmatmul.mubr.f32.vlgmr.msra.gmra.mxu1 %v6403_v46  ;;  %4592 = vmatprep.subr.mxu0 %v3218_v33  ;;  %v3214_v46 = vld [vmem:[#allocation11 + $0x420] sm:$0xff] }
 0x335   : > { %2943 = vmatprep.mubr.f32.mxu0 %v6437_v14  ;;  %4593 = vmatpush3.msra.mxu0 %v3218_v33 }
 0x336   : > { %3295 = vmatprep.mubr.f32.mxu1 %v6406_v62  ;;  %4594 = vmatprep.subr.mxu0 %v3217_v9  ;;  %v3213_v62 = vld [vmem:[#allocation11 + $0x418] sm:$0xff] }
 0x337   : > { %2944 = vmatmul.mubr.f32.gmra.mxu0 %v6443_v57 }
 0x338   : > { %3296 = vmatmul.mubr.f32.gmra.mxu1 %v6415_v19  ;;  %4595 = vmatpush3.msra.mxu0 %v3217_v9  ;;  %v3212_v19 = vld [vmem:[#allocation11 + $0x410] sm:$0xff] }
 0x339   : > { %2948 = vmatprep.mubr.f32.mxu0 %v6447_v59  ;;  %3300 = vmatprep.mubr.f32.mxu1 %v6417_v60  ;;  %v3211_v60 = vld [vmem:[#allocation11 + $0x408] sm:$0xff] }
 0x33a   : > { %4596 = vmatprep.subr.mxu0 %v3216_v25 }
 0x33b   : > { %4597 = vmatpush3.msra.mxu0 %v3216_v25 }
 0x33c   : > { %2949 = vmatmul.mubr.f32.gmra.mxu0 %v6453_v36  ;;  %3301 = vmatmul.mubr.f32.gmra.mxu1 %v6427_v44  ;;  %v3210_v44 = vld [vmem:[#allocation11 + $0x400] sm:$0xff] }
 0x33d   : > { %2953 = vmatprep.mubr.f32.mxu0 %v6455_v47  ;;  %3305 = vmatprep.mubr.f32.mxu1 %v6429_v15 }
 0x33e   : > { %4598 = vmatprep.subr.mxu0 %v3215_v52 }
 0x33f   : > { %4599 = vmatpush3.msra.mxu0 %v3215_v52 }
 0x340   : > { %2954 = vmatmul.mubr.f32.gmra.mxu0 %v6461_v0  ;;  %3306 = vmatmul.mubr.f32.gmra.mxu1 %v6435_v5 }
 0x341   : > { %2958 = vmatprep.mubr.f32.mxu0 %v6463_v55  ;;  %3310 = vmatprep.mubr.f32.mxu1 %v6437_v14 }
 0x342   : > { %4600 = vmatprep.subr.mxu0 %v3214_v46 }
 0x343   : > { %4601 = vmatpush3.msra.mxu0 %v3214_v46 }
 0x344   : > { %2959 = vmatmul.mubr.f32.gmra.mxu0 %v6470_v51  ;;  %3311 = vmatmul.mubr.f32.gmra.mxu1 %v6443_v57 }
 0x345   : > { %2963 = vmatprep.mubr.f32.mxu0 %v6473_v53  ;;  %3315 = vmatprep.mubr.f32.mxu1 %v6447_v59 }
 0x346   : > { %4602 = vmatprep.subr.mxu0 %v3213_v62 }
 0x347   : > { %4603 = vmatpush3.msra.mxu0 %v3213_v62 }
 0x348   : > { %2964 = vmatmul.mubr.f32.gmra.mxu0 %v6479_v50  ;;  %3316 = vmatmul.mubr.f32.gmra.mxu1 %v6453_v36 }
 0x349   : > { %2968 = vmatprep.mubr.f32.mxu0 %v6481_v34  ;;  %3320 = vmatprep.mubr.f32.mxu1 %v6455_v47 }
 0x34a   : > { %4604 = vmatprep.subr.mxu0 %v3212_v19 }
 0x34b   : > { %4605 = vmatpush3.msra.mxu0 %v3212_v19 }
 0x34c   : > { %2969 = vmatmul.mubr.f32.gmra.mxu0 %v6488_v10  ;;  %3321 = vmatmul.mubr.f32.gmra.mxu1 %v6461_v0 }
 0x34d   : > { %2973 = vmatprep.mubr.f32.mxu0 %v6490_v54  ;;  %3325 = vmatprep.mubr.f32.mxu1 %v6463_v55 }
 0x34e   : > { %4606 = vmatprep.subr.mxu0 %v3211_v60 }
 0x34f   : > { %4607 = vmatpush3.msra.mxu0 %v3211_v60 }
 0x350   : > { %2974 = vmatmul.mubr.f32.gmra.mxu0 %v6497_v11  ;;  %3326 = vmatmul.mubr.f32.gmra.mxu1 %v6470_v51 }
 0x351   : > { %2978 = vmatprep.mubr.f32.mxu0 %v6499_v58  ;;  %3330 = vmatprep.mubr.f32.mxu1 %v6473_v53 }
 0x352   : > { %4608 = vmatprep.subr.mxu0 %v3210_v44 }
 0x353   : > { %4609 = vmatpush3.msra.mxu0 %v3210_v44 }
 0x354   : > { %2979 = vmatmul.mubr.f32.gmra.mxu0 %v6506_v48  ;;  %3331 = vmatmul.mubr.f32.gmra.mxu1 %v6479_v50 }
 0x355   : > { %3335 = vmatprep.mubr.f32.mxu1 %v6481_v34  ;;  %4610 = vmatprep.mubr.f32.mxu0 %v6397_v45  ;;  %v3172_v45 = vld [vmem:[#allocation2 + $0x200] sm:$0xff] }
 0x358   : > { %3336 = vmatmul.mubr.f32.gmra.mxu1 %v6488_v10  ;;  %4611 = vmatmul.mubr.f32.vlgmr.msra.gmra.mxu0 %v6400_v18  ;;  %v3171_v18 = vld [vmem:[#allocation2 + $0x218] sm:$0xff] }
 0x359   : > { %3340 = vmatprep.mubr.f32.mxu1 %v6490_v54  ;;  %4613 = vmatprep.mubr.f32.mxu0 %v6409_v41  ;;  %v3175_v41 = vld [vmem:[#allocation2 + $0x178] sm:$0xff] }
 0x35c   : > { %3341 = vmatmul.mubr.f32.gmra.mxu1 %v6497_v11  ;;  %4614 = vmatmul.mubr.f32.gmra.mxu0 %v6412_v40  ;;  %v3174_v40 = vld [vmem:[#allocation2 + $0x128] sm:$0xff] }
 0x35d   : > { %3345 = vmatprep.mubr.f32.mxu1 %v6499_v58  ;;  %4616 = vmatprep.mubr.f32.mxu0 %v6421_v29  ;;  %v3173_v29 = vld [vmem:[#allocation2 + $0x10] sm:$0xff] }
 0x360   : > { %3346 = vmatmul.mubr.f32.gmra.mxu1 %v6506_v48  ;;  %4617 = vmatmul.mubr.f32.gmra.mxu0 %v6424_v49  ;;  %v3176_v49 = vld [vmem:[#allocation2 + $0x208] sm:$0xff] }
 0x361   : > { %3350 = vmatprep.mubr.f32.mxu1 %v6509_v16  ;;  %4619 = vmatprep.mubr.f32.mxu0 %v6439_v1 }
 0x364   : > { %3351 = vmatmul.mubr.f32.gmra.mxu1 %v6513_v23  ;;  %4620 = vmatmul.mubr.f32.gmra.mxu0 %v6445_v7 }
 0x365   : > { %3355 = vmatprep.mubr.f32.mxu1 %v6515_v20  ;;  %4622 = vmatprep.mubr.f32.mxu0 %v6457_v12 }
 0x368   : > { %3356 = vmatmul.mubr.f32.gmra.mxu1 %v6519_v63  ;;  %4623 = vmatmul.mubr.f32.gmra.mxu0 %v6466_v42 }
 0x369   : > { %3360 = vmatprep.mubr.f32.mxu1 %v3172_v45  ;;  %4625 = vmatprep.mubr.f32.mxu0 %v6476_v27 }
 0x36c   : > { %3361 = vmatmul.mubr.f32.gmra.mxu1 %v3171_v18  ;;  %4626 = vmatmul.mubr.f32.gmra.mxu0 %v6485_v61 }
 0x36d   : > { %3365 = vmatprep.mubr.f32.mxu1 %v3175_v41  ;;  %4628 = vmatprep.mubr.f32.mxu0 %v6494_v22 }
 0x370   : > { %3366 = vmatmul.mubr.f32.gmra.mxu1 %v3174_v40  ;;  %4629 = vmatmul.mubr.f32.gmra.mxu0 %v6501_v39 }
 0x371   : > { %4631 = vmatprep.mubr.f32.mxu0 %v3173_v29 }
 0x374   : > { %4632 = vmatmul.mubr.f32.gmra.mxu0 %v3176_v49 }
 0x393   : > { %v3976_v15 = vpop.f32.mrf.mxu0 }
 0x395   : > { %v3977_v5 = vpop.f32.mrf.mxu0 }
 0x396   : > { %v3978_v14 = vadd.f32 %v3977_v5, %v3976_v15  ;;  %v4500_v1 = vpop.f32.mrf.mxu1 }
 0x398   : > { %v3979_v57 = vpop.f32.mrf.mxu0  ;;  %v2760_v7 = vpop.f32.mrf.mxu1 }
 0x399   : > { %v6606_v59 = vadd.f32 %v3978_v14, %v2760_v7 }
 0x39a   : > { %v3980_v36 = vpop.f32.mrf.mxu0  ;;  %v4503_v12 = vpop.f32.mrf.mxu1 }
 0x39b   : > { %v3981_v47 = vadd.f32 %v3980_v36, %v3979_v57 }
 0x39c   : > { %v3982_v0 = vpop.f32.mrf.mxu0  ;;  %v2770_v51 = vpop.f32.mrf.mxu1 }
 0x39d   : > { %v6608_v55 = vadd.f32 %v4500_v1, %v3981_v47 }
 0x39e   : > { %v3983_v42 = vpop.f32.mrf.mxu0  ;;  %v4506_v61 = vpop.f32.mrf.mxu1 }
 0x39f   : > { %v3984_v53 = vadd.f32 %v3983_v42, %v3982_v0 }
 0x3a0   : > { %v3985_v27 = vpop.f32.mrf.mxu0  ;;  %v2780_v58 = vpop.f32.mrf.mxu1 }
 0x3a1   : > { %v6610_v50 = vadd.f32 %v3984_v53, %v2770_v51 }
 0x3a2   : > { %v3986_v34 = vpop.f32.mrf.mxu0  ;;  %v4509_v20 = vpop.f32.mrf.mxu1 }
 0x3a3   : > { %v3987_v10 = vadd.f32 %v3986_v34, %v3985_v27 }
 0x3a4   : > { %v3988_v54 = vpop.f32.mrf.mxu0  ;;  %v2790_v8 = vpop.f32.mrf.mxu1 }
 0x3a5   : > { %v6612_v22 = vadd.f32 %v4503_v12, %v3987_v10 }
 0x3a6   : > { %v3989_v11 = vpop.f32.mrf.mxu0 }
 0x3a7   : > { %v3990_v39 = vadd.f32 %v3989_v11, %v3988_v54 }
 0x3a8   : > { %v3991_v48 = vpop.f32.mrf.mxu0 }
 0x3a9   : > { %v6614_v16 = vadd.f32 %v3990_v39, %v2780_v58 }
 0x3aa   : > { %v3992_v23 = vpop.f32.mrf.mxu0 }
 0x3ab   : > { %v3993_v63 = vadd.f32 %v3992_v23, %v3991_v48  ;;  %v4512_v17 = vpop.f32.mrf.mxu1 }
 0x3ac   : > { %v3994_v28 = vpop.f32.mrf.mxu0 }
 0x3ad   : > { %v6616_v38 = vadd.f32 %v4506_v61, %v3993_v63  ;;  %v2800_v32 = vpop.f32.mrf.mxu1 }
 0x3ae   : > { %v3995_v43 = vpop.f32.mrf.mxu0 }
 0x3af   : > { %v3996_v24 = vadd.f32 %v3995_v43, %v3994_v28 }
 0x3b0   : > { %v3997_v6 = vpop.f32.mrf.mxu0 }
 0x3b1   : > { %v6618_v13 = vadd.f32 %v3996_v24, %v2790_v8 }
 0x3b2   : > { %v3998_v2 = vpop.f32.mrf.mxu0 }
 0x3b3   : > { %v3999_v31 = vadd.f32 %v3998_v2, %v3997_v6 }
 0x3b4   : > { %v4000_v4 = vpop.f32.mrf.mxu0  ;;  %v4515_v3 = vpop.f32.mrf.mxu1 }
 0x3b5   : > { %v6620_v35 = vadd.f32 %v4509_v20, %v3999_v31 }
 0x3b6   : > { %v4001_v21 = vpop.f32.mrf.mxu0  ;;  %v2810_v52 = vpop.f32.mrf.mxu1 }
 0x3b7   : > { %v4002_v37 = vadd.f32 %v4001_v21, %v4000_v4 }
 0x3b8   : > { %v4003_v26 = vpop.f32.mrf.mxu0 }
 0x3b9   : > { %v6622_v30 = vadd.f32 %v4002_v37, %v2800_v32 }
 0x3ba   : > { %v4004_v56 = vpop.f32.mrf.mxu0 }
 0x3bb   : > { %v4005_v33 = vadd.f32 %v4004_v56, %v4003_v26 }
 0x3bc   : > { %v4006_v9 = vpop.f32.mrf.mxu0 }
 0x3bd   : > { %v6624_v25 = vadd.f32 %v4512_v17, %v4005_v33 }
 0x3be   : > { %v4007_v46 = vpop.f32.mrf.mxu0  ;;  %v4518_v19 = vpop.f32.mrf.mxu1 }
 0x3bf   : > { %v4008_v62 = vadd.f32 %v4007_v46, %v4006_v9 }
 0x3c0   : > { %v4009_v60 = vpop.f32.mrf.mxu0  ;;  %v2820_v41 = vpop.f32.mrf.mxu1 }
 0x3c1   : > { %v6626_v44 = vadd.f32 %v4008_v62, %v2810_v52 }
 0x3c2   : > { %v4010_v45 = vpop.f32.mrf.mxu0 }
 0x3c3   : > { %v4011_v18 = vadd.f32 %v4010_v45, %v4009_v60  ;;  %v4521_v49 = vpop.f32.mrf.mxu1 }
 0x3c4   : > { %v4012_v40 = vpop.f32.mrf.mxu0 }
 0x3c5   : > { %v6628_v29 = vadd.f32 %v4515_v3, %v4011_v18  ;;  %v2830_v14 = vpop.f32.mrf.mxu1 }
 0x3c6   : > { %v4013_v15 = vpop.f32.mrf.mxu0 }
 0x3c7   : > { %v4014_v5 = vadd.f32 %v4013_v15, %v4012_v40 }
 0x3c8   : > { %v4015_v1 = vpop.f32.mrf.mxu0 }
 0x3c9   : > { %v6630_v57 = vadd.f32 %v4014_v5, %v2820_v41 }
 0x3ca   : > { %v4016_v7 = vpop.f32.mrf.mxu0  ;;  %v4556_v47 = vpop.f32.mrf.mxu1 }
 0x3cb   : > { %v4017_v36 = vadd.f32 %v4016_v7, %v4015_v1 }
 0x3cc   : > { %v4018_v12 = vpop.f32.mrf.mxu0  ;;  %v3050_v42 = vpop.f32.mrf.mxu1 }
 0x3cd   : > { %v6632_v0 = vadd.f32 %v4518_v19, %v4017_v36 }
 0x3ce   : > { %v4019_v51 = vpop.f32.mrf.mxu0 }
 0x3cf   : > { %v4020_v53 = vadd.f32 %v4019_v51, %v4018_v12  ;;  %v4559_v34 = vpop.f32.mrf.mxu1 }
 0x3d0   : > { %v4021_v27 = vpop.f32.mrf.mxu0 }
 0x3d1   : > { %v6634_v61 = vadd.f32 %v4020_v53, %v2830_v14  ;;  %v3060_v54 = vpop.f32.mrf.mxu1 }
 0x3d2   : > { %v4022_v10 = vpop.f32.mrf.mxu0 }
 0x3d3   : > { %v4023_v11 = vadd.f32 %v4022_v10, %v4021_v27 }
 0x3d4   : > { %v4088_v58 = vpop.f32.mrf.mxu0  ;;  %v4562_v23 = vpop.f32.mrf.mxu1 }
 0x3d5   : > { %v6636_v39 = vadd.f32 %v4521_v49, %v4023_v11 }
 0x3d6   : > { %v4089_v48 = vpop.f32.mrf.mxu0  ;;  %v3070_v28 = vpop.f32.mrf.mxu1 }
 0x3d7   : > { %v4090_v20 = vadd.f32 %v4089_v48, %v4088_v58 }
 0x3d8   : > { %v4091_v63 = vpop.f32.mrf.mxu0 }
 0x3d9   : > { %v2906_v43 = vadd.f32 %v4090_v20, %v6606_v59 }
 0x3da   : > { %v4092_v8 = vpop.f32.mrf.mxu0 }
 0x3db   : > { %v4093_v24 = vadd.f32 %v4092_v8, %v4091_v63  ;;  %v4565_v6 = vpop.f32.mrf.mxu1  ;;  %v6639_v2 = vadd.f32 %v3050_v42, %v2906_v43 }
 0x3dc   : > { %v4094_v17 = vpop.f32.mrf.mxu0 }
 0x3dd   : > { %v2911_v31 = vadd.f32 %v4093_v24, %v6608_v55  ;;  %v3080_v4 = vpop.f32.mrf.mxu1 }
 0x3de   : > { %v4095_v21 = vpop.f32.mrf.mxu0 }
 0x3df   : > { %v4096_v32 = vadd.f32 %v4095_v21, %v4094_v17  ;;  %v6642_v37 = vadd.f32 %v4556_v47, %v2911_v31 }
 0x3e0   : > { %v4097_v26 = vpop.f32.mrf.mxu0  ;;  %v4568_v3 = vpop.f32.mrf.mxu1 }
 0x3e1   : > { %v2916_v56 = vadd.f32 %v4096_v32, %v6610_v50 }
 0x3e2   : > { %v4098_v33 = vpop.f32.mrf.mxu0  ;;  %v3090_v9 = vpop.f32.mrf.mxu1 }
 0x3e3   : > { %v4099_v59 = vadd.f32 %v4098_v33, %v4097_v26  ;;  %v6645_v52 = vadd.f32 %v3060_v54, %v2916_v56 }
 0x3e4   : > { %v4100_v62 = vpop.f32.mrf.mxu0 }
 0x3e5   : > { %v2921_v46 = vadd.f32 %v4099_v59, %v6612_v22  ;;  %v4571_v19 = vpop.f32.mrf.mxu1 }
 0x3e6   : > { %v4101_v60 = vpop.f32.mrf.mxu0 }
 0x3e7   : > { %v3100_v55 = vpop.f32.mrf.mxu1  ;;  %v6648_v45 = vadd.f32 %v4559_v34, %v2921_v46  ;;  %v4102_v18 = vadd.f32 %v4101_v60, %v4100_v62 }
 0x3e9   : > { %v2926_v41 = vadd.f32 %v4102_v18, %v6614_v16  ;;  %v4103_v40 = vpop.f32.mrf.mxu0 }
 0x3ea   : > { %v6651_v49 = vpop.f32.mrf.mxu1 }
 0x3eb   : > { %v4104_v50 = vpop.f32.mrf.mxu0  ;;  %v6653_v5 = vadd.f32 %v3070_v28, %v2926_v41 }
 0x3ec   : > { %v3110_v15 = vpop.f32.mrf.mxu1  ;;  %v4105_v14 = vadd.f32 %v4104_v50, %v4103_v40 }
 0x3ee   : > { %v2931_v1 = vadd.f32 %v4105_v14, %v6616_v38  ;;  %v4106_v22 = vpop.f32.mrf.mxu0 }
 0x3ef   : > { %v6656_v7 = vpop.f32.mrf.mxu1 }
 0x3f0   : > { %v4107_v36 = vpop.f32.mrf.mxu0  ;;  %v6660_v12 = vadd.f32 %v4562_v23, %v2931_v1 }
 0x3f1   : > { %v6658_v47 = vpop.f32.mrf.mxu1  ;;  %v4108_v42 = vadd.f32 %v4107_v36, %v4106_v22 }
 0x3f3   : > { %v2936_v16 = vadd.f32 %v4108_v42, %v6618_v13  ;;  %v4109_v51 = vpop.f32.mrf.mxu0 }
 0x3f4   : > { %v6663_v53 = vpop.f32.mrf.mxu1 }
 0x3f5   : > { %v4110_v27 = vpop.f32.mrf.mxu0  ;;  %v6665_v10 = vadd.f32 %v3080_v4, %v2936_v16 }
 0x3f6   : > { %v4201_v34 = vpop.f32.mrf.mxu1  ;;  %v4111_v54 = vadd.f32 %v4110_v27, %v4109_v51 }
 0x3f7   : > { %v4112_v38 = vpop.f32.mrf.mxu0 }
 0x3f8   : > { %v4203_v11 = vpop.f32.mrf.mxu1  ;;  %v2941_v58 = vadd.f32 %v4111_v54, %v6620_v35 }
 0x3f9   : > { %v4113_v48 = vpop.f32.mrf.mxu0 }
 0x3fa   : > { %v4204_v20 = vpop.f32.mrf.mxu1  ;;  %v4114_v63 = vadd.f32 %v4113_v48, %v4112_v38  ;;  %v6668_v23 = vadd.f32 %v4565_v6, %v2941_v58 }
 0x3fc   : > { %v4115_v28 = vpop.f32.mrf.mxu0  ;;  %v6670_v43 = vpop.f32.mrf.mxu1  ;;  %v2946_v13 = vadd.f32 %v4114_v63, %v6622_v30 }
 0x3fe   : > { %v4116_v8 = vpop.f32.mrf.mxu0  ;;  %v6673_v24 = vpop.f32.mrf.mxu1  ;;  %v6675_v31 = vadd.f32 %v3090_v9, %v2946_v13 }
 0x3ff   : > { %v4117_v17 = vadd.f32 %v4116_v8, %v4115_v28 }
 0x400   : > { %v4118_v4 = vpop.f32.mrf.mxu0  ;;  %v4209_v21 = vpop.f32.mrf.mxu1 }
 0x401   : > { %v2951_v35 = vadd.f32 %v4117_v17, %v6624_v25 }
 0x402   : > { %v4119_v32 = vpop.f32.mrf.mxu0  ;;  %v4210_v26 = vpop.f32.mrf.mxu1 }
 0x403   : > { %v4120_v56 = vadd.f32 %v4119_v32, %v4118_v4  ;;  %v6678_v6 = vadd.f32 %v4568_v3, %v2951_v35  ;;  %v4202_v35 = vadd.f32 %v4201_v34, %v6663_v53  ;;  %v3556_v53 = vld [vmem:[%s5556_s24 + $0x8] sm:$0xff] }
 0x404   : > { %v4121_v33 = vpop.f32.mrf.mxu0  ;;  %v6680_v59 = vpop.f32.mrf.mxu1 }
 0x405   : > { %v2956_v30 = vadd.f32 %v4120_v56, %v6626_v44 }
 0x406   : > { %v4122_v46 = vpop.f32.mrf.mxu0  ;;  %v4213_v62 = vpop.f32.mrf.mxu1 }
 0x407   : > { %v4123_v60 = vadd.f32 %v4122_v46, %v4121_v33  ;;  %v6683_v18 = vadd.f32 %v3100_v55, %v2956_v30 }
 0x408   : > { %v4124_v9 = vpop.f32.mrf.mxu0  ;;  %v4215_v41 = vpop.f32.mrf.mxu1 }
 0x409   : > { %v2961_v40 = vadd.f32 %v4123_v60, %v6628_v29 }
 0x40a   : > { %v4125_v25 = vpop.f32.mrf.mxu0  ;;  %v4216_v50 = vpop.f32.mrf.mxu1 }
 0x40b   : > { %v4126_v14 = vadd.f32 %v4125_v25, %v4124_v9  ;;  %v6686_v1 = vadd.f32 %v4571_v19, %v2961_v40  ;;  %v4217_v25 = vadd.f32 %v4216_v50, %v4215_v41 }
 0x40c   : > { %v4127_v3 = vpop.f32.mrf.mxu0  ;;  %v6688_v22 = vpop.f32.mrf.mxu1 }
 0x40d   : > { %v2966_v36 = vadd.f32 %v4126_v14, %v6630_v57 }
 0x40e   : > { %v4128_v44 = vpop.f32.mrf.mxu0  ;;  %v6691_v42 = vpop.f32.mrf.mxu1 }
 0x40f   : > { %v4129_v16 = vadd.f32 %v4128_v44, %v4127_v3  ;;  %v6693_v55 = vadd.f32 %v3110_v15, %v2966_v36  ;;  %v4205_v15 = vadd.f32 %v4204_v20, %v4203_v11  ;;  %v4211_v11 = vadd.f32 %v4210_v26, %v4209_v21  ;;  %v3555_v26 = vld [vmem:[%s5556_s24] sm:$0xff]  ;;  %v3558_v36 = vld [vmem:[%s5556_s24 + $0x18] sm:$0xff] }
 0x410   : > { %v4130_v51 = vpop.f32.mrf.mxu0  ;;  %v4221_v27 = vpop.f32.mrf.mxu1  ;;  %v4208_v21 = vadd.f32 %v6673_v24, %v6670_v43 }
 0x411   : > { %v2971_v29 = vadd.f32 %v4129_v16, %v6632_v0 }
 0x412   : > { %v4131_v54 = vpop.f32.mrf.mxu0  ;;  %v4222_v38 = vpop.f32.mrf.mxu1 }
 0x413   : > { %v4132_v58 = vadd.f32 %v4131_v54, %v4130_v51  ;;  %v6697_v19 = vadd.f32 %v6651_v49, %v2971_v29  ;;  %v4214_v51 = vadd.f32 %v4213_v62, %v6680_v59  ;;  %v3560_v62 = vld [vmem:[%s5556_s24 + $0x28] sm:$0xff] }
 0x414   : > { %v4133_v48 = vpop.f32.mrf.mxu0  ;;  %v6699_v63 = vpop.f32.mrf.mxu1 }
 0x415   : > { %v2976_v57 = vadd.f32 %v4132_v58, %v6634_v61  ;;  %v6712_v61 = vld [vmem:[%s6976_s2] ss:$0 sm:$0xff]  ;;  %v4223_v58 = vadd.f32 %v4222_v38, %v4221_v27  ;;  %v4220_v38 = vadd.f32 %v6691_v42, %v6688_v22 }
 0x416   : > { %v4134_v28 = vpop.f32.mrf.mxu0  ;;  %v6702_v13 = vpop.f32.mrf.mxu1 }
 0x417   : > { %v4135_v8 = vadd.f32 %v4134_v28, %v4133_v48  ;;  %v6705_v17 = vadd.f32 %v6658_v47, %v2976_v57  ;;  %v3557_v48 = vld [vmem:[%s5556_s24 + $0x10] sm:$0xff]  ;;  %v4226_v22 = vadd.f32 %v6702_v13, %v6699_v63  ;;  %v3564_v13 = vld [vmem:[%s5556_s24 + $0x48] sm:$0xff] }
 0x418   : > { %v4227_v0 = vpop.f32.mrf.mxu1  ;;  %v4612_v4 = vpop.f32.mrf.mxu0 }
 0x419   : > { %v2981_v49 = vadd.f32 %v4135_v8, %v6636_v39  ;;  %v3443_v32 = vadd.f32 %v4612_v4, %v4205_v15 }
 0x41a   : > { %v4228_v56 = vpop.f32.mrf.mxu1  ;;  %v3437_v33 = vpop.f32.mrf.mxu0 }
 0x41b   : > { %v3517_v20 = vadd.f32 %v3443_v32, %v6642_v37  ;;  %v3438_v47 = vadd.f32 %v4202_v35, %v3437_v33  ;;  %v6716_v30 = vadd.f32 %v6656_v7, %v2981_v49  ;;  %v4229_v33 = vadd.f32 %v4228_v56, %v4227_v0 }
 0x41c   : > { %v6719_v34 = vpop.f32.mrf.mxu1  ;;  %v4615_v39 = vpop.f32.mrf.mxu0 }
 0x41d   : > { %v3540_v46 = vadd.f32 %v6712_v61, %v3517_v20  ;;  %v3516_v60 = vadd.f32 %v3438_v47, %v6639_v2  ;;  %v3453_v9 = vadd.f32 %v4615_v39, %v4211_v11 }
 0x41e   : > { %v6726_v37 = vpop.f32.mrf.mxu1  ;;  %v3447_v40 = vpop.f32.mrf.mxu0 }
 0x41f   : > { %v3572_v7 = vadd.f32 %v3556_v53, %v3540_v46  ;;  %v3539_v14 = vadd.f32 %v6712_v61, %v3516_v60  ;;  %v3519_v3 = vadd.f32 %v3453_v9, %v6648_v45  ;;  %v3448_v44 = vadd.f32 %v4208_v21, %v3447_v40  ;;  %v3562_v53 = vld [vmem:[%s5556_s24 + $0x38] sm:$0xff]  ;;  %v3561_v40 = vld [vmem:[%s5556_s24 + $0x30] sm:$0xff] }
 0x420   : > { %v4233_v16 = vpop.f32.mrf.mxu1  ;;  %v4618_v2 = vpop.f32.mrf.mxu0 }
 0x421   : > { %3588 = vst [vmem:[%s6374_s17 + $0x8] sm:$0xff] %v3572_v7  ;;  %v3571_v43 = vadd.f32 %v3555_v26, %v3539_v14  ;;  %v3542_v24 = vadd.f32 %v6712_v61, %v3519_v3  ;;  %v3463_v41 = vadd.f32 %v4618_v2, %v4217_v25  ;;  %v3518_v50 = vadd.f32 %v3448_v44, %v6645_v52 }
 0x422   : > { %v4234_v29 = vpop.f32.mrf.mxu1  ;;  %v3457_v54 = vpop.f32.mrf.mxu0 }
 0x423   : > { %3587 = vst [vmem:[%s6374_s17] sm:$0xff] %v3571_v43  ;;  %v3574_v45 = vadd.f32 %v3558_v36, %v3542_v24  ;;  %v3521_v57 = vadd.f32 %v3463_v41, %v6660_v12  ;;  %v3458_v28 = vadd.f32 %v4214_v51, %v3457_v54  ;;  %v3541_v59 = vadd.f32 %v6712_v61, %v3518_v50  ;;  %v3559_v12 = vld [vmem:[%s5556_s24 + $0x20] sm:$0xff]  ;;  %v3566_v54 = vld [vmem:[%s5556_s24 + $0x58] sm:$0xff] }
 0x424   : > { %v4236_v15 = vpop.f32.mrf.mxu1  ;;  %v4621_v8 = vpop.f32.mrf.mxu0  ;;  %v4235_v21 = vadd.f32 %v4234_v29, %v4233_v16  ;;  %v4232_v16 = vadd.f32 %v6726_v37, %v6719_v34 }
 0x425   : > { %3590 = vst [vmem:[%s6374_s17 + $0x18] sm:$0xff] %v3574_v45  ;;  %v3544_v52 = vadd.f32 %v6712_v61, %v3521_v57  ;;  %v3520_v4 = vadd.f32 %v3458_v28, %v6653_v5  ;;  %v3473_v27 = vadd.f32 %v4621_v8, %v4223_v58  ;;  %v3573_v35 = vadd.f32 %v3557_v48, %v3541_v59  ;;  %v3565_v8 = vld [vmem:[%s5556_s24 + $0x50] sm:$0xff] }
 0x426   : > { %v4237_v49 = vpop.f32.mrf.mxu1  ;;  %v3467_v32 = vpop.f32.mrf.mxu0 }
 0x427   : > { %v3576_v11 = vadd.f32 %v3560_v62, %v3544_v52  ;;  %v3543_v20 = vadd.f32 %v6712_v61, %v3520_v4  ;;  %v3523_v47 = vadd.f32 %v3473_v27, %v6668_v23  ;;  %3589 = vst [vmem:[%s6374_s17 + $0x10] sm:$0xff] %v3573_v35  ;;  %v3468_v5 = vadd.f32 %v4220_v38, %v3467_v32  ;;  %v3568_v38 = vld [vmem:[%s5556_s24 + $0x68] sm:$0xff] }
 0x428   : > { %v4239_v39 = vpop.f32.mrf.mxu1  ;;  %v4624_v46 = vpop.f32.mrf.mxu0  ;;  %v4238_v34 = vadd.f32 %v4237_v49, %v4236_v15 }
 0x429   : > { %3592 = vst [vmem:[%s6374_s17 + $0x28] sm:$0xff] %v3576_v11  ;;  %v3575_v42 = vadd.f32 %v3559_v12, %v3543_v20  ;;  %v3546_v0 = vadd.f32 %v6712_v61, %v3523_v47  ;;  %v3483_v56 = vadd.f32 %v4624_v46, %v4229_v33  ;;  %v3522_v60 = vadd.f32 %v3468_v5, %v6665_v10  ;;  %v3567_v33 = vld [vmem:[%s5556_s24 + $0x60] sm:$0xff] }
 0x42a   : > { %v4240_v9 = vpop.f32.mrf.mxu1  ;;  %v3477_v23 = vpop.f32.mrf.mxu0 }
 0x42b   : > { %3591 = vst [vmem:[%s6374_s17 + $0x20] sm:$0xff] %v3575_v42  ;;  %v3578_v26 = vadd.f32 %v3562_v53, %v3546_v0  ;;  %v3525_v25 = vadd.f32 %v3483_v56, %v6678_v6  ;;  %v3478_v7 = vadd.f32 %v4226_v22, %v3477_v23  ;;  %v3545_v63 = vadd.f32 %v6712_v61, %v3522_v60  ;;  %v3563_v6 = vld [vmem:[%s5556_s24 + $0x40] sm:$0xff]  ;;  %v3569_v42 = vld [vmem:[%s5556_s24 + $0x70] sm:$0xff] }
 0x42c   : > { %v4242_v14 = vpop.f32.mrf.mxu1  ;;  %v4627_v3 = vpop.f32.mrf.mxu0  ;;  %v4241_v41 = vadd.f32 %v4240_v9, %v4239_v39  ;;  %v3570_v39 = vld [vmem:[%s5556_s24 + $0x78] sm:$0xff]  ;;  %s5207_s24 = smov [#allocation12]  }
 0x42d   : > { %3594 = vst [vmem:[%s6374_s17 + $0x38] sm:$0xff] %v3578_v26  ;;  %v3548_v10 = vadd.f32 %v6712_v61, %v3525_v25  ;;  %v3524_v36 = vadd.f32 %v3478_v7, %v6675_v31  ;;  %v3493_v44 = vadd.f32 %v4627_v3, %v4235_v21  ;;  %v3577_v2 = vadd.f32 %v3561_v40, %v3545_v63  ;;  %s5043_s1 = sshll.u32 %s5207_s24, 4  ;;  %s5044_s1 = int_to_ptr.vmem [resolvable:$false] %s5043_s1 }
 0x42e   : > { %v4243_v51 = vpop.f32.mrf.mxu1  ;;  %v3487_v43 = vpop.f32.mrf.mxu0  ;;  %s5045_s20 = scalar_lea.vmem %s5044_s1, 4096  ;;  %p5046_p7 = scmp.lt.s32.totalorder %s6800_s12, %s5044_s1 }
 0x42f   : > { %v3580_v24 = vadd.f32 %v3564_v13, %v3548_v10  ;;  %v3547_v50 = vadd.f32 %v6712_v61, %v3524_v36  ;;  %v3527_v29 = vadd.f32 %v3493_v44, %v6686_v1  ;;  %3593 = vst [vmem:[%s6374_s17 + $0x30] sm:$0xff] %v3577_v2  ;;  %v3488_v31 = vadd.f32 %v4232_v16, %v3487_v43  ;;  %p5047_p3 = scmp.lt.s32.totalorder %s5045_s20, %s5039_s11 }
 0x430   : > { %v4245_v58 = vpop.f32.mrf.mxu1  ;;  %v4630_v45 = vpop.f32.mrf.mxu0 }
 0x431   : > { %3596 = vst [vmem:[%s6374_s17 + $0x48] sm:$0xff] %v3580_v24  ;;  %v3579_v37 = vadd.f32 %v3563_v6, %v3547_v50  ;;  %v3550_v48 = vadd.f32 %v6712_v61, %v3527_v29  ;;  %v3503_v57 = vadd.f32 %v4630_v45, %v4241_v41  ;;  %v3526_v28 = vadd.f32 %v3488_v31, %v6683_v18  ;;  %p5048_p10 = por %p5047_p3, %p5046_p7 }
 0x432   : > { %v4246_v59 = vpop.f32.mrf.mxu1  ;;  %v3497_v1 = vpop.f32.mrf.mxu0  ;;  %v4244_v18 = vadd.f32 %v4243_v51, %v4242_v14 }
 0x433   : > { %3595 = vst [vmem:[%s6374_s17 + $0x40] sm:$0xff] %v3579_v37  ;;  %v3582_v62 = vadd.f32 %v3566_v54, %v3550_v48  ;;  %v3529_v52 = vadd.f32 %v3503_v57, %v6697_v19  ;;  %v4247_v4 = vadd.f32 %v4246_v59, %v4245_v58  ;;  %v3498_v27 = vadd.f32 %v4238_v34, %v3497_v1  ;;  %p5049_p4 = pnand %p5048_p10, %p5042_p5 }
 0x434   : > { %v3549_v15 = vadd.f32 %v6712_v61, %v3526_v28  ;;  %v4633_v35 = vpop.f32.mrf.mxu0 }
 0x435   : > { %3598 = vst [vmem:[%s6374_s17 + $0x58] sm:$0xff] %v3582_v62  ;;  %v3552_v12 = vadd.f32 %v6712_v61, %v3529_v52  ;;  %v3528_v49 = vadd.f32 %v3498_v27, %v6693_v55  ;;  %v3513_v32 = vadd.f32 %v4633_v35, %v4247_v4 }
 0x436   : > { %v3581_v19 = vadd.f32 %v3565_v8, %v3549_v15  ;;  %v3507_v11 = vpop.f32.mrf.mxu0 }
 0x437   : > { %v3584_v20 = vadd.f32 %v3568_v38, %v3552_v12  ;;  %v3551_v47 = vadd.f32 %v6712_v61, %v3528_v49  ;;  %v3531_v53 = vadd.f32 %v3513_v32, %v6716_v30  ;;  %v3508_v5 = vadd.f32 %v4244_v18, %v3507_v11 }
 0x438   : > { %3597 = vst [vmem:[%s6374_s17 + $0x50] sm:$0xff] %v3581_v19 }
 0x439   : > { %3600 = vst [vmem:[%s6374_s17 + $0x68] sm:$0xff] %v3584_v20  ;;  %v3583_v55 = vadd.f32 %v3567_v33, %v3551_v47  ;;  %v3554_v46 = vadd.f32 %v6712_v61, %v3531_v53  ;;  %v3530_v22 = vadd.f32 %v3508_v5, %v6705_v17 }
 0x43b   : > { %3599 = vst [vmem:[%s6374_s17 + $0x60] sm:$0xff] %v3583_v55  ;;  %v3586_v0 = vadd.f32 %v3570_v39, %v3554_v46  ;;  %v3553_v30 = vadd.f32 %v6712_v61, %v3530_v22 }
 0x43d   : > { %3602 = vst [vmem:[%s6374_s17 + $0x78] sm:$0xff] %v3586_v0  ;;  %v3585_v56 = vadd.f32 %v3569_v42, %v3553_v30 }
 0x43f   : > { %3601 = vst [vmem:[%s6374_s17 + $0x70] sm:$0xff] %v3585_v56 }
 0x440   : > { %5052 = shalt.err (!%p5049_p4)
}
 0x441   : > { %s5053_s17 = scalar_lea.hbm %s6798_s15, 2048  ;;  %s5057_s0 = scalar_lea.hbm %s6979_s3, 8192 }
 0x442   : > { %p5054_p2 = scmp.ne.s32.totalorder %s6798_s15, %s5053_s17  ;;  %p5058_p6 = scmp.lt.s32.totalorder %s6798_s15, %s6979_s3 }
 0x443   : > { %p5059_p11 = scmp.lt.s32.totalorder %s5057_s0, %s5053_s17 }
 0x444   : > { %p5055_p0 = pnand %p5054_p2, %p6980_p9 }
 0x445   : > { %p5060_p1 = por %p5059_p11, %p5058_p6 }
 0x446   : > { %p5056_p8 = pneg %p5055_p0 }
 0x448   : > { %p5061_p13 = pnand %p5060_p1, %p5056_p8 }
 0x44a   : > { %5064 = shalt.err (!%p5061_p13)
}
 0x44b   : > { %s5208_s13 = smov 128   ;;  %s5209_s25 = smov 8  }
 0x44c   : > { %4648 = dma.vmem_to_hbm [thread:$0]  (%p6980_p9), %s6800_s12, 2048, %s6798_s15, %s3604_s5, %s5208_s13, %s5208_s13, %s5209_s25  }
 0x44d PF: > { %p4676_p12 = scmp.ge.s32.totalorder %s5195_s14, 2  ;;  %s3635_s21 = sand.u32 1, %s5167_s30  }
 0x44e   : > { %p6981_p5 = scmp.ne.s32.totalorder %s6947_s6, 0  ;;  %s3636_s26 = scalar_lea.sflag [#allocation5], %s3635_s21 }
 0x450   : > { %p4668_p7 = pnand %p4676_p12, %p6981_p5 }
 0x452   : > { %p4669_p3 = pneg %p4668_p7 }
 0x454   : > { %5138 = dma.done.wait (%p4669_p3), %s3636_s26, 2048  }
 0x455   : > { %5140 = vsyncadd (%p4669_p3), %s3636_s26, 4294965248  ;;  %s27_s14 = sadd.s32 1, %s5195_s14   ;;  %s6983_s24 = sld [smem:[#allocation19_spill]] }
 0x456   : > { %p6832_p10 = scmp.ge.s32.totalorder %s27_s14, 6   ;;  %s6984_s25 = sld [smem:[#allocation20_spill]] }
 0x457   : > { %s6985_s27 = sld [smem:[#allocation21_spill]]  ;;  %s6991_s26 = smov %s7012_s4 }
 0x458   : > { %s6986_s18 = sld [smem:[#allocation31_spill]]  ;;  %s6992_s28 = smov %s5163_s29 }
 0x459   : > { %s6987_s10 = sld [smem:[#allocation24_spill]]  ;;  %s6994_s30 = smov %s5171_s8 }
 0x45a   : > { %s6988_s11 = sld [smem:[#allocation25_spill]]  ;;  %s6995_s8 = smov %s5175_s9 }
 0x45b   : > { %s6989_s12 = sld [smem:[#allocation27_spill]]  ;;  %s6996_s9 = smov %s5452_s7 }
 0x45c   : > { %s6990_s13 = sld [smem:[#allocation28_spill]]  ;;  %26 = sbr.rel (!%p6832_p10) target bundleno = 22 (0x16), region = 140 }
 0x45e   : > { %s6993_s29 = smov %s6986_s18 }
 0x461   :  { %3641 = vsyncpa [#allocation4], 1 }
 0x462   :  { %3643 = vsyncpa [#allocation4 + $0x1], 1 }
 0x463   :  { %3644 = vsyncpa [#allocation7], 1 }
 0x464   :  { %3646 = vsyncpa [#allocation7 + $0x1], 1 }
 0x465   :  { %3647 = vsyncpa [#allocation10], 1 }
 0x466   :  { %3648 = vsyncpa [#allocation5], 1 }
 0x467   :  { %3650 = vsyncpa [#allocation5 + $0x1], 1 }

</bundles_post_ra>
